<compile_context>
chip_gen: v7x
topology: tpu7x:2x2x1
jax: 0.10.0
libtpu: 0.0.40
codegen_flags: <defaults>
</compile_context>

<pallas_src>
import functools

import jax
import jax.numpy as jnp
from jax.experimental import pallas as pl
from jax.experimental.pallas import tpu as pltpu

HS = 128          # state GRU hidden size
HN = 64           # news GRU hidden size
HC = 256          # fused hidden width: [h_state(128) | h_news(64) | pad(64)]
G = 3 * HC        # fused gate width (r|z|n), 256 lanes per gate


def _round8(x):
    return (x + 7) // 8 * 8


# ----------------------------------------------------------------------------
# Fused Actor kernel.
# PyTorch GRU gate order (r, z, n):
#   r = sigmoid(x Wir + bir + h Whr + bhr)
#   z = sigmoid(x Wiz + biz + h Whz + bhz)
#   n = tanh  (x Win + bin + r * (h Whn + bhn))
#   h' = (1 - z) * n + z * h
# Both GRUs share one fused hidden vector h = [h_state | h_news | 0] and one
# block-diagonal W_hh; b_hh for r/z is pre-folded into the input bias slab.
# ----------------------------------------------------------------------------
def _make_actor_kernel(B, T, s_dim, n_dim, a_dim, row_ihn, row_hh):
    BT = B * T
    # bias slab lane offsets: [b_gi | b_hh_n | b1 | b2 | b3]
    o_bgi = 0
    o_bhhn = G
    o_b1 = G + HC
    o_b2 = o_b1 + 384
    o_b3 = o_b2 + 256

    def kernel(state_ref, news_ref, gru_w_ref, bias_ref,
               w1_ref, w2_ref, w3_ref,
               out_ref, hfin_ref, hist_scr):
        f32 = jnp.float32

        # ---- GRU input projections, hoisted off the serial chain -----------
        xs = state_ref[...].reshape(BT, s_dim)
        xn = news_ref[...].reshape(BT, n_dim)
        gi = (jnp.dot(xs, gru_w_ref[0:s_dim, :], preferred_element_type=f32)
              + jnp.dot(xn, gru_w_ref[row_ihn:row_ihn + n_dim, :],
                        preferred_element_type=f32)
              + bias_ref[:, o_bgi:o_bgi + G])
        gi = gi.reshape(B, T, G)

        bhh_n = bias_ref[:, o_bhhn:o_bhhn + HC]          # tiny (2 vregs)

        # ---- fused recurrence: one matmul / sigmoid / tanh per step --------
        h = jnp.zeros((B, HC), f32)
        for t in range(T):                       # T small & static -> unrolled
            gi_t = gi[:, t, :]                                       # (B, 768)
            gh = jnp.dot(h, gru_w_ref[row_hh:row_hh + HC, :],
                         preferred_element_type=f32)                 # (B, 768)
            rz = jax.nn.sigmoid(gi_t[:, 0:2 * HC] + gh[:, 0:2 * HC])
            r = rz[:, 0:HC]
            z = rz[:, HC:2 * HC]
            n = jnp.tanh(gi_t[:, 2 * HC:3 * HC]
                         + r * (gh[:, 2 * HC:3 * HC] + bhh_n))
            h = (1.0 - z) * n + z * h
            hist_scr[t * B:(t + 1) * B, :] = h        # one contiguous store

        hfin_ref[...] = h                             # [h_state | h_news | 0]

        # ---- all FC heads + softmax, once over the flat (B*T, .) history ---
        hist = hist_scr[...]                                        # (BT, 256)
        # stage 1: fc_s_1 | fc_pg_1 | fc_n_1 (+relu)
        h1 = jnp.maximum(
            jnp.dot(hist, w1_ref[...], preferred_element_type=f32)
            + bias_ref[:, o_b1:o_b1 + 384], 0.0)                    # s1|p1|n1
        # stage 2: fc_s_2 | fc_pg_2 | fc_n_out
        h2 = (jnp.dot(h1, w2_ref[...], preferred_element_type=f32)
              + bias_ref[:, o_b2:o_b2 + 256])                       # s2|p2|nv
        sp2 = jnp.maximum(h2[:, 0:128], 0.0)          # relu on s2|p2 only
        n_val = h2[:, 128:129]                        # fc_n_out (no relu)
        # stage 3: fc_pg_out (lanes 0:a_dim) | fc_s_out (lane a_dim)
        h3 = (jnp.dot(sp2, w3_ref[...], preferred_element_type=f32)
              + bias_ref[:, o_b3:o_b3 + 128])

        lane = jax.lax.broadcasted_iota(jnp.int32, (BT, 128), 1)
        is_logit = lane < a_dim
        logits = jnp.where(is_logit, h3, -1e30)
        m = jnp.max(logits, axis=-1, keepdims=True)
        e = jnp.exp(logits - m)                       # pad lanes -> exactly 0
        probs = e * pl.reciprocal(jnp.sum(e, axis=-1, keepdims=True),
                                  approx=True)

        sn_lane = (lane == a_dim).astype(f32)
        s_val = jnp.sum(h3 * sn_lane, axis=-1, keepdims=True)        # fc_s_out
        # lane-dense output slab: [softmax(pn) | sn | zeros]
        out_ref[...] = probs + (s_val * n_val) * sn_lane

    return kernel


# ----------------------------------------------------------------------------
# Wrapper: single pallas_call, no wrapper-side compute besides tiny re-layout
# of the lane-dense kernel outputs.
# ----------------------------------------------------------------------------
@functools.partial(jax.jit, static_argnames=("a_dim",))
def actor_forward(state, news, w, *, a_dim):
    B, T, s_dim = state.shape
    n_dim = news.shape[-1]
    row_ihn = _round8(s_dim)
    row_hh = row_ihn + _round8(n_dim)

    kernel = _make_actor_kernel(B, T, s_dim, n_dim, a_dim, row_ihn, row_hh)
    out_slab, h_fin = pl.pallas_call(
        kernel,
        out_shape=(
            jax.ShapeDtypeStruct((B * T, 128), jnp.float32),   # [pn | sn | 0]
            jax.ShapeDtypeStruct((B, HC), jnp.float32),        # final hidden
        ),
        in_specs=[pl.BlockSpec(memory_space=pltpu.MemorySpace.VMEM)] * 7,
        out_specs=(pl.BlockSpec(memory_space=pltpu.MemorySpace.VMEM),
                   pl.BlockSpec(memory_space=pltpu.MemorySpace.VMEM)),
        scratch_shapes=[pltpu.VMEM((B * T, HC), jnp.float32)],  # h history
    )(state, news, w["gru_w"], w["bias"], w["w1"], w["w2"], w["w3"])

    slab = jnp.transpose(out_slab.reshape(T, B, 128), (1, 0, 2))   # (B, T, 128)
    pn = slab[:, :, 0:a_dim]
    sn = slab[:, :, a_dim:a_dim + 1]
    hs = h_fin[None, :, 0:HS]
    hn = h_fin[None, :, HS:HS + HN]
    return pn, sn, hs, hn


# ----------------------------------------------------------------------------
# Parameters: "logical" PyTorch-equivalent layout + packing for the kernel
# ----------------------------------------------------------------------------
def init_params(key, s_dim, a_dim, n_dim):
    keys = jax.random.split(key, 24)
    it = iter(keys)

    def w(shape, scale=0.1):
        return (scale * jax.random.normal(next(it), shape)).astype(jnp.float32)

    p = {}
    # state_gru: nn.GRU(s_dim, 128) -- weights stored (in, 3H), gate order r|z|n
    p["sg_wih"], p["sg_whh"] = w((s_dim, 3 * HS)), w((HS, 3 * HS))
    p["sg_bih"], p["sg_bhh"] = w((1, 3 * HS)), w((1, 3 * HS))
    # news_gru: nn.GRU(n_dim, 64)
    p["ng_wih"], p["ng_whh"] = w((n_dim, 3 * HN)), w((HN, 3 * HN))
    p["ng_bih"], p["ng_bhh"] = w((1, 3 * HN)), w((1, 3 * HN))
    # linear heads, weights stored (in, out)
    p["ws1"], p["bs1"] = w((128, 128)), w((1, 128))
    p["ws2"], p["bs2"] = w((128, 64)), w((1, 64))
    p["wso"], p["bso"] = w((64, 1)), w((1, 1))
    p["wp1"], p["bp1"] = w((128, 128)), w((1, 128))
    p["wp2"], p["bp2"] = w((128, 64)), w((1, 64))
    p["wpo"], p["bpo"] = w((64, a_dim)), w((1, a_dim))
    p["wn1"], p["bn1"] = w((64, 32)), w((1, 32))
    p["wno"], p["bno"] = w((32, 1)), w((1, 1))
    return p


def pack_params(p, s_dim, a_dim, n_dim):
    """Re-layout parameters into fused, lane-aligned slabs (outside hot path)."""
    f32 = jnp.float32
    assert a_dim + 1 <= 128 and n_dim <= 8 * ((n_dim + 7) // 8)

    row_ihn = _round8(s_dim)
    row_hh = row_ihn + _round8(n_dim)

    # ---- GRU slab: [W_ih_state ; W_ih_news ; block-diag W_hh], width 768 ----
    gru_w = jnp.zeros((row_hh + HC, G), f32)
    whh = jnp.zeros((HC, G), f32)
    b_gi = jnp.zeros((1, G), f32)
    bhh_n = jnp.zeros((1, HC), f32)
    for g in range(3):                       # gate order r, z, n
        c0 = g * HC
        gru_w = gru_w.at[0:s_dim, c0:c0 + HS].set(
            p["sg_wih"][:, g * HS:(g + 1) * HS])
        gru_w = gru_w.at[row_ihn:row_ihn + n_dim, c0 + HS:c0 + HS + HN].set(
            p["ng_wih"][:, g * HN:(g + 1) * HN])
        whh = whh.at[0:HS, c0:c0 + HS].set(p["sg_whh"][:, g * HS:(g + 1) * HS])
        whh = whh.at[HS:HS + HN, c0 + HS:c0 + HS + HN].set(
            p["ng_whh"][:, g * HN:(g + 1) * HN])
        bs = p["sg_bih"][:, g * HS:(g + 1) * HS]
        bn = p["ng_bih"][:, g * HN:(g + 1) * HN]
        if g < 2:   # r, z gates: fold b_hh into the input-side bias
            bs = bs + p["sg_bhh"][:, g * HS:(g + 1) * HS]
            bn = bn + p["ng_bhh"][:, g * HN:(g + 1) * HN]
        b_gi = b_gi.at[:, c0:c0 + HS].set(bs)
        b_gi = b_gi.at[:, c0 + HS:c0 + HS + HN].set(bn)
    gru_w = gru_w.at[row_hh:row_hh + HC, :].set(whh)
    bhh_n = bhh_n.at[:, 0:HS].set(p["sg_bhh"][:, 2 * HS:3 * HS])
    bhh_n = bhh_n.at[:, HS:HS + HN].set(p["ng_bhh"][:, 2 * HN:3 * HN])

    # ---- head slab 1: [fc_s_1 | fc_pg_1 | fc_n_1 | 0] -----------------------
    w1 = jnp.zeros((HC, 384), f32)
    w1 = w1.at[0:HS, 0:HS].set(p["ws1"])
    w1 = w1.at[0:HS, HS:2 * HS].set(p["wp1"])
    w1 = w1.at[HS:HS + HN, 2 * HS:2 * HS + 32].set(p["wn1"])
    b1 = jnp.zeros((1, 384), f32)
    b1 = b1.at[:, 0:HS].set(p["bs1"])
    b1 = b1.at[:, HS:2 * HS].set(p["bp1"])
    b1 = b1.at[:, 2 * HS:2 * HS + 32].set(p["bn1"])

    # ---- head slab 2: [fc_s_2 | fc_pg_2 | fc_n_out | 0] ---------------------
    w2 = jnp.zeros((384, HC), f32)
    w2 = w2.at[0:HS, 0:HN].set(p["ws2"])
    w2 = w2.at[HS:2 * HS, HN:2 * HN].set(p["wp2"])
    w2 = w2.at[2 * HS:2 * HS + 32, 2 * HN:2 * HN + 1].set(p["wno"])
    b2 = jnp.zeros((1, HC), f32)
    b2 = b2.at[:, 0:HN].set(p["bs2"])
    b2 = b2.at[:, HN:2 * HN].set(p["bp2"])
    b2 = b2.at[:, 2 * HN:2 * HN + 1].set(p["bno"])

    # ---- head slab 3: fc_pg_out -> lanes 0:a_dim, fc_s_out -> lane a_dim ----
    w3 = jnp.zeros((HS, HS), f32)
    w3 = w3.at[0:HN, a_dim:a_dim + 1].set(p["wso"])
    w3 = w3.at[HN:2 * HN, 0:a_dim].set(p["wpo"])
    b3 = jnp.zeros((1, HS), f32)
    b3 = b3.at[:, 0:a_dim].set(p["bpo"])
    b3 = b3.at[:, a_dim:a_dim + 1].set(p["bso"])

    bias = jnp.concatenate([b_gi, bhh_n, b1, b2, b3], axis=1)  # (1, 1792)
    return {"gru_w": gru_w, "bias": bias, "w1": w1, "w2": w2, "w3": w3}


# ----------------------------------------------------------------------------
# Pure-JAX reference (for correctness checking against the Pallas kernel)
# ----------------------------------------------------------------------------
def gru_ref(x, w_ih, w_hh, b_ih, b_hh):
    B, T, _ = x.shape
    H = w_hh.shape[0]

    def step(h, x_t):
        gi = x_t @ w_ih + b_ih
        gh = h @ w_hh + b_hh
        r = jax.nn.sigmoid(gi[:, 0:H] + gh[:, 0:H])
        z = jax.nn.sigmoid(gi[:, H:2 * H] + gh[:, H:2 * H])
        n = jnp.tanh(gi[:, 2 * H:3 * H] + r * gh[:, 2 * H:3 * H])
        h_new = (1.0 - z) * n + z * h
        return h_new, h_new

    h0 = jnp.zeros((B, H), jnp.float32)
    h_last, ys = jax.lax.scan(step, h0, jnp.transpose(x, (1, 0, 2)))
    return jnp.transpose(ys, (1, 0, 2)), h_last[None]


def actor_ref(state, news, p):
    relu = jax.nn.relu
    s_out, hs = gru_ref(state, p["sg_wih"], p["sg_whh"], p["sg_bih"], p["sg_bhh"])
    n_out, hn = gru_ref(news, p["ng_wih"], p["ng_whh"], p["ng_bih"], p["ng_bhh"])
    s1 = relu(s_out @ p["ws1"] + p["bs1"])
    s2 = relu(s1 @ p["ws2"] + p["bs2"])
    n1 = relu(n_out @ p["wn1"] + p["bn1"])
    n_val = n1 @ p["wno"] + p["bno"]
    sn = (s2 @ p["wso"] + p["bso"]) * n_val
    p1 = relu(s_out @ p["wp1"] + p["bp1"])
    p2 = relu(p1 @ p["wp2"] + p["bp2"])
    pn = jax.nn.softmax(p2 @ p["wpo"] + p["bpo"], axis=-1)
    return pn, sn, hs, hn


if __name__ == "__main__":
    s_dim, a_dim, b_dim, n_dim = 10, 3, 2, 6
    T = 8  # sequence length

    key = jax.random.PRNGKey(0)
    k_state, k_news, k_params = jax.random.split(key, 3)

    state = jax.random.normal(k_state, (b_dim, T, s_dim), dtype=jnp.float32)
    news = jax.random.normal(k_news, (b_dim, T, n_dim), dtype=jnp.float32)
    params = init_params(k_params, s_dim, a_dim, n_dim)
    packed = pack_params(params, s_dim, a_dim, n_dim)

    pn_out, sn_out, hs, hn = actor_forward(state, news, packed, a_dim=a_dim)
    jax.block_until_ready((pn_out, sn_out, hs, hn))

    # shape / sanity checks
    assert pn_out.shape == (b_dim, T, a_dim)
    assert sn_out.shape == (b_dim, T, 1)
    assert hs.shape == (1, b_dim, HS)
    assert hn.shape == (1, b_dim, HN)
    assert bool(jnp.all(jnp.isfinite(pn_out))) and bool(jnp.all(jnp.isfinite(sn_out)))
    # softmax rows sum to ~1 (tolerance covers the approx-reciprocal normalization)
    assert jnp.allclose(jnp.sum(pn_out, axis=-1), 1.0, atol=1e-2)

    # numerical check against the pure-JAX reference.  The tolerance covers the
    # precision difference between the Pallas MXU matmul path (+ approximate
    # reciprocal in the softmax) and XLA's default-precision matmuls.
    pn_r, sn_r, hs_r, hn_r = actor_ref(state, news, params)
    for name, got, ref in (("pn", pn_out, pn_r), ("sn", sn_out, sn_r),
                           ("hs", hs, hs_r), ("hn", hn, hn_r)):
        err = float(jnp.max(jnp.abs(got - ref)))
        assert jnp.allclose(got, ref, atol=2e-2, rtol=2e-2), (name, err)

    print("KERNEL_OK")
</pallas_src>

<mosaic_0001>
module attributes {stable_mosaic.version = 11 : i64} {
  func.func @kernel(%arg0: memref<2x8x10xf32, #tpu.memory_space<vmem>>, %arg1: memref<2x8x6xf32, #tpu.memory_space<vmem>>, %arg2: memref<280x768xf32, #tpu.memory_space<vmem>>, %arg3: memref<1x1792xf32, #tpu.memory_space<vmem>>, %arg4: memref<256x384xf32, #tpu.memory_space<vmem>>, %arg5: memref<384x256xf32, #tpu.memory_space<vmem>>, %arg6: memref<128x128xf32, #tpu.memory_space<vmem>>, %arg7: memref<16x128xf32, #tpu.memory_space<vmem>>, %arg8: memref<2x256xf32, #tpu.memory_space<vmem>>, %arg9: memref<16x256xf32, #tpu.memory_space<vmem>>) attributes {dimension_semantics = [], scalar_prefetch = 0 : i64, scratch_operands = 1 : i64, tpu.core_type = #tpu.core_type<tc>} {
    %c0 = arith.constant 0 : index
    %c0_0 = arith.constant 0 : index
    %c0_1 = arith.constant 0 : index
    %0 = vector.load %arg0[%c0, %c0_0, %c0_1] : memref<2x8x10xf32, #tpu.memory_space<vmem>>, vector<2x8x10xf32>
    %1 = vector.shape_cast %0 : vector<2x8x10xf32> to vector<16x10xf32>
    %c0_2 = arith.constant 0 : index
    %c0_3 = arith.constant 0 : index
    %c0_4 = arith.constant 0 : index
    %2 = vector.load %arg1[%c0_2, %c0_3, %c0_4] : memref<2x8x6xf32, #tpu.memory_space<vmem>>, vector<2x8x6xf32>
    %3 = vector.shape_cast %2 : vector<2x8x6xf32> to vector<16x6xf32>
    %c0_5 = arith.constant 0 : index
    %c0_6 = arith.constant 0 : index
    %4 = vector.load %arg2[%c0_5, %c0_6] : memref<280x768xf32, #tpu.memory_space<vmem>>, vector<10x768xf32>
    %cst = arith.constant dense<0.000000e+00> : vector<16x768xf32>
    %5 = tpu.matmul %1, %4, %cst {dimension_numbers = #tpu.dot_dimension_numbers<[1], [0], [0], [1], [0, 0, 1, 1], [], []>} : vector<16x10xf32>, vector<10x768xf32>, vector<16x768xf32> -> vector<16x768xf32>
    %c16 = arith.constant 16 : index
    %c0_7 = arith.constant 0 : index
    %6 = vector.load %arg2[%c16, %c0_7] : memref<280x768xf32, #tpu.memory_space<vmem>>, vector<6x768xf32>
    %cst_8 = arith.constant dense<0.000000e+00> : vector<16x768xf32>
    %7 = tpu.matmul %3, %6, %cst_8 {dimension_numbers = #tpu.dot_dimension_numbers<[1], [0], [0], [1], [0, 0, 1, 1], [], []>} : vector<16x6xf32>, vector<6x768xf32>, vector<16x768xf32> -> vector<16x768xf32>
    %8 = arith.addf %5, %7 : vector<16x768xf32>
    %c0_9 = arith.constant 0 : index
    %c0_10 = arith.constant 0 : index
    %9 = vector.load %arg3[%c0_9, %c0_10] : memref<1x1792xf32, #tpu.memory_space<vmem>>, vector<1x768xf32>
    %10 = vector.broadcast %9 : vector<1x768xf32> to vector<16x768xf32>
    %11 = arith.addf %8, %10 : vector<16x768xf32>
    %12 = vector.shape_cast %11 : vector<16x768xf32> to vector<2x8x768xf32>
    %c0_11 = arith.constant 0 : index
    %c768 = arith.constant 768 : index
    %13 = vector.load %arg3[%c0_11, %c768] : memref<1x1792xf32, #tpu.memory_space<vmem>>, vector<1x256xf32>
    %cst_12 = arith.constant 0.000000e+00 : f32
    %14 = vector.broadcast %cst_12 : f32 to vector<2x256xf32>
    %15 = vector.extract_strided_slice %12 {offsets = [0, 0, 0], sizes = [2, 1, 768], strides = [1, 1, 1]} : vector<2x8x768xf32> to vector<2x1x768xf32>
    %16 = vector.shape_cast %15 : vector<2x1x768xf32> to vector<2x768xf32>
    %c24 = arith.constant 24 : index
    %c0_13 = arith.constant 0 : index
    %17 = vector.load %arg2[%c24, %c0_13] : memref<280x768xf32, #tpu.memory_space<vmem>>, vector<256x768xf32>
    %cst_14 = arith.constant dense<0.000000e+00> : vector<2x768xf32>
    %18 = tpu.matmul %14, %17, %cst_14 {dimension_numbers = #tpu.dot_dimension_numbers<[1], [0], [0], [1], [0, 0, 1, 1], [], []>} : vector<2x256xf32>, vector<256x768xf32>, vector<2x768xf32> -> vector<2x768xf32>
    %19 = vector.extract_strided_slice %16 {offsets = [0, 0], sizes = [2, 512], strides = [1, 1]} : vector<2x768xf32> to vector<2x512xf32>
    %20 = vector.extract_strided_slice %18 {offsets = [0, 0], sizes = [2, 512], strides = [1, 1]} : vector<2x768xf32> to vector<2x512xf32>
    %21 = arith.addf %19, %20 : vector<2x512xf32>
    %22 = arith.negf %21 : vector<2x512xf32>
    %23 = math.exp %22 : vector<2x512xf32>
    %cst_15 = arith.constant 1.000000e+00 : f32
    %24 = vector.broadcast %cst_15 : f32 to vector<2x512xf32>
    %25 = arith.addf %24, %23 : vector<2x512xf32>
    %26 = arith.divf %24, %25 : vector<2x512xf32>
    %27 = vector.extract_strided_slice %26 {offsets = [0, 0], sizes = [2, 256], strides = [1, 1]} : vector<2x512xf32> to vector<2x256xf32>
    %28 = vector.extract_strided_slice %26 {offsets = [0, 256], sizes = [2, 256], strides = [1, 1]} : vector<2x512xf32> to vector<2x256xf32>
    %29 = vector.extract_strided_slice %16 {offsets = [0, 512], sizes = [2, 256], strides = [1, 1]} : vector<2x768xf32> to vector<2x256xf32>
    %30 = vector.extract_strided_slice %18 {offsets = [0, 512], sizes = [2, 256], strides = [1, 1]} : vector<2x768xf32> to vector<2x256xf32>
    %31 = vector.broadcast %13 : vector<1x256xf32> to vector<2x256xf32>
    %32 = arith.addf %30, %31 : vector<2x256xf32>
    %33 = arith.mulf %27, %32 : vector<2x256xf32>
    %34 = arith.addf %29, %33 : vector<2x256xf32>
    %35 = math.tanh %34 : vector<2x256xf32>
    %cst_16 = arith.constant 1.000000e+00 : f32
    %36 = vector.broadcast %cst_16 : f32 to vector<2x256xf32>
    %37 = arith.subf %36, %28 : vector<2x256xf32>
    %38 = arith.mulf %37, %35 : vector<2x256xf32>
    %39 = arith.mulf %28, %14 : vector<2x256xf32>
    %40 = arith.addf %38, %39 : vector<2x256xf32>
    %c0_17 = arith.constant 0 : index
    %c0_18 = arith.constant 0 : index
    %41 = vector.load %arg9[%c0_17, %c0_18] : memref<16x256xf32, #tpu.memory_space<vmem>>, vector<2x256xf32>
    tpu.vector_store %arg9[%c0_17, %c0_18], %40 {strides = array<i32>} : memref<16x256xf32, #tpu.memory_space<vmem>>, vector<2x256xf32>,
    %42 = vector.extract_strided_slice %12 {offsets = [0, 1, 0], sizes = [2, 1, 768], strides = [1, 1, 1]} : vector<2x8x768xf32> to vector<2x1x768xf32>
    %43 = vector.shape_cast %42 : vector<2x1x768xf32> to vector<2x768xf32>
    %c24_19 = arith.constant 24 : index
    %c0_20 = arith.constant 0 : index
    %44 = vector.load %arg2[%c24_19, %c0_20] : memref<280x768xf32, #tpu.memory_space<vmem>>, vector<256x768xf32>
    %cst_21 = arith.constant dense<0.000000e+00> : vector<2x768xf32>
    %45 = tpu.matmul %40, %44, %cst_21 {dimension_numbers = #tpu.dot_dimension_numbers<[1], [0], [0], [1], [0, 0, 1, 1], [], []>} : vector<2x256xf32>, vector<256x768xf32>, vector<2x768xf32> -> vector<2x768xf32>
    %46 = vector.extract_strided_slice %43 {offsets = [0, 0], sizes = [2, 512], strides = [1, 1]} : vector<2x768xf32> to vector<2x512xf32>
    %47 = vector.extract_strided_slice %45 {offsets = [0, 0], sizes = [2, 512], strides = [1, 1]} : vector<2x768xf32> to vector<2x512xf32>
    %48 = arith.addf %46, %47 : vector<2x512xf32>
    %49 = arith.negf %48 : vector<2x512xf32>
    %50 = math.exp %49 : vector<2x512xf32>
    %cst_22 = arith.constant 1.000000e+00 : f32
    %51 = vector.broadcast %cst_22 : f32 to vector<2x512xf32>
    %52 = arith.addf %51, %50 : vector<2x512xf32>
    %53 = arith.divf %51, %52 : vector<2x512xf32>
    %54 = vector.extract_strided_slice %53 {offsets = [0, 0], sizes = [2, 256], strides = [1, 1]} : vector<2x512xf32> to vector<2x256xf32>
    %55 = vector.extract_strided_slice %53 {offsets = [0, 256], sizes = [2, 256], strides = [1, 1]} : vector<2x512xf32> to vector<2x256xf32>
    %56 = vector.extract_strided_slice %43 {offsets = [0, 512], sizes = [2, 256], strides = [1, 1]} : vector<2x768xf32> to vector<2x256xf32>
    %57 = vector.extract_strided_slice %45 {offsets = [0, 512], sizes = [2, 256], strides = [1, 1]} : vector<2x768xf32> to vector<2x256xf32>
    %58 = vector.broadcast %13 : vector<1x256xf32> to vector<2x256xf32>
    %59 = arith.addf %57, %58 : vector<2x256xf32>
    %60 = arith.mulf %54, %59 : vector<2x256xf32>
    %61 = arith.addf %56, %60 : vector<2x256xf32>
    %62 = math.tanh %61 : vector<2x256xf32>
    %cst_23 = arith.constant 1.000000e+00 : f32
    %63 = vector.broadcast %cst_23 : f32 to vector<2x256xf32>
    %64 = arith.subf %63, %55 : vector<2x256xf32>
    %65 = arith.mulf %64, %62 : vector<2x256xf32>
    %66 = arith.mulf %55, %40 : vector<2x256xf32>
    %67 = arith.addf %65, %66 : vector<2x256xf32>
    %c2 = arith.constant 2 : index
    %c0_24 = arith.constant 0 : index
    %68 = vector.load %arg9[%c2, %c0_24] : memref<16x256xf32, #tpu.memory_space<vmem>>, vector<2x256xf32>
    tpu.vector_store %arg9[%c2, %c0_24], %67 {strides = array<i32>} : memref<16x256xf32, #tpu.memory_space<vmem>>, vector<2x256xf32>,
    %69 = vector.extract_strided_slice %12 {offsets = [0, 2, 0], sizes = [2, 1, 768], strides = [1, 1, 1]} : vector<2x8x768xf32> to vector<2x1x768xf32>
    %70 = vector.shape_cast %69 : vector<2x1x768xf32> to vector<2x768xf32>
    %c24_25 = arith.constant 24 : index
    %c0_26 = arith.constant 0 : index
    %71 = vector.load %arg2[%c24_25, %c0_26] : memref<280x768xf32, #tpu.memory_space<vmem>>, vector<256x768xf32>
    %cst_27 = arith.constant dense<0.000000e+00> : vector<2x768xf32>
    %72 = tpu.matmul %67, %71, %cst_27 {dimension_numbers = #tpu.dot_dimension_numbers<[1], [0], [0], [1], [0, 0, 1, 1], [], []>} : vector<2x256xf32>, vector<256x768xf32>, vector<2x768xf32> -> vector<2x768xf32>
    %73 = vector.extract_strided_slice %70 {offsets = [0, 0], sizes = [2, 512], strides = [1, 1]} : vector<2x768xf32> to vector<2x512xf32>
    %74 = vector.extract_strided_slice %72 {offsets = [0, 0], sizes = [2, 512], strides = [1, 1]} : vector<2x768xf32> to vector<2x512xf32>
    %75 = arith.addf %73, %74 : vector<2x512xf32>
    %76 = arith.negf %75 : vector<2x512xf32>
    %77 = math.exp %76 : vector<2x512xf32>
    %cst_28 = arith.constant 1.000000e+00 : f32
    %78 = vector.broadcast %cst_28 : f32 to vector<2x512xf32>
    %79 = arith.addf %78, %77 : vector<2x512xf32>
    %80 = arith.divf %78, %79 : vector<2x512xf32>
    %81 = vector.extract_strided_slice %80 {offsets = [0, 0], sizes = [2, 256], strides = [1, 1]} : vector<2x512xf32> to vector<2x256xf32>
    %82 = vector.extract_strided_slice %80 {offsets = [0, 256], sizes = [2, 256], strides = [1, 1]} : vector<2x512xf32> to vector<2x256xf32>
    %83 = vector.extract_strided_slice %70 {offsets = [0, 512], sizes = [2, 256], strides = [1, 1]} : vector<2x768xf32> to vector<2x256xf32>
    %84 = vector.extract_strided_slice %72 {offsets = [0, 512], sizes = [2, 256], strides = [1, 1]} : vector<2x768xf32> to vector<2x256xf32>
    %85 = vector.broadcast %13 : vector<1x256xf32> to vector<2x256xf32>
    %86 = arith.addf %84, %85 : vector<2x256xf32>
    %87 = arith.mulf %81, %86 : vector<2x256xf32>
    %88 = arith.addf %83, %87 : vector<2x256xf32>
    %89 = math.tanh %88 : vector<2x256xf32>
    %cst_29 = arith.constant 1.000000e+00 : f32
    %90 = vector.broadcast %cst_29 : f32 to vector<2x256xf32>
    %91 = arith.subf %90, %82 : vector<2x256xf32>
    %92 = arith.mulf %91, %89 : vector<2x256xf32>
    %93 = arith.mulf %82, %67 : vector<2x256xf32>
    %94 = arith.addf %92, %93 : vector<2x256xf32>
    %c4 = arith.constant 4 : index
    %c0_30 = arith.constant 0 : index
    %95 = vector.load %arg9[%c4, %c0_30] : memref<16x256xf32, #tpu.memory_space<vmem>>, vector<2x256xf32>
    tpu.vector_store %arg9[%c4, %c0_30], %94 {strides = array<i32>} : memref<16x256xf32, #tpu.memory_space<vmem>>, vector<2x256xf32>,
    %96 = vector.extract_strided_slice %12 {offsets = [0, 3, 0], sizes = [2, 1, 768], strides = [1, 1, 1]} : vector<2x8x768xf32> to vector<2x1x768xf32>
    %97 = vector.shape_cast %96 : vector<2x1x768xf32> to vector<2x768xf32>
    %c24_31 = arith.constant 24 : index
    %c0_32 = arith.constant 0 : index
    %98 = vector.load %arg2[%c24_31, %c0_32] : memref<280x768xf32, #tpu.memory_space<vmem>>, vector<256x768xf32>
    %cst_33 = arith.constant dense<0.000000e+00> : vector<2x768xf32>
    %99 = tpu.matmul %94, %98, %cst_33 {dimension_numbers = #tpu.dot_dimension_numbers<[1], [0], [0], [1], [0, 0, 1, 1], [], []>} : vector<2x256xf32>, vector<256x768xf32>, vector<2x768xf32> -> vector<2x768xf32>
    %100 = vector.extract_strided_slice %97 {offsets = [0, 0], sizes = [2, 512], strides = [1, 1]} : vector<2x768xf32> to vector<2x512xf32>
    %101 = vector.extract_strided_slice %99 {offsets = [0, 0], sizes = [2, 512], strides = [1, 1]} : vector<2x768xf32> to vector<2x512xf32>
    %102 = arith.addf %100, %101 : vector<2x512xf32>
    %103 = arith.negf %102 : vector<2x512xf32>
    %104 = math.exp %103 : vector<2x512xf32>
    %cst_34 = arith.constant 1.000000e+00 : f32
    %105 = vector.broadcast %cst_34 : f32 to vector<2x512xf32>
    %106 = arith.addf %105, %104 : vector<2x512xf32>
    %107 = arith.divf %105, %106 : vector<2x512xf32>
    %108 = vector.extract_strided_slice %107 {offsets = [0, 0], sizes = [2, 256], strides = [1, 1]} : vector<2x512xf32> to vector<2x256xf32>
    %109 = vector.extract_strided_slice %107 {offsets = [0, 256], sizes = [2, 256], strides = [1, 1]} : vector<2x512xf32> to vector<2x256xf32>
    %110 = vector.extract_strided_slice %97 {offsets = [0, 512], sizes = [2, 256], strides = [1, 1]} : vector<2x768xf32> to vector<2x256xf32>
    %111 = vector.extract_strided_slice %99 {offsets = [0, 512], sizes = [2, 256], strides = [1, 1]} : vector<2x768xf32> to vector<2x256xf32>
    %112 = vector.broadcast %13 : vector<1x256xf32> to vector<2x256xf32>
    %113 = arith.addf %111, %112 : vector<2x256xf32>
    %114 = arith.mulf %108, %113 : vector<2x256xf32>
    %115 = arith.addf %110, %114 : vector<2x256xf32>
    %116 = math.tanh %115 : vector<2x256xf32>
    %cst_35 = arith.constant 1.000000e+00 : f32
    %117 = vector.broadcast %cst_35 : f32 to vector<2x256xf32>
    %118 = arith.subf %117, %109 : vector<2x256xf32>
    %119 = arith.mulf %118, %116 : vector<2x256xf32>
    %120 = arith.mulf %109, %94 : vector<2x256xf32>
    %121 = arith.addf %119, %120 : vector<2x256xf32>
    %c6 = arith.constant 6 : index
    %c0_36 = arith.constant 0 : index
    %122 = vector.load %arg9[%c6, %c0_36] : memref<16x256xf32, #tpu.memory_space<vmem>>, vector<2x256xf32>
    tpu.vector_store %arg9[%c6, %c0_36], %121 {strides = array<i32>} : memref<16x256xf32, #tpu.memory_space<vmem>>, vector<2x256xf32>,
    %123 = vector.extract_strided_slice %12 {offsets = [0, 4, 0], sizes = [2, 1, 768], strides = [1, 1, 1]} : vector<2x8x768xf32> to vector<2x1x768xf32>
    %124 = vector.shape_cast %123 : vector<2x1x768xf32> to vector<2x768xf32>
    %c24_37 = arith.constant 24 : index
    %c0_38 = arith.constant 0 : index
    %125 = vector.load %arg2[%c24_37, %c0_38] : memref<280x768xf32, #tpu.memory_space<vmem>>, vector<256x768xf32>
    %cst_39 = arith.constant dense<0.000000e+00> : vector<2x768xf32>
    %126 = tpu.matmul %121, %125, %cst_39 {dimension_numbers = #tpu.dot_dimension_numbers<[1], [0], [0], [1], [0, 0, 1, 1], [], []>} : vector<2x256xf32>, vector<256x768xf32>, vector<2x768xf32> -> vector<2x768xf32>
    %127 = vector.extract_strided_slice %124 {offsets = [0, 0], sizes = [2, 512], strides = [1, 1]} : vector<2x768xf32> to vector<2x512xf32>
    %128 = vector.extract_strided_slice %126 {offsets = [0, 0], sizes = [2, 512], strides = [1, 1]} : vector<2x768xf32> to vector<2x512xf32>
    %129 = arith.addf %127, %128 : vector<2x512xf32>
    %130 = arith.negf %129 : vector<2x512xf32>
    %131 = math.exp %130 : vector<2x512xf32>
    %cst_40 = arith.constant 1.000000e+00 : f32
    %132 = vector.broadcast %cst_40 : f32 to vector<2x512xf32>
    %133 = arith.addf %132, %131 : vector<2x512xf32>
    %134 = arith.divf %132, %133 : vector<2x512xf32>
    %135 = vector.extract_strided_slice %134 {offsets = [0, 0], sizes = [2, 256], strides = [1, 1]} : vector<2x512xf32> to vector<2x256xf32>
    %136 = vector.extract_strided_slice %134 {offsets = [0, 256], sizes = [2, 256], strides = [1, 1]} : vector<2x512xf32> to vector<2x256xf32>
    %137 = vector.extract_strided_slice %124 {offsets = [0, 512], sizes = [2, 256], strides = [1, 1]} : vector<2x768xf32> to vector<2x256xf32>
    %138 = vector.extract_strided_slice %126 {offsets = [0, 512], sizes = [2, 256], strides = [1, 1]} : vector<2x768xf32> to vector<2x256xf32>
    %139 = vector.broadcast %13 : vector<1x256xf32> to vector<2x256xf32>
    %140 = arith.addf %138, %139 : vector<2x256xf32>
    %141 = arith.mulf %135, %140 : vector<2x256xf32>
    %142 = arith.addf %137, %141 : vector<2x256xf32>
    %143 = math.tanh %142 : vector<2x256xf32>
    %cst_41 = arith.constant 1.000000e+00 : f32
    %144 = vector.broadcast %cst_41 : f32 to vector<2x256xf32>
    %145 = arith.subf %144, %136 : vector<2x256xf32>
    %146 = arith.mulf %145, %143 : vector<2x256xf32>
    %147 = arith.mulf %136, %121 : vector<2x256xf32>
    %148 = arith.addf %146, %147 : vector<2x256xf32>
    %c8 = arith.constant 8 : index
    %c0_42 = arith.constant 0 : index
    %149 = vector.load %arg9[%c8, %c0_42] : memref<16x256xf32, #tpu.memory_space<vmem>>, vector<2x256xf32>
    tpu.vector_store %arg9[%c8, %c0_42], %148 {strides = array<i32>} : memref<16x256xf32, #tpu.memory_space<vmem>>, vector<2x256xf32>,
    %150 = vector.extract_strided_slice %12 {offsets = [0, 5, 0], sizes = [2, 1, 768], strides = [1, 1, 1]} : vector<2x8x768xf32> to vector<2x1x768xf32>
    %151 = vector.shape_cast %150 : vector<2x1x768xf32> to vector<2x768xf32>
    %c24_43 = arith.constant 24 : index
    %c0_44 = arith.constant 0 : index
    %152 = vector.load %arg2[%c24_43, %c0_44] : memref<280x768xf32, #tpu.memory_space<vmem>>, vector<256x768xf32>
    %cst_45 = arith.constant dense<0.000000e+00> : vector<2x768xf32>
    %153 = tpu.matmul %148, %152, %cst_45 {dimension_numbers = #tpu.dot_dimension_numbers<[1], [0], [0], [1], [0, 0, 1, 1], [], []>} : vector<2x256xf32>, vector<256x768xf32>, vector<2x768xf32> -> vector<2x768xf32>
    %154 = vector.extract_strided_slice %151 {offsets = [0, 0], sizes = [2, 512], strides = [1, 1]} : vector<2x768xf32> to vector<2x512xf32>
    %155 = vector.extract_strided_slice %153 {offsets = [0, 0], sizes = [2, 512], strides = [1, 1]} : vector<2x768xf32> to vector<2x512xf32>
    %156 = arith.addf %154, %155 : vector<2x512xf32>
    %157 = arith.negf %156 : vector<2x512xf32>
    %158 = math.exp %157 : vector<2x512xf32>
    %cst_46 = arith.constant 1.000000e+00 : f32
    %159 = vector.broadcast %cst_46 : f32 to vector<2x512xf32>
    %160 = arith.addf %159, %158 : vector<2x512xf32>
    %161 = arith.divf %159, %160 : vector<2x512xf32>
    %162 = vector.extract_strided_slice %161 {offsets = [0, 0], sizes = [2, 256], strides = [1, 1]} : vector<2x512xf32> to vector<2x256xf32>
    %163 = vector.extract_strided_slice %161 {offsets = [0, 256], sizes = [2, 256], strides = [1, 1]} : vector<2x512xf32> to vector<2x256xf32>
    %164 = vector.extract_strided_slice %151 {offsets = [0, 512], sizes = [2, 256], strides = [1, 1]} : vector<2x768xf32> to vector<2x256xf32>
    %165 = vector.extract_strided_slice %153 {offsets = [0, 512], sizes = [2, 256], strides = [1, 1]} : vector<2x768xf32> to vector<2x256xf32>
    %166 = vector.broadcast %13 : vector<1x256xf32> to vector<2x256xf32>
    %167 = arith.addf %165, %166 : vector<2x256xf32>
    %168 = arith.mulf %162, %167 : vector<2x256xf32>
    %169 = arith.addf %164, %168 : vector<2x256xf32>
    %170 = math.tanh %169 : vector<2x256xf32>
    %cst_47 = arith.constant 1.000000e+00 : f32
    %171 = vector.broadcast %cst_47 : f32 to vector<2x256xf32>
    %172 = arith.subf %171, %163 : vector<2x256xf32>
    %173 = arith.mulf %172, %170 : vector<2x256xf32>
    %174 = arith.mulf %163, %148 : vector<2x256xf32>
    %175 = arith.addf %173, %174 : vector<2x256xf32>
    %c10 = arith.constant 10 : index
    %c0_48 = arith.constant 0 : index
    %176 = vector.load %arg9[%c10, %c0_48] : memref<16x256xf32, #tpu.memory_space<vmem>>, vector<2x256xf32>
    tpu.vector_store %arg9[%c10, %c0_48], %175 {strides = array<i32>} : memref<16x256xf32, #tpu.memory_space<vmem>>, vector<2x256xf32>,
    %177 = vector.extract_strided_slice %12 {offsets = [0, 6, 0], sizes = [2, 1, 768], strides = [1, 1, 1]} : vector<2x8x768xf32> to vector<2x1x768xf32>
    %178 = vector.shape_cast %177 : vector<2x1x768xf32> to vector<2x768xf32>
    %c24_49 = arith.constant 24 : index
    %c0_50 = arith.constant 0 : index
    %179 = vector.load %arg2[%c24_49, %c0_50] : memref<280x768xf32, #tpu.memory_space<vmem>>, vector<256x768xf32>
    %cst_51 = arith.constant dense<0.000000e+00> : vector<2x768xf32>
    %180 = tpu.matmul %175, %179, %cst_51 {dimension_numbers = #tpu.dot_dimension_numbers<[1], [0], [0], [1], [0, 0, 1, 1], [], []>} : vector<2x256xf32>, vector<256x768xf32>, vector<2x768xf32> -> vector<2x768xf32>
    %181 = vector.extract_strided_slice %178 {offsets = [0, 0], sizes = [2, 512], strides = [1, 1]} : vector<2x768xf32> to vector<2x512xf32>
    %182 = vector.extract_strided_slice %180 {offsets = [0, 0], sizes = [2, 512], strides = [1, 1]} : vector<2x768xf32> to vector<2x512xf32>
    %183 = arith.addf %181, %182 : vector<2x512xf32>
    %184 = arith.negf %183 : vector<2x512xf32>
    %185 = math.exp %184 : vector<2x512xf32>
    %cst_52 = arith.constant 1.000000e+00 : f32
    %186 = vector.broadcast %cst_52 : f32 to vector<2x512xf32>
    %187 = arith.addf %186, %185 : vector<2x512xf32>
    %188 = arith.divf %186, %187 : vector<2x512xf32>
    %189 = vector.extract_strided_slice %188 {offsets = [0, 0], sizes = [2, 256], strides = [1, 1]} : vector<2x512xf32> to vector<2x256xf32>
    %190 = vector.extract_strided_slice %188 {offsets = [0, 256], sizes = [2, 256], strides = [1, 1]} : vector<2x512xf32> to vector<2x256xf32>
    %191 = vector.extract_strided_slice %178 {offsets = [0, 512], sizes = [2, 256], strides = [1, 1]} : vector<2x768xf32> to vector<2x256xf32>
    %192 = vector.extract_strided_slice %180 {offsets = [0, 512], sizes = [2, 256], strides = [1, 1]} : vector<2x768xf32> to vector<2x256xf32>
    %193 = vector.broadcast %13 : vector<1x256xf32> to vector<2x256xf32>
    %194 = arith.addf %192, %193 : vector<2x256xf32>
    %195 = arith.mulf %189, %194 : vector<2x256xf32>
    %196 = arith.addf %191, %195 : vector<2x256xf32>
    %197 = math.tanh %196 : vector<2x256xf32>
    %cst_53 = arith.constant 1.000000e+00 : f32
    %198 = vector.broadcast %cst_53 : f32 to vector<2x256xf32>
    %199 = arith.subf %198, %190 : vector<2x256xf32>
    %200 = arith.mulf %199, %197 : vector<2x256xf32>
    %201 = arith.mulf %190, %175 : vector<2x256xf32>
    %202 = arith.addf %200, %201 : vector<2x256xf32>
    %c12 = arith.constant 12 : index
    %c0_54 = arith.constant 0 : index
    %203 = vector.load %arg9[%c12, %c0_54] : memref<16x256xf32, #tpu.memory_space<vmem>>, vector<2x256xf32>
    tpu.vector_store %arg9[%c12, %c0_54], %202 {strides = array<i32>} : memref<16x256xf32, #tpu.memory_space<vmem>>, vector<2x256xf32>,
    %204 = vector.extract_strided_slice %12 {offsets = [0, 7, 0], sizes = [2, 1, 768], strides = [1, 1, 1]} : vector<2x8x768xf32> to vector<2x1x768xf32>
    %205 = vector.shape_cast %204 : vector<2x1x768xf32> to vector<2x768xf32>
    %c24_55 = arith.constant 24 : index
    %c0_56 = arith.constant 0 : index
    %206 = vector.load %arg2[%c24_55, %c0_56] : memref<280x768xf32, #tpu.memory_space<vmem>>, vector<256x768xf32>
    %cst_57 = arith.constant dense<0.000000e+00> : vector<2x768xf32>
    %207 = tpu.matmul %202, %206, %cst_57 {dimension_numbers = #tpu.dot_dimension_numbers<[1], [0], [0], [1], [0, 0, 1, 1], [], []>} : vector<2x256xf32>, vector<256x768xf32>, vector<2x768xf32> -> vector<2x768xf32>
    %208 = vector.extract_strided_slice %205 {offsets = [0, 0], sizes = [2, 512], strides = [1, 1]} : vector<2x768xf32> to vector<2x512xf32>
    %209 = vector.extract_strided_slice %207 {offsets = [0, 0], sizes = [2, 512], strides = [1, 1]} : vector<2x768xf32> to vector<2x512xf32>
    %210 = arith.addf %208, %209 : vector<2x512xf32>
    %211 = arith.negf %210 : vector<2x512xf32>
    %212 = math.exp %211 : vector<2x512xf32>
    %cst_58 = arith.constant 1.000000e+00 : f32
    %213 = vector.broadcast %cst_58 : f32 to vector<2x512xf32>
    %214 = arith.addf %213, %212 : vector<2x512xf32>
    %215 = arith.divf %213, %214 : vector<2x512xf32>
    %216 = vector.extract_strided_slice %215 {offsets = [0, 0], sizes = [2, 256], strides = [1, 1]} : vector<2x512xf32> to vector<2x256xf32>
    %217 = vector.extract_strided_slice %215 {offsets = [0, 256], sizes = [2, 256], strides = [1, 1]} : vector<2x512xf32> to vector<2x256xf32>
    %218 = vector.extract_strided_slice %205 {offsets = [0, 512], sizes = [2, 256], strides = [1, 1]} : vector<2x768xf32> to vector<2x256xf32>
    %219 = vector.extract_strided_slice %207 {offsets = [0, 512], sizes = [2, 256], strides = [1, 1]} : vector<2x768xf32> to vector<2x256xf32>
    %220 = vector.broadcast %13 : vector<1x256xf32> to vector<2x256xf32>
    %221 = arith.addf %219, %220 : vector<2x256xf32>
    %222 = arith.mulf %216, %221 : vector<2x256xf32>
    %223 = arith.addf %218, %222 : vector<2x256xf32>
    %224 = math.tanh %223 : vector<2x256xf32>
    %cst_59 = arith.constant 1.000000e+00 : f32
    %225 = vector.broadcast %cst_59 : f32 to vector<2x256xf32>
    %226 = arith.subf %225, %217 : vector<2x256xf32>
    %227 = arith.mulf %226, %224 : vector<2x256xf32>
    %228 = arith.mulf %217, %202 : vector<2x256xf32>
    %229 = arith.addf %227, %228 : vector<2x256xf32>
    %c14 = arith.constant 14 : index
    %c0_60 = arith.constant 0 : index
    %230 = vector.load %arg9[%c14, %c0_60] : memref<16x256xf32, #tpu.memory_space<vmem>>, vector<2x256xf32>
    tpu.vector_store %arg9[%c14, %c0_60], %229 {strides = array<i32>} : memref<16x256xf32, #tpu.memory_space<vmem>>, vector<2x256xf32>,
    %c0_61 = arith.constant 0 : index
    %c0_62 = arith.constant 0 : index
    %231 = vector.load %arg8[%c0_61, %c0_62] : memref<2x256xf32, #tpu.memory_space<vmem>>, vector<2x256xf32>
    tpu.vector_store %arg8[%c0_61, %c0_62], %229 {strides = array<i32>} : memref<2x256xf32, #tpu.memory_space<vmem>>, vector<2x256xf32>,
    %c0_63 = arith.constant 0 : index
    %c0_64 = arith.constant 0 : index
    %232 = vector.load %arg9[%c0_63, %c0_64] : memref<16x256xf32, #tpu.memory_space<vmem>>, vector<16x256xf32>
    %c0_65 = arith.constant 0 : index
    %c0_66 = arith.constant 0 : index
    %233 = vector.load %arg4[%c0_65, %c0_66] : memref<256x384xf32, #tpu.memory_space<vmem>>, vector<256x384xf32>
    %cst_67 = arith.constant dense<0.000000e+00> : vector<16x384xf32>
    %234 = tpu.matmul %232, %233, %cst_67 {dimension_numbers = #tpu.dot_dimension_numbers<[1], [0], [0], [1], [0, 0, 1, 1], [], []>} : vector<16x256xf32>, vector<256x384xf32>, vector<16x384xf32> -> vector<16x384xf32>
    %c0_68 = arith.constant 0 : index
    %c1024 = arith.constant 1024 : index
    %235 = vector.load %arg3[%c0_68, %c1024] : memref<1x1792xf32, #tpu.memory_space<vmem>>, vector<1x384xf32>
    %236 = vector.broadcast %235 : vector<1x384xf32> to vector<16x384xf32>
    %237 = arith.addf %234, %236 : vector<16x384xf32>
    %cst_69 = arith.constant 0.000000e+00 : f32
    %238 = vector.broadcast %cst_69 : f32 to vector<16x384xf32>
    %239 = arith.maximumf %237, %238 : vector<16x384xf32>
    %c0_70 = arith.constant 0 : index
    %c0_71 = arith.constant 0 : index
    %240 = vector.load %arg5[%c0_70, %c0_71] : memref<384x256xf32, #tpu.memory_space<vmem>>, vector<384x256xf32>
    %cst_72 = arith.constant dense<0.000000e+00> : vector<16x256xf32>
    %241 = tpu.matmul %239, %240, %cst_72 {dimension_numbers = #tpu.dot_dimension_numbers<[1], [0], [0], [1], [0, 0, 1, 1], [], []>} : vector<16x384xf32>, vector<384x256xf32>, vector<16x256xf32> -> vector<16x256xf32>
    %c0_73 = arith.constant 0 : index
    %c1408 = arith.constant 1408 : index
    %242 = vector.load %arg3[%c0_73, %c1408] : memref<1x1792xf32, #tpu.memory_space<vmem>>, vector<1x256xf32>
    %243 = vector.broadcast %242 : vector<1x256xf32> to vector<16x256xf32>
    %244 = arith.addf %241, %243 : vector<16x256xf32>
    %245 = vector.extract_strided_slice %244 {offsets = [0, 0], sizes = [16, 128], strides = [1, 1]} : vector<16x256xf32> to vector<16x128xf32>
    %cst_74 = arith.constant 0.000000e+00 : f32
    %246 = vector.broadcast %cst_74 : f32 to vector<16x128xf32>
    %247 = arith.maximumf %245, %246 : vector<16x128xf32>
    %248 = vector.extract_strided_slice %244 {offsets = [0, 128], sizes = [16, 1], strides = [1, 1]} : vector<16x256xf32> to vector<16x1xf32>
    %c0_75 = arith.constant 0 : index
    %c0_76 = arith.constant 0 : index
    %249 = vector.load %arg6[%c0_75, %c0_76] : memref<128x128xf32, #tpu.memory_space<vmem>>, vector<128x128xf32>
    %cst_77 = arith.constant dense<0.000000e+00> : vector<16x128xf32>
    %250 = tpu.matmul %247, %249, %cst_77 {dimension_numbers = #tpu.dot_dimension_numbers<[1], [0], [0], [1], [0, 0, 1, 1], [], []>} : vector<16x128xf32>, vector<128x128xf32>, vector<16x128xf32> -> vector<16x128xf32>
    %c0_78 = arith.constant 0 : index
    %c1664 = arith.constant 1664 : index
    %251 = vector.load %arg3[%c0_78, %c1664] : memref<1x1792xf32, #tpu.memory_space<vmem>>, vector<1x128xf32>
    %252 = vector.broadcast %251 : vector<1x128xf32> to vector<16x128xf32>
    %253 = arith.addf %250, %252 : vector<16x128xf32>
    %254 = tpu.iota {dimensions = array<i32: 1>} : vector<16x128xi32>
    %c3_i32 = arith.constant 3 : i32
    %255 = vector.broadcast %c3_i32 : i32 to vector<16x128xi32>
    %256 = arith.cmpi slt, %254, %255 : vector<16x128xi32>
    %cst_79 = arith.constant -1.000000e+30 : f32
    %257 = vector.broadcast %cst_79 : f32 to vector<16x128xf32>
    %258 = arith.select %256, %253, %257 : vector<16x128xi1>, vector<16x128xf32>
    %cst_80 = arith.constant dense<0xFF800000> : vector<16xf32>
    %259 = vector.multi_reduction <maximumf>, %258, %cst_80 [1] : vector<16x128xf32> to vector<16xf32>
    %260 = vector.shape_cast %259 : vector<16xf32> to vector<16x1xf32>
    %261 = vector.broadcast %260 : vector<16x1xf32> to vector<16x128xf32>
    %262 = arith.subf %258, %261 : vector<16x128xf32>
    %263 = math.exp %262 : vector<16x128xf32>
    %cst_81 = arith.constant dense<0.000000e+00> : vector<16xf32>
    %264 = vector.multi_reduction <add>, %263, %cst_81 [1] : vector<16x128xf32> to vector<16xf32>
    %265 = vector.shape_cast %264 : vector<16xf32> to vector<16x1xf32>
    %266 = tpu.reciprocal %265 {approx = true} : vector<16x1xf32> -> vector<16x1xf32>
    %267 = vector.broadcast %266 : vector<16x1xf32> to vector<16x128xf32>
    %268 = arith.mulf %263, %267 : vector<16x128xf32>
    %c3_i32_82 = arith.constant 3 : i32
    %269 = vector.broadcast %c3_i32_82 : i32 to vector<16x128xi32>
    %270 = arith.cmpi eq, %254, %269 : vector<16x128xi32>
    %271 = arith.extui %270 : vector<16x128xi1> to vector<16x128xi32>
    %272 = arith.sitofp %271 : vector<16x128xi32> to vector<16x128xf32>
    %273 = arith.mulf %253, %272 : vector<16x128xf32>
    %cst_83 = arith.constant dense<0.000000e+00> : vector<16xf32>
    %274 = vector.multi_reduction <add>, %273, %cst_83 [1] : vector<16x128xf32> to vector<16xf32>
    %275 = vector.shape_cast %274 : vector<16xf32> to vector<16x1xf32>
    %276 = arith.mulf %275, %248 : vector<16x1xf32>
    %277 = vector.broadcast %276 : vector<16x1xf32> to vector<16x128xf32>
    %278 = arith.mulf %277, %272 : vector<16x128xf32>
    %279 = arith.addf %268, %278 : vector<16x128xf32>
    %c0_84 = arith.constant 0 : index
    %c0_85 = arith.constant 0 : index
    %280 = vector.load %arg7[%c0_84, %c0_85] : memref<16x128xf32, #tpu.memory_space<vmem>>, vector<16x128xf32>
    tpu.vector_store %arg7[%c0_84, %c0_85], %279 {strides = array<i32>} : memref<16x128xf32, #tpu.memory_space<vmem>>, vector<16x128xf32>,
    return
  }
}

</mosaic_0001>

<bundles_post_ra>
// kernel: actor_forward.1
= control target key start
LH: loop header
LB: loop body
LE: loop exit
PB: predicated region body
PF: predicated region fallthrough
CT: control target
= control target key end

     0   :  { %14 = vsyncpa [#allocation4], 0  ;;  %s10192_s0 = inlined_call_operand.vmem [shape: f32[2,8,10], index: 0, kind: input, shape index: {}]   ;;  %s10193_s1 = inlined_call_operand.vmem [shape: f32[2,8,6], index: 1, kind: input, shape index: {}]   ;;  %s10194_s2 = inlined_call_operand.hbm [shape: f32[280,768], index: 2, kind: input, shape index: {}]   ;;  %s10195_s3 = inlined_call_operand.vmem [shape: f32[1,1792], index: 3, kind: input, shape index: {}]   ;;  %s10196_s4 = inlined_call_operand.hbm [shape: f32[256,384], index: 4, kind: input, shape index: {}]   ;;  %s10197_s5 = inlined_call_operand.hbm [shape: f32[384,256], index: 5, kind: input, shape index: {}]   ;;  %s10198_s6 = inlined_call_operand.hbm [shape: f32[128,128], index: 6, kind: input, shape index: {}]   ;;  %s10199_s7 = inlined_call_operand.vmem [shape: f32[16,128], index: 7, kind: output, shape index: {0}]   ;;  %s10200_s8 = inlined_call_operand.vmem [shape: f32[2,256], index: 8, kind: output, shape index: {1}]  }
   0x1   :  { %15 = vsyncpa [#allocation6], 0 }
   0x2   :  { %16 = vsyncpa [#allocation9], 0  ;;  %s8180_s27 = smov [#allocation5]   ;;  %s8086_s9 = scalar_lea.hbm %s10196_s4, 12288 }
   0x3   :  { %s40_s28 = sshll.u32 %s8180_s27, 4  ;;  %p8087_p0 = scmp.ne.s32.totalorder %s10196_s4, %s8086_s9  ;;  %s41_s28 = int_to_ptr.vmem [resolvable:$true] %s40_s28 }
   0x4   :  { %p8090_p1 = scmp.lt.u32.totalorder %s8086_s9, %s10196_s4 }
   0x6   :  { %p8092_p2 = pnand %p8090_p1, %p8087_p0 }
   0x8   :  { %8095 = shalt.err (!%p8092_p2)
}
   0x9   :  { %s8096_s14 = scalar_lea.vmem %s41_s28, 12288  ;;  %p8101_p4 = scmp.lt.s32.totalorder %s41_s28, %s41_s28 }
   0xa   :  { %p8097_p3 = scmp.ne.s32.totalorder %s41_s28, %s8096_s14  ;;  %p8102_p5 = scmp.lt.s32.totalorder %s8096_s14, %s8096_s14 }
   0xc   :  { %p8103_p6 = por %p8102_p5, %p8101_p4 }
   0xe   :  { %p8104_p7 = pnand %p8103_p6, %p8097_p3 }
  0x10   :  { %8107 = shalt.err (!%p8104_p7)
}
  0x11   :  { %s8181_s15 = smov 384   ;;  %s8182_s16 = smov 24  }
  0x12   :  { %46 = dma.hbm_to_vmem [thread:$0]  %s10196_s4, 12288, %s41_s28, [#allocation6], %s8181_s15, %s8181_s15, %s8182_s16  }
  0x13   :  { %s8183_s19 = smov [#allocation3]   ;;  %s8108_s23 = scalar_lea.hbm %s10194_s2, 26880 }
  0x14   :  { %s26_s20 = sshll.u32 %s8183_s19, 4  ;;  %p8109_p8 = scmp.ne.s32.totalorder %s10194_s2, %s8108_s23  ;;  %s27_s20 = int_to_ptr.vmem [resolvable:$true] %s26_s20 }
  0x15   :  { %p8112_p9 = scmp.lt.u32.totalorder %s8108_s23, %s10194_s2 }
  0x17   :  { %p8114_p10 = pnand %p8112_p9, %p8109_p8 }
  0x19   :  { %8117 = shalt.err (!%p8114_p10)
}
  0x1a   :  { %s8118_s29 = scalar_lea.vmem %s27_s20, 26880  ;;  %p8123_p12 = scmp.lt.s32.totalorder %s27_s20, %s27_s20 }
  0x1b   :  { %p8119_p11 = scmp.ne.s32.totalorder %s27_s20, %s8118_s29  ;;  %p8124_p13 = scmp.lt.s32.totalorder %s8118_s29, %s8118_s29 }
  0x1d   :  { %p8125_p0 = por %p8124_p13, %p8123_p12 }
  0x1f   :  { %p8126_p1 = pnand %p8125_p0, %p8119_p11 }
  0x21   :  { %8129 = shalt.err (!%p8126_p1)
}
  0x22   :  { %s8184_s4 = smov 768   ;;  %s8185_s28 = smov 48  }
  0x23   :  { %32 = dma.hbm_to_vmem [thread:$0]  %s10194_s2, 26880, %s27_s20, [#allocation4], %s8184_s4, %s8184_s4, %s8185_s28  }
  0x24   :  { %s8186_s10 = smov [#allocation7]   ;;  %s8130_s14 = scalar_lea.hbm %s10197_s5, 12288 }
  0x25   :  { %s52_s11 = sshll.u32 %s8186_s10, 4  ;;  %p8131_p2 = scmp.ne.s32.totalorder %s10197_s5, %s8130_s14  ;;  %s53_s11 = int_to_ptr.vmem [resolvable:$true] %s52_s11 }
  0x26   :  { %p8134_p3 = scmp.lt.u32.totalorder %s8130_s14, %s10197_s5 }
  0x28   :  { %p8136_p4 = pnand %p8134_p3, %p8131_p2 }
  0x2a   :  { %8139 = shalt.err (!%p8136_p4)
}
  0x2b   :  { %s8140_s19 = scalar_lea.vmem %s53_s11, 12288  ;;  %p8145_p6 = scmp.lt.s32.totalorder %s53_s11, %s53_s11 }
  0x2c   :  { %p8141_p5 = scmp.ne.s32.totalorder %s53_s11, %s8140_s19  ;;  %p8146_p7 = scmp.lt.s32.totalorder %s8140_s19, %s8140_s19 }
  0x2e   :  { %p8147_p8 = por %p8146_p7, %p8145_p6 }
  0x30   :  { %p8148_p9 = pnand %p8147_p8, %p8141_p5 }
  0x32   :  { %8151 = shalt.err (!%p8148_p9)
}
  0x33   :  { %s8187_s2 = smov 256   ;;  %s8188_s20 = smov 16  }
  0x34   :  { %58 = dma.hbm_to_vmem [thread:$0]  %s10197_s5, 12288, %s53_s11, [#allocation6], %s8187_s2, %s8187_s2, %s8188_s20  }
  0x35   :  { %s8189_s23 = smov [#allocation8]   ;;  %s8152_s27 = scalar_lea.hbm %s10198_s6, 2048 }
  0x36   :  { %s64_s24 = sshll.u32 %s8189_s23, 4  ;;  %p8153_p10 = scmp.ne.s32.totalorder %s10198_s6, %s8152_s27  ;;  %s65_s24 = int_to_ptr.vmem [resolvable:$true] %s64_s24 }
  0x37   :  { %p8156_p11 = scmp.lt.u32.totalorder %s8152_s27, %s10198_s6 }
  0x39   :  { %p8158_p12 = pnand %p8156_p11, %p8153_p10 }
  0x3b   :  { %8161 = shalt.err (!%p8158_p12)
}
  0x3c   :  { %s8162_s9 = scalar_lea.vmem %s65_s24, 2048  ;;  %p8167_p0 = scmp.lt.s32.totalorder %s65_s24, %s65_s24 }
  0x3d   :  { %p8163_p13 = scmp.ne.s32.totalorder %s65_s24, %s8162_s9  ;;  %p8168_p1 = scmp.lt.s32.totalorder %s8162_s9, %s8162_s9 }
  0x3f   :  { %p8169_p2 = por %p8168_p1, %p8167_p0 }
  0x41   :  { %p8170_p3 = pnand %p8169_p2, %p8163_p13 }
  0x43   :  { %8173 = shalt.err (!%p8170_p3)
}
  0x44   :  { %s8190_s5 = smov 128   ;;  %s8191_s10 = smov 8  }
  0x45   :  { %70 = dma.hbm_to_vmem [thread:$0]  %s10198_s6, 2048, %s65_s24, [#allocation9], %s8190_s5, %s8190_s5, %s8191_s10  }
  0x46   :  { %8174 = dma.done.wait [#allocation4], 26880  }
  0x47   :  { %8175 = vsyncadd [#allocation4], 4294940416 }
  0x48   :  { %8176 = dma.done.wait [#allocation6], 24576  }
  0x49   :  { %8177 = vsyncadd [#allocation6], 4294942720 }
  0x4a   :  { %8178 = dma.done.wait [#allocation9], 2048  }
  0x4b   :  { %8179 = vsyncadd [#allocation9], 4294965248  ;;  %v10202_v0 = vmov 0.0   ;;  %vm369_vm0 = vcmask 1041408   ;;  %vm112_vm1 = vcmask 1045504   ;;  %vm8193_vm2 = vmmov 1  }
  0x4c   :  { %195 = vmatprep.mubr.f32.mxu0 %v10202_v0  ;;  %529 = vmatprep.mubr.f32.mxu1 %v10202_v0  ;;  %vm8291_vm3 = vmpackc.low %vm369_vm0, %vm8193_vm2  ;;  %v100_v2 = vld [vmem:[#allocation3 + $0x68] sm:$0x3f]  ;;  %v99_v3 = vld [vmem:[#allocation3 + $0x60] sm:$0x3f]  ;;  %vm105_vm4 = vcmask 48128   ;;  %vm362_vm5 = vcmask 80896  }
  0x4d   :  { %v8298_v4 = vld [vmem:[%s10193_s1] sm:$0xff]  ;;  %5760 = vmatprep.subr.msk.mxu0 %vm112_vm1, %v100_v2  ;;  %v90_v5 = vld [vmem:[#allocation3 + $0x18] sm:$0xff]  ;;  %v96_v6 = vld [vmem:[#allocation3 + $0x48] sm:$0x3]  ;;  %vm1195_vm6 = vcmask 1041409   ;;  %vm1730_vm7 = vcmask 1043459  }
  0x4e   :  { %v89_v7 = vld [vmem:[#allocation3 + $0x10] sm:$0xff]  ;;  %5761 = vmatpush1.msk.msra.mxu0 %vm112_vm1, %v99_v3  ;;  %v5947_v8 = vpack.c.bf16 %v96_v6, %v90_v5  ;;  %v95_v9 = vld [vmem:[#allocation3 + $0x40] sm:$0x3]  ;;  %v8305_v10 = vld [vmem:[%s10193_s1 + $0x8] sm:$0xff]  ;;  %vm2278_vm8 = vcmask 1045509   ;;  %vm2830_vm9 = vcmask 1047559  }
  0x4f   :  { %5762 = vmatmul.mubr.msk.f32.vlgmr.msra.gmra.mrb[0].mxu0 %vm105_vm4, %v8298_v4  ;;  %v5950_v11 = vpack.c.bf16 %v95_v9, %v89_v7  ;;  %v665_v12 = vld [vmem:[#allocation3 + $0x98] sm:$0xff]  ;;  %v671_v13 = vld [vmem:[#allocation3 + $0xc8] sm:$0xff]  ;;  %v664_v14 = vld [vmem:[#allocation3 + $0x90] sm:$0xff] }
  0x50   :  { %5949 = vmatprep.subr.msk.bf16.mxu1 %vm8291_vm3, %v5947_v8  ;;  %201 = vmatprep.mubr.f32.mxu0 %v10202_v0  ;;  %v5959_v15 = vpack.c.bf16 %v671_v13, %v665_v12  ;;  %v670_v16 = vld [vmem:[#allocation3 + $0xc0] sm:$0xff]  ;;  %v102_v17 = vld [vmem:[#allocation3 + $0x78] sm:$0x3f]  ;;  %v101_v18 = vld [vmem:[#allocation3 + $0x70] sm:$0x3f] }
  0x51   :  { %5952 = vmatpush1.bf16.msk.msra.mxu1 %vm8291_vm3, %v5950_v11  ;;  %v8317_v19 = vld [vmem:[%s10192_s0] sm:$0xff]  ;;  %v5961_v20 = vpack.c.bf16 %v670_v16, %v664_v14  ;;  %5764 = vmatprep.subr.msk.mxu0 %vm112_vm1, %v102_v17  ;;  %v677_v21 = vld [vmem:[#allocation3 + $0xf8] sm:$0xff]  ;;  %v683_v22 = vld [vmem:[#allocation3 + $0x128] sm:$0xff] }
  0x52   :  { %5960 = vmatprep.subr.bf16.mxu1 %v5959_v15  ;;  %5765 = vmatpush1.msk.msra.mxu0 %vm112_vm1, %v101_v18  ;;  %v5963_v23 = vpack.c.bf16 %v683_v22, %v677_v21  ;;  %v676_v24 = vld [vmem:[#allocation3 + $0xf0] sm:$0xff]  ;;  %v682_v25 = vld [vmem:[#allocation3 + $0x120] sm:$0xff]  ;;  %v689_v26 = vld [vmem:[#allocation3 + $0x158] sm:$0xff] }
  0x53   :  { %5763 = vmatmul.mubr.msk.f32.gmra.mrb[2].mxu0 %vm105_vm4, %v8305_v10  ;;  %v695_v27 = vld [vmem:[#allocation3 + $0x188] sm:$0xff]  ;;  %v5965_v29 = vpack.c.bf16 %v682_v25, %v676_v24  ;;  %v103_v30 = vld [vmem:[#allocation3 + $0x80] sm:$0x3f]  ;;  %v688_v33 = vld [vmem:[#allocation3 + $0x150] sm:$0xff] }
  0x54   :  { %v104_v28 = vld [vmem:[#allocation3 + $0x88] sm:$0x3f]  ;;  %5778 = vmatmul.mubr.msk.f32.vlgmr.msra.gmra.mrb[0].mxu1 %vm362_vm5, %v8317_v19  ;;  %272 = vmatprep.mubr.f32.mxu0 %v10202_v0  ;;  %v5967_v32 = vpack.c.bf16 %v695_v27, %v689_v26  ;;  %v694_v34 = vld [vmem:[#allocation3 + $0x180] sm:$0xff]  ;;  %v94_v35 = vld [vmem:[#allocation3 + $0x38] sm:$0x3] }
  0x55   :  { %5962 = vmatpush1.bf16.msra.mxu1 %v5961_v20  ;;  %5768 = vmatprep.subr.msk.mxu0 %vm112_vm1, %v104_v28  ;;  %v88_v31 = vld [vmem:[#allocation3 + $0x8] sm:$0xff]  ;;  %v701_v36 = vld [vmem:[#allocation3 + $0x1b8] sm:$0xff]  ;;  %v700_v39 = vld [vmem:[#allocation3 + $0x1b0] sm:$0xff]  ;;  %v5969_v40 = vpack.c.bf16 %v694_v34, %v688_v33 }
  0x56   :  { %5964 = vmatprep.subr.bf16.mxu1 %v5963_v23  ;;  %535 = vmatprep.mubr.f32.mxu1 %v10202_v0  ;;  %v707_v37 = vld [vmem:[#allocation3 + $0x1e8] sm:$0xff]  ;;  %v5941_v38 = vpack.c.bf16 %v94_v35, %v88_v31  ;;  %v706_v41 = vld [vmem:[#allocation3 + $0x1e0] sm:$0xff]  ;;  %v93_v43 = vld [vmem:[#allocation3 + $0x30] sm:$0x3] }
  0x57   :  { %5766 = vmatmul.mubr.msk.f32.vlgmr.msra.gmra.mrb[4].mxu0 %vm105_vm4, %v8298_v4  ;;  %v87_v42 = vld [vmem:[#allocation3] sm:$0xff]  ;;  %v5971_v44 = vpack.c.bf16 %v707_v37, %v701_v36  ;;  %v92_v45 = vld [vmem:[#allocation3 + $0x28] sm:$0xff]  ;;  %v98_v46 = vld [vmem:[#allocation3 + $0x58] sm:$0x3]  ;;  %v5973_v51 = vpack.c.bf16 %v706_v41, %v700_v39 }
  0x58   :  { %278 = vmatprep.mubr.f32.mxu0 %v10202_v0  ;;  %5769 = vmatpush1.msk.msra.mxu0 %vm112_vm1, %v103_v30  ;;  %v8337_v47 = vld [vmem:[%s10192_s0 + $0x8] sm:$0xff]  ;;  %v713_v48 = vld [vmem:[#allocation3 + $0x218] sm:$0xff]  ;;  %v5944_v50 = vpack.c.bf16 %v93_v43, %v87_v42  ;;  %v5953_v52 = vpack.c.bf16 %v98_v46, %v92_v45  ;;  %v712_v54 = vld [vmem:[#allocation3 + $0x210] sm:$0xff] }
  0x59   :  { %5966 = vmatpush1.bf16.msra.mxu1 %v5965_v29  ;;  %5943 = vmatprep.subr.msk.bf16.mxu0 %vm8291_vm3, %v5941_v38  ;;  %v719_v49 = vld [vmem:[#allocation3 + $0x248] sm:$0xff]  ;;  %v718_v55 = vld [vmem:[#allocation3 + $0x240] sm:$0xff]  ;;  %v725_v56 = vld [vmem:[#allocation3 + $0x278] sm:$0xff] }
  0x5a   :  { %5968 = vmatprep.subr.bf16.mxu1 %v5967_v32  ;;  %5779 = vmatmul.mubr.msk.f32.gmra.mrb[2].mxu1 %vm362_vm5, %v8337_v47  ;;  %v5975_v53 = vpack.c.bf16 %v719_v49, %v713_v48  ;;  %v731_v57 = vld [vmem:[#allocation3 + $0x2a8] sm:$0xff]  ;;  %v5977_v58 = vpack.c.bf16 %v718_v55, %v712_v54  ;;  %v724_v59 = vld [vmem:[#allocation3 + $0x270] sm:$0xff]  ;;  %v91_v60 = vld [vmem:[#allocation3 + $0x20] sm:$0xff] }
  0x5b   :  { %5767 = vmatmul.mubr.msk.f32.gmra.mrb[6].mxu0 %vm105_vm4, %v8305_v10  ;;  %920 = vmatprep.mubr.f32.mxu1 %v10202_v0  ;;  %v97_v61 = vld [vmem:[#allocation3 + $0x50] sm:$0x3]  ;;  %v5979_v62 = vpack.c.bf16 %v731_v57, %v725_v56  ;;  %v730_v63 = vld [vmem:[#allocation3 + $0x2a0] sm:$0xff]  ;;  %v667_v2 = vld [vmem:[#allocation3 + $0xa8] sm:$0xff] }
  0x5c   :  { %349 = vmatprep.mubr.f32.mxu0 %v10202_v0  ;;  %v673_v3 = vld [vmem:[#allocation3 + $0xd8] sm:$0xff]  ;;  %v743_v5 = vld [vmem:[#allocation3 + $0x308] sm:$0xff]  ;;  %v5956_v6 = vpack.c.bf16 %v97_v61, %v91_v60  ;;  %v5981_v7 = vpack.c.bf16 %v730_v63, %v724_v59  ;;  %v736_v11 = vld [vmem:[#allocation3 + $0x2d0] sm:$0xff] }
  0x5d   :  { %5970 = vmatpush1.bf16.msra.mxu1 %v5969_v40  ;;  %v8355_v8 = vpack.c.bf16 %v673_v3, %v667_v2  ;;  %v742_v12 = vld [vmem:[#allocation3 + $0x300] sm:$0xff]  ;;  %v749_v13 = vld [vmem:[#allocation3 + $0x338] sm:$0xff]  ;;  %v755_v14 = vld [vmem:[#allocation3 + $0x368] sm:$0xff] }
  0x5e   :  { %5972 = vmatprep.subr.bf16.mxu1 %v5971_v44  ;;  %v666_v15 = vld [vmem:[#allocation3 + $0xa0] sm:$0xff]  ;;  %v672_v16 = vld [vmem:[#allocation3 + $0xd0] sm:$0xff]  ;;  %v5987_v18 = vpack.c.bf16 %v755_v14, %v749_v13  ;;  %v679_v21 = vld [vmem:[#allocation3 + $0x108] sm:$0xff] }
  0x5f   :  { %5770 = vmatmul.mubr.msk.f32.vlgmr.msra.gmra.mrb[8].mxu0 %vm105_vm4, %v8298_v4  ;;  %v737_v4 = vld [vmem:[#allocation3 + $0x2d8] sm:$0xff]  ;;  %v748_v17 = vld [vmem:[#allocation3 + $0x330] sm:$0xff]  ;;  %v754_v20 = vld [vmem:[#allocation3 + $0x360] sm:$0xff]  ;;  %v8366_v1 = vpack.c.bf16 %v672_v16, %v666_v15 }
  0x60   :  { %355 = vmatprep.mubr.f32.mxu0 %v10202_v0  ;;  %5946 = vmatpush1.bf16.msk.msra.mxu0 %vm8291_vm3, %v5944_v50  ;;  %v5983_v9 = vpack.c.bf16 %v743_v5, %v737_v4  ;;  %v685_v22 = vld [vmem:[#allocation3 + $0x138] sm:$0xff]  ;;  %v767_v24 = vld [vmem:[#allocation3 + $0x3c8] sm:$0xff]  ;;  %v5989_v25 = vpack.c.bf16 %v754_v20, %v748_v17  ;;  %v678_v27 = vld [vmem:[#allocation3 + $0x100] sm:$0xff] }
  0x61   :  { %5974 = vmatpush1.bf16.msra.mxu1 %v5973_v51  ;;  %5955 = vmatprep.subr.msk.bf16.mxu0 %vm8291_vm3, %v5953_v52  ;;  %v761_v23 = vld [vmem:[#allocation3 + $0x398] sm:$0xff]  ;;  %v8368_v26 = vpack.c.bf16 %v685_v22, %v679_v21  ;;  %v684_v28 = vld [vmem:[#allocation3 + $0x130] sm:$0xff]  ;;  %v766_v31 = vld [vmem:[#allocation3 + $0x3c0] sm:$0xff] }
  0x62   :  { %5976 = vmatprep.subr.bf16.mxu1 %v5975_v53  ;;  %v760_v29 = vld [vmem:[#allocation3 + $0x390] sm:$0xff]  ;;  %v5991_v30 = vpack.c.bf16 %v767_v24, %v761_v23  ;;  %v691_v32 = vld [vmem:[#allocation3 + $0x168] sm:$0xff]  ;;  %v697_v33 = vld [vmem:[#allocation3 + $0x198] sm:$0xff]  ;;  %v8373_v36 = vpack.c.bf16 %v684_v28, %v678_v27 }
  0x63   :  { %5771 = vmatmul.mubr.msk.f32.gmra.mrb[10].mxu0 %vm105_vm4, %v8305_v10  ;;  %v5985_v10 = vpack.c.bf16 %v742_v12, %v736_v11  ;;  %v773_v34 = vld [vmem:[#allocation3 + $0x3f8] sm:$0xff]  ;;  %v779_v35 = vld [vmem:[#allocation3 + $0x428] sm:$0xff]  ;;  %v5993_v37 = vpack.c.bf16 %v766_v31, %v760_v29  ;;  %v8377_v38 = vpack.c.bf16 %v697_v33, %v691_v32  ;;  %v690_v39 = vld [vmem:[#allocation3 + $0x160] sm:$0xff] }
  0x64   :  { %452 = vmatprep.mubr.f32.mxu0 %v10202_v0  ;;  %v696_v40 = vld [vmem:[#allocation3 + $0x190] sm:$0xff]  ;;  %v5995_v42 = vpack.c.bf16 %v779_v35, %v773_v34  ;;  %v703_v43 = vld [vmem:[#allocation3 + $0x1c8] sm:$0xff]  ;;  %v709_v44 = vld [vmem:[#allocation3 + $0x1f8] sm:$0xff] }
  0x65   :  { %5978 = vmatpush1.bf16.msra.mxu1 %v5977_v58  ;;  %v772_v41 = vld [vmem:[#allocation3 + $0x3f0] sm:$0xff]  ;;  %v785_v45 = vld [vmem:[#allocation3 + $0x458] sm:$0xff]  ;;  %v791_v46 = vld [vmem:[#allocation3 + $0x488] sm:$0xff]  ;;  %v8382_v48 = vpack.c.bf16 %v696_v40, %v690_v39  ;;  %v8386_v50 = vpack.c.bf16 %v709_v44, %v703_v43 }
  0x66   :  { %5980 = vmatprep.subr.bf16.mxu1 %v5979_v62  ;;  %v702_v51 = vld [vmem:[#allocation3 + $0x1c0] sm:$0xff]  ;;  %v708_v52 = vld [vmem:[#allocation3 + $0x1f0] sm:$0xff]  ;;  %v5999_v54 = vpack.c.bf16 %v791_v46, %v785_v45  ;;  %v715_v55 = vld [vmem:[#allocation3 + $0x228] sm:$0xff] }
  0x67   :  { %5774 = vmatmul.mubr.msk.f32.vlgmr.msra.gmra.mrb[0].mxu0 %vm362_vm5, %v8317_v19  ;;  %v784_v53 = vld [vmem:[#allocation3 + $0x450] sm:$0xff]  ;;  %v721_v56 = vld [vmem:[#allocation3 + $0x258] sm:$0xff]  ;;  %v803_v58 = vld [vmem:[#allocation3 + $0x4e8] sm:$0xff]  ;;  %v8389_v59 = vpack.c.bf16 %v708_v52, %v702_v51 }
  0x68   :  { %458 = vmatprep.mubr.f32.mxu0 %v10202_v0  ;;  %5958 = vmatpush1.bf16.msk.msra.mxu0 %vm8291_vm3, %v5956_v6  ;;  %v797_v57 = vld [vmem:[#allocation3 + $0x4b8] sm:$0xff]  ;;  %v8392_v61 = vpack.c.bf16 %v721_v56, %v715_v55  ;;  %v714_v62 = vld [vmem:[#allocation3 + $0x220] sm:$0xff]  ;;  %v720_v63 = vld [vmem:[#allocation3 + $0x250] sm:$0xff] }
  0x69   :  { %5982 = vmatpush1.bf16.msra.mxu1 %v5981_v7  ;;  %6024 = vmatprep.subr.bf16.mxu0 %v8355_v8  ;;  %v796_v2 = vld [vmem:[#allocation3 + $0x4b0] sm:$0xff]  ;;  %v6003_v3 = vpack.c.bf16 %v803_v58, %v797_v57  ;;  %v802_v4 = vld [vmem:[#allocation3 + $0x4e0] sm:$0xff]  ;;  %v727_v5 = vld [vmem:[#allocation3 + $0x288] sm:$0xff]  ;;  %v8395_v11 = vpack.c.bf16 %v720_v63, %v714_v62 }
  0x6a   :  { %5984 = vmatprep.subr.bf16.mxu1 %v5983_v9  ;;  %v733_v6 = vld [vmem:[#allocation3 + $0x2b8] sm:$0xff]  ;;  %v815_v9 = vld [vmem:[#allocation3 + $0x548] sm:$0xff]  ;;  %v6005_v12 = vpack.c.bf16 %v802_v4, %v796_v2  ;;  %v726_v14 = vld [vmem:[#allocation3 + $0x280] sm:$0xff] }
  0x6b   :  { %5775 = vmatmul.mubr.msk.f32.gmra.mrb[2].mxu0 %vm362_vm5, %v8337_v47  ;;  %v809_v7 = vld [vmem:[#allocation3 + $0x518] sm:$0xff]  ;;  %v8398_v13 = vpack.c.bf16 %v733_v6, %v727_v5  ;;  %v808_v15 = vld [vmem:[#allocation3 + $0x510] sm:$0xff]  ;;  %v814_v17 = vld [vmem:[#allocation3 + $0x540] sm:$0xff] }
  0x6c   :  { %606 = vmatprep.mubr.f32.mxu0 %v10202_v0  ;;  %v6007_v16 = vpack.c.bf16 %v815_v9, %v809_v7  ;;  %v745_v20 = vld [vmem:[#allocation3 + $0x318] sm:$0xff]  ;;  %v827_v22 = vld [vmem:[#allocation3 + $0x5a8] sm:$0xff]  ;;  %v6009_v24 = vpack.c.bf16 %v814_v17, %v808_v15  ;;  %v738_v27 = vld [vmem:[#allocation3 + $0x2e0] sm:$0xff] }
  0x6d   :  { %5986 = vmatpush1.bf16.msra.mxu1 %v5985_v10  ;;  %v732_v10 = vld [vmem:[#allocation3 + $0x2b0] sm:$0xff]  ;;  %v821_v21 = vld [vmem:[#allocation3 + $0x578] sm:$0xff]  ;;  %v826_v31 = vld [vmem:[#allocation3 + $0x5a0] sm:$0xff] }
  0x6e   :  { %5988 = vmatprep.subr.bf16.mxu1 %v5987_v18  ;;  %v739_v18 = vld [vmem:[#allocation3 + $0x2e8] sm:$0xff]  ;;  %v8401_v23 = vpack.c.bf16 %v732_v10, %v726_v14  ;;  %v744_v28 = vld [vmem:[#allocation3 + $0x310] sm:$0xff]  ;;  %v757_v33 = vld [vmem:[#allocation3 + $0x378] sm:$0xff] }
  0x6f   :  { %5782 = vmatmul.mubr.msk.f32.vlgmr.msra.gmra.mrb[8].mxu0 %vm362_vm5, %v8317_v19  ;;  %v778_v19 = vld [vmem:[#allocation3 + $0x420] sm:$0xff]  ;;  %v820_v29 = vld [vmem:[#allocation3 + $0x570] sm:$0xff]  ;;  %v751_v32 = vld [vmem:[#allocation3 + $0x348] sm:$0xff] }
  0x70   :  { %6026 = vmatpush1.bf16.msra.mxu0 %v8366_v1  ;;  %612 = vmatprep.mubr.f32.mxu0 %v10202_v0  ;;  %v5997_v49 = vpack.c.bf16 %v778_v19, %v772_v41  ;;  %v833_v34 = vld [vmem:[#allocation3 + $0x5d8] sm:$0xff]  ;;  %v839_v35 = vld [vmem:[#allocation3 + $0x608] sm:$0xff]  ;;  %v6013_v39 = vpack.c.bf16 %v826_v31, %v820_v29  ;;  %v8410_v40 = vpack.c.bf16 %v757_v33, %v751_v32  ;;  %v750_v41 = vld [vmem:[#allocation3 + $0x340] sm:$0xff] }
  0x71   :  { %5990 = vmatpush1.bf16.msra.mxu1 %v5989_v25  ;;  %6028 = vmatprep.subr.bf16.mxu0 %v8368_v26  ;;  %v8404_v25 = vpack.c.bf16 %v745_v20, %v739_v18  ;;  %v832_v19 = vld [vmem:[#allocation3 + $0x5d0] sm:$0xff]  ;;  %v6015_v43 = vpack.c.bf16 %v839_v35, %v833_v34  ;;  %v838_v44 = vld [vmem:[#allocation3 + $0x600] sm:$0xff]  ;;  %v763_v45 = vld [vmem:[#allocation3 + $0x3a8] sm:$0xff] }
  0x72   :  { %5992 = vmatprep.subr.bf16.mxu1 %v5991_v30  ;;  %v6011_v30 = vpack.c.bf16 %v827_v22, %v821_v21  ;;  %v769_v46 = vld [vmem:[#allocation3 + $0x3d8] sm:$0xff]  ;;  %v851_v51 = vld [vmem:[#allocation3 + $0x668] sm:$0xff]  ;;  %v768_v55 = vld [vmem:[#allocation3 + $0x3d0] sm:$0xff] }
  0x73   :  { %5783 = vmatmul.mubr.msk.f32.gmra.mrb[10].mxu0 %vm362_vm5, %v8337_v47  ;;  %v790_v47 = vld [vmem:[#allocation3 + $0x480] sm:$0xff]  ;;  %v844_v56 = vld [vmem:[#allocation3 + $0x630] sm:$0xff]  ;;  %v781_v62 = vld [vmem:[#allocation3 + $0x438] sm:$0xff] }
  0x74   :  { %6030 = vmatpush1.bf16.msra.mxu0 %v8373_v36  ;;  %991 = vmatprep.mubr.f32.mxu0 %v10202_v0  ;;  %v6001_v60 = vpack.c.bf16 %v790_v47, %v784_v53  ;;  %v6017_v53 = vpack.c.bf16 %v838_v44, %v832_v19  ;;  %v762_v47 = vld [vmem:[#allocation3 + $0x3a0] sm:$0xff]  ;;  %v669_v63 = vld [vmem:[#allocation3 + $0xb8] sm:$0xff]  ;;  %v675_v2 = vld [vmem:[#allocation3 + $0xe8] sm:$0xff] }
  0x75   :  { %5994 = vmatpush1.bf16.msra.mxu1 %v5993_v37  ;;  %6032 = vmatprep.subr.bf16.mxu0 %v8377_v38  ;;  %v8407_v37 = vpack.c.bf16 %v744_v28, %v738_v27  ;;  %v850_v58 = vld [vmem:[#allocation3 + $0x660] sm:$0xff]  ;;  %v780_v7 = vld [vmem:[#allocation3 + $0x430] sm:$0xff]  ;;  %v787_v10 = vld [vmem:[#allocation3 + $0x468] sm:$0xff] }
  0x76   :  { %5996 = vmatprep.subr.bf16.mxu1 %v5995_v42  ;;  %v756_v42 = vld [vmem:[#allocation3 + $0x370] sm:$0xff]  ;;  %v6021_v4 = vpack.c.bf16 %v850_v58, %v844_v56  ;;  %v774_v6 = vld [vmem:[#allocation3 + $0x400] sm:$0xff]  ;;  %v793_v15 = vld [vmem:[#allocation3 + $0x498] sm:$0xff] }
  0x77   :  { %v8413_v52 = vpack.c.bf16 %v756_v42, %v750_v41  ;;  %v668_v9 = vld [vmem:[#allocation3 + $0xb0] sm:$0xff]  ;;  %v674_v14 = vld [vmem:[#allocation3 + $0xe0] sm:$0xff]  ;;  %v687_v17 = vld [vmem:[#allocation3 + $0x148] sm:$0xff]  ;;  %v8425_v18 = vpack.c.bf16 %v780_v7, %v774_v6  ;;  %v8428_v21 = vpack.c.bf16 %v793_v15, %v787_v10 }
  0x78   :  { %6034 = vmatpush1.bf16.msra.mxu0 %v8382_v48  ;;  %v6089_v20 = vpack.c.bf16 %v674_v14, %v668_v9  ;;  %v786_v22 = vld [vmem:[#allocation3 + $0x460] sm:$0xff]  ;;  %v680_v27 = vld [vmem:[#allocation3 + $0x110] sm:$0xff]  ;;  %v805_v31 = vld [vmem:[#allocation3 + $0x4f8] sm:$0xff] }
  0x79   :  { %5998 = vmatpush1.bf16.msra.mxu1 %v5997_v49  ;;  %6036 = vmatprep.subr.bf16.mxu0 %v8386_v50  ;;  %v845_v49 = vld [vmem:[#allocation3 + $0x638] sm:$0xff]  ;;  %v686_v29 = vld [vmem:[#allocation3 + $0x140] sm:$0xff]  ;;  %v699_v33 = vld [vmem:[#allocation3 + $0x1a8] sm:$0xff] }
  0x7a   :  { %6000 = vmatprep.subr.bf16.mxu1 %v5999_v54  ;;  %v8416_v54 = vpack.c.bf16 %v769_v46, %v763_v45  ;;  %v6019_v57 = vpack.c.bf16 %v851_v51, %v845_v49  ;;  %v693_v32 = vld [vmem:[#allocation3 + $0x178] sm:$0xff]  ;;  %v6093_v35 = vpack.c.bf16 %v686_v29, %v680_v27  ;;  %v798_v41 = vld [vmem:[#allocation3 + $0x4c0] sm:$0xff]  ;;  %v804_v42 = vld [vmem:[#allocation3 + $0x4f0] sm:$0xff] }
  0x7b   :  { %v692_v19 = vld [vmem:[#allocation3 + $0x170] sm:$0xff]  ;;  %v698_v44 = vld [vmem:[#allocation3 + $0x1a0] sm:$0xff]  ;;  %v811_v45 = vld [vmem:[#allocation3 + $0x528] sm:$0xff] }
  0x7c   :  { %6038 = vmatpush1.bf16.msra.mxu0 %v8389_v59  ;;  %v817_v46 = vld [vmem:[#allocation3 + $0x558] sm:$0xff]  ;;  %v711_v51 = vld [vmem:[#allocation3 + $0x208] sm:$0xff]  ;;  %v810_v56 = vld [vmem:[#allocation3 + $0x520] sm:$0xff] }
  0x7d   :  { %6002 = vmatpush1.bf16.msra.mxu1 %v6001_v60  ;;  %6040 = vmatprep.subr.bf16.mxu0 %v8392_v61  ;;  %v775_v60 = vld [vmem:[#allocation3 + $0x408] sm:$0xff]  ;;  %v705_v49 = vld [vmem:[#allocation3 + $0x1d8] sm:$0xff]  ;;  %v704_v58 = vld [vmem:[#allocation3 + $0x1d0] sm:$0xff] }
  0x7e   :  { %6004 = vmatprep.subr.bf16.mxu1 %v6003_v3  ;;  %v8419_v3 = vpack.c.bf16 %v768_v55, %v762_v47  ;;  %v8422_v5 = vpack.c.bf16 %v781_v62, %v775_v60  ;;  %v6097_v47 = vpack.c.bf16 %v698_v44, %v692_v19  ;;  %v8442_v55 = vpack.c.bf16 %v817_v46, %v811_v45  ;;  %v710_v62 = vld [vmem:[#allocation3 + $0x200] sm:$0xff]  ;;  %v723_v6 = vld [vmem:[#allocation3 + $0x268] sm:$0xff]  ;;  %v828_v10 = vld [vmem:[#allocation3 + $0x5b0] sm:$0xff] }
  0x7f   :  { %v6099_v60 = vpack.c.bf16 %v711_v51, %v705_v49  ;;  %v6101_v9 = vpack.c.bf16 %v710_v62, %v704_v58  ;;  %v822_v14 = vld [vmem:[#allocation3 + $0x580] sm:$0xff]  ;;  %v716_v15 = vld [vmem:[#allocation3 + $0x230] sm:$0xff]  ;;  %v735_v27 = vld [vmem:[#allocation3 + $0x2c8] sm:$0xff] }
  0x80   :  { %6042 = vmatpush1.bf16.msra.mxu0 %v8395_v11  ;;  %v853_v19 = vld [vmem:[#allocation3 + $0x678] sm:$0xff]  ;;  %v747_v44 = vld [vmem:[#allocation3 + $0x328] sm:$0xff]  ;;  %v846_v51 = vld [vmem:[#allocation3 + $0x640] sm:$0xff] }
  0x81   :  { %6006 = vmatpush1.bf16.msra.mxu1 %v6005_v12  ;;  %6044 = vmatprep.subr.bf16.mxu0 %v8398_v13  ;;  %v6087_v12 = vpack.c.bf16 %v675_v2, %v669_v63  ;;  %v823_v63 = vld [vmem:[#allocation3 + $0x588] sm:$0xff]  ;;  %v829_v2 = vld [vmem:[#allocation3 + $0x5b8] sm:$0xff]  ;;  %v746_v58 = vld [vmem:[#allocation3 + $0x320] sm:$0xff] }
  0x82   :  { %6008 = vmatprep.subr.bf16.mxu1 %v6007_v16  ;;  %v681_v16 = vld [vmem:[#allocation3 + $0x118] sm:$0xff]  ;;  %v759_v62 = vld [vmem:[#allocation3 + $0x388] sm:$0xff] }
  0x83   :  { %v6091_v28 = vpack.c.bf16 %v687_v17, %v681_v16  ;;  %v722_v17 = vld [vmem:[#allocation3 + $0x260] sm:$0xff] }
  0x84   :  { %6046 = vmatpush1.bf16.msra.mxu0 %v8401_v23  ;;  %v6105_v29 = vpack.c.bf16 %v722_v17, %v716_v15  ;;  %v764_v17 = vld [vmem:[#allocation3 + $0x3b0] sm:$0xff] }
  0x85   :  { %6010 = vmatpush1.bf16.msra.mxu1 %v6009_v24  ;;  %6048 = vmatprep.subr.bf16.mxu0 %v8404_v25  ;;  %v792_v24 = vld [vmem:[#allocation3 + $0x490] sm:$0xff] }
  0x86   :  { %6012 = vmatprep.subr.bf16.mxu1 %v6011_v30  ;;  %v799_v30 = vld [vmem:[#allocation3 + $0x4c8] sm:$0xff]  ;;  %v8432_v34 = vpack.c.bf16 %v792_v24, %v786_v22  ;;  %v841_v22 = vld [vmem:[#allocation3 + $0x618] sm:$0xff] }
  0x87   :  { %v729_v24 = vld [vmem:[#allocation3 + $0x298] sm:$0xff] }
  0x88   :  { %6050 = vmatpush1.bf16.msra.mxu0 %v8407_v37 }
  0x89   :  { %6014 = vmatpush1.bf16.msra.mxu1 %v6013_v39  ;;  %6052 = vmatprep.subr.bf16.mxu0 %v8410_v40  ;;  %v8435_v39 = vpack.c.bf16 %v805_v31, %v799_v30  ;;  %v834_v31 = vld [vmem:[#allocation3 + $0x5e0] sm:$0xff] }
  0x8a   :  { %6016 = vmatprep.subr.bf16.mxu1 %v6015_v43  ;;  %v6095_v43 = vpack.c.bf16 %v699_v33, %v693_v32  ;;  %v840_v32 = vld [vmem:[#allocation3 + $0x610] sm:$0xff] }
  0x8b   :  { %v728_v33 = vld [vmem:[#allocation3 + $0x290] sm:$0xff]  ;;  %v8457_v45 = vpack.c.bf16 %v840_v32, %v834_v31  ;;  %v782_v32 = vld [vmem:[#allocation3 + $0x440] sm:$0xff] }
  0x8c   :  { %6054 = vmatpush1.bf16.msra.mxu0 %v8413_v52  ;;  %v776_v31 = vld [vmem:[#allocation3 + $0x410] sm:$0xff] }
  0x8d   :  { %6018 = vmatpush1.bf16.msra.mxu1 %v6017_v53  ;;  %6056 = vmatprep.subr.bf16.mxu0 %v8416_v54  ;;  %v8439_v53 = vpack.c.bf16 %v804_v42, %v798_v41  ;;  %v734_v41 = vld [vmem:[#allocation3 + $0x2c0] sm:$0xff]  ;;  %v847_v42 = vld [vmem:[#allocation3 + $0x648] sm:$0xff] }
  0x8e   :  { %6020 = vmatprep.subr.bf16.mxu1 %v6019_v57  ;;  %v816_v57 = vld [vmem:[#allocation3 + $0x550] sm:$0xff]  ;;  %v6109_v46 = vpack.c.bf16 %v734_v41, %v728_v33  ;;  %v8460_v49 = vpack.c.bf16 %v853_v19, %v847_v42  ;;  %v789_v33 = vld [vmem:[#allocation3 + $0x478] sm:$0xff]  ;;  %v6125_v41 = vpack.c.bf16 %v782_v32, %v776_v31  ;;  %v842_v31 = vld [vmem:[#allocation3 + $0x620] sm:$0xff] }
  0x8f   :  { %v8445_v7 = vpack.c.bf16 %v816_v57, %v810_v56  ;;  %v740_v57 = vld [vmem:[#allocation3 + $0x2f0] sm:$0xff]  ;;  %v849_v32 = vld [vmem:[#allocation3 + $0x658] sm:$0xff] }
  0x90   :  { %6058 = vmatpush1.bf16.msra.mxu0 %v8419_v3  ;;  %v788_v19 = vld [vmem:[#allocation3 + $0x470] sm:$0xff] }
  0x91   :  { %6022 = vmatpush1.bf16.msra.mxu1 %v6021_v4  ;;  %6060 = vmatprep.subr.bf16.mxu0 %v8422_v5  ;;  %v717_v4 = vld [vmem:[#allocation3 + $0x238] sm:$0xff] }
  0x92   :  { %6088 = vmatprep.subr.bf16.mxu1 %v6087_v12  ;;  %v8448_v12 = vpack.c.bf16 %v829_v2, %v823_v63  ;;  %v6103_v16 = vpack.c.bf16 %v723_v6, %v717_v4  ;;  %v6113_v2 = vpack.c.bf16 %v746_v58, %v740_v57  ;;  %v752_v6 = vld [vmem:[#allocation3 + $0x350] sm:$0xff]  ;;  %v806_v57 = vld [vmem:[#allocation3 + $0x500] sm:$0xff]  ;;  %v813_v58 = vld [vmem:[#allocation3 + $0x538] sm:$0xff] }
  0x94   :  { %921 = vmatmul.mubr.f32.vlgmr.msra.gmra.mrb[4].mxu1 %v10202_v0  ;;  %6062 = vmatpush1.bf16.msra.mxu0 %v8425_v18 }
  0x95   :  { %6090 = vmatpush1.bf16.msra.mxu1 %v6089_v20  ;;  %6064 = vmatprep.subr.bf16.mxu0 %v8428_v21  ;;  %v835_v20 = vld [vmem:[#allocation3 + $0x5e8] sm:$0xff] }
  0x96   :  { %6092 = vmatprep.subr.bf16.mxu1 %v6091_v28  ;;  %1062 = vmatprep.mubr.f32.mxu1 %v10202_v0  ;;  %v8451_v28 = vpack.c.bf16 %v828_v10, %v822_v14  ;;  %v8454_v30 = vpack.c.bf16 %v841_v22, %v835_v20  ;;  %v765_v14 = vld [vmem:[#allocation3 + $0x3b8] sm:$0xff]  ;;  %v771_v10 = vld [vmem:[#allocation3 + $0x3e8] sm:$0xff]  ;;  %v770_v20 = vld [vmem:[#allocation3 + $0x3e0] sm:$0xff] }
  0x97   :  { %v777_v22 = vld [vmem:[#allocation3 + $0x418] sm:$0xff] }
  0x98   :  { %6066 = vmatpush1.bf16.msra.mxu0 %v8432_v34 }
  0x99   :  { %6094 = vmatpush1.bf16.msra.mxu1 %v6093_v35  ;;  %6068 = vmatprep.subr.bf16.mxu0 %v8435_v39  ;;  %v6107_v35 = vpack.c.bf16 %v735_v27, %v729_v24  ;;  %v783_v24 = vld [vmem:[#allocation3 + $0x448] sm:$0xff]  ;;  %v6121_v27 = vpack.c.bf16 %v770_v20, %v764_v17  ;;  %v830_v17 = vld [vmem:[#allocation3 + $0x5c0] sm:$0xff]  ;;  %v837_v20 = vld [vmem:[#allocation3 + $0x5f8] sm:$0xff] }
  0x9a   :  { %6096 = vmatprep.subr.bf16.mxu1 %v6095_v43  ;;  %v741_v43 = vld [vmem:[#allocation3 + $0x2f8] sm:$0xff] }
  0x9b   :  { %v6111_v56 = vpack.c.bf16 %v747_v44, %v741_v43  ;;  %v794_v43 = vld [vmem:[#allocation3 + $0x4a0] sm:$0xff]  ;;  %v801_v44 = vld [vmem:[#allocation3 + $0x4d8] sm:$0xff] }
  0x9c   :  { %6070 = vmatpush1.bf16.msra.mxu0 %v8439_v53 }
  0x9d   :  { %6098 = vmatpush1.bf16.msra.mxu1 %v6097_v47  ;;  %6072 = vmatprep.subr.bf16.mxu0 %v8442_v55  ;;  %v852_v47 = vld [vmem:[#allocation3 + $0x670] sm:$0xff] }
  0x9e   :  { %6100 = vmatprep.subr.bf16.mxu1 %v6099_v60  ;;  %v753_v60 = vld [vmem:[#allocation3 + $0x358] sm:$0xff]  ;;  %v8463_v63 = vpack.c.bf16 %v852_v47, %v846_v51  ;;  %v6129_v51 = vpack.c.bf16 %v794_v43, %v788_v19  ;;  %v854_v19 = vld [vmem:[#allocation3 + $0x680] sm:$0xff] }
  0x9f   :  { %v6115_v4 = vpack.c.bf16 %v759_v62, %v753_v60  ;;  %v819_v60 = vld [vmem:[#allocation3 + $0x568] sm:$0xff] }
  0xa0   :  { %6074 = vmatpush1.bf16.msra.mxu0 %v8445_v7 }
  0xa1   :  { %6102 = vmatpush1.bf16.msra.mxu1 %v6101_v9  ;;  %6076 = vmatprep.subr.bf16.mxu0 %v8448_v12  ;;  %v758_v9 = vld [vmem:[#allocation3 + $0x380] sm:$0xff] }
  0xa2   :  { %6104 = vmatprep.subr.bf16.mxu1 %v6103_v16  ;;  %v6117_v15 = vpack.c.bf16 %v758_v9, %v752_v6  ;;  %v6119_v16 = vpack.c.bf16 %v771_v10, %v765_v14  ;;  %v818_v6 = vld [vmem:[#allocation3 + $0x560] sm:$0xff]  ;;  %v825_v9 = vld [vmem:[#allocation3 + $0x598] sm:$0xff]  ;;  %v831_v14 = vld [vmem:[#allocation3 + $0x5c8] sm:$0xff] }
  0xa4   :  { %6078 = vmatpush1.bf16.msra.mxu0 %v8451_v28 }
  0xa5   :  { %6106 = vmatpush1.bf16.msra.mxu1 %v6105_v29  ;;  %6080 = vmatprep.subr.bf16.mxu0 %v8454_v30  ;;  %v6123_v29 = vpack.c.bf16 %v783_v24, %v777_v22  ;;  %v843_v22 = vld [vmem:[#allocation3 + $0x628] sm:$0xff] }
  0xa6   :  { %6108 = vmatprep.subr.bf16.mxu1 %v6107_v35  ;;  %v795_v35 = vld [vmem:[#allocation3 + $0x4a8] sm:$0xff] }
  0xa7   :  { %v6127_v42 = vpack.c.bf16 %v795_v35, %v789_v33  ;;  %v855_v33 = vld [vmem:[#allocation3 + $0x688] sm:$0xff] }
  0xa8   :  { %6082 = vmatpush1.bf16.msra.mxu0 %v8457_v45 }
  0xa9   :  { %6110 = vmatpush1.bf16.msra.mxu1 %v6109_v46  ;;  %6084 = vmatprep.subr.bf16.mxu0 %v8460_v49  ;;  %v807_v46 = vld [vmem:[#allocation3 + $0x508] sm:$0xff] }
  0xaa   :  { %6112 = vmatprep.subr.bf16.mxu1 %v6111_v56  ;;  %v6131_v47 = vpack.c.bf16 %v807_v46, %v801_v44  ;;  %v800_v56 = vld [vmem:[#allocation3 + $0x4d0] sm:$0xff] }
  0xab   :  { %v6133_v62 = vpack.c.bf16 %v806_v57, %v800_v56  ;;  %v1276_v57 = vld [vmem:[#allocation3 + $0x2d8] sm:$0xff] }
  0xac   :  { %6086 = vmatpush1.bf16.msra.mxu0 %v8463_v63 }
  0xad   :  { %6114 = vmatpush1.bf16.msra.mxu1 %v6113_v2  ;;  %v6135_v2 = vpack.c.bf16 %v819_v60, %v813_v58  ;;  %v1282_v58 = vld [vmem:[#allocation3 + $0x308] sm:$0xff] }
  0xae   :  { %6116 = vmatprep.subr.bf16.mxu1 %v6115_v4  ;;  %v812_v4 = vld [vmem:[#allocation3 + $0x530] sm:$0xff]  ;;  %v8534_v60 = vpack.c.bf16 %v1282_v58, %v1276_v57  ;;  %v1353_v57 = vld [vmem:[#allocation3 + $0x540] sm:$0xff]  ;;  %v1360_v58 = vld [vmem:[#allocation3 + $0x578] sm:$0xff] }
  0xaf   :  { %992 = vmatmul.mubr.f32.vlgmr.msra.gmra.mrb[12].mxu0 %v10202_v0  ;;  %v6137_v10 = vpack.c.bf16 %v818_v6, %v812_v4  ;;  %v1294_v4 = vld [vmem:[#allocation3 + $0x368] sm:$0xff] }
  0xb1   :  { %6118 = vmatpush1.bf16.msra.mxu1 %v6117_v15  ;;  %v6139_v15 = vpack.c.bf16 %v831_v14, %v825_v9  ;;  %v1287_v14 = vld [vmem:[#allocation3 + $0x330] sm:$0xff] }
  0xb2   :  { %6120 = vmatprep.subr.bf16.mxu1 %v6119_v16  ;;  %v824_v16 = vld [vmem:[#allocation3 + $0x590] sm:$0xff] }
  0xb3   :  { %v6141_v24 = vpack.c.bf16 %v830_v17, %v824_v16  ;;  %v1306_v16 = vld [vmem:[#allocation3 + $0x3c8] sm:$0xff] }
  0xb5   :  { %6122 = vmatpush1.bf16.msra.mxu1 %v6121_v27  ;;  %v6143_v27 = vpack.c.bf16 %v843_v22, %v837_v20  ;;  %v1299_v22 = vld [vmem:[#allocation3 + $0x390] sm:$0xff] }
  0xb6   :  { %6124 = vmatprep.subr.bf16.mxu1 %v6123_v29  ;;  %v836_v29 = vld [vmem:[#allocation3 + $0x5f0] sm:$0xff] }
  0xb7   :  { %v6145_v35 = vpack.c.bf16 %v842_v31, %v836_v29  ;;  %v1312_v29 = vld [vmem:[#allocation3 + $0x3f8] sm:$0xff]  ;;  %v1318_v31 = vld [vmem:[#allocation3 + $0x428] sm:$0xff] }
  0xb9   :  { %6126 = vmatpush1.bf16.msra.mxu1 %v6125_v41  ;;  %v6147_v41 = vpack.c.bf16 %v855_v33, %v849_v32  ;;  %v8552_v32 = vpack.c.bf16 %v1318_v31, %v1312_v29  ;;  %v1311_v33 = vld [vmem:[#allocation3 + $0x3f0] sm:$0xff]  ;;  %v1377_v29 = vld [vmem:[#allocation3 + $0x600] sm:$0xff]  ;;  %v1384_v31 = vld [vmem:[#allocation3 + $0x638] sm:$0xff] }
  0xba   :  { %6128 = vmatprep.subr.bf16.mxu1 %v6127_v42  ;;  %v848_v42 = vld [vmem:[#allocation3 + $0x650] sm:$0xff] }
  0xbb   :  { %v6149_v43 = vpack.c.bf16 %v854_v19, %v848_v42 }
  0xbd   :  { %6130 = vmatpush1.bf16.msra.mxu1 %v6129_v51  ;;  %v1263_v51 = vld [vmem:[#allocation3 + $0x270] sm:$0xff] }
  0xbe   :  { %6132 = vmatprep.subr.bf16.mxu1 %v6131_v47  ;;  %v1269_v47 = vld [vmem:[#allocation3 + $0x2a0] sm:$0xff] }
  0xbf   :  { %v8530_v56 = vpack.c.bf16 %v1269_v47, %v1263_v51  ;;  %v1347_v47 = vld [vmem:[#allocation3 + $0x510] sm:$0xff] }
  0xc1   :  { %6134 = vmatpush1.bf16.msra.mxu1 %v6133_v62  ;;  %v1281_v62 = vld [vmem:[#allocation3 + $0x300] sm:$0xff] }
  0xc2   :  { %6136 = vmatprep.subr.bf16.mxu1 %v6135_v2  ;;  %v1288_v2 = vld [vmem:[#allocation3 + $0x338] sm:$0xff] }
  0xc3   :  { %v8538_v9 = vpack.c.bf16 %v1294_v4, %v1288_v2  ;;  %v1359_v2 = vld [vmem:[#allocation3 + $0x570] sm:$0xff]  ;;  %v1365_v4 = vld [vmem:[#allocation3 + $0x5a0] sm:$0xff] }
  0xc5   :  { %6138 = vmatpush1.bf16.msra.mxu1 %v6137_v10  ;;  %v1293_v10 = vld [vmem:[#allocation3 + $0x360] sm:$0xff] }
  0xc6   :  { %6140 = vmatprep.subr.bf16.mxu1 %v6139_v15  ;;  %v1300_v15 = vld [vmem:[#allocation3 + $0x398] sm:$0xff]  ;;  %v8542_v17 = vpack.c.bf16 %v1293_v10, %v1287_v14 }
  0xc7   :  { %v8545_v20 = vpack.c.bf16 %v1306_v16, %v1300_v15  ;;  %v1372_v10 = vld [vmem:[#allocation3 + $0x5d8] sm:$0xff]  ;;  %v1378_v15 = vld [vmem:[#allocation3 + $0x608] sm:$0xff]  ;;  %v8586_v16 = vpack.c.bf16 %v1365_v4, %v1359_v2 }
  0xc9   :  { %6142 = vmatpush1.bf16.msra.mxu1 %v6141_v24  ;;  %v1305_v24 = vld [vmem:[#allocation3 + $0x3c0] sm:$0xff] }
  0xca   :  { %6144 = vmatprep.subr.bf16.mxu1 %v6143_v27  ;;  %v8548_v27 = vpack.c.bf16 %v1305_v24, %v1299_v22  ;;  %v8589_v22 = vpack.c.bf16 %v1378_v15, %v1372_v10  ;;  %v1371_v24 = vld [vmem:[#allocation3 + $0x5d0] sm:$0xff] }
  0xcd   :  { %6146 = vmatpush1.bf16.msra.mxu1 %v6145_v35  ;;  %v1317_v35 = vld [vmem:[#allocation3 + $0x420] sm:$0xff] }
  0xce   :  { %6148 = vmatprep.subr.bf16.mxu1 %v6147_v41  ;;  %v8554_v41 = vpack.c.bf16 %v1317_v35, %v1311_v33  ;;  %v1390_v33 = vld [vmem:[#allocation3 + $0x668] sm:$0xff]  ;;  %v8592_v35 = vpack.c.bf16 %v1377_v29, %v1371_v24 }
  0xd1   :  { %6150 = vmatpush1.bf16.msra.mxu1 %v6149_v43  ;;  %v1324_v43 = vld [vmem:[#allocation3 + $0x458] sm:$0xff] }
  0xd2   :  { %6216 = vmatprep.subr.bf16.mxu1 %v8355_v8  ;;  %v1204_v8 = vld [vmem:[#allocation3 + $0x98] sm:$0xff] }
  0xd4   :  { %1063 = vmatmul.mubr.f32.vlgmr.msra.gmra.mrb[6].mxu1 %v10202_v0 }
  0xd5   :  { %6218 = vmatpush1.bf16.msra.mxu1 %v8366_v1  ;;  %v1210_v1 = vld [vmem:[#allocation3 + $0xc8] sm:$0xff] }
  0xd6   :  { %6220 = vmatprep.subr.bf16.mxu1 %v8368_v26  ;;  %v6151_v26 = vpack.c.bf16 %v1210_v1, %v1204_v8  ;;  %v1330_v8 = vld [vmem:[#allocation3 + $0x488] sm:$0xff] }
  0xd7   :  { %v8558_v1 = vpack.c.bf16 %v1330_v8, %v1324_v43  ;;  %v1389_v43 = vld [vmem:[#allocation3 + $0x660] sm:$0xff] }
  0xd8   :  { %6152 = vmatprep.subr.bf16.mxu0 %v6151_v26 }
  0xd9   :  { %6222 = vmatpush1.bf16.msra.mxu1 %v8373_v36  ;;  %v1203_v36 = vld [vmem:[#allocation3 + $0x90] sm:$0xff] }
  0xda   :  { %6224 = vmatprep.subr.bf16.mxu1 %v8377_v38  ;;  %v1209_v38 = vld [vmem:[#allocation3 + $0xc0] sm:$0xff] }
  0xdd   :  { %6226 = vmatpush1.bf16.msra.mxu1 %v8382_v48  ;;  %v8493_v48 = vpack.c.bf16 %v1209_v38, %v1203_v36  ;;  %v1329_v36 = vld [vmem:[#allocation3 + $0x480] sm:$0xff] }
  0xde   :  { %6228 = vmatprep.subr.bf16.mxu1 %v8386_v50  ;;  %v1216_v50 = vld [vmem:[#allocation3 + $0xf8] sm:$0xff] }
  0xdf   :  { %6154 = vmatpush1.bf16.msra.mxu0 %v8493_v48 }
  0xe1   :  { %6230 = vmatpush1.bf16.msra.mxu1 %v8389_v59  ;;  %v1222_v59 = vld [vmem:[#allocation3 + $0x128] sm:$0xff] }
  0xe2   :  { %6232 = vmatprep.subr.bf16.mxu1 %v8392_v61  ;;  %v8497_v61 = vpack.c.bf16 %v1222_v59, %v1216_v50 }
  0xe4   :  { %6156 = vmatprep.subr.bf16.mxu0 %v8497_v61 }
  0xe5   :  { %6234 = vmatpush1.bf16.msra.mxu1 %v8395_v11  ;;  %v1215_v11 = vld [vmem:[#allocation3 + $0xf0] sm:$0xff] }
  0xe6   :  { %6236 = vmatprep.subr.bf16.mxu1 %v8398_v13  ;;  %v1221_v13 = vld [vmem:[#allocation3 + $0x120] sm:$0xff] }
  0xe9   :  { %6238 = vmatpush1.bf16.msra.mxu1 %v8401_v23  ;;  %v8500_v23 = vpack.c.bf16 %v1221_v13, %v1215_v11 }
  0xea   :  { %6240 = vmatprep.subr.bf16.mxu1 %v8404_v25  ;;  %v1228_v25 = vld [vmem:[#allocation3 + $0x158] sm:$0xff] }
  0xeb   :  { %6158 = vmatpush1.bf16.msra.mxu0 %v8500_v23 }
  0xed   :  { %6242 = vmatpush1.bf16.msra.mxu1 %v8407_v37  ;;  %v1234_v37 = vld [vmem:[#allocation3 + $0x188] sm:$0xff] }
  0xee   :  { %6244 = vmatprep.subr.bf16.mxu1 %v8410_v40  ;;  %v8505_v40 = vpack.c.bf16 %v1234_v37, %v1228_v25  ;;  %v1336_v25 = vld [vmem:[#allocation3 + $0x4b8] sm:$0xff]  ;;  %v1342_v37 = vld [vmem:[#allocation3 + $0x4e8] sm:$0xff] }
  0xf0   :  { %6160 = vmatprep.subr.bf16.mxu0 %v8505_v40 }
  0xf1   :  { %6246 = vmatpush1.bf16.msra.mxu1 %v8413_v52  ;;  %v1227_v52 = vld [vmem:[#allocation3 + $0x150] sm:$0xff] }
  0xf2   :  { %6248 = vmatprep.subr.bf16.mxu1 %v8416_v54  ;;  %v1233_v54 = vld [vmem:[#allocation3 + $0x180] sm:$0xff] }
  0xf5   :  { %6250 = vmatpush1.bf16.msra.mxu1 %v8419_v3  ;;  %v8508_v3 = vpack.c.bf16 %v1233_v54, %v1227_v52  ;;  %v8568_v52 = vpack.c.bf16 %v1342_v37, %v1336_v25  ;;  %v1335_v54 = vld [vmem:[#allocation3 + $0x4b0] sm:$0xff]  ;;  %v1208_v25 = vld [vmem:[#allocation3 + $0xb8] sm:$0xff]  ;;  %v1214_v37 = vld [vmem:[#allocation3 + $0xe8] sm:$0xff] }
  0xf6   :  { %6252 = vmatprep.subr.bf16.mxu1 %v8422_v5  ;;  %v1240_v5 = vld [vmem:[#allocation3 + $0x1b8] sm:$0xff] }
  0xf7   :  { %6162 = vmatpush1.bf16.msra.mxu0 %v8508_v3 }
  0xf9   :  { %6254 = vmatpush1.bf16.msra.mxu1 %v8425_v18  ;;  %v1246_v18 = vld [vmem:[#allocation3 + $0x1e8] sm:$0xff] }
  0xfa   :  { %6256 = vmatprep.subr.bf16.mxu1 %v8428_v21  ;;  %v8513_v21 = vpack.c.bf16 %v1246_v18, %v1240_v5  ;;  %v1341_v5 = vld [vmem:[#allocation3 + $0x4e0] sm:$0xff] }
  0xfc   :  { %6164 = vmatprep.subr.bf16.mxu0 %v8513_v21 }
  0xfd   :  { %6258 = vmatpush1.bf16.msra.mxu1 %v8432_v34  ;;  %v1239_v34 = vld [vmem:[#allocation3 + $0x1b0] sm:$0xff] }
  0xfe   :  { %6260 = vmatprep.subr.bf16.mxu1 %v8435_v39  ;;  %v1245_v39 = vld [vmem:[#allocation3 + $0x1e0] sm:$0xff] }
 0x101   :  { %6262 = vmatpush1.bf16.msra.mxu1 %v8439_v53  ;;  %v8516_v53 = vpack.c.bf16 %v1245_v39, %v1239_v34  ;;  %v8570_v39 = vpack.c.bf16 %v1341_v5, %v1335_v54  ;;  %v8602_v54 = vpack.c.bf16 %v1214_v37, %v1208_v25 }
 0x102   :  { %6264 = vmatprep.subr.bf16.mxu1 %v8442_v55  ;;  %v1252_v55 = vld [vmem:[#allocation3 + $0x218] sm:$0xff] }
 0x103   :  { %6166 = vmatpush1.bf16.msra.mxu0 %v8516_v53  ;;  %10341 = vst [vmem:[#allocation14_spill] sm:$0xff] %v8602_v54 }
 0x105   :  { %6266 = vmatpush1.bf16.msra.mxu1 %v8445_v7  ;;  %v1258_v7 = vld [vmem:[#allocation3 + $0x248] sm:$0xff] }
 0x106   :  { %6268 = vmatprep.subr.bf16.mxu1 %v8448_v12  ;;  %v8521_v12 = vpack.c.bf16 %v1258_v7, %v1252_v55 }
 0x108   :  { %6168 = vmatprep.subr.bf16.mxu0 %v8521_v12 }
 0x109   :  { %6270 = vmatpush1.bf16.msra.mxu1 %v8451_v28  ;;  %v1251_v28 = vld [vmem:[#allocation3 + $0x210] sm:$0xff] }
 0x10a   :  { %6272 = vmatprep.subr.bf16.mxu1 %v8454_v30  ;;  %v1257_v30 = vld [vmem:[#allocation3 + $0x240] sm:$0xff] }
 0x10b   :  { %v8524_v44 = vpack.c.bf16 %v1257_v30, %v1251_v28 }
 0x10d   :  { %6274 = vmatpush1.bf16.msra.mxu1 %v8457_v45  ;;  %6170 = vmatpush1.bf16.msra.mxu0 %v8524_v44  ;;  %v1264_v45 = vld [vmem:[#allocation3 + $0x278] sm:$0xff] }
 0x10e   :  { %6276 = vmatprep.subr.bf16.mxu1 %v8460_v49  ;;  %v1270_v49 = vld [vmem:[#allocation3 + $0x2a8] sm:$0xff] }
 0x10f   :  { %v8528_v46 = vpack.c.bf16 %v1270_v49, %v1264_v45  ;;  %v1348_v45 = vld [vmem:[#allocation3 + $0x518] sm:$0xff]  ;;  %v1354_v49 = vld [vmem:[#allocation3 + $0x548] sm:$0xff] }
 0x110   :  { %v8578_v51 = vpack.c.bf16 %v1354_v49, %v1348_v45  ;;  %v10201_v49 = vlaneseq }
 0x111   :  { %6278 = vmatpush1.bf16.msra.mxu1 %v8463_v63  ;;  %6172 = vmatprep.subr.bf16.mxu0 %v8528_v46  ;;  %v1275_v63 = vld [vmem:[#allocation3 + $0x2d0] sm:$0xff] }
 0x112   :  { %6344 = vmatprep.subr.bf16.mxu1 %v6151_v26  ;;  %6174 = vmatpush1.bf16.msra.mxu0 %v8530_v56  ;;  %v8536_v6 = vpack.c.bf16 %v1281_v62, %v1275_v63  ;;  %v1323_v26 = vld [vmem:[#allocation3 + $0x450] sm:$0xff]  ;;  %v8580_v63 = vpack.c.bf16 %v1353_v57, %v1347_v47  ;;  %v1366_v62 = vld [vmem:[#allocation3 + $0x5a8] sm:$0xff]  ;;  %v8614_v47 = vshrl.u32 %v10201_v49, 7 }
 0x113   :  { %6176 = vmatprep.subr.bf16.mxu0 %v8534_v60  ;;  %v8560_v50 = vpack.c.bf16 %v1329_v36, %v1323_v26  ;;  %v8583_v14 = vpack.c.bf16 %v1366_v62, %v1360_v58  ;;  %v8625_v62 = vld [vmem:[%s10195_s3] sm:$0x3f] }
 0x114   :  { %10342 = vst [vmem:[#allocation15_spill] sm:$0xff] %v8614_v47  ;;  %v8617_v57 = vsub.s32 0, %v8614_v47  ;;  %v8620_v58 = vsub.s32 1, %v8614_v47  ;;  %v10208_v25 = vsub.s32 2, %v8614_v47  ;;  %v635_v0 = vsub.s32 3, %v8614_v47 }
 0x116   :  { %6178 = vmatpush1.bf16.msra.mxu0 %v8536_v6  ;;  %10343 = vst [vmem:[#allocation16_spill] sm:$0xff] %v8617_v57  ;;  %10344 = vst [vmem:[#allocation17_spill] sm:$0xff] %v8620_v58  ;;  %v624_v2 = vrot.slane %v8625_v62, %v8617_v57  ;;  %v628_v4 = vrot.slane %v8625_v62, %v8620_v58 }
 0x117   :  { %6180 = vmatprep.subr.bf16.mxu0 %v8538_v9 }
 0x11a   :  { %6182 = vmatpush1.bf16.msra.mxu0 %v8542_v17 }
 0x11b   :  { %6184 = vmatprep.subr.bf16.mxu0 %v8545_v20 }
 0x11e   :  { %6186 = vmatpush1.bf16.msra.mxu0 %v8548_v27 }
 0x11f   :  { %6188 = vmatprep.subr.bf16.mxu0 %v8552_v32 }
 0x122   :  { %6190 = vmatpush1.bf16.msra.mxu0 %v8554_v41 }
 0x123   :  { %6192 = vmatprep.subr.bf16.mxu0 %v8558_v1 }
 0x126   :  { %6194 = vmatpush1.bf16.msra.mxu0 %v8560_v50 }
 0x127   :  { %v531_v42 = vpop.f32.mrb[0].mxu1  ;;  %6196 = vmatprep.subr.bf16.mxu0 %v8568_v52 }
 0x128   :  { %v533_v19 = vpop.f32.mrb[1].mxu1 }
 0x12a   :  { %v274_v38 = vpop.f32.mrb[4].mxu0  ;;  %6198 = vmatpush1.bf16.msra.mxu0 %v8570_v39 }
 0x12b   :  { %v8562_v59 = vadd.f32 %v531_v42, %v274_v38  ;;  %v276_v11 = vpop.f32.mrb[5].mxu0  ;;  %6200 = vmatprep.subr.bf16.mxu0 %v8578_v51  ;;  %v8595_v42 = vpack.c.bf16 %v1390_v33, %v1384_v31 }
 0x12c   :  { %v8565_v13 = vadd.f32 %v533_v19, %v276_v11  ;;  %v1383_v19 = vld [vmem:[#allocation3 + $0x630] sm:$0xff] }
 0x12d   :  { %v537_v34 = vpop.f32.mrb[2].mxu1  ;;  %v8598_v36 = vpack.c.bf16 %v1389_v43, %v1383_v19 }
 0x12e   :  { %v280_v18 = vpop.f32.mrb[6].mxu0  ;;  %v539_v28 = vpop.f32.mrb[3].mxu1  ;;  %6202 = vmatpush1.bf16.msra.mxu0 %v8580_v63 }
 0x12f   :  { %v282_v55 = vpop.f32.mrb[7].mxu0  ;;  %v8572_v7 = vadd.f32 %v537_v34, %v280_v18  ;;  %6204 = vmatprep.subr.bf16.mxu0 %v8583_v14  ;;  %10340 = vst [vmem:[#allocation13_spill] sm:$0xff] %v8598_v36 }
 0x130   :  { %v8575_v30 = vadd.f32 %v539_v28, %v282_v55 }
 0x132   :  { %6206 = vmatpush1.bf16.msra.mxu0 %v8586_v16 }
 0x133   :  { %6208 = vmatprep.subr.bf16.mxu0 %v8589_v22 }
 0x136   :  { %6210 = vmatpush1.bf16.msra.mxu0 %v8592_v35 }
 0x137   :  { %6212 = vmatprep.subr.bf16.mxu0 %v8595_v42 }
 0x13a   :  { %v454_v8 = vpop.f32.mrb[0].mxu0  ;;  %6214 = vmatpush1.bf16.msra.mxu0 %v8598_v36 }
 0x13b   :  { %v456_v26 = vpop.f32.mrb[1].mxu0  ;;  %6280 = vmatprep.subr.bf16.mxu0 %v8602_v54  ;;  %v8631_v24 = vadd.f32 %v624_v2, %v454_v8 }
 0x13c   :  { %v8633_v31 = vadd.f32 %v628_v4, %v456_v26  ;;  %v632_v26 = vrot.slane %v8625_v62, %v10208_v25 }
 0x13d   :  { %10345 = vst [vmem:[#allocation18_spill] sm:$0xff] %v8631_v24 }
 0x13e   :  { %v460_v38 = vpop.f32.mrb[2].mxu0  ;;  %10346 = vst [vmem:[#allocation19_spill] sm:$0xff] %v8633_v31 }
 0x13f   :  { %v462_v11 = vpop.f32.mrb[3].mxu0  ;;  %v8635_v19 = vadd.f32 %v624_v2, %v460_v38 }
 0x140   :  { %v8639_v37 = vadd.f32 %v628_v4, %v462_v11  ;;  %v8650_v11 = vadd.f32 %v632_v26, %v8562_v59 }
 0x141   :  { %10347 = vst [vmem:[#allocation20_spill] sm:$0xff] %v8635_v19 }
 0x142   :  { %v8604_v5 = vpop.f32.mrb[8].mxu0  ;;  %10348 = vst [vmem:[#allocation21_spill] sm:$0xff] %v8639_v37  ;;  %10349 = vst [vmem:[#allocation22_spill] sm:$0xff] %v8650_v11 }
 0x143   :  { %v8606_v18 = vpop.f32.mrb[9].mxu0 }
 0x146   :  { %v8609_v34 = vpop.f32.mrb[10].mxu0 }
 0x147   :  { %v8611_v55 = vpop.f32.mrb[11].mxu0 }
 0x167   :  { %v922_v28 = vpop.f32.mrb[4].mxu1 }
 0x168   :  { %v924_v45 = vpop.f32.mrb[5].mxu1  ;;  %v1073_v29 = vrot.slane %v922_v28, 1  ;;  %v1085_v43 = vadd.f32 %v922_v28, %v8631_v24  ;;  %v636_v28 = vrot.slane %v8625_v62, %v635_v0 }
 0x169   :  { %v1074_v33 = vrot.slane %v924_v45, 1  ;;  %v1086_v49 = vadd.f32 %v924_v45, %v8633_v31 }
 0x16a   :  { %v1089_v54 = vadd.f32 %v1073_v29, %v8635_v19  ;;  %v5784_v36 = vmul.f32 -1.442695, %v1085_v43  ;;  %v8653_v4 = vadd.f32 %v636_v28, %v8565_v13  ;;  %v8660_v0 = vadd.f32 %v636_v28, %v8575_v30  ;;  %v663_v28 = vld [vmem:[%s10195_s3 + $0x6] sm:$0x3] }
 0x16b   :  { %v1090_v8 = vadd.f32 %v1074_v33, %v8639_v37  ;;  %v5785_v38 = vmul.f32 -1.442695, %v1086_v49  ;;  %v8656_v33 = vadd.f32 %v632_v26, %v8572_v7 }
 0x16c   :  { %v5788_v2 = vmul.f32 -1.442695, %v1089_v54  ;;  %7757 = vpow2.f32 %v5784_v36  ;;  %10350 = vst [vmem:[#allocation23_spill] sm:$0xff] %v8653_v4  ;;  %10352 = vst [vmem:[#allocation25_spill] sm:$0xff] %v8660_v0 }
 0x16d   :  { %v5789_v24 = vmul.f32 -1.442695, %v1090_v8  ;;  %7759 = vpow2.f32 %v5785_v38  ;;  %10351 = vst [vmem:[#allocation24_spill] sm:$0xff] %v8656_v33 }
 0x16e   :  { %7761 = vpow2.f32 %v5788_v2 }
 0x16f   :  { %7763 = vpow2.f32 %v5789_v24 }
 0x176   :  { %v7758_v38 = vpop.eup %7757 }
 0x177   :  { %v7760_v25 = vpop.eup %7759 }
 0x178   :  { %v7762_v7 = vpop.eup %7761  ;;  %v1118_v30 = vadd.f32 1.0, %v7760_v25 }
 0x179   :  { %v7764_v24 = vpop.eup %7763  ;;  %v1121_v26 = vadd.f32 1.0, %v7762_v7 }
 0x182   :  { %v993_v10 = vpop.f32.mrb[12].mxu0 }
 0x183   :  { %v995_v15 = vpop.f32.mrb[13].mxu0  ;;  %v1075_v45 = vrot.slane %v993_v10, 1  ;;  %v1087_v49 = vadd.f32 %v993_v10, %v8650_v11  ;;  %v1117_v10 = vadd.f32 1.0, %v7758_v38 }
 0x184   :  { %v1076_v29 = vrot.slane %v995_v15, 1  ;;  %v1088_v36 = vadd.f32 %v995_v15, %v8653_v4  ;;  %v1122_v15 = vadd.f32 1.0, %v7764_v24 }
 0x185   :  { %v1091_v59 = vadd.f32 %v1075_v45, %v8656_v33  ;;  %v5786_v43 = vmul.f32 -1.442695, %v1087_v49  ;;  %v639_v45 = vsub.s32 4, %v8614_v47  ;;  %v643_v49 = vsub.s32 5, %v8614_v47 }
 0x186   :  { %v1092_v54 = vadd.f32 %v1076_v29, %v8660_v0  ;;  %v5787_v13 = vmul.f32 -1.442695, %v1088_v36 }
 0x187   :  { %v5790_v8 = vmul.f32 -1.442695, %v1091_v59  ;;  %7765 = vpow2.f32 %v5786_v43  ;;  %v8671_v59 = vrot.slane %v663_v28, %v8617_v57  ;;  %v644_v38 = vrot.slane %v8625_v62, %v643_v49 }
 0x188   :  { %v5791_v2 = vmul.f32 -1.442695, %v1092_v54  ;;  %7767 = vpow2.f32 %v5787_v13  ;;  %v8674_v54 = vrot.slane %v663_v28, %v8620_v58  ;;  %v640_v13 = vrot.slane %v8625_v62, %v639_v45 }
 0x189   :  { %7769 = vpow2.f32 %v5790_v8  ;;  %10353 = vst [vmem:[#allocation26_spill] sm:$0xff] %v8671_v59  ;;  %v8684_v62 = vadd.f32 %v644_v38, %v8606_v18 }
 0x18a   :  { %7771 = vpow2.f32 %v5791_v2  ;;  %10354 = vst [vmem:[#allocation27_spill] sm:$0xff] %v8674_v54  ;;  %v8681_v28 = vadd.f32 %v640_v13, %v8604_v5  ;;  %v8691_v5 = vadd.f32 %v644_v38, %v8611_v55 }
 0x18b   :  { %7773 = vrcp.f32 %v1117_v10  ;;  %10356 = vst [vmem:[#allocation29_spill] sm:$0xff] %v8684_v62 }
 0x18c   :  { %7775 = vrcp.f32 %v1118_v30  ;;  %10355 = vst [vmem:[#allocation28_spill] sm:$0xff] %v8681_v28  ;;  %10357 = vst [vmem:[#allocation30_spill] sm:$0xff] %v8691_v5 }
 0x18d   :  { %7777 = vrcp.f32 %v1121_v26 }
 0x18e   :  { %7779 = vrcp.f32 %v1122_v15 }
 0x191   :  { %v7766_v29 = vpop.eup %7765 }
 0x192   :  { %v7768_v36 = vpop.eup %7767  ;;  %v1119_v8 = vadd.f32 1.0, %v7766_v29 }
 0x193   :  { %v7770_v25 = vpop.eup %7769  ;;  %v1120_v2 = vadd.f32 1.0, %v7768_v36 }
 0x194   :  { %v7772_v43 = vpop.eup %7771  ;;  %v1123_v24 = vadd.f32 1.0, %v7770_v25  ;;  %7781 = vrcp.f32 %v1119_v8 }
 0x195   :  { %v7774_v26 = vpop.eup %7773  ;;  %v1124_v15 = vadd.f32 1.0, %v7772_v43  ;;  %7783 = vrcp.f32 %v1120_v2 }
 0x196   :  { %v7776_v57 = vpop.eup %7775  ;;  %7785 = vrcp.f32 %v1123_v24 }
 0x197   :  { %v7778_v29 = vpop.eup %7777  ;;  %7787 = vrcp.f32 %v1124_v15 }
 0x198   :  { %v7780_v25 = vpop.eup %7779 }
 0x1a7   :  { %v1064_v7 = vpop.f32.mrb[6].mxu1 }
 0x1a8   :  { %v1152_v10 = vadd.f32 %v8671_v59, %v1064_v7  ;;  %v1066_v30 = vpop.f32.mrb[7].mxu1  ;;  %v8687_v7 = vadd.f32 %v640_v13, %v8609_v34  ;;  %v7782_v34 = vpop.eup %7781 }
 0x1a9   :  { %v1153_v47 = vadd.f32 %v8674_v54, %v1066_v30  ;;  %v1174_v2 = vsub.f32 1.0, %v7782_v34 }
 0x1aa   :  { %v1156_v58 = vrot.slane %v1152_v10, 1  ;;  %v1162_v45 = vmul.f32 %v7774_v26, %v1152_v10 }
 0x1ab   :  { %v1157_v49 = vrot.slane %v1153_v47, 1  ;;  %v1163_v36 = vmul.f32 %v7776_v57, %v1153_v47  ;;  %v7784_v57 = vpop.eup %7783 }
 0x1ac   :  { %v1164_v43 = vmul.f32 %v7778_v29, %v1156_v58  ;;  %v1166_v30 = vadd.f32 %v1162_v45, %v8681_v28  ;;  %v7786_v58 = vpop.eup %7785  ;;  %v1175_v55 = vsub.f32 1.0, %v7784_v57  ;;  %v1182_v45 = vmul.f32 0.0, %v7782_v34  ;;  %v1213_v34 = vld [vmem:[#allocation3 + $0xe0] sm:$0xff] }
 0x1ad   :  { %v1165_v8 = vmul.f32 %v7780_v25, %v1157_v49  ;;  %v1167_v10 = vadd.f32 %v1163_v36, %v8684_v62  ;;  %v7788_v13 = vpop.eup %7787  ;;  %v1176_v26 = vsub.f32 1.0, %v7786_v58  ;;  %v1183_v25 = vmul.f32 0.0, %v7784_v57  ;;  %v1226_v57 = vld [vmem:[#allocation3 + $0x148] sm:$0xff] }
 0x1ae   :  { %v1168_v18 = vadd.f32 %v1164_v43, %v8687_v7  ;;  %7789 = vtanh.f32 %v1166_v30  ;;  %v1177_v49 = vsub.f32 1.0, %v7788_v13 }
 0x1af   :  { %v1169_v47 = vadd.f32 %v1165_v8, %v8691_v5  ;;  %7791 = vtanh.f32 %v1167_v10  ;;  %v1184_v8 = vmul.f32 0.0, %v7786_v58 }
 0x1b0   :  { %7793 = vtanh.f32 %v1168_v18 }
 0x1b1   :  { %7795 = vtanh.f32 %v1169_v47  ;;  %v1185_v47 = vmul.f32 0.0, %v7788_v13 }
 0x1b8   :  { %v7790_v24 = vpop.eup %7789 }
 0x1b9   :  { %v7792_v38 = vpop.eup %7791  ;;  %v1178_v15 = vmul.f32 %v7790_v24, %v1174_v2  ;;  %v1207_v2 = vld [vmem:[#allocation3 + $0xb0] sm:$0xff] }
 0x1ba   :  { %v7794_v29 = vpop.eup %7793  ;;  %v1179_v36 = vmul.f32 %v7792_v38, %v1175_v55  ;;  %v1220_v55 = vld [vmem:[#allocation3 + $0x118] sm:$0xff]  ;;  %v8712_v13 = vpack.c.bf16 %v1213_v34, %v1207_v2 }
 0x1bb   :  { %v7796_v43 = vpop.eup %7795  ;;  %v1180_v30 = vmul.f32 %v7794_v29, %v1176_v26  ;;  %v8696_v10 = vadd.f32 %v1182_v45, %v1178_v15  ;;  %v8719_v15 = vpack.c.bf16 %v1226_v57, %v1220_v55  ;;  %v1219_v45 = vld [vmem:[#allocation3 + $0x110] sm:$0xff]  ;;  %v1225_v29 = vld [vmem:[#allocation3 + $0x140] sm:$0xff] }
 0x1bc   :  { %v1181_v18 = vmul.f32 %v7796_v43, %v1177_v49  ;;  %v8698_v62 = vadd.f32 %v1183_v25, %v1179_v36  ;;  %v1232_v49 = vld [vmem:[#allocation3 + $0x178] sm:$0xff]  ;;  %v1238_v36 = vld [vmem:[#allocation3 + $0x1a8] sm:$0xff]  ;;  %v8724_v25 = vpack.c.bf16 %v1225_v29, %v1219_v45  ;;  %v1243_v55 = vld [vmem:[#allocation3 + $0x1d0] sm:$0xff] }
 0x1bd   :  { %v8700_v28 = vadd.f32 %v1184_v8, %v1180_v30  ;;  %v8727_v43 = vpack.c.bf16 %v1238_v36, %v1232_v49  ;;  %v1231_v30 = vld [vmem:[#allocation3 + $0x170] sm:$0xff]  ;;  %v1237_v8 = vld [vmem:[#allocation3 + $0x1a0] sm:$0xff]  ;;  %v1262_v45 = vld [vmem:[#allocation3 + $0x268] sm:$0xff] }
 0x1be   :  { %v8702_v5 = vadd.f32 %v1185_v47, %v1181_v18  ;;  %v1244_v18 = vld [vmem:[#allocation3 + $0x1d8] sm:$0xff]  ;;  %v1250_v47 = vld [vmem:[#allocation3 + $0x208] sm:$0xff]  ;;  %v8732_v2 = vpack.c.bf16 %v1237_v8, %v1231_v30  ;;  %v1249_v57 = vld [vmem:[#allocation3 + $0x200] sm:$0xff] }
 0x1bf   :  { %v10222_v24 = vrot.slane %v8700_v28, 7  ;;  %v8735_v34 = vpack.c.bf16 %v1250_v47, %v1244_v18  ;;  %v1255_v29 = vld [vmem:[#allocation3 + $0x230] sm:$0xff]  ;;  %v1261_v49 = vld [vmem:[#allocation3 + $0x260] sm:$0xff]  ;;  %v1268_v36 = vld [vmem:[#allocation3 + $0x298] sm:$0xff] }
 0x1c0   :  { %v10221_v38 = vrot.slane %v8702_v5, 7  ;;  %v1274_v30 = vld [vmem:[#allocation3 + $0x2c8] sm:$0xff]  ;;  %v1267_v8 = vld [vmem:[#allocation3 + $0x290] sm:$0xff]  ;;  %v1273_v18 = vld [vmem:[#allocation3 + $0x2c0] sm:$0xff] }
 0x1c1   :  { %v8710_v58 = vsel %vm1195_vm6, %v10222_v24, %v8696_v10  ;;  %v1280_v47 = vld [vmem:[#allocation3 + $0x2f8] sm:$0xff]  ;;  %v1795_v24 = vld [vmem:[#allocation3 + $0x250] sm:$0xff] }
 0x1c2   :  { %v1198_v26 = vsel %vm1195_vm6, %v10221_v38, %v8698_v62  ;;  %1201 = vst [vmem:[#allocation2] sm:$0x3] %v8710_v58  ;;  %v1789_v38 = vld [vmem:[#allocation3 + $0x220] sm:$0xff] }
 0x1c3   :  { %1202 = vst [vmem:[#allocation2 + $0x8] sm:$0x3] %v1198_v26  ;;  %1459 = vmatprep.mubr.f32.mxu0 %v1198_v26  ;;  %1530 = vmatprep.mubr.f32.mxu1 %v1198_v26 }
 0x1c4   :  { %1460 = vmatmul.mubr.f32.vlgmr.msra.gmra.mrb[14].mxu0 %v8710_v58  ;;  %1531 = vmatmul.mubr.f32.vlgmr.msra.gmra.mrb[8].mxu1 %v8710_v58 }
 0x1c5   :  { %6282 = vmatpush1.bf16.msra.mxu0 %v8712_v13  ;;  %1601 = vmatprep.mubr.f32.mxu0 %v1198_v26  ;;  %v1256_v26 = vld [vmem:[#allocation3 + $0x238] sm:$0xff] }
 0x1c6   :  { %6284 = vmatprep.subr.bf16.mxu0 %v8719_v15  ;;  %6346 = vmatpush1.bf16.msra.mxu1 %v8493_v48  ;;  %v8740_v48 = vpack.c.bf16 %v1249_v57, %v1243_v55  ;;  %v1286_v55 = vld [vmem:[#allocation3 + $0x328] sm:$0xff]  ;;  %v1279_v57 = vld [vmem:[#allocation3 + $0x2f0] sm:$0xff] }
 0x1c7   :  { %6348 = vmatprep.subr.bf16.mxu1 %v8497_v61  ;;  %v8743_v61 = vpack.c.bf16 %v1262_v45, %v1256_v26  ;;  %v1285_v26 = vld [vmem:[#allocation3 + $0x320] sm:$0xff]  ;;  %v1292_v45 = vld [vmem:[#allocation3 + $0x358] sm:$0xff] }
 0x1c9   :  { %6286 = vmatpush1.bf16.msra.mxu0 %v8724_v25 }
 0x1ca   :  { %6288 = vmatprep.subr.bf16.mxu0 %v8727_v43  ;;  %6350 = vmatpush1.bf16.msra.mxu1 %v8500_v23  ;;  %v8748_v23 = vpack.c.bf16 %v1261_v49, %v1255_v29  ;;  %v1298_v29 = vld [vmem:[#allocation3 + $0x388] sm:$0xff]  ;;  %v1291_v49 = vld [vmem:[#allocation3 + $0x350] sm:$0xff] }
 0x1cb   :  { %6352 = vmatprep.subr.bf16.mxu1 %v8505_v40  ;;  %v8751_v40 = vpack.c.bf16 %v1274_v30, %v1268_v36  ;;  %v1297_v36 = vld [vmem:[#allocation3 + $0x380] sm:$0xff]  ;;  %v1304_v30 = vld [vmem:[#allocation3 + $0x3b8] sm:$0xff] }
 0x1cd   :  { %6290 = vmatpush1.bf16.msra.mxu0 %v8732_v2 }
 0x1ce   :  { %6292 = vmatprep.subr.bf16.mxu0 %v8735_v34  ;;  %6354 = vmatpush1.bf16.msra.mxu1 %v8508_v3  ;;  %v8756_v3 = vpack.c.bf16 %v1273_v18, %v1267_v8  ;;  %v1310_v8 = vld [vmem:[#allocation3 + $0x3e8] sm:$0xff]  ;;  %v1303_v18 = vld [vmem:[#allocation3 + $0x3b0] sm:$0xff] }
 0x1cf   :  { %6356 = vmatprep.subr.bf16.mxu1 %v8513_v21  ;;  %v8759_v21 = vpack.c.bf16 %v1286_v55, %v1280_v47  ;;  %v1309_v47 = vld [vmem:[#allocation3 + $0x3e0] sm:$0xff]  ;;  %v1316_v55 = vld [vmem:[#allocation3 + $0x418] sm:$0xff] }
 0x1d1   :  { %6294 = vmatpush1.bf16.msra.mxu0 %v8740_v48 }
 0x1d2   :  { %6296 = vmatprep.subr.bf16.mxu0 %v8743_v61  ;;  %6358 = vmatpush1.bf16.msra.mxu1 %v8516_v53  ;;  %v8764_v53 = vpack.c.bf16 %v1285_v26, %v1279_v57  ;;  %v1322_v57 = vld [vmem:[#allocation3 + $0x448] sm:$0xff]  ;;  %v1315_v26 = vld [vmem:[#allocation3 + $0x410] sm:$0xff] }
 0x1d3   :  { %6360 = vmatprep.subr.bf16.mxu1 %v8521_v12  ;;  %v8767_v12 = vpack.c.bf16 %v1298_v29, %v1292_v45  ;;  %v1321_v45 = vld [vmem:[#allocation3 + $0x440] sm:$0xff]  ;;  %v1328_v29 = vld [vmem:[#allocation3 + $0x478] sm:$0xff] }
 0x1d5   :  { %6298 = vmatpush1.bf16.msra.mxu0 %v8748_v23 }
 0x1d6   :  { %6300 = vmatprep.subr.bf16.mxu0 %v8751_v40  ;;  %6362 = vmatpush1.bf16.msra.mxu1 %v8524_v44  ;;  %v8772_v44 = vpack.c.bf16 %v1297_v36, %v1291_v49  ;;  %v1334_v49 = vld [vmem:[#allocation3 + $0x4a8] sm:$0xff]  ;;  %v1327_v36 = vld [vmem:[#allocation3 + $0x470] sm:$0xff] }
 0x1d7   :  { %6364 = vmatprep.subr.bf16.mxu1 %v8528_v46  ;;  %v8775_v46 = vpack.c.bf16 %v1310_v8, %v1304_v30  ;;  %v1333_v30 = vld [vmem:[#allocation3 + $0x4a0] sm:$0xff]  ;;  %v1340_v8 = vld [vmem:[#allocation3 + $0x4d8] sm:$0xff] }
 0x1d9   :  { %6302 = vmatpush1.bf16.msra.mxu0 %v8756_v3 }
 0x1da   :  { %6304 = vmatprep.subr.bf16.mxu0 %v8759_v21  ;;  %6366 = vmatpush1.bf16.msra.mxu1 %v8530_v56  ;;  %v8780_v56 = vpack.c.bf16 %v1309_v47, %v1303_v18  ;;  %v1346_v18 = vld [vmem:[#allocation3 + $0x508] sm:$0xff]  ;;  %v1339_v47 = vld [vmem:[#allocation3 + $0x4d0] sm:$0xff] }
 0x1db   :  { %6368 = vmatprep.subr.bf16.mxu1 %v8534_v60  ;;  %v8783_v60 = vpack.c.bf16 %v1322_v57, %v1316_v55  ;;  %v1345_v55 = vld [vmem:[#allocation3 + $0x500] sm:$0xff]  ;;  %v1352_v57 = vld [vmem:[#allocation3 + $0x538] sm:$0xff] }
 0x1dd   :  { %6306 = vmatpush1.bf16.msra.mxu0 %v8764_v53 }
 0x1de   :  { %6308 = vmatprep.subr.bf16.mxu0 %v8767_v12  ;;  %6370 = vmatpush1.bf16.msra.mxu1 %v8536_v6  ;;  %v8788_v6 = vpack.c.bf16 %v1321_v45, %v1315_v26  ;;  %v1358_v26 = vld [vmem:[#allocation3 + $0x568] sm:$0xff]  ;;  %v1351_v45 = vld [vmem:[#allocation3 + $0x530] sm:$0xff] }
 0x1df   :  { %6372 = vmatprep.subr.bf16.mxu1 %v8538_v9  ;;  %v8791_v9 = vpack.c.bf16 %v1334_v49, %v1328_v29  ;;  %v1357_v29 = vld [vmem:[#allocation3 + $0x560] sm:$0xff]  ;;  %v1364_v49 = vld [vmem:[#allocation3 + $0x598] sm:$0xff] }
 0x1e1   :  { %6310 = vmatpush1.bf16.msra.mxu0 %v8772_v44 }
 0x1e2   :  { %6312 = vmatprep.subr.bf16.mxu0 %v8775_v46  ;;  %6374 = vmatpush1.bf16.msra.mxu1 %v8542_v17  ;;  %v8796_v17 = vpack.c.bf16 %v1333_v30, %v1327_v36  ;;  %v1370_v36 = vld [vmem:[#allocation3 + $0x5c8] sm:$0xff]  ;;  %v1363_v30 = vld [vmem:[#allocation3 + $0x590] sm:$0xff] }
 0x1e3   :  { %6376 = vmatprep.subr.bf16.mxu1 %v8545_v20  ;;  %v8799_v20 = vpack.c.bf16 %v1346_v18, %v1340_v8  ;;  %v1369_v8 = vld [vmem:[#allocation3 + $0x5c0] sm:$0xff]  ;;  %v1376_v18 = vld [vmem:[#allocation3 + $0x5f8] sm:$0xff] }
 0x1e5   :  { %6314 = vmatpush1.bf16.msra.mxu0 %v8780_v56 }
 0x1e6   :  { %6316 = vmatprep.subr.bf16.mxu0 %v8783_v60  ;;  %6378 = vmatpush1.bf16.msra.mxu1 %v8548_v27  ;;  %v8804_v27 = vpack.c.bf16 %v1345_v55, %v1339_v47  ;;  %v1382_v47 = vld [vmem:[#allocation3 + $0x628] sm:$0xff]  ;;  %v1375_v55 = vld [vmem:[#allocation3 + $0x5f0] sm:$0xff] }
 0x1e7   :  { %6380 = vmatprep.subr.bf16.mxu1 %v8552_v32  ;;  %v8807_v32 = vpack.c.bf16 %v1358_v26, %v1352_v57  ;;  %v1381_v57 = vld [vmem:[#allocation3 + $0x620] sm:$0xff]  ;;  %v1388_v26 = vld [vmem:[#allocation3 + $0x658] sm:$0xff] }
 0x1e9   :  { %6318 = vmatpush1.bf16.msra.mxu0 %v8788_v6 }
 0x1ea   :  { %6320 = vmatprep.subr.bf16.mxu0 %v8791_v9  ;;  %6382 = vmatpush1.bf16.msra.mxu1 %v8554_v41  ;;  %v8812_v41 = vpack.c.bf16 %v1357_v29, %v1351_v45  ;;  %v1394_v45 = vld [vmem:[#allocation3 + $0x688] sm:$0xff]  ;;  %v1387_v29 = vld [vmem:[#allocation3 + $0x650] sm:$0xff] }
 0x1eb   :  { %6384 = vmatprep.subr.bf16.mxu1 %v8558_v1  ;;  %v8815_v1 = vpack.c.bf16 %v1370_v36, %v1364_v49  ;;  %v1393_v49 = vld [vmem:[#allocation3 + $0x680] sm:$0xff]  ;;  %v10359_v36 = vld [vmem:[#allocation14_spill] sm:$0xff] }
 0x1ed   :  { %6322 = vmatpush1.bf16.msra.mxu0 %v8796_v17 }
 0x1ee   :  { %6324 = vmatprep.subr.bf16.mxu0 %v8799_v20  ;;  %6386 = vmatpush1.bf16.msra.mxu1 %v8560_v50  ;;  %v8820_v50 = vpack.c.bf16 %v1369_v8, %v1363_v30  ;;  %v1741_v30 = vld [vmem:[#allocation3 + $0xa0] sm:$0xff] }
 0x1ef   :  { %6388 = vmatprep.subr.bf16.mxu1 %v8568_v52  ;;  %v8823_v52 = vpack.c.bf16 %v1382_v47, %v1376_v18  ;;  %v1747_v18 = vld [vmem:[#allocation3 + $0xd0] sm:$0xff]  ;;  %v1754_v47 = vld [vmem:[#allocation3 + $0x108] sm:$0xff] }
 0x1f1   :  { %6326 = vmatpush1.bf16.msra.mxu0 %v8804_v27 }
 0x1f2   :  { %6328 = vmatprep.subr.bf16.mxu0 %v8807_v32  ;;  %6390 = vmatpush1.bf16.msra.mxu1 %v8570_v39  ;;  %v8828_v39 = vpack.c.bf16 %v1381_v57, %v1375_v55  ;;  %v1760_v55 = vld [vmem:[#allocation3 + $0x138] sm:$0xff]  ;;  %v8847_v57 = vpack.c.bf16 %v1747_v18, %v1741_v30 }
 0x1f3   :  { %6392 = vmatprep.subr.bf16.mxu1 %v8578_v51  ;;  %v8831_v51 = vpack.c.bf16 %v1394_v45, %v1388_v26  ;;  %v1759_v26 = vld [vmem:[#allocation3 + $0x130] sm:$0xff]  ;;  %v1766_v45 = vld [vmem:[#allocation3 + $0x168] sm:$0xff] }
 0x1f5   :  { %6330 = vmatpush1.bf16.msra.mxu0 %v8812_v41 }
 0x1f6   :  { %6332 = vmatprep.subr.bf16.mxu0 %v8815_v1  ;;  %6394 = vmatpush1.bf16.msra.mxu1 %v8580_v63  ;;  %v8836_v63 = vpack.c.bf16 %v1393_v49, %v1387_v29  ;;  %v1772_v29 = vld [vmem:[#allocation3 + $0x198] sm:$0xff] }
 0x1f7   :  { %6396 = vmatprep.subr.bf16.mxu1 %v8583_v14  ;;  %v10358_v14 = vld [vmem:[#allocation13_spill] sm:$0xff]  ;;  %v8856_v49 = vpack.c.bf16 %v1772_v29, %v1766_v45 }
 0x1f8   :  { %10360 = vst [vmem:[#allocation13_spill] sm:$0xff] %v8847_v57 }
 0x1f9   :  { %6334 = vmatpush1.bf16.msra.mxu0 %v8820_v50  ;;  %10363 = vst [vmem:[#allocation32_spill] sm:$0xff] %v8856_v49 }
 0x1fa   :  { %6336 = vmatprep.subr.bf16.mxu0 %v8823_v52  ;;  %6398 = vmatpush1.bf16.msra.mxu1 %v8586_v16  ;;  %v1742_v16 = vld [vmem:[#allocation3 + $0xa8] sm:$0xff] }
 0x1fb   :  { %6400 = vmatprep.subr.bf16.mxu1 %v8589_v22  ;;  %v1748_v22 = vld [vmem:[#allocation3 + $0xd8] sm:$0xff] }
 0x1fc   :  { %v8845_v8 = vpack.c.bf16 %v1748_v22, %v1742_v16  ;;  %v1778_v16 = vld [vmem:[#allocation3 + $0x1c8] sm:$0xff]  ;;  %v1784_v22 = vld [vmem:[#allocation3 + $0x1f8] sm:$0xff] }
 0x1fd   :  { %6338 = vmatpush1.bf16.msra.mxu0 %v8828_v39  ;;  %v8862_v18 = vpack.c.bf16 %v1784_v22, %v1778_v16  ;;  %v8871_v16 = vpack.c.bf16 %v1795_v24, %v1789_v38  ;;  %v1826_v24 = vld [vmem:[#allocation3 + $0x348] sm:$0xff]  ;;  %v1832_v38 = vld [vmem:[#allocation3 + $0x378] sm:$0xff] }
 0x1fe   :  { %6340 = vmatprep.subr.bf16.mxu0 %v8831_v51  ;;  %6402 = vmatpush1.bf16.msra.mxu1 %v8592_v35  ;;  %v8849_v35 = vpack.c.bf16 %v1760_v55, %v1754_v47  ;;  %v1777_v47 = vld [vmem:[#allocation3 + $0x1c0] sm:$0xff]  ;;  %v1783_v55 = vld [vmem:[#allocation3 + $0x1f0] sm:$0xff] }
 0x1ff   :  { %6404 = vmatprep.subr.bf16.mxu1 %v8595_v42  ;;  %v1753_v42 = vld [vmem:[#allocation3 + $0x100] sm:$0xff]  ;;  %10365 = vst [vmem:[#allocation34_spill] sm:$0xff] %v8862_v18  ;;  %v8865_v45 = vpack.c.bf16 %v1783_v55, %v1777_v47  ;;  %10368 = vst [vmem:[#allocation37_spill] sm:$0xff] %v8871_v16  ;;  %v1814_v47 = vld [vmem:[#allocation3 + $0x2e8] sm:$0xff] }
 0x200   :  { %10361 = vst [vmem:[#allocation14_spill] sm:$0xff] %v8849_v35  ;;  %v1820_v55 = vld [vmem:[#allocation3 + $0x318] sm:$0xff] }
 0x201   :  { %6342 = vmatpush1.bf16.msra.mxu0 %v8836_v63  ;;  %10366 = vst [vmem:[#allocation35_spill] sm:$0xff] %v8865_v45 }
 0x202   :  { %6406 = vmatpush1.bf16.msra.mxu1 %v10358_v14  ;;  %6408 = vmatprep.subr.bf16.mxu0 %v8845_v8  ;;  %v1765_v14 = vld [vmem:[#allocation3 + $0x160] sm:$0xff] }
 0x203   :  { %6472 = vmatprep.subr.bf16.mxu1 %v10359_v36  ;;  %v1771_v36 = vld [vmem:[#allocation3 + $0x190] sm:$0xff] }
 0x204   :  { %1602 = vmatmul.mubr.f32.vlgmr.msra.gmra.mrb[16].mxu0 %v8710_v58  ;;  %v8853_v58 = vpack.c.bf16 %v1759_v26, %v1753_v42  ;;  %v8859_v30 = vpack.c.bf16 %v1771_v36, %v1765_v14  ;;  %v1790_v42 = vld [vmem:[#allocation3 + $0x228] sm:$0xff]  ;;  %v1796_v26 = vld [vmem:[#allocation3 + $0x258] sm:$0xff] }
 0x205   :  { %6410 = vmatpush1.bf16.msra.mxu0 %v8847_v57  ;;  %v8868_v29 = vpack.c.bf16 %v1796_v26, %v1790_v42  ;;  %v1802_v14 = vld [vmem:[#allocation3 + $0x288] sm:$0xff]  ;;  %v1808_v36 = vld [vmem:[#allocation3 + $0x2b8] sm:$0xff]  ;;  %v8880_v26 = vpack.c.bf16 %v1820_v55, %v1814_v47 }
 0x206   :  { %10362 = vst [vmem:[#allocation31_spill] sm:$0xff] %v8853_v58  ;;  %6412 = vmatprep.subr.bf16.mxu0 %v8849_v35  ;;  %10364 = vst [vmem:[#allocation33_spill] sm:$0xff] %v8859_v30  ;;  %v8874_v22 = vpack.c.bf16 %v1808_v36, %v1802_v14  ;;  %v8886_v36 = vpack.c.bf16 %v1832_v38, %v1826_v24  ;;  %v1856_v24 = vld [vmem:[#allocation3 + $0x438] sm:$0xff] }
 0x207   :  { %10367 = vst [vmem:[#allocation36_spill] sm:$0xff] %v8868_v29  ;;  %10371 = vst [vmem:[#allocation40_spill] sm:$0xff] %v8880_v26 }
 0x208   :  { %10369 = vst [vmem:[#allocation38_spill] sm:$0xff] %v8874_v22  ;;  %10373 = vst [vmem:[#allocation42_spill] sm:$0xff] %v8886_v36 }
 0x209   :  { %6414 = vmatpush1.bf16.msra.mxu0 %v8853_v58  ;;  %v1710_v58 = vrot.slane %v8696_v10, 7 }
 0x20a   :  { %6416 = vmatprep.subr.bf16.mxu0 %v8856_v49  ;;  %v1801_v49 = vld [vmem:[#allocation3 + $0x280] sm:$0xff] }
 0x20d   :  { %6418 = vmatpush1.bf16.msra.mxu0 %v8859_v30  ;;  %v1807_v30 = vld [vmem:[#allocation3 + $0x2b0] sm:$0xff] }
 0x20e   :  { %6420 = vmatprep.subr.bf16.mxu0 %v8862_v18  ;;  %v8877_v42 = vpack.c.bf16 %v1807_v30, %v1801_v49  ;;  %v1813_v18 = vld [vmem:[#allocation3 + $0x2e0] sm:$0xff]  ;;  %v1838_v49 = vld [vmem:[#allocation3 + $0x3a8] sm:$0xff]  ;;  %v1844_v30 = vld [vmem:[#allocation3 + $0x3d8] sm:$0xff] }
 0x20f   :  { %v8892_v55 = vpack.c.bf16 %v1844_v30, %v1838_v49  ;;  %v1862_v49 = vld [vmem:[#allocation3 + $0x468] sm:$0xff]  ;;  %v1868_v30 = vld [vmem:[#allocation3 + $0x498] sm:$0xff] }
 0x210   :  { %10370 = vst [vmem:[#allocation39_spill] sm:$0xff] %v8877_v42 }
 0x211   :  { %6422 = vmatpush1.bf16.msra.mxu0 %v8865_v45  ;;  %v1819_v45 = vld [vmem:[#allocation3 + $0x310] sm:$0xff]  ;;  %10375 = vst [vmem:[#allocation44_spill] sm:$0xff] %v8892_v55 }
 0x212   :  { %6424 = vmatprep.subr.bf16.mxu0 %v8868_v29  ;;  %v8883_v14 = vpack.c.bf16 %v1819_v45, %v1813_v18  ;;  %v1825_v29 = vld [vmem:[#allocation3 + $0x340] sm:$0xff]  ;;  %v1850_v45 = vld [vmem:[#allocation3 + $0x408] sm:$0xff] }
 0x213   :  { %v8899_v38 = vpack.c.bf16 %v1856_v24, %v1850_v45  ;;  %v1874_v45 = vld [vmem:[#allocation3 + $0x4c8] sm:$0xff]  ;;  %v1880_v24 = vld [vmem:[#allocation3 + $0x4f8] sm:$0xff] }
 0x214   :  { %10372 = vst [vmem:[#allocation41_spill] sm:$0xff] %v8883_v14 }
 0x215   :  { %6426 = vmatpush1.bf16.msra.mxu0 %v8871_v16  ;;  %v1831_v16 = vld [vmem:[#allocation3 + $0x370] sm:$0xff]  ;;  %10377 = vst [vmem:[#allocation46_spill] sm:$0xff] %v8899_v38 }
 0x216   :  { %6428 = vmatprep.subr.bf16.mxu0 %v8874_v22  ;;  %v8889_v47 = vpack.c.bf16 %v1831_v16, %v1825_v29  ;;  %v1837_v22 = vld [vmem:[#allocation3 + $0x3a0] sm:$0xff]  ;;  %v1855_v16 = vld [vmem:[#allocation3 + $0x430] sm:$0xff] }
 0x217   :  { %v1849_v29 = vld [vmem:[#allocation3 + $0x400] sm:$0xff] }
 0x218   :  { %10374 = vst [vmem:[#allocation43_spill] sm:$0xff] %v8889_v47 }
 0x219   :  { %6430 = vmatpush1.bf16.msra.mxu0 %v8877_v42  ;;  %v1843_v42 = vld [vmem:[#allocation3 + $0x3d0] sm:$0xff] }
 0x21a   :  { %6432 = vmatprep.subr.bf16.mxu0 %v8880_v26  ;;  %v8895_v18 = vpack.c.bf16 %v1843_v42, %v1837_v22  ;;  %v8905_v22 = vpack.c.bf16 %v1868_v30, %v1862_v49  ;;  %v1861_v42 = vld [vmem:[#allocation3 + $0x460] sm:$0xff]  ;;  %v1891_v26 = vld [vmem:[#allocation3 + $0x550] sm:$0xff] }
 0x21b   :  { %v1885_v30 = vld [vmem:[#allocation3 + $0x520] sm:$0xff] }
 0x21c   :  { %10376 = vst [vmem:[#allocation45_spill] sm:$0xff] %v8895_v18  ;;  %10379 = vst [vmem:[#allocation48_spill] sm:$0xff] %v8905_v22 }
 0x21d   :  { %6434 = vmatpush1.bf16.msra.mxu0 %v8883_v14  ;;  %v8901_v14 = vpack.c.bf16 %v1855_v16, %v1849_v29  ;;  %v8911_v29 = vpack.c.bf16 %v1880_v24, %v1874_v45  ;;  %v1879_v16 = vld [vmem:[#allocation3 + $0x4f0] sm:$0xff]  ;;  %v1897_v24 = vld [vmem:[#allocation3 + $0x580] sm:$0xff] }
 0x21e   :  { %6436 = vmatprep.subr.bf16.mxu0 %v8886_v36 }
 0x21f   :  { %10378 = vst [vmem:[#allocation47_spill] sm:$0xff] %v8901_v14  ;;  %10381 = vst [vmem:[#allocation50_spill] sm:$0xff] %v8911_v29 }
 0x221   :  { %6438 = vmatpush1.bf16.msra.mxu0 %v8889_v47 }
 0x222   :  { %6440 = vmatprep.subr.bf16.mxu0 %v8892_v55  ;;  %v1867_v55 = vld [vmem:[#allocation3 + $0x490] sm:$0xff] }
 0x223   :  { %v8907_v47 = vpack.c.bf16 %v1867_v55, %v1861_v42  ;;  %v1898_v55 = vld [vmem:[#allocation3 + $0x588] sm:$0xff]  ;;  %v1904_v42 = vld [vmem:[#allocation3 + $0x5b8] sm:$0xff] }
 0x224   :  { %v8922_v45 = vpack.c.bf16 %v1904_v42, %v1898_v55 }
 0x225   :  { %6442 = vmatpush1.bf16.msra.mxu0 %v8895_v18  ;;  %10380 = vst [vmem:[#allocation49_spill] sm:$0xff] %v8907_v47  ;;  %v1873_v18 = vld [vmem:[#allocation3 + $0x4c0] sm:$0xff] }
 0x226   :  { %6444 = vmatprep.subr.bf16.mxu0 %v8899_v38  ;;  %v1886_v38 = vld [vmem:[#allocation3 + $0x528] sm:$0xff]  ;;  %v8913_v36 = vpack.c.bf16 %v1879_v16, %v1873_v18  ;;  %10385 = vst [vmem:[#allocation54_spill] sm:$0xff] %v8922_v45  ;;  %v1916_v16 = vld [vmem:[#allocation3 + $0x618] sm:$0xff] }
 0x227   :  { %v1910_v18 = vld [vmem:[#allocation3 + $0x5e8] sm:$0xff] }
 0x228   :  { %10382 = vst [vmem:[#allocation51_spill] sm:$0xff] %v8913_v36 }
 0x229   :  { %6446 = vmatpush1.bf16.msra.mxu0 %v8901_v14  ;;  %v1892_v14 = vld [vmem:[#allocation3 + $0x558] sm:$0xff] }
 0x22a   :  { %6448 = vmatprep.subr.bf16.mxu0 %v8905_v22  ;;  %v8915_v49 = vpack.c.bf16 %v1892_v14, %v1886_v38  ;;  %v8919_v22 = vpack.c.bf16 %v1891_v26, %v1885_v30  ;;  %v8928_v38 = vpack.c.bf16 %v1916_v16, %v1910_v18  ;;  %v1922_v26 = vld [vmem:[#allocation3 + $0x648] sm:$0xff]  ;;  %v1928_v30 = vld [vmem:[#allocation3 + $0x678] sm:$0xff] }
 0x22b   :  { %v8934_v42 = vpack.c.bf16 %v1928_v30, %v1922_v26 }
 0x22c   :  { %10383 = vst [vmem:[#allocation52_spill] sm:$0xff] %v8915_v49  ;;  %10384 = vst [vmem:[#allocation53_spill] sm:$0xff] %v8919_v22 }
 0x22d   :  { %6450 = vmatpush1.bf16.msra.mxu0 %v8907_v47  ;;  %v1903_v47 = vld [vmem:[#allocation3 + $0x5b0] sm:$0xff]  ;;  %10387 = vst [vmem:[#allocation56_spill] sm:$0xff] %v8928_v38  ;;  %10389 = vst [vmem:[#allocation58_spill] sm:$0xff] %v8934_v42 }
 0x22e   :  { %6452 = vmatprep.subr.bf16.mxu0 %v8911_v29  ;;  %v8925_v14 = vpack.c.bf16 %v1903_v47, %v1897_v24  ;;  %v1909_v29 = vld [vmem:[#allocation3 + $0x5e0] sm:$0xff] }
 0x230   :  { %10386 = vst [vmem:[#allocation55_spill] sm:$0xff] %v8925_v14 }
 0x231   :  { %6454 = vmatpush1.bf16.msra.mxu0 %v8913_v36  ;;  %v1915_v36 = vld [vmem:[#allocation3 + $0x610] sm:$0xff] }
 0x232   :  { %6456 = vmatprep.subr.bf16.mxu0 %v8915_v49  ;;  %v8931_v55 = vpack.c.bf16 %v1915_v36, %v1909_v29  ;;  %v1921_v49 = vld [vmem:[#allocation3 + $0x640] sm:$0xff] }
 0x234   :  { %10388 = vst [vmem:[#allocation57_spill] sm:$0xff] %v8931_v55 }
 0x235   :  { %6458 = vmatpush1.bf16.msra.mxu0 %v8919_v22  ;;  %v1927_v22 = vld [vmem:[#allocation3 + $0x670] sm:$0xff] }
 0x236   :  { %6460 = vmatprep.subr.bf16.mxu0 %v8922_v45  ;;  %v8937_v47 = vpack.c.bf16 %v1927_v22, %v1921_v49 }
 0x238   :  { %10390 = vst [vmem:[#allocation59_spill] sm:$0xff] %v8937_v47 }
 0x239   :  { %6462 = vmatpush1.bf16.msra.mxu0 %v8925_v14 }
 0x23a   :  { %6464 = vmatprep.subr.bf16.mxu0 %v8928_v38 }
 0x23d   :  { %6466 = vmatpush1.bf16.msra.mxu0 %v8931_v55 }
 0x23e   :  { %6468 = vmatprep.subr.bf16.mxu0 %v8934_v42 }
 0x241   :  { %6470 = vmatpush1.bf16.msra.mxu0 %v8937_v47 }
 0x297   :  { %v1461_v24 = vpop.f32.mrb[14].mxu0  ;;  %v1532_v18 = vpop.f32.mrb[8].mxu1 }
 0x298   :  { %v1614_v16 = vrot.slane %v1532_v18, 7  ;;  %v1463_v14 = vpop.f32.mrb[15].mxu0  ;;  %v1534_v36 = vpop.f32.mrb[9].mxu1  ;;  %v1612_v47 = vrot.slane %v1461_v24, 7 }
 0x299   :  { %v1615_v29 = vrot.slane %v1534_v36, 7  ;;  %v1613_v35 = vrot.slane %v1463_v14, 7 }
 0x29a   :  { %v1626_v38 = vadd.f32 %v1614_v16, %v8650_v11  ;;  %v1628_v16 = vadd.f32 %v1461_v24, %v8635_v19  ;;  %v10394_v19 = vld [vmem:[#allocation29_spill] sm:$0xff] }
 0x29b   :  { %v1627_v26 = vadd.f32 %v1615_v29, %v8653_v4  ;;  %v1629_v29 = vadd.f32 %v1463_v14, %v8639_v37 }
 0x29c   :  { %v5794_v30 = vmul.f32 -1.442695, %v1626_v38 }
 0x29d   :  { %v5795_v45 = vmul.f32 -1.442695, %v1627_v26  ;;  %v10391_v26 = vld [vmem:[#allocation18_spill] sm:$0xff] }
 0x29e   :  { %7797 = vpow2.f32 %v5794_v30  ;;  %v1624_v30 = vadd.f32 %v1612_v47, %v10391_v26 }
 0x29f   :  { %7799 = vpow2.f32 %v5795_v45  ;;  %v1711_v45 = vrot.slane %v8698_v62, 7  ;;  %v1631_v62 = vadd.f32 %v1534_v36, %v8660_v0 }
 0x2a0   :  { %v5792_v4 = vmul.f32 -1.442695, %v1624_v30 }
 0x2a1   :  { %v5799_v47 = vmul.f32 -1.442695, %v1631_v62 }
 0x2a8   :  { %v7798_v22 = vpop.eup %7797 }
 0x2a9   :  { %v1658_v49 = vadd.f32 1.0, %v7798_v22  ;;  %v7800_v55 = vpop.eup %7799 }
 0x2aa   :  { %v1659_v42 = vadd.f32 1.0, %v7800_v55  ;;  %v1625_v55 = vadd.f32 %v1613_v35, %v8633_v31 }
 0x2ab   :  { %7801 = vrcp.f32 %v1658_v49  ;;  %v5797_v49 = vmul.f32 -1.442695, %v1629_v29 }
 0x2ac   :  { %7803 = vrcp.f32 %v1659_v42  ;;  %v5796_v42 = vmul.f32 -1.442695, %v1628_v16  ;;  %v5793_v24 = vmul.f32 -1.442695, %v1625_v55 }
 0x2ae   :  { %7805 = vpow2.f32 %v5796_v42 }
 0x2af   :  { %7807 = vpow2.f32 %v5797_v49 }
 0x2b0   :  { %7809 = vpow2.f32 %v5792_v4 }
 0x2b1   :  { %7811 = vpow2.f32 %v5793_v24 }
 0x2b5   :  { %v8944_v57 = vpop.eup %7801 }
 0x2b6   :  { %v8949_v38 = vmul.f32 %v8944_v57, %v1710_v58  ;;  %v8953_v22 = vpop.eup %7803  ;;  %v1630_v58 = vadd.f32 %v1532_v18, %v8656_v33 }
 0x2b7   :  { %v8957_v10 = vmul.f32 %v8953_v22, %v1711_v45 }
 0x2b8   :  { %v5798_v14 = vmul.f32 -1.442695, %v1630_v58  ;;  %v7806_v11 = vpop.eup %7805 }
 0x2b9   :  { %v7808_v37 = vpop.eup %7807  ;;  %v1660_v45 = vadd.f32 1.0, %v7806_v11 }
 0x2ba   :  { %7813 = vpow2.f32 %v5798_v14  ;;  %v7810_v35 = vpop.eup %7809  ;;  %v1661_v29 = vadd.f32 1.0, %v7808_v37 }
 0x2bb   :  { %7815 = vpow2.f32 %v5799_v47  ;;  %v7812_v16 = vpop.eup %7811  ;;  %v1656_v30 = vadd.f32 1.0, %v7810_v35 }
 0x2bc   :  { %v1657_v55 = vadd.f32 1.0, %v7812_v16  ;;  %7817 = vrcp.f32 %v1660_v45 }
 0x2bd   :  { %7819 = vrcp.f32 %v1661_v29 }
 0x2be   :  { %7821 = vrcp.f32 %v1656_v30 }
 0x2bf   :  { %7823 = vrcp.f32 %v1657_v55 }
 0x2c4   :  { %v7814_v4 = vpop.eup %7813 }
 0x2c5   :  { %v7816_v18 = vpop.eup %7815  ;;  %v1662_v42 = vadd.f32 1.0, %v7814_v4 }
 0x2c6   :  { %v1663_v36 = vadd.f32 1.0, %v7816_v18  ;;  %v7818_v62 = vpop.eup %7817  ;;  %v10392_v18 = vld [vmem:[#allocation30_spill] sm:$0xff] }
 0x2c7   :  { %v7820_v47 = vpop.eup %7819  ;;  %7825 = vrcp.f32 %v1662_v42 }
 0x2c8   :  { %v7822_v35 = vpop.eup %7821  ;;  %7827 = vrcp.f32 %v1663_v36 }
 0x2c9   :  { %v7824_v29 = vpop.eup %7823 }
 0x2d1   :  { %v7826_v42 = vpop.eup %7825 }
 0x2d2   :  { %v1704_v36 = vsub.f32 1.0, %v7826_v42 }
 0x2d7   :  { %v1603_v49 = vpop.f32.mrb[16].mxu0 }
 0x2d8   :  { %v1680_v24 = vadd.f32 %v1603_v49, %v8671_v59  ;;  %v1605_v58 = vpop.f32.mrb[17].mxu0  ;;  %v10393_v49 = vld [vmem:[#allocation28_spill] sm:$0xff] }
 0x2d9   :  { %v1681_v14 = vadd.f32 %v1605_v58, %v8674_v54 }
 0x2da   :  { %v1684_v37 = vrot.slane %v1680_v24, 7  ;;  %v1692_v11 = vmul.f32 %v7818_v62, %v1680_v24  ;;  %v7828_v24 = vpop.eup %7827 }
 0x2db   :  { %v1685_v16 = vrot.slane %v1681_v14, 7  ;;  %v1693_v45 = vmul.f32 %v7820_v47, %v1681_v14  ;;  %v1705_v14 = vsub.f32 1.0, %v7828_v24 }
 0x2dc   :  { %v1690_v30 = vmul.f32 %v7822_v35, %v1684_v37  ;;  %v1696_v55 = vadd.f32 %v1692_v11, %v8687_v7  ;;  %v1702_v37 = vsub.f32 1.0, %v8944_v57  ;;  %v10395_v35 = vrot.slane %v8700_v28, 7 }
 0x2dd   :  { %v1691_v4 = vmul.f32 %v7824_v29, %v1685_v16  ;;  %v1697_v31 = vadd.f32 %v1693_v45, %v10392_v18  ;;  %v1703_v29 = vsub.f32 1.0, %v8953_v22 }
 0x2de   :  { %v1694_v59 = vadd.f32 %v1690_v30, %v10393_v49  ;;  %7829 = vtanh.f32 %v1696_v55  ;;  %v1718_v16 = vmul.f32 %v7826_v42, %v10395_v35  ;;  %v2312_v35 = vld [vmem:[#allocation3 + $0x158] sm:$0xff] }
 0x2df   :  { %v1695_v58 = vadd.f32 %v1691_v4, %v10394_v19  ;;  %7831 = vtanh.f32 %v1697_v31  ;;  %v10396_v31 = vrot.slane %v8702_v5, 7 }
 0x2e0   :  { %7833 = vtanh.f32 %v1694_v59 }
 0x2e1   :  { %7835 = vtanh.f32 %v1695_v58  ;;  %v1719_v59 = vmul.f32 %v7828_v24, %v10396_v31 }
 0x2e8   :  { %v7830_v62 = vpop.eup %7829 }
 0x2e9   :  { %v7832_v47 = vpop.eup %7831  ;;  %v1708_v11 = vmul.f32 %v7830_v62, %v1704_v36 }
 0x2ea   :  { %v7834_v45 = vpop.eup %7833  ;;  %v1709_v30 = vmul.f32 %v7832_v47, %v1705_v14 }
 0x2eb   :  { %v7836_v55 = vpop.eup %7835  ;;  %v1706_v4 = vmul.f32 %v7834_v45, %v1702_v37  ;;  %v8973_v58 = vadd.f32 %v1718_v16, %v1708_v11  ;;  %v2299_v37 = vld [vmem:[#allocation3 + $0xf0] sm:$0xff]  ;;  %v2305_v11 = vld [vmem:[#allocation3 + $0x120] sm:$0xff]  ;;  %v2318_v16 = vld [vmem:[#allocation3 + $0x188] sm:$0xff] }
 0x2ec   :  { %v1707_v18 = vmul.f32 %v7836_v55, %v1703_v29  ;;  %v8975_v19 = vadd.f32 %v1719_v59, %v1709_v30  ;;  %v10421_v45 = vld [vmem:[#allocation53_spill] sm:$0xff]  ;;  %v9061_v29 = vpack.c.bf16 %v2305_v11, %v2299_v37  ;;  %v10422_v30 = vld [vmem:[#allocation54_spill] sm:$0xff]  ;;  %v9065_v31 = vpack.c.bf16 %v2318_v16, %v2312_v35  ;;  %v2317_v55 = vld [vmem:[#allocation3 + $0x180] sm:$0xff] }
 0x2ed   :  { %v8978_v57 = vadd.f32 %v8949_v38, %v1706_v4  ;;  %v1729_v42 = vrot.slane %v8973_v58, 6  ;;  %v2311_v59 = vld [vmem:[#allocation3 + $0x150] sm:$0xff]  ;;  %v2324_v4 = vld [vmem:[#allocation3 + $0x1b8] sm:$0xff]  ;;  %v2389_v37 = vld [vmem:[#allocation3 + $0x3c0] sm:$0xff] }
 0x2ee   :  { %v8981_v28 = vadd.f32 %v8957_v10, %v1707_v18  ;;  %v1733_v36 = vrot.slane %v8975_v19, 6  ;;  %v2396_v35 = vld [vmem:[#allocation3 + $0x3f8] sm:$0xff]  ;;  %v2402_v16 = vld [vmem:[#allocation3 + $0x428] sm:$0xff] }
 0x2ef   :  { %v10267_v22 = vrot.slane %v8978_v57, 7  ;;  %v1931_v5 = vrot.slane %v8978_v57, 1 }
 0x2f0   :  { %v10266_v24 = vrot.slane %v8981_v28, 7  ;;  %v1933_v62 = vrot.slane %v8981_v28, 1 }
 0x2f1   :  { %v1731_v38 = vsel %vm1730_vm7, %v1729_v42, %v10267_v22  ;;  %v1932_v10 = vsel %vm1195_vm6, %v8973_v58, %v1931_v5  ;;  %v2330_v42 = vld [vmem:[#allocation3 + $0x1e8] sm:$0xff]  ;;  %v10423_v5 = vld [vmem:[#allocation55_spill] sm:$0xff] }
 0x2f2   :  { %v1734_v18 = vsel %vm1730_vm7, %v1733_v36, %v10266_v24  ;;  %v1934_v14 = vsel %vm1195_vm6, %v8975_v19, %v1933_v62  ;;  %1737 = vst [vmem:[#allocation2] sm:$0xc] %v1731_v38  ;;  %v9069_v36 = vpack.c.bf16 %v2317_v55, %v2311_v59  ;;  %v10424_v62 = vld [vmem:[#allocation56_spill] sm:$0xff]  ;;  %v9073_v38 = vpack.c.bf16 %v2330_v42, %v2324_v4  ;;  %v2401_v59 = vld [vmem:[#allocation3 + $0x420] sm:$0xff]  ;;  %v2408_v4 = vld [vmem:[#allocation3 + $0x458] sm:$0xff] }
 0x2f3   :  { %1738 = vst [vmem:[#allocation2 + $0x8] sm:$0xc] %v1734_v18  ;;  %2001 = vmatprep.mubr.f32.mxu1 %v1934_v14  ;;  %2072 = vmatprep.mubr.f32.mxu0 %v1934_v14  ;;  %v2329_v18 = vld [vmem:[#allocation3 + $0x1e0] sm:$0xff]  ;;  %v2414_v42 = vld [vmem:[#allocation3 + $0x488] sm:$0xff] }
 0x2f4   :  { %2002 = vmatmul.mubr.f32.vlgmr.msra.gmra.mrb[10].mxu1 %v1932_v10  ;;  %2073 = vmatmul.mubr.f32.vlgmr.msra.gmra.mrb[18].mxu0 %v1932_v10  ;;  %v10432_v22 = vld [vmem:[#allocation23_spill] sm:$0xff] }
 0x2f5   :  { %6474 = vmatpush1.bf16.msra.mxu1 %v8712_v13  ;;  %2143 = vmatprep.mubr.f32.mxu1 %v1934_v14  ;;  %v10397_v13 = vld [vmem:[#allocation13_spill] sm:$0xff]  ;;  %v2336_v14 = vld [vmem:[#allocation3 + $0x218] sm:$0xff] }
 0x2f6   :  { %6476 = vmatprep.subr.bf16.mxu1 %v8719_v15  ;;  %v10398_v15 = vld [vmem:[#allocation14_spill] sm:$0xff] }
 0x2f9   :  { %6478 = vmatpush1.bf16.msra.mxu1 %v8724_v25  ;;  %v10399_v25 = vld [vmem:[#allocation31_spill] sm:$0xff] }
 0x2fa   :  { %6480 = vmatprep.subr.bf16.mxu1 %v8727_v43  ;;  %v10400_v43 = vld [vmem:[#allocation32_spill] sm:$0xff] }
 0x2fd   :  { %6482 = vmatpush1.bf16.msra.mxu1 %v8732_v2  ;;  %v10401_v2 = vld [vmem:[#allocation33_spill] sm:$0xff] }
 0x2fe   :  { %6484 = vmatprep.subr.bf16.mxu1 %v8735_v34  ;;  %v10402_v34 = vld [vmem:[#allocation34_spill] sm:$0xff] }
 0x301   :  { %6486 = vmatpush1.bf16.msra.mxu1 %v8740_v48  ;;  %v10403_v48 = vld [vmem:[#allocation35_spill] sm:$0xff] }
 0x302   :  { %6488 = vmatprep.subr.bf16.mxu1 %v8743_v61  ;;  %v10404_v61 = vld [vmem:[#allocation36_spill] sm:$0xff] }
 0x305   :  { %6490 = vmatpush1.bf16.msra.mxu1 %v8748_v23  ;;  %v10405_v23 = vld [vmem:[#allocation37_spill] sm:$0xff] }
 0x306   :  { %6492 = vmatprep.subr.bf16.mxu1 %v8751_v40  ;;  %v10406_v40 = vld [vmem:[#allocation38_spill] sm:$0xff] }
 0x309   :  { %6494 = vmatpush1.bf16.msra.mxu1 %v8756_v3  ;;  %v10407_v3 = vld [vmem:[#allocation39_spill] sm:$0xff] }
 0x30a   :  { %6496 = vmatprep.subr.bf16.mxu1 %v8759_v21  ;;  %v10408_v21 = vld [vmem:[#allocation40_spill] sm:$0xff] }
 0x30d   :  { %6498 = vmatpush1.bf16.msra.mxu1 %v8764_v53  ;;  %v10409_v53 = vld [vmem:[#allocation41_spill] sm:$0xff] }
 0x30e   :  { %6500 = vmatprep.subr.bf16.mxu1 %v8767_v12  ;;  %v10410_v12 = vld [vmem:[#allocation42_spill] sm:$0xff] }
 0x311   :  { %6502 = vmatpush1.bf16.msra.mxu1 %v8772_v44  ;;  %v10411_v44 = vld [vmem:[#allocation43_spill] sm:$0xff] }
 0x312   :  { %6504 = vmatprep.subr.bf16.mxu1 %v8775_v46  ;;  %v10412_v46 = vld [vmem:[#allocation44_spill] sm:$0xff] }
 0x315   :  { %6506 = vmatpush1.bf16.msra.mxu1 %v8780_v56  ;;  %v10413_v56 = vld [vmem:[#allocation45_spill] sm:$0xff] }
 0x316   :  { %6508 = vmatprep.subr.bf16.mxu1 %v8783_v60  ;;  %v10414_v60 = vld [vmem:[#allocation46_spill] sm:$0xff] }
 0x319   :  { %6510 = vmatpush1.bf16.msra.mxu1 %v8788_v6  ;;  %v10415_v6 = vld [vmem:[#allocation47_spill] sm:$0xff] }
 0x31a   :  { %6512 = vmatprep.subr.bf16.mxu1 %v8791_v9  ;;  %v10416_v9 = vld [vmem:[#allocation48_spill] sm:$0xff] }
 0x31d   :  { %6514 = vmatpush1.bf16.msra.mxu1 %v8796_v17  ;;  %v10417_v17 = vld [vmem:[#allocation49_spill] sm:$0xff] }
 0x31e   :  { %6516 = vmatprep.subr.bf16.mxu1 %v8799_v20  ;;  %v10418_v20 = vld [vmem:[#allocation50_spill] sm:$0xff] }
 0x321   :  { %6518 = vmatpush1.bf16.msra.mxu1 %v8804_v27  ;;  %v10419_v27 = vld [vmem:[#allocation51_spill] sm:$0xff] }
 0x322   :  { %6520 = vmatprep.subr.bf16.mxu1 %v8807_v32  ;;  %v2288_v32 = vld [vmem:[#allocation3 + $0x98] sm:$0xff] }
 0x325   :  { %6522 = vmatpush1.bf16.msra.mxu1 %v8812_v41  ;;  %v2294_v41 = vld [vmem:[#allocation3 + $0xc8] sm:$0xff] }
 0x326   :  { %6524 = vmatprep.subr.bf16.mxu1 %v8815_v1  ;;  %v2287_v1 = vld [vmem:[#allocation3 + $0x90] sm:$0xff] }
 0x329   :  { %6526 = vmatpush1.bf16.msra.mxu1 %v8820_v50  ;;  %v10420_v50 = vld [vmem:[#allocation52_spill] sm:$0xff] }
 0x32a   :  { %6528 = vmatprep.subr.bf16.mxu1 %v8823_v52  ;;  %v6535_v52 = vpack.c.bf16 %v2294_v41, %v2288_v32  ;;  %v2371_v41 = vld [vmem:[#allocation3 + $0x330] sm:$0xff] }
 0x32c   :  { %6536 = vmatprep.subr.bf16.mxu0 %v6535_v52 }
 0x32d   :  { %6530 = vmatpush1.bf16.msra.mxu1 %v8828_v39  ;;  %v2293_v39 = vld [vmem:[#allocation3 + $0xc0] sm:$0xff] }
 0x32e   :  { %6532 = vmatprep.subr.bf16.mxu1 %v8831_v51  ;;  %v2300_v51 = vld [vmem:[#allocation3 + $0xf8] sm:$0xff] }
 0x331   :  { %6534 = vmatpush1.bf16.msra.mxu1 %v8836_v63  ;;  %v2306_v63 = vld [vmem:[#allocation3 + $0x128] sm:$0xff] }
 0x332   :  { %6600 = vmatprep.subr.bf16.mxu1 %v8845_v8  ;;  %v9055_v8 = vpack.c.bf16 %v2293_v39, %v2287_v1  ;;  %v9057_v47 = vpack.c.bf16 %v2306_v63, %v2300_v51  ;;  %v2377_v1 = vld [vmem:[#allocation3 + $0x360] sm:$0xff]  ;;  %v2383_v63 = vld [vmem:[#allocation3 + $0x390] sm:$0xff] }
 0x333   :  { %v9103_v39 = vpack.c.bf16 %v2377_v1, %v2371_v41  ;;  %v9109_v11 = vpack.c.bf16 %v2389_v37, %v2383_v63  ;;  %v2456_v41 = vld [vmem:[#allocation3 + $0x5d8] sm:$0xff]  ;;  %v2462_v1 = vld [vmem:[#allocation3 + $0x608] sm:$0xff]  ;;  %v2455_v63 = vld [vmem:[#allocation3 + $0x5d0] sm:$0xff] }
 0x334   :  { %2144 = vmatmul.mubr.f32.vlgmr.msra.gmra.mrb[12].mxu1 %v1932_v10  ;;  %6538 = vmatpush1.bf16.msra.mxu0 %v9055_v8  ;;  %v2323_v10 = vld [vmem:[#allocation3 + $0x1b0] sm:$0xff]  ;;  %v2461_v37 = vld [vmem:[#allocation3 + $0x600] sm:$0xff] }
 0x335   :  { %6602 = vmatpush1.bf16.msra.mxu1 %v10397_v13  ;;  %6540 = vmatprep.subr.bf16.mxu0 %v9057_v47  ;;  %v2342_v13 = vld [vmem:[#allocation3 + $0x248] sm:$0xff] }
 0x336   :  { %6604 = vmatprep.subr.bf16.mxu1 %v10398_v15  ;;  %v10425_v15 = vld [vmem:[#allocation57_spill] sm:$0xff] }
 0x338   :  { %6542 = vmatpush1.bf16.msra.mxu0 %v9061_v29 }
 0x339   :  { %6606 = vmatpush1.bf16.msra.mxu1 %v10399_v25  ;;  %6544 = vmatprep.subr.bf16.mxu0 %v9065_v31  ;;  %v9077_v25 = vpack.c.bf16 %v2329_v18, %v2323_v10  ;;  %v2413_v10 = vld [vmem:[#allocation3 + $0x480] sm:$0xff] }
 0x33a   :  { %6608 = vmatprep.subr.bf16.mxu1 %v10400_v43  ;;  %v10426_v43 = vld [vmem:[#allocation58_spill] sm:$0xff] }
 0x33c   :  { %6546 = vmatpush1.bf16.msra.mxu0 %v9069_v36 }
 0x33d   :  { %6610 = vmatpush1.bf16.msra.mxu1 %v10401_v2  ;;  %6548 = vmatprep.subr.bf16.mxu0 %v9073_v38  ;;  %v9081_v2 = vpack.c.bf16 %v2342_v13, %v2336_v14  ;;  %v2420_v14 = vld [vmem:[#allocation3 + $0x4b8] sm:$0xff]  ;;  %v2426_v13 = vld [vmem:[#allocation3 + $0x4e8] sm:$0xff] }
 0x33e   :  { %6612 = vmatprep.subr.bf16.mxu1 %v10402_v34  ;;  %v2335_v34 = vld [vmem:[#allocation3 + $0x210] sm:$0xff] }
 0x340   :  { %6550 = vmatpush1.bf16.msra.mxu0 %v9077_v25 }
 0x341   :  { %6614 = vmatpush1.bf16.msra.mxu1 %v10403_v48  ;;  %v2341_v48 = vld [vmem:[#allocation3 + $0x240] sm:$0xff]  ;;  %6552 = vmatprep.subr.bf16.mxu0 %v9081_v2 }
 0x342   :  { %6616 = vmatprep.subr.bf16.mxu1 %v10404_v61  ;;  %v2348_v61 = vld [vmem:[#allocation3 + $0x278] sm:$0xff] }
 0x345   :  { %6618 = vmatpush1.bf16.msra.mxu1 %v10405_v23  ;;  %v2354_v23 = vld [vmem:[#allocation3 + $0x2a8] sm:$0xff] }
 0x346   :  { %6620 = vmatprep.subr.bf16.mxu1 %v10406_v40  ;;  %v10427_v40 = vld [vmem:[#allocation59_spill] sm:$0xff] }
 0x349   :  { %6622 = vmatpush1.bf16.msra.mxu1 %v10407_v3  ;;  %v9085_v3 = vpack.c.bf16 %v2341_v48, %v2335_v34  ;;  %v2425_v34 = vld [vmem:[#allocation3 + $0x4e0] sm:$0xff] }
 0x34a   :  { %6624 = vmatprep.subr.bf16.mxu1 %v10408_v21  ;;  %v9088_v21 = vpack.c.bf16 %v2354_v23, %v2348_v61  ;;  %v2432_v61 = vld [vmem:[#allocation3 + $0x518] sm:$0xff]  ;;  %v2438_v23 = vld [vmem:[#allocation3 + $0x548] sm:$0xff] }
 0x34b   :  { %6554 = vmatpush1.bf16.msra.mxu0 %v9085_v3 }
 0x34c   :  { %6556 = vmatprep.subr.bf16.mxu0 %v9088_v21 }
 0x34d   :  { %6626 = vmatpush1.bf16.msra.mxu1 %v10409_v53  ;;  %v2347_v53 = vld [vmem:[#allocation3 + $0x270] sm:$0xff] }
 0x34e   :  { %6628 = vmatprep.subr.bf16.mxu1 %v10410_v12  ;;  %v2353_v12 = vld [vmem:[#allocation3 + $0x2a0] sm:$0xff] }
 0x351   :  { %6630 = vmatpush1.bf16.msra.mxu1 %v10411_v44  ;;  %v2360_v44 = vld [vmem:[#allocation3 + $0x2d8] sm:$0xff] }
 0x352   :  { %6632 = vmatprep.subr.bf16.mxu1 %v10412_v46  ;;  %v2366_v46 = vld [vmem:[#allocation3 + $0x308] sm:$0xff] }
 0x355   :  { %6634 = vmatpush1.bf16.msra.mxu1 %v10413_v56  ;;  %v9091_v56 = vpack.c.bf16 %v2353_v12, %v2347_v53  ;;  %v9130_v53 = vpack.c.bf16 %v2438_v23, %v2432_v61  ;;  %v2437_v12 = vld [vmem:[#allocation3 + $0x540] sm:$0xff] }
 0x356   :  { %6636 = vmatprep.subr.bf16.mxu1 %v10414_v60  ;;  %v9094_v60 = vpack.c.bf16 %v2366_v46, %v2360_v44  ;;  %v2444_v44 = vld [vmem:[#allocation3 + $0x578] sm:$0xff]  ;;  %v2450_v46 = vld [vmem:[#allocation3 + $0x5a8] sm:$0xff] }
 0x357   :  { %6558 = vmatpush1.bf16.msra.mxu0 %v9091_v56 }
 0x358   :  { %6560 = vmatprep.subr.bf16.mxu0 %v9094_v60 }
 0x359   :  { %6638 = vmatpush1.bf16.msra.mxu1 %v10415_v6  ;;  %v2359_v6 = vld [vmem:[#allocation3 + $0x2d0] sm:$0xff] }
 0x35a   :  { %6640 = vmatprep.subr.bf16.mxu1 %v10416_v9  ;;  %v2365_v9 = vld [vmem:[#allocation3 + $0x300] sm:$0xff] }
 0x35d   :  { %6642 = vmatpush1.bf16.msra.mxu1 %v10417_v17  ;;  %v2372_v17 = vld [vmem:[#allocation3 + $0x338] sm:$0xff] }
 0x35e   :  { %6644 = vmatprep.subr.bf16.mxu1 %v10418_v20  ;;  %v2378_v20 = vld [vmem:[#allocation3 + $0x368] sm:$0xff] }
 0x35f   :  { %v9100_v32 = vpack.c.bf16 %v2378_v20, %v2372_v17  ;;  %v2443_v17 = vld [vmem:[#allocation3 + $0x570] sm:$0xff]  ;;  %v2449_v20 = vld [vmem:[#allocation3 + $0x5a0] sm:$0xff] }
 0x361   :  { %6646 = vmatpush1.bf16.msra.mxu1 %v10419_v27  ;;  %v9097_v27 = vpack.c.bf16 %v2365_v9, %v2359_v6  ;;  %v9136_v9 = vpack.c.bf16 %v2450_v46, %v2444_v44 }
 0x362   :  { %6648 = vmatprep.subr.bf16.mxu1 %v10420_v50  ;;  %v2384_v50 = vld [vmem:[#allocation3 + $0x398] sm:$0xff] }
 0x363   :  { %6562 = vmatpush1.bf16.msra.mxu0 %v9097_v27 }
 0x364   :  { %6564 = vmatprep.subr.bf16.mxu0 %v9100_v32 }
 0x365   :  { %6650 = vmatpush1.bf16.msra.mxu1 %v10421_v45  ;;  %v9113_v45 = vpack.c.bf16 %v2402_v16, %v2396_v35  ;;  %v2468_v35 = vld [vmem:[#allocation3 + $0x638] sm:$0xff]  ;;  %v2474_v16 = vld [vmem:[#allocation3 + $0x668] sm:$0xff] }
 0x366   :  { %6652 = vmatprep.subr.bf16.mxu1 %v10422_v30  ;;  %v2395_v30 = vld [vmem:[#allocation3 + $0x3f0] sm:$0xff] }
 0x367   :  { %6566 = vmatpush1.bf16.msra.mxu0 %v9103_v39  ;;  %v9115_v55 = vpack.c.bf16 %v2401_v59, %v2395_v30  ;;  %v9145_v30 = vpack.c.bf16 %v2461_v37, %v2455_v63  ;;  %v9148_v59 = vpack.c.bf16 %v2474_v16, %v2468_v35 }
 0x369   :  { %6654 = vmatpush1.bf16.msra.mxu1 %v10423_v5  ;;  %v9119_v5 = vpack.c.bf16 %v2414_v42, %v2408_v4  ;;  %v2467_v4 = vld [vmem:[#allocation3 + $0x630] sm:$0xff]  ;;  %v2473_v42 = vld [vmem:[#allocation3 + $0x660] sm:$0xff] }
 0x36a   :  { %6656 = vmatprep.subr.bf16.mxu1 %v10424_v62  ;;  %v2407_v62 = vld [vmem:[#allocation3 + $0x450] sm:$0xff] }
 0x36b   :  { %v9121_v18 = vpack.c.bf16 %v2413_v10, %v2407_v62  ;;  %v9151_v62 = vpack.c.bf16 %v2473_v42, %v2467_v4  ;;  %v2292_v10 = vld [vmem:[#allocation3 + $0xb8] sm:$0xff] }
 0x36d   :  { %6658 = vmatpush1.bf16.msra.mxu1 %v10425_v15  ;;  %v9125_v15 = vpack.c.bf16 %v2426_v13, %v2420_v14  ;;  %v2298_v14 = vld [vmem:[#allocation3 + $0xe8] sm:$0xff] }
 0x36e   :  { %6660 = vmatprep.subr.bf16.mxu1 %v10426_v43  ;;  %v2419_v43 = vld [vmem:[#allocation3 + $0x4b0] sm:$0xff]  ;;  %v9155_v13 = vpack.c.bf16 %v2298_v14, %v2292_v10  ;;  %v2258_v14 = vrot.slane %v8973_v58, 7 }
 0x36f   :  { %v9127_v48 = vpack.c.bf16 %v2425_v34, %v2419_v43 }
 0x371   :  { %6662 = vmatpush1.bf16.msra.mxu1 %v10427_v40  ;;  %v2431_v40 = vld [vmem:[#allocation3 + $0x510] sm:$0xff] }
 0x372   :  { %6728 = vmatprep.subr.bf16.mxu1 %v6535_v52  ;;  %v2390_v52 = vld [vmem:[#allocation3 + $0x3c8] sm:$0xff]  ;;  %v9133_v6 = vpack.c.bf16 %v2437_v12, %v2431_v40 }
 0x373   :  { %v9106_v51 = vpack.c.bf16 %v2390_v52, %v2384_v50  ;;  %v9139_v50 = vpack.c.bf16 %v2449_v20, %v2443_v17  ;;  %v9142_v52 = vpack.c.bf16 %v2462_v1, %v2456_v41 }
 0x375   :  { %6568 = vmatprep.subr.bf16.mxu0 %v9106_v51 }
 0x376   :  { %6570 = vmatpush1.bf16.msra.mxu0 %v9109_v11 }
 0x377   :  { %6572 = vmatprep.subr.bf16.mxu0 %v9113_v45 }
 0x37a   :  { %6574 = vmatpush1.bf16.msra.mxu0 %v9115_v55 }
 0x37b   :  { %6576 = vmatprep.subr.bf16.mxu0 %v9119_v5 }
 0x37e   :  { %6578 = vmatpush1.bf16.msra.mxu0 %v9121_v18 }
 0x37f   :  { %6580 = vmatprep.subr.bf16.mxu0 %v9125_v15 }
 0x382   :  { %6582 = vmatpush1.bf16.msra.mxu0 %v9127_v48 }
 0x383   :  { %6584 = vmatprep.subr.bf16.mxu0 %v9130_v53 }
 0x386   :  { %6586 = vmatpush1.bf16.msra.mxu0 %v9133_v6 }
 0x387   :  { %6588 = vmatprep.subr.bf16.mxu0 %v9136_v9 }
 0x38a   :  { %6590 = vmatpush1.bf16.msra.mxu0 %v9139_v50 }
 0x38b   :  { %6592 = vmatprep.subr.bf16.mxu0 %v9142_v52 }
 0x38e   :  { %6594 = vmatpush1.bf16.msra.mxu0 %v9145_v30 }
 0x38f   :  { %6596 = vmatprep.subr.bf16.mxu0 %v9148_v59 }
 0x392   :  { %6598 = vmatpush1.bf16.msra.mxu0 %v9151_v62 }
 0x393   :  { %6664 = vmatprep.subr.bf16.mxu0 %v9155_v13 }
 0x3c7   :  { %v2003_v43 = vpop.f32.mrb[10].mxu1  ;;  %v2074_v34 = vpop.f32.mrb[18].mxu0 }
 0x3c8   :  { %v2160_v61 = vrot.slane %v2074_v34, 7  ;;  %v2005_v23 = vpop.f32.mrb[11].mxu1  ;;  %v2076_v40 = vpop.f32.mrb[19].mxu0  ;;  %v2154_v35 = vrot.slane %v2003_v43, 6  ;;  %v2158_v16 = vrot.slane %v2003_v43, 7  ;;  %v2259_v43 = vrot.slane %v8975_v19, 7 }
 0x3c9   :  { %v2161_v12 = vrot.slane %v2076_v40, 7  ;;  %v2155_v4 = vrot.slane %v2005_v23, 6  ;;  %v2159_v42 = vrot.slane %v2005_v23, 7 }
 0x3ca   :  { %v2176_v44 = vadd.f32 %v2160_v61, %v8656_v33  ;;  %v2170_v10 = vadd.f32 %v2154_v35, %v10391_v26  ;;  %v10428_v61 = vld [vmem:[#allocation20_spill] sm:$0xff] }
 0x3cb   :  { %v2177_v17 = vadd.f32 %v2161_v12, %v8660_v0 }
 0x3cc   :  { %v5806_v46 = vmul.f32 -1.442695, %v2176_v44  ;;  %v2174_v44 = vadd.f32 %v2158_v16, %v10428_v61  ;;  %v2156_v16 = vrot.slane %v2074_v34, 6 }
 0x3cd   :  { %v5807_v20 = vmul.f32 -1.442695, %v2177_v17 }
 0x3ce   :  { %7837 = vpow2.f32 %v5806_v46  ;;  %v10429_v46 = vld [vmem:[#allocation19_spill] sm:$0xff] }
 0x3cf   :  { %7839 = vpow2.f32 %v5807_v20  ;;  %v2171_v17 = vadd.f32 %v2155_v4, %v10429_v46  ;;  %v10430_v20 = vld [vmem:[#allocation21_spill] sm:$0xff]  ;;  %v2157_v4 = vrot.slane %v2076_v40, 6 }
 0x3d1   :  { %v5801_v35 = vmul.f32 -1.442695, %v2171_v17 }
 0x3d8   :  { %v7838_v41 = vpop.eup %7837 }
 0x3d9   :  { %v2208_v1 = vadd.f32 1.0, %v7838_v41  ;;  %v7840_v63 = vpop.eup %7839  ;;  %v2175_v41 = vadd.f32 %v2159_v42, %v10430_v20  ;;  %v10431_v42 = vld [vmem:[#allocation22_spill] sm:$0xff] }
 0x3da   :  { %v2209_v37 = vadd.f32 1.0, %v7840_v63  ;;  %v5800_v63 = vmul.f32 -1.442695, %v2170_v10  ;;  %v2173_v10 = vadd.f32 %v2157_v4, %v10432_v22 }
 0x3db   :  { %7841 = vrcp.f32 %v2208_v1  ;;  %v5805_v24 = vmul.f32 -1.442695, %v2175_v41 }
 0x3dc   :  { %7843 = vrcp.f32 %v2209_v37  ;;  %v5804_v37 = vmul.f32 -1.442695, %v2174_v44  ;;  %v5803_v46 = vmul.f32 -1.442695, %v2173_v10 }
 0x3dd   :  { %7845 = vpow2.f32 %v5800_v63 }
 0x3de   :  { %7847 = vpow2.f32 %v5804_v37 }
 0x3df   :  { %7849 = vpow2.f32 %v5801_v35  ;;  %v10433_v35 = vld [vmem:[#allocation26_spill] sm:$0xff] }
 0x3e0   :  { %7851 = vpow2.f32 %v5805_v24 }
 0x3e5   :  { %v9163_v12 = vpop.eup %7841 }
 0x3e6   :  { %v9168_v1 = vmul.f32 %v9163_v12, %v2258_v14  ;;  %v9171_v23 = vpop.eup %7843  ;;  %v2172_v14 = vadd.f32 %v2156_v16, %v10431_v42 }
 0x3e7   :  { %v9174_v58 = vmul.f32 %v9171_v23, %v2259_v43  ;;  %v7846_v19 = vpop.eup %7845 }
 0x3e8   :  { %v5802_v20 = vmul.f32 -1.442695, %v2172_v14  ;;  %v7848_v44 = vpop.eup %7847  ;;  %v2202_v41 = vadd.f32 1.0, %v7846_v19 }
 0x3e9   :  { %v7850_v61 = vpop.eup %7849  ;;  %v2206_v43 = vadd.f32 1.0, %v7848_v44 }
 0x3ea   :  { %v7852_v17 = vpop.eup %7851  ;;  %7853 = vpow2.f32 %v5802_v20  ;;  %v2203_v26 = vadd.f32 1.0, %v7850_v61 }
 0x3eb   :  { %7855 = vpow2.f32 %v5803_v46  ;;  %v2207_v63 = vadd.f32 1.0, %v7852_v17 }
 0x3ec   :  { %7857 = vrcp.f32 %v2202_v41 }
 0x3ed   :  { %7859 = vrcp.f32 %v2206_v43 }
 0x3ee   :  { %7861 = vrcp.f32 %v2203_v26 }
 0x3ef   :  { %7863 = vrcp.f32 %v2207_v63 }
 0x3f4   :  { %v7854_v24 = vpop.eup %7853 }
 0x3f5   :  { %v7856_v34 = vpop.eup %7855  ;;  %v2204_v37 = vadd.f32 1.0, %v7854_v24 }
 0x3f6   :  { %v7858_v14 = vpop.eup %7857  ;;  %v2205_v20 = vadd.f32 1.0, %v7856_v34 }
 0x3f7   :  { %v7860_v19 = vpop.eup %7859  ;;  %7865 = vrcp.f32 %v2204_v37 }
 0x3f8   :  { %v7862_v46 = vpop.eup %7861  ;;  %7867 = vrcp.f32 %v2205_v20 }
 0x3f9   :  { %v7864_v43 = vpop.eup %7863 }
 0x407   :  { %v2145_v40 = vpop.f32.mrb[12].mxu1 }
 0x408   :  { %v2226_v16 = vadd.f32 %v2145_v40, %v10433_v35  ;;  %v2147_v4 = vpop.f32.mrb[13].mxu1  ;;  %v10434_v35 = vld [vmem:[#allocation29_spill] sm:$0xff] }
 0x409   :  { %v2227_v10 = vadd.f32 %v2147_v4, %v8674_v54  ;;  %v10435_v54 = vld [vmem:[#allocation30_spill] sm:$0xff] }
 0x40a   :  { %v2230_v44 = vrot.slane %v2226_v16, 6  ;;  %v2232_v61 = vrot.slane %v2226_v16, 7  ;;  %v7866_v16 = vpop.eup %7865 }
 0x40b   :  { %v2231_v17 = vrot.slane %v2227_v10, 6  ;;  %v2233_v41 = vrot.slane %v2227_v10, 7  ;;  %v7868_v10 = vpop.eup %7867  ;;  %v2250_v37 = vsub.f32 1.0, %v7866_v16 }
 0x40c   :  { %v2238_v26 = vmul.f32 %v7858_v14, %v2230_v44  ;;  %v2240_v63 = vmul.f32 %v7860_v19, %v2232_v61  ;;  %v2252_v19 = vsub.f32 1.0, %v9163_v12  ;;  %v2251_v20 = vsub.f32 1.0, %v7868_v10 }
 0x40d   :  { %v2239_v0 = vmul.f32 %v7862_v46, %v2231_v17  ;;  %v2241_v22 = vmul.f32 %v7864_v43, %v2233_v41  ;;  %v10436_v46 = vrot.slane %v8978_v57, 7 }
 0x40e   :  { %v2242_v24 = vadd.f32 %v2238_v26, %v10393_v49  ;;  %v2244_v40 = vadd.f32 %v2240_v63, %v8687_v7  ;;  %v10437_v63 = vrot.slane %v8981_v28, 7 }
 0x40f   :  { %v2243_v4 = vadd.f32 %v2239_v0, %v10434_v35  ;;  %v2245_v34 = vadd.f32 %v2241_v22, %v10435_v54  ;;  %v2264_v17 = vmul.f32 %v7866_v16, %v10436_v46  ;;  %v2253_v0 = vsub.f32 1.0, %v9171_v23 }
 0x410   :  { %7869 = vtanh.f32 %v2242_v24  ;;  %v2265_v24 = vmul.f32 %v7868_v10, %v10437_v63  ;;  %v2291_v10 = vld [vmem:[#allocation3 + $0xb0] sm:$0xff]  ;;  %v2309_v63 = vld [vmem:[#allocation3 + $0x140] sm:$0xff] }
 0x411   :  { %7871 = vtanh.f32 %v2244_v40 }
 0x412   :  { %7873 = vtanh.f32 %v2243_v4 }
 0x413   :  { %7875 = vtanh.f32 %v2245_v34 }
 0x41a   :  { %v7870_v14 = vpop.eup %7869 }
 0x41b   :  { %v7872_v44 = vpop.eup %7871  ;;  %v2254_v61 = vmul.f32 %v7870_v14, %v2250_v37  ;;  %v2297_v14 = vld [vmem:[#allocation3 + $0xe0] sm:$0xff] }
 0x41c   :  { %v7874_v41 = vpop.eup %7873  ;;  %v2256_v22 = vmul.f32 %v7872_v44, %v2252_v19  ;;  %v2304_v44 = vld [vmem:[#allocation3 + $0x118] sm:$0xff] }
 0x41d   :  { %v7876_v43 = vpop.eup %7875  ;;  %v2255_v26 = vmul.f32 %v7874_v41, %v2251_v20  ;;  %v9190_v40 = vadd.f32 %v2264_v17, %v2254_v61  ;;  %v2310_v20 = vld [vmem:[#allocation3 + $0x148] sm:$0xff]  ;;  %v9212_v41 = vpack.c.bf16 %v2297_v14, %v2291_v10  ;;  %v2328_v10 = vld [vmem:[#allocation3 + $0x1d8] sm:$0xff] }
 0x41e   :  { %v2257_v4 = vmul.f32 %v7876_v43, %v2253_v0  ;;  %v9193_v12 = vadd.f32 %v9168_v1, %v2256_v22  ;;  %v9216_v43 = vpack.c.bf16 %v2310_v20, %v2304_v44  ;;  %v2334_v14 = vld [vmem:[#allocation3 + $0x208] sm:$0xff]  ;;  %v2327_v44 = vld [vmem:[#allocation3 + $0x1d0] sm:$0xff]  ;;  %v2333_v20 = vld [vmem:[#allocation3 + $0x200] sm:$0xff] }
 0x41f   :  { %v9195_v34 = vadd.f32 %v2265_v24, %v2255_v26  ;;  %v2276_v57 = vrot.slane %v9190_v40, 6  ;;  %v2479_v16 = vrot.slane %v9190_v40, 2  ;;  %v2303_v26 = vld [vmem:[#allocation3 + $0x110] sm:$0xff]  ;;  %v2316_v24 = vld [vmem:[#allocation3 + $0x178] sm:$0xff] }
 0x420   :  { %v9200_v23 = vadd.f32 %v9174_v58, %v2257_v4  ;;  %v2277_v37 = vrot.slane %v9193_v12, 5  ;;  %v2480_v28 = vrot.slane %v9193_v12, 1  ;;  %v2322_v4 = vld [vmem:[#allocation3 + $0x1a8] sm:$0xff] }
 0x421   :  { %v2280_v19 = vrot.slane %v9195_v34, 6  ;;  %v2482_v1 = vrot.slane %v9195_v34, 2 }
 0x422   :  { %v2281_v61 = vrot.slane %v9200_v23, 5  ;;  %v2483_v46 = vrot.slane %v9200_v23, 1  ;;  %v2279_v17 = vsel %vm2278_vm8, %v2277_v37, %v2276_v57  ;;  %v9210_v58 = vsel %vm1195_vm6, %v2480_v28, %v2479_v16  ;;  %v2315_v37 = vld [vmem:[#allocation3 + $0x170] sm:$0xff]  ;;  %v2321_v28 = vld [vmem:[#allocation3 + $0x1a0] sm:$0xff] }
 0x423   :  { %2285 = vst [vmem:[#allocation2] sm:$0x30] %v2279_v17  ;;  %v9221_v57 = vpack.c.bf16 %v2309_v63, %v2303_v26  ;;  %v9224_v16 = vpack.c.bf16 %v2322_v4, %v2316_v24  ;;  %v2339_v17 = vld [vmem:[#allocation3 + $0x230] sm:$0xff]  ;;  %v2358_v26 = vld [vmem:[#allocation3 + $0x2c8] sm:$0xff]  ;;  %v2357_v24 = vld [vmem:[#allocation3 + $0x2c0] sm:$0xff] }
 0x424   :  { %v2282_v0 = vsel %vm2278_vm8, %v2281_v61, %v2280_v19  ;;  %v2484_v22 = vsel %vm1195_vm6, %v2483_v46, %v2482_v1  ;;  %v9229_v19 = vpack.c.bf16 %v2321_v28, %v2315_v37  ;;  %v9232_v1 = vpack.c.bf16 %v2334_v14, %v2328_v10  ;;  %v2340_v61 = vld [vmem:[#allocation3 + $0x238] sm:$0xff]  ;;  %v2346_v46 = vld [vmem:[#allocation3 + $0x268] sm:$0xff]  ;;  %v2351_v63 = vld [vmem:[#allocation3 + $0x290] sm:$0xff] }
 0x425   :  { %2286 = vst [vmem:[#allocation2 + $0x8] sm:$0x30] %v2282_v0  ;;  %2551 = vmatprep.mubr.f32.mxu0 %v2484_v22  ;;  %2622 = vmatprep.mubr.f32.mxu1 %v2484_v22  ;;  %v2345_v0 = vld [vmem:[#allocation3 + $0x260] sm:$0xff]  ;;  %v2364_v4 = vld [vmem:[#allocation3 + $0x2f8] sm:$0xff]  ;;  %v2370_v37 = vld [vmem:[#allocation3 + $0x328] sm:$0xff] }
 0x426   :  { %2552 = vmatmul.mubr.f32.vlgmr.msra.gmra.mrb[20].mxu0 %v9210_v58  ;;  %2623 = vmatmul.mubr.f32.vlgmr.msra.gmra.mrb[14].mxu1 %v9210_v58  ;;  %v2363_v28 = vld [vmem:[#allocation3 + $0x2f0] sm:$0xff]  ;;  %v2369_v10 = vld [vmem:[#allocation3 + $0x320] sm:$0xff]  ;;  %v2376_v14 = vld [vmem:[#allocation3 + $0x358] sm:$0xff] }
 0x427   :  { %6666 = vmatpush1.bf16.msra.mxu0 %v9212_v41  ;;  %2693 = vmatprep.mubr.f32.mxu0 %v2484_v22  ;;  %v2352_v22 = vld [vmem:[#allocation3 + $0x298] sm:$0xff] }
 0x428   :  { %6668 = vmatprep.subr.bf16.mxu0 %v9216_v43  ;;  %6730 = vmatpush1.bf16.msra.mxu1 %v9055_v8  ;;  %v9237_v8 = vpack.c.bf16 %v2333_v20, %v2327_v44  ;;  %v2382_v44 = vld [vmem:[#allocation3 + $0x388] sm:$0xff]  ;;  %v2375_v20 = vld [vmem:[#allocation3 + $0x350] sm:$0xff] }
 0x429   :  { %6732 = vmatprep.subr.bf16.mxu1 %v9057_v47  ;;  %v9240_v47 = vpack.c.bf16 %v2346_v46, %v2340_v61  ;;  %v2381_v61 = vld [vmem:[#allocation3 + $0x380] sm:$0xff]  ;;  %v2388_v46 = vld [vmem:[#allocation3 + $0x3b8] sm:$0xff] }
 0x42b   :  { %6670 = vmatpush1.bf16.msra.mxu0 %v9221_v57 }
 0x42c   :  { %6672 = vmatprep.subr.bf16.mxu0 %v9224_v16  ;;  %6734 = vmatpush1.bf16.msra.mxu1 %v9061_v29  ;;  %v9245_v29 = vpack.c.bf16 %v2345_v0, %v2339_v17  ;;  %v2394_v17 = vld [vmem:[#allocation3 + $0x3e8] sm:$0xff]  ;;  %v2387_v0 = vld [vmem:[#allocation3 + $0x3b0] sm:$0xff] }
 0x42d   :  { %6736 = vmatprep.subr.bf16.mxu1 %v9065_v31  ;;  %v9248_v31 = vpack.c.bf16 %v2358_v26, %v2352_v22  ;;  %v2393_v22 = vld [vmem:[#allocation3 + $0x3e0] sm:$0xff]  ;;  %v2400_v26 = vld [vmem:[#allocation3 + $0x418] sm:$0xff] }
 0x42f   :  { %6674 = vmatpush1.bf16.msra.mxu0 %v9229_v19 }
 0x430   :  { %6676 = vmatprep.subr.bf16.mxu0 %v9232_v1  ;;  %6738 = vmatpush1.bf16.msra.mxu1 %v9069_v36  ;;  %v9253_v36 = vpack.c.bf16 %v2357_v24, %v2351_v63  ;;  %v2406_v63 = vld [vmem:[#allocation3 + $0x448] sm:$0xff]  ;;  %v2399_v24 = vld [vmem:[#allocation3 + $0x410] sm:$0xff] }
 0x431   :  { %6740 = vmatprep.subr.bf16.mxu1 %v9073_v38  ;;  %v9256_v38 = vpack.c.bf16 %v2370_v37, %v2364_v4  ;;  %v2405_v4 = vld [vmem:[#allocation3 + $0x440] sm:$0xff]  ;;  %v2412_v37 = vld [vmem:[#allocation3 + $0x478] sm:$0xff] }
 0x433   :  { %6678 = vmatpush1.bf16.msra.mxu0 %v9237_v8 }
 0x434   :  { %6680 = vmatprep.subr.bf16.mxu0 %v9240_v47  ;;  %6742 = vmatpush1.bf16.msra.mxu1 %v9077_v25  ;;  %v9261_v25 = vpack.c.bf16 %v2369_v10, %v2363_v28  ;;  %v2418_v28 = vld [vmem:[#allocation3 + $0x4a8] sm:$0xff]  ;;  %v2411_v10 = vld [vmem:[#allocation3 + $0x470] sm:$0xff] }
 0x435   :  { %6744 = vmatprep.subr.bf16.mxu1 %v9081_v2  ;;  %v9264_v2 = vpack.c.bf16 %v2382_v44, %v2376_v14  ;;  %v2417_v14 = vld [vmem:[#allocation3 + $0x4a0] sm:$0xff]  ;;  %v2424_v44 = vld [vmem:[#allocation3 + $0x4d8] sm:$0xff] }
 0x437   :  { %6682 = vmatpush1.bf16.msra.mxu0 %v9245_v29 }
 0x438   :  { %6684 = vmatprep.subr.bf16.mxu0 %v9248_v31  ;;  %6746 = vmatpush1.bf16.msra.mxu1 %v9085_v3  ;;  %v9269_v3 = vpack.c.bf16 %v2381_v61, %v2375_v20  ;;  %v2430_v20 = vld [vmem:[#allocation3 + $0x508] sm:$0xff]  ;;  %v2423_v61 = vld [vmem:[#allocation3 + $0x4d0] sm:$0xff] }
 0x439   :  { %6748 = vmatprep.subr.bf16.mxu1 %v9088_v21  ;;  %v9272_v21 = vpack.c.bf16 %v2394_v17, %v2388_v46  ;;  %v2429_v46 = vld [vmem:[#allocation3 + $0x500] sm:$0xff]  ;;  %v2436_v17 = vld [vmem:[#allocation3 + $0x538] sm:$0xff] }
 0x43b   :  { %6686 = vmatpush1.bf16.msra.mxu0 %v9253_v36 }
 0x43c   :  { %6688 = vmatprep.subr.bf16.mxu0 %v9256_v38  ;;  %6750 = vmatpush1.bf16.msra.mxu1 %v9091_v56  ;;  %v9277_v56 = vpack.c.bf16 %v2393_v22, %v2387_v0  ;;  %v2442_v0 = vld [vmem:[#allocation3 + $0x568] sm:$0xff]  ;;  %v2435_v22 = vld [vmem:[#allocation3 + $0x530] sm:$0xff] }
 0x43d   :  { %6752 = vmatprep.subr.bf16.mxu1 %v9094_v60  ;;  %v9280_v60 = vpack.c.bf16 %v2406_v63, %v2400_v26  ;;  %v2441_v26 = vld [vmem:[#allocation3 + $0x560] sm:$0xff]  ;;  %v2448_v63 = vld [vmem:[#allocation3 + $0x598] sm:$0xff] }
 0x43f   :  { %6690 = vmatpush1.bf16.msra.mxu0 %v9261_v25 }
 0x440   :  { %6692 = vmatprep.subr.bf16.mxu0 %v9264_v2  ;;  %6754 = vmatpush1.bf16.msra.mxu1 %v9097_v27  ;;  %v9285_v27 = vpack.c.bf16 %v2405_v4, %v2399_v24  ;;  %v2454_v24 = vld [vmem:[#allocation3 + $0x5c8] sm:$0xff]  ;;  %v2447_v4 = vld [vmem:[#allocation3 + $0x590] sm:$0xff] }
 0x441   :  { %6756 = vmatprep.subr.bf16.mxu1 %v9100_v32  ;;  %v9288_v32 = vpack.c.bf16 %v2418_v28, %v2412_v37  ;;  %v2453_v37 = vld [vmem:[#allocation3 + $0x5c0] sm:$0xff]  ;;  %v2460_v28 = vld [vmem:[#allocation3 + $0x5f8] sm:$0xff] }
 0x443   :  { %6694 = vmatpush1.bf16.msra.mxu0 %v9269_v3 }
 0x444   :  { %6696 = vmatprep.subr.bf16.mxu0 %v9272_v21  ;;  %6758 = vmatpush1.bf16.msra.mxu1 %v9103_v39  ;;  %v9293_v39 = vpack.c.bf16 %v2417_v14, %v2411_v10  ;;  %v2466_v10 = vld [vmem:[#allocation3 + $0x628] sm:$0xff]  ;;  %v2459_v14 = vld [vmem:[#allocation3 + $0x5f0] sm:$0xff] }
 0x445   :  { %6760 = vmatprep.subr.bf16.mxu1 %v9106_v51  ;;  %v9296_v51 = vpack.c.bf16 %v2430_v20, %v2424_v44  ;;  %v2465_v44 = vld [vmem:[#allocation3 + $0x620] sm:$0xff]  ;;  %v2472_v20 = vld [vmem:[#allocation3 + $0x658] sm:$0xff] }
 0x447   :  { %6698 = vmatpush1.bf16.msra.mxu0 %v9277_v56 }
 0x448   :  { %6700 = vmatprep.subr.bf16.mxu0 %v9280_v60  ;;  %6762 = vmatpush1.bf16.msra.mxu1 %v9109_v11  ;;  %v9301_v11 = vpack.c.bf16 %v2429_v46, %v2423_v61  ;;  %v2478_v61 = vld [vmem:[#allocation3 + $0x688] sm:$0xff]  ;;  %v2471_v46 = vld [vmem:[#allocation3 + $0x650] sm:$0xff] }
 0x449   :  { %6764 = vmatprep.subr.bf16.mxu1 %v9113_v45  ;;  %v9304_v45 = vpack.c.bf16 %v2442_v0, %v2436_v17  ;;  %v2477_v17 = vld [vmem:[#allocation3 + $0x680] sm:$0xff] }
 0x44b   :  { %6702 = vmatpush1.bf16.msra.mxu0 %v9285_v27 }
 0x44c   :  { %6704 = vmatprep.subr.bf16.mxu0 %v9288_v32  ;;  %6766 = vmatpush1.bf16.msra.mxu1 %v9115_v55  ;;  %v9309_v55 = vpack.c.bf16 %v2441_v26, %v2435_v22  ;;  %v2847_v22 = vld [vmem:[#allocation3 + $0xd0] sm:$0xff]  ;;  %v2854_v26 = vld [vmem:[#allocation3 + $0x108] sm:$0xff] }
 0x44d   :  { %6768 = vmatprep.subr.bf16.mxu1 %v9119_v5  ;;  %v9312_v5 = vpack.c.bf16 %v2454_v24, %v2448_v63  ;;  %v2860_v63 = vld [vmem:[#allocation3 + $0x138] sm:$0xff] }
 0x44f   :  { %6706 = vmatpush1.bf16.msra.mxu0 %v9293_v39 }
 0x450   :  { %6708 = vmatprep.subr.bf16.mxu0 %v9296_v51  ;;  %6770 = vmatpush1.bf16.msra.mxu1 %v9121_v18  ;;  %v9317_v18 = vpack.c.bf16 %v2453_v37, %v2447_v4  ;;  %v2859_v4 = vld [vmem:[#allocation3 + $0x130] sm:$0xff]  ;;  %v2866_v37 = vld [vmem:[#allocation3 + $0x168] sm:$0xff] }
 0x451   :  { %6772 = vmatprep.subr.bf16.mxu1 %v9125_v15  ;;  %v9320_v15 = vpack.c.bf16 %v2466_v10, %v2460_v28  ;;  %v2865_v28 = vld [vmem:[#allocation3 + $0x160] sm:$0xff]  ;;  %v2871_v10 = vld [vmem:[#allocation3 + $0x190] sm:$0xff] }
 0x453   :  { %6710 = vmatpush1.bf16.msra.mxu0 %v9301_v11 }
 0x454   :  { %6712 = vmatprep.subr.bf16.mxu0 %v9304_v45  ;;  %6774 = vmatpush1.bf16.msra.mxu1 %v9127_v48  ;;  %v9325_v48 = vpack.c.bf16 %v2465_v44, %v2459_v14  ;;  %v2878_v14 = vld [vmem:[#allocation3 + $0x1c8] sm:$0xff]  ;;  %v2884_v44 = vld [vmem:[#allocation3 + $0x1f8] sm:$0xff] }
 0x455   :  { %6776 = vmatprep.subr.bf16.mxu1 %v9130_v53  ;;  %v9328_v53 = vpack.c.bf16 %v2478_v61, %v2472_v20  ;;  %v9356_v20 = vpack.c.bf16 %v2871_v10, %v2865_v28  ;;  %v9359_v61 = vpack.c.bf16 %v2884_v44, %v2878_v14  ;;  %v2901_v28 = vld [vmem:[#allocation3 + $0x280] sm:$0xff]  ;;  %v2907_v10 = vld [vmem:[#allocation3 + $0x2b0] sm:$0xff]  ;;  %v2914_v14 = vld [vmem:[#allocation3 + $0x2e8] sm:$0xff] }
 0x456   :  { %v2920_v44 = vld [vmem:[#allocation3 + $0x318] sm:$0xff] }
 0x457   :  { %6714 = vmatpush1.bf16.msra.mxu0 %v9309_v55  ;;  %10442 = vst [vmem:[#allocation32_spill] sm:$0xff] %v9356_v20  ;;  %10443 = vst [vmem:[#allocation33_spill] sm:$0xff] %v9359_v61 }
 0x458   :  { %6716 = vmatprep.subr.bf16.mxu0 %v9312_v5  ;;  %6778 = vmatpush1.bf16.msra.mxu1 %v9133_v6  ;;  %v9333_v6 = vpack.c.bf16 %v2477_v17, %v2471_v46  ;;  %v2877_v46 = vld [vmem:[#allocation3 + $0x1c0] sm:$0xff]  ;;  %v2883_v17 = vld [vmem:[#allocation3 + $0x1f0] sm:$0xff] }
 0x459   :  { %6780 = vmatprep.subr.bf16.mxu1 %v9136_v9  ;;  %v2842_v9 = vld [vmem:[#allocation3 + $0xa8] sm:$0xff] }
 0x45b   :  { %6718 = vmatpush1.bf16.msra.mxu0 %v9317_v18 }
 0x45c   :  { %6720 = vmatprep.subr.bf16.mxu0 %v9320_v15  ;;  %6782 = vmatpush1.bf16.msra.mxu1 %v9139_v50  ;;  %v2848_v50 = vld [vmem:[#allocation3 + $0xd8] sm:$0xff] }
 0x45d   :  { %6784 = vmatprep.subr.bf16.mxu1 %v9142_v52  ;;  %v2841_v52 = vld [vmem:[#allocation3 + $0xa0] sm:$0xff]  ;;  %v9342_v0 = vpack.c.bf16 %v2848_v50, %v2842_v9  ;;  %v2890_v9 = vld [vmem:[#allocation3 + $0x228] sm:$0xff]  ;;  %v2896_v50 = vld [vmem:[#allocation3 + $0x258] sm:$0xff] }
 0x45e   :  { %v9344_v24 = vpack.c.bf16 %v2847_v22, %v2841_v52  ;;  %v9362_v52 = vpack.c.bf16 %v2883_v17, %v2877_v46  ;;  %v9365_v22 = vpack.c.bf16 %v2896_v50, %v2890_v9  ;;  %v9374_v46 = vpack.c.bf16 %v2907_v10, %v2901_v28  ;;  %v2913_v9 = vld [vmem:[#allocation3 + $0x2e0] sm:$0xff]  ;;  %v2919_v50 = vld [vmem:[#allocation3 + $0x310] sm:$0xff]  ;;  %v2938_v28 = vld [vmem:[#allocation3 + $0x3a8] sm:$0xff] }
 0x45f   :  { %6722 = vmatpush1.bf16.msra.mxu0 %v9325_v48  ;;  %v9377_v17 = vpack.c.bf16 %v2920_v44, %v2914_v14  ;;  %v2944_v10 = vld [vmem:[#allocation3 + $0x3d8] sm:$0xff] }
 0x460   :  { %6724 = vmatprep.subr.bf16.mxu0 %v9328_v53  ;;  %6786 = vmatpush1.bf16.msra.mxu1 %v9145_v30  ;;  %10438 = vst [vmem:[#allocation28_spill] sm:$0xff] %v9344_v24  ;;  %v9346_v30 = vpack.c.bf16 %v2860_v63, %v2854_v26  ;;  %10444 = vst [vmem:[#allocation34_spill] sm:$0xff] %v9362_v52  ;;  %v2889_v26 = vld [vmem:[#allocation3 + $0x220] sm:$0xff]  ;;  %v2895_v63 = vld [vmem:[#allocation3 + $0x250] sm:$0xff]  ;;  %v9389_v44 = vpack.c.bf16 %v2944_v10, %v2938_v28 }
 0x461   :  { %6788 = vmatprep.subr.bf16.mxu1 %v9148_v59  ;;  %v2853_v59 = vld [vmem:[#allocation3 + $0x100] sm:$0xff]  ;;  %10445 = vst [vmem:[#allocation35_spill] sm:$0xff] %v9365_v22  ;;  %10448 = vst [vmem:[#allocation38_spill] sm:$0xff] %v9374_v46  ;;  %v2962_v28 = vld [vmem:[#allocation3 + $0x468] sm:$0xff] }
 0x462   :  { %10439 = vst [vmem:[#allocation13_spill] sm:$0xff] %v9346_v30  ;;  %10449 = vst [vmem:[#allocation39_spill] sm:$0xff] %v9377_v17  ;;  %v2968_v10 = vld [vmem:[#allocation3 + $0x498] sm:$0xff] }
 0x463   :  { %6726 = vmatpush1.bf16.msra.mxu0 %v9333_v6  ;;  %10453 = vst [vmem:[#allocation43_spill] sm:$0xff] %v9389_v44 }
 0x464   :  { %6790 = vmatpush1.bf16.msra.mxu1 %v9151_v62  ;;  %6792 = vmatprep.subr.bf16.mxu0 %v9342_v0  ;;  %v2872_v62 = vld [vmem:[#allocation3 + $0x198] sm:$0xff] }
 0x465   :  { %6856 = vmatprep.subr.bf16.mxu1 %v9155_v13  ;;  %v9350_v13 = vpack.c.bf16 %v2859_v4, %v2853_v59  ;;  %v2902_v59 = vld [vmem:[#allocation3 + $0x288] sm:$0xff]  ;;  %v2908_v4 = vld [vmem:[#allocation3 + $0x2b8] sm:$0xff] }
 0x466   :  { %2694 = vmatmul.mubr.f32.vlgmr.msra.gmra.mrb[22].mxu0 %v9210_v58  ;;  %v9353_v58 = vpack.c.bf16 %v2872_v62, %v2866_v37  ;;  %v9368_v37 = vpack.c.bf16 %v2895_v63, %v2889_v26  ;;  %v9371_v62 = vpack.c.bf16 %v2908_v4, %v2902_v59  ;;  %v2926_v26 = vld [vmem:[#allocation3 + $0x348] sm:$0xff]  ;;  %v2932_v63 = vld [vmem:[#allocation3 + $0x378] sm:$0xff]  ;;  %v9380_v59 = vpack.c.bf16 %v2919_v50, %v2913_v9 }
 0x467   :  { %6794 = vmatpush1.bf16.msra.mxu0 %v9344_v24  ;;  %10440 = vst [vmem:[#allocation14_spill] sm:$0xff] %v9350_v13  ;;  %v9383_v4 = vpack.c.bf16 %v2932_v63, %v2926_v26  ;;  %v2950_v50 = vld [vmem:[#allocation3 + $0x408] sm:$0xff]  ;;  %v2956_v26 = vld [vmem:[#allocation3 + $0x438] sm:$0xff] }
 0x468   :  { %6796 = vmatprep.subr.bf16.mxu0 %v9346_v30  ;;  %10441 = vst [vmem:[#allocation31_spill] sm:$0xff] %v9353_v58  ;;  %10446 = vst [vmem:[#allocation36_spill] sm:$0xff] %v9368_v37  ;;  %v9396_v63 = vpack.c.bf16 %v2956_v26, %v2950_v50  ;;  %v2974_v50 = vld [vmem:[#allocation3 + $0x4c8] sm:$0xff]  ;;  %v2980_v26 = vld [vmem:[#allocation3 + $0x4f8] sm:$0xff] }
 0x469   :  { %10447 = vst [vmem:[#allocation37_spill] sm:$0xff] %v9371_v62  ;;  %10450 = vst [vmem:[#allocation40_spill] sm:$0xff] %v9380_v59 }
 0x46a   :  { %10451 = vst [vmem:[#allocation41_spill] sm:$0xff] %v9383_v4  ;;  %10455 = vst [vmem:[#allocation45_spill] sm:$0xff] %v9396_v63 }
 0x46b   :  { %6798 = vmatpush1.bf16.msra.mxu0 %v9350_v13 }
 0x46c   :  { %6800 = vmatprep.subr.bf16.mxu0 %v9353_v58 }
 0x46f   :  { %6802 = vmatpush1.bf16.msra.mxu0 %v9356_v20 }
 0x470   :  { %6804 = vmatprep.subr.bf16.mxu0 %v9359_v61  ;;  %v10470_v61 = vld [vmem:[#allocation25_spill] sm:$0xff] }
 0x473   :  { %6806 = vmatpush1.bf16.msra.mxu0 %v9362_v52 }
 0x474   :  { %6808 = vmatprep.subr.bf16.mxu0 %v9365_v22  ;;  %v2925_v22 = vld [vmem:[#allocation3 + $0x340] sm:$0xff] }
 0x477   :  { %6810 = vmatpush1.bf16.msra.mxu0 %v9368_v37  ;;  %v2931_v37 = vld [vmem:[#allocation3 + $0x370] sm:$0xff] }
 0x478   :  { %6812 = vmatprep.subr.bf16.mxu0 %v9371_v62  ;;  %v9386_v14 = vpack.c.bf16 %v2931_v37, %v2925_v22  ;;  %v2937_v62 = vld [vmem:[#allocation3 + $0x3a0] sm:$0xff]  ;;  %v2955_v37 = vld [vmem:[#allocation3 + $0x430] sm:$0xff] }
 0x479   :  { %v2949_v22 = vld [vmem:[#allocation3 + $0x400] sm:$0xff] }
 0x47a   :  { %10452 = vst [vmem:[#allocation42_spill] sm:$0xff] %v9386_v14 }
 0x47b   :  { %6814 = vmatpush1.bf16.msra.mxu0 %v9374_v46  ;;  %v2943_v46 = vld [vmem:[#allocation3 + $0x3d0] sm:$0xff] }
 0x47c   :  { %6816 = vmatprep.subr.bf16.mxu0 %v9377_v17  ;;  %v9392_v9 = vpack.c.bf16 %v2943_v46, %v2937_v62  ;;  %v9402_v62 = vpack.c.bf16 %v2968_v10, %v2962_v28  ;;  %v2961_v46 = vld [vmem:[#allocation3 + $0x460] sm:$0xff]  ;;  %v2991_v10 = vld [vmem:[#allocation3 + $0x550] sm:$0xff]  ;;  %v3016_v17 = vld [vmem:[#allocation3 + $0x618] sm:$0xff] }
 0x47d   :  { %v2985_v28 = vld [vmem:[#allocation3 + $0x520] sm:$0xff] }
 0x47e   :  { %10454 = vst [vmem:[#allocation44_spill] sm:$0xff] %v9392_v9  ;;  %10457 = vst [vmem:[#allocation47_spill] sm:$0xff] %v9402_v62 }
 0x47f   :  { %6818 = vmatpush1.bf16.msra.mxu0 %v9380_v59  ;;  %v9398_v59 = vpack.c.bf16 %v2955_v37, %v2949_v22  ;;  %v9408_v22 = vpack.c.bf16 %v2980_v26, %v2974_v50  ;;  %v2973_v37 = vld [vmem:[#allocation3 + $0x4c0] sm:$0xff] }
 0x480   :  { %6820 = vmatprep.subr.bf16.mxu0 %v9383_v4  ;;  %v2992_v4 = vld [vmem:[#allocation3 + $0x558] sm:$0xff]  ;;  %v2997_v26 = vld [vmem:[#allocation3 + $0x580] sm:$0xff] }
 0x481   :  { %10456 = vst [vmem:[#allocation46_spill] sm:$0xff] %v9398_v59  ;;  %10459 = vst [vmem:[#allocation49_spill] sm:$0xff] %v9408_v22 }
 0x483   :  { %6822 = vmatpush1.bf16.msra.mxu0 %v9386_v14 }
 0x484   :  { %6824 = vmatprep.subr.bf16.mxu0 %v9389_v44  ;;  %v2967_v44 = vld [vmem:[#allocation3 + $0x490] sm:$0xff] }
 0x485   :  { %v9404_v14 = vpack.c.bf16 %v2967_v44, %v2961_v46  ;;  %v2998_v46 = vld [vmem:[#allocation3 + $0x588] sm:$0xff] }
 0x487   :  { %6826 = vmatpush1.bf16.msra.mxu0 %v9392_v9  ;;  %10458 = vst [vmem:[#allocation48_spill] sm:$0xff] %v9404_v14  ;;  %v2986_v9 = vld [vmem:[#allocation3 + $0x528] sm:$0xff] }
 0x488   :  { %6828 = vmatprep.subr.bf16.mxu0 %v9396_v63  ;;  %v2979_v63 = vld [vmem:[#allocation3 + $0x4f0] sm:$0xff]  ;;  %v9413_v44 = vpack.c.bf16 %v2992_v4, %v2986_v9  ;;  %v3009_v9 = vld [vmem:[#allocation3 + $0x5e0] sm:$0xff] }
 0x48a   :  { %10461 = vst [vmem:[#allocation51_spill] sm:$0xff] %v9413_v44 }
 0x48b   :  { %6830 = vmatpush1.bf16.msra.mxu0 %v9398_v59  ;;  %v9410_v59 = vpack.c.bf16 %v2979_v63, %v2973_v37  ;;  %v3003_v63 = vld [vmem:[#allocation3 + $0x5b0] sm:$0xff]  ;;  %v3010_v37 = vld [vmem:[#allocation3 + $0x5e8] sm:$0xff] }
 0x48c   :  { %6832 = vmatprep.subr.bf16.mxu0 %v9402_v62  ;;  %v3004_v62 = vld [vmem:[#allocation3 + $0x5b8] sm:$0xff]  ;;  %v9422_v52 = vpack.c.bf16 %v3003_v63, %v2997_v26  ;;  %v9425_v4 = vpack.c.bf16 %v3016_v17, %v3010_v37 }
 0x48d   :  { %10460 = vst [vmem:[#allocation50_spill] sm:$0xff] %v9410_v59  ;;  %v9419_v50 = vpack.c.bf16 %v3004_v62, %v2998_v46 }
 0x48e   :  { %10464 = vst [vmem:[#allocation54_spill] sm:$0xff] %v9422_v52  ;;  %10465 = vst [vmem:[#allocation55_spill] sm:$0xff] %v9425_v4 }
 0x48f   :  { %6834 = vmatpush1.bf16.msra.mxu0 %v9404_v14  ;;  %v9416_v14 = vpack.c.bf16 %v2991_v10, %v2985_v28  ;;  %10463 = vst [vmem:[#allocation53_spill] sm:$0xff] %v9419_v50  ;;  %v3022_v28 = vld [vmem:[#allocation3 + $0x648] sm:$0xff]  ;;  %v3028_v10 = vld [vmem:[#allocation3 + $0x678] sm:$0xff] }
 0x490   :  { %6836 = vmatprep.subr.bf16.mxu0 %v9408_v22  ;;  %v9431_v46 = vpack.c.bf16 %v3028_v10, %v3022_v28 }
 0x491   :  { %10462 = vst [vmem:[#allocation52_spill] sm:$0xff] %v9416_v14 }
 0x492   :  { %10467 = vst [vmem:[#allocation57_spill] sm:$0xff] %v9431_v46 }
 0x493   :  { %6838 = vmatpush1.bf16.msra.mxu0 %v9410_v59  ;;  %v3015_v59 = vld [vmem:[#allocation3 + $0x610] sm:$0xff] }
 0x494   :  { %6840 = vmatprep.subr.bf16.mxu0 %v9413_v44  ;;  %v9428_v62 = vpack.c.bf16 %v3015_v59, %v3009_v9  ;;  %v3021_v44 = vld [vmem:[#allocation3 + $0x640] sm:$0xff] }
 0x496   :  { %10466 = vst [vmem:[#allocation56_spill] sm:$0xff] %v9428_v62 }
 0x497   :  { %6842 = vmatpush1.bf16.msra.mxu0 %v9416_v14  ;;  %v3027_v14 = vld [vmem:[#allocation3 + $0x670] sm:$0xff] }
 0x498   :  { %6844 = vmatprep.subr.bf16.mxu0 %v9419_v50  ;;  %v9434_v26 = vpack.c.bf16 %v3027_v14, %v3021_v44 }
 0x49a   :  { %10468 = vst [vmem:[#allocation58_spill] sm:$0xff] %v9434_v26 }
 0x49b   :  { %6846 = vmatpush1.bf16.msra.mxu0 %v9422_v52 }
 0x49c   :  { %6848 = vmatprep.subr.bf16.mxu0 %v9425_v4 }
 0x49f   :  { %6850 = vmatpush1.bf16.msra.mxu0 %v9428_v62  ;;  %v10469_v62 = vld [vmem:[#allocation23_spill] sm:$0xff] }
 0x4a0   :  { %6852 = vmatprep.subr.bf16.mxu0 %v9431_v46 }
 0x4a3   :  { %6854 = vmatpush1.bf16.msra.mxu0 %v9434_v26 }
 0x4f9   :  { %v2553_v17 = vpop.f32.mrb[20].mxu0  ;;  %v2624_v63 = vpop.f32.mrb[14].mxu1 }
 0x4fa   :  { %v2706_v37 = vrot.slane %v2624_v63, 5  ;;  %v2710_v52 = vrot.slane %v2624_v63, 6  ;;  %v2555_v59 = vpop.f32.mrb[21].mxu0  ;;  %v2626_v9 = vpop.f32.mrb[15].mxu1 }
 0x4fb   :  { %v2707_v50 = vrot.slane %v2626_v9, 5  ;;  %v2711_v4 = vrot.slane %v2626_v9, 6 }
 0x4fc   :  { %v2722_v28 = vadd.f32 %v2706_v37, %v10431_v42  ;;  %v2726_v10 = vadd.f32 %v2710_v52, %v8656_v33 }
 0x4fd   :  { %v2723_v14 = vadd.f32 %v2707_v50, %v10469_v62  ;;  %v2727_v46 = vadd.f32 %v2711_v4, %v10470_v61  ;;  %v2704_v50 = vrot.slane %v2553_v17, 5  ;;  %v2708_v4 = vrot.slane %v2553_v17, 6 }
 0x4fe   :  { %v5810_v22 = vmul.f32 -1.442695, %v2722_v28  ;;  %v5814_v44 = vmul.f32 -1.442695, %v2726_v10  ;;  %v2709_v10 = vrot.slane %v2555_v59, 6 }
 0x4ff   :  { %v5811_v26 = vmul.f32 -1.442695, %v2723_v14  ;;  %v5815_v20 = vmul.f32 -1.442695, %v2727_v46  ;;  %v10471_v14 = vld [vmem:[#allocation18_spill] sm:$0xff] }
 0x500   :  { %7877 = vpow2.f32 %v5810_v22  ;;  %v2705_v22 = vrot.slane %v2555_v59, 5  ;;  %v2720_v46 = vadd.f32 %v2704_v50, %v10471_v14 }
 0x501   :  { %7879 = vpow2.f32 %v5814_v44  ;;  %v10472_v44 = vld [vmem:[#allocation20_spill] sm:$0xff] }
 0x502   :  { %7881 = vpow2.f32 %v5811_v26 }
 0x503   :  { %7883 = vpow2.f32 %v5815_v20  ;;  %v2808_v20 = vrot.slane %v9190_v40, 7  ;;  %v2809_v40 = vrot.slane %v9195_v34, 7 }
 0x50a   :  { %v7878_v63 = vpop.eup %7877 }
 0x50b   :  { %v7880_v58 = vpop.eup %7879  ;;  %v2754_v13 = vadd.f32 1.0, %v7878_v63 }
 0x50c   :  { %v2758_v9 = vadd.f32 1.0, %v7880_v58  ;;  %v7882_v37 = vpop.eup %7881  ;;  %v2724_v58 = vadd.f32 %v2708_v4, %v10472_v44  ;;  %v2811_v4 = vrot.slane %v9200_v23, 7 }
 0x50d   :  { %7885 = vrcp.f32 %v2754_v13  ;;  %v7884_v52 = vpop.eup %7883  ;;  %v2755_v28 = vadd.f32 1.0, %v7882_v37  ;;  %v2810_v13 = vrot.slane %v9193_v12, 7 }
 0x50e   :  { %7887 = vrcp.f32 %v2758_v9  ;;  %v2759_v33 = vadd.f32 1.0, %v7884_v52  ;;  %v10473_v9 = vld [vmem:[#allocation19_spill] sm:$0xff]  ;;  %v5812_v14 = vmul.f32 -1.442695, %v2724_v58  ;;  %v10475_v58 = vld [vmem:[#allocation26_spill] sm:$0xff] }
 0x50f   :  { %7889 = vrcp.f32 %v2755_v28  ;;  %v2721_v37 = vadd.f32 %v2705_v22, %v10473_v9  ;;  %v5808_v28 = vmul.f32 -1.442695, %v2720_v46 }
 0x510   :  { %7891 = vrcp.f32 %v2759_v33  ;;  %v10474_v33 = vld [vmem:[#allocation21_spill] sm:$0xff] }
 0x511   :  { %v2725_v17 = vadd.f32 %v2709_v10, %v10474_v33  ;;  %v5809_v44 = vmul.f32 -1.442695, %v2721_v37  ;;  %7893 = vpow2.f32 %v5808_v28 }
 0x512   :  { %7895 = vpow2.f32 %v5812_v14  ;;  %v10476_v14 = vld [vmem:[#allocation27_spill] sm:$0xff] }
 0x513   :  { %v5813_v62 = vmul.f32 -1.442695, %v2725_v17  ;;  %7897 = vpow2.f32 %v5809_v44 }
 0x515   :  { %7899 = vpow2.f32 %v5813_v62 }
 0x517   :  { %v9444_v26 = vpop.eup %7885 }
 0x518   :  { %v9448_v63 = vpop.eup %7887  ;;  %v9452_v52 = vmul.f32 %v9444_v26, %v2808_v20 }
 0x519   :  { %v9456_v59 = vmul.f32 %v9448_v63, %v2810_v13  ;;  %v7890_v50 = vpop.eup %7889 }
 0x51a   :  { %v7892_v12 = vpop.eup %7891  ;;  %v2817_v61 = vmul.f32 %v7890_v50, %v2809_v40 }
 0x51b   :  { %v2819_v22 = vmul.f32 %v7892_v12, %v2811_v4  ;;  %v7894_v10 = vpop.eup %7893 }
 0x51c   :  { %v7896_v20 = vpop.eup %7895  ;;  %v2752_v46 = vadd.f32 1.0, %v7894_v10 }
 0x51d   :  { %v7898_v13 = vpop.eup %7897  ;;  %v2756_v9 = vadd.f32 1.0, %v7896_v20 }
 0x51e   :  { %v2753_v34 = vadd.f32 1.0, %v7898_v13  ;;  %7901 = vrcp.f32 %v2752_v46 }
 0x51f   :  { %v7900_v33 = vpop.eup %7899  ;;  %7903 = vrcp.f32 %v2756_v9 }
 0x520   :  { %v2757_v42 = vadd.f32 1.0, %v7900_v33  ;;  %7905 = vrcp.f32 %v2753_v34 }
 0x522   :  { %7907 = vrcp.f32 %v2757_v42 }
 0x528   :  { %v7902_v28 = vpop.eup %7901 }
 0x529   :  { %v7904_v62 = vpop.eup %7903 }
 0x52a   :  { %v7906_v30 = vpop.eup %7905 }
 0x52c   :  { %v7908_v20 = vpop.eup %7907 }
 0x539   :  { %v2695_v23 = vpop.f32.mrb[22].mxu0 }
 0x53a   :  { %v2776_v37 = vadd.f32 %v2695_v23, %v10475_v58  ;;  %v2697_v17 = vpop.f32.mrb[23].mxu0 }
 0x53b   :  { %v2777_v44 = vadd.f32 %v2697_v17, %v10476_v14 }
 0x53c   :  { %v2780_v40 = vrot.slane %v2776_v37, 5  ;;  %v2782_v4 = vrot.slane %v2776_v37, 6  ;;  %v2800_v37 = vsub.f32 1.0, %v9444_v26 }
 0x53d   :  { %v2781_v24 = vrot.slane %v2777_v44, 5  ;;  %v2783_v10 = vrot.slane %v2777_v44, 6 }
 0x53e   :  { %v2788_v13 = vmul.f32 %v7902_v28, %v2780_v40  ;;  %v2790_v33 = vmul.f32 %v7904_v62, %v2782_v4  ;;  %v2802_v28 = vsub.f32 1.0, %v9448_v63  ;;  %v2803_v40 = vsub.f32 1.0, %v7892_v12 }
 0x53f   :  { %v2789_v46 = vmul.f32 %v7906_v30, %v2781_v24  ;;  %v2791_v9 = vmul.f32 %v7908_v20, %v2783_v10  ;;  %v2801_v24 = vsub.f32 1.0, %v7890_v50 }
 0x540   :  { %v2792_v42 = vadd.f32 %v2788_v13, %v10393_v49  ;;  %v2794_v34 = vadd.f32 %v2790_v33, %v8687_v7 }
 0x541   :  { %v2793_v23 = vadd.f32 %v2789_v46, %v10434_v35  ;;  %v2795_v58 = vadd.f32 %v2791_v9, %v10435_v54 }
 0x542   :  { %7909 = vtanh.f32 %v2792_v42 }
 0x543   :  { %7911 = vtanh.f32 %v2794_v34 }
 0x544   :  { %7913 = vtanh.f32 %v2793_v23 }
 0x545   :  { %7915 = vtanh.f32 %v2795_v58 }
 0x54c   :  { %v7910_v17 = vpop.eup %7909 }
 0x54d   :  { %v7912_v44 = vpop.eup %7911  ;;  %v2804_v30 = vmul.f32 %v7910_v17, %v2800_v37 }
 0x54e   :  { %v7914_v62 = vpop.eup %7913  ;;  %v2806_v4 = vmul.f32 %v7912_v44, %v2802_v28  ;;  %v3402_v28 = vld [vmem:[#allocation3 + $0xf0] sm:$0xff]  ;;  %v3408_v44 = vld [vmem:[#allocation3 + $0x120] sm:$0xff] }
 0x54f   :  { %v7916_v10 = vpop.eup %7915  ;;  %v2805_v20 = vmul.f32 %v7914_v62, %v2801_v24  ;;  %v9469_v13 = vadd.f32 %v9452_v52, %v2804_v30  ;;  %v3415_v24 = vld [vmem:[#allocation3 + $0x158] sm:$0xff]  ;;  %v3421_v30 = vld [vmem:[#allocation3 + $0x188] sm:$0xff] }
 0x550   :  { %v2807_v33 = vmul.f32 %v7916_v10, %v2803_v40  ;;  %v9472_v46 = vadd.f32 %v9456_v59, %v2806_v4  ;;  %v10501_v62 = vld [vmem:[#allocation52_spill] sm:$0xff]  ;;  %v9552_v40 = vpack.c.bf16 %v3408_v44, %v3402_v28  ;;  %v10502_v4 = vld [vmem:[#allocation53_spill] sm:$0xff]  ;;  %v9556_v10 = vpack.c.bf16 %v3421_v30, %v3415_v24  ;;  %v3504_v30 = vld [vmem:[#allocation3 + $0x420] sm:$0xff] }
 0x551   :  { %v9474_v58 = vadd.f32 %v2817_v61, %v2805_v20  ;;  %v2828_v26 = vrot.slane %v9469_v13, 5  ;;  %v3031_v63 = vrot.slane %v9469_v13, 3  ;;  %v3414_v20 = vld [vmem:[#allocation3 + $0x150] sm:$0xff]  ;;  %v3505_v28 = vld [vmem:[#allocation3 + $0x428] sm:$0xff] }
 0x552   :  { %v9478_v50 = vadd.f32 %v2819_v22, %v2807_v33  ;;  %v2829_v12 = vrot.slane %v9472_v46, 4  ;;  %v3032_v9 = vrot.slane %v9472_v46, 2  ;;  %v3420_v33 = vld [vmem:[#allocation3 + $0x180] sm:$0xff]  ;;  %v3498_v24 = vld [vmem:[#allocation3 + $0x3f0] sm:$0xff] }
 0x553   :  { %v2832_v52 = vrot.slane %v9474_v58, 5  ;;  %v3034_v42 = vrot.slane %v9474_v58, 3 }
 0x554   :  { %v2833_v59 = vrot.slane %v9478_v50, 4  ;;  %v3035_v61 = vrot.slane %v9478_v50, 2  ;;  %v2831_v34 = vsel %vm2830_vm9, %v2829_v12, %v2828_v26  ;;  %v3033_v23 = vsel %vm1195_vm6, %v3032_v9, %v3031_v63  ;;  %v3427_v26 = vld [vmem:[#allocation3 + $0x1b8] sm:$0xff]  ;;  %v3433_v63 = vld [vmem:[#allocation3 + $0x1e8] sm:$0xff] }
 0x555   :  { %2837 = vst [vmem:[#allocation2] sm:$0xc0] %v2831_v34  ;;  %v10503_v12 = vld [vmem:[#allocation54_spill] sm:$0xff]  ;;  %v9560_v9 = vpack.c.bf16 %v3420_v33, %v3414_v20  ;;  %v3517_v20 = vld [vmem:[#allocation3 + $0x488] sm:$0xff] }
 0x556   :  { %v2834_v22 = vsel %vm2830_vm9, %v2833_v59, %v2832_v52  ;;  %v3036_v37 = vsel %vm1195_vm6, %v3035_v61, %v3034_v42  ;;  %v10504_v52 = vld [vmem:[#allocation55_spill] sm:$0xff]  ;;  %v9564_v42 = vpack.c.bf16 %v3433_v63, %v3427_v26  ;;  %v3426_v59 = vld [vmem:[#allocation3 + $0x1b0] sm:$0xff]  ;;  %v3439_v34 = vld [vmem:[#allocation3 + $0x218] sm:$0xff] }
 0x557   :  { %2838 = vst [vmem:[#allocation2 + $0x8] sm:$0xc0] %v2834_v22  ;;  %3103 = vmatprep.mubr.f32.mxu1 %v3036_v37  ;;  %3174 = vmatprep.mubr.f32.mxu0 %v3036_v37  ;;  %v3432_v61 = vld [vmem:[#allocation3 + $0x1e0] sm:$0xff]  ;;  %v10505_v22 = vld [vmem:[#allocation56_spill] sm:$0xff]  ;;  %v3510_v26 = vld [vmem:[#allocation3 + $0x450] sm:$0xff] }
 0x558   :  { %3104 = vmatmul.mubr.f32.vlgmr.msra.gmra.mrb[16].mxu1 %v3033_v23  ;;  %3175 = vmatmul.mubr.f32.vlgmr.msra.gmra.mrb[24].mxu0 %v3033_v23  ;;  %v3516_v63 = vld [vmem:[#allocation3 + $0x480] sm:$0xff] }
 0x559   :  { %6858 = vmatpush1.bf16.msra.mxu1 %v9212_v41  ;;  %3245 = vmatprep.mubr.f32.mxu1 %v3036_v37  ;;  %v10477_v41 = vld [vmem:[#allocation28_spill] sm:$0xff]  ;;  %v9568_v37 = vpack.c.bf16 %v3432_v61, %v3426_v59 }
 0x55a   :  { %6860 = vmatprep.subr.bf16.mxu1 %v9216_v43  ;;  %v10478_v43 = vld [vmem:[#allocation13_spill] sm:$0xff]  ;;  %v3529_v59 = vld [vmem:[#allocation3 + $0x4e8] sm:$0xff] }
 0x55d   :  { %6862 = vmatpush1.bf16.msra.mxu1 %v9221_v57  ;;  %v10479_v57 = vld [vmem:[#allocation14_spill] sm:$0xff] }
 0x55e   :  { %6864 = vmatprep.subr.bf16.mxu1 %v9224_v16  ;;  %v10480_v16 = vld [vmem:[#allocation31_spill] sm:$0xff] }
 0x561   :  { %6866 = vmatpush1.bf16.msra.mxu1 %v9229_v19  ;;  %v10481_v19 = vld [vmem:[#allocation32_spill] sm:$0xff] }
 0x562   :  { %6868 = vmatprep.subr.bf16.mxu1 %v9232_v1  ;;  %v10482_v1 = vld [vmem:[#allocation33_spill] sm:$0xff] }
 0x565   :  { %6870 = vmatpush1.bf16.msra.mxu1 %v9237_v8  ;;  %v10483_v8 = vld [vmem:[#allocation34_spill] sm:$0xff] }
 0x566   :  { %6872 = vmatprep.subr.bf16.mxu1 %v9240_v47  ;;  %v10484_v47 = vld [vmem:[#allocation35_spill] sm:$0xff] }
 0x569   :  { %6874 = vmatpush1.bf16.msra.mxu1 %v9245_v29  ;;  %v10485_v29 = vld [vmem:[#allocation36_spill] sm:$0xff] }
 0x56a   :  { %6876 = vmatprep.subr.bf16.mxu1 %v9248_v31  ;;  %v10486_v31 = vld [vmem:[#allocation37_spill] sm:$0xff] }
 0x56d   :  { %6878 = vmatpush1.bf16.msra.mxu1 %v9253_v36  ;;  %v10487_v36 = vld [vmem:[#allocation38_spill] sm:$0xff] }
 0x56e   :  { %6880 = vmatprep.subr.bf16.mxu1 %v9256_v38  ;;  %v10488_v38 = vld [vmem:[#allocation39_spill] sm:$0xff] }
 0x571   :  { %6882 = vmatpush1.bf16.msra.mxu1 %v9261_v25  ;;  %v10489_v25 = vld [vmem:[#allocation40_spill] sm:$0xff] }
 0x572   :  { %6884 = vmatprep.subr.bf16.mxu1 %v9264_v2  ;;  %v10490_v2 = vld [vmem:[#allocation41_spill] sm:$0xff] }
 0x575   :  { %6886 = vmatpush1.bf16.msra.mxu1 %v9269_v3  ;;  %v10491_v3 = vld [vmem:[#allocation42_spill] sm:$0xff] }
 0x576   :  { %6888 = vmatprep.subr.bf16.mxu1 %v9272_v21  ;;  %v10492_v21 = vld [vmem:[#allocation43_spill] sm:$0xff] }
 0x579   :  { %6890 = vmatpush1.bf16.msra.mxu1 %v9277_v56  ;;  %v10493_v56 = vld [vmem:[#allocation44_spill] sm:$0xff] }
 0x57a   :  { %6892 = vmatprep.subr.bf16.mxu1 %v9280_v60  ;;  %v10494_v60 = vld [vmem:[#allocation45_spill] sm:$0xff] }
 0x57d   :  { %6894 = vmatpush1.bf16.msra.mxu1 %v9285_v27  ;;  %v10495_v27 = vld [vmem:[#allocation46_spill] sm:$0xff] }
 0x57e   :  { %6896 = vmatprep.subr.bf16.mxu1 %v9288_v32  ;;  %v10496_v32 = vld [vmem:[#allocation47_spill] sm:$0xff] }
 0x581   :  { %6898 = vmatpush1.bf16.msra.mxu1 %v9293_v39  ;;  %v10497_v39 = vld [vmem:[#allocation48_spill] sm:$0xff] }
 0x582   :  { %6900 = vmatprep.subr.bf16.mxu1 %v9296_v51  ;;  %v10498_v51 = vld [vmem:[#allocation49_spill] sm:$0xff] }
 0x585   :  { %6902 = vmatpush1.bf16.msra.mxu1 %v9301_v11  ;;  %v10499_v11 = vld [vmem:[#allocation50_spill] sm:$0xff] }
 0x586   :  { %6904 = vmatprep.subr.bf16.mxu1 %v9304_v45  ;;  %v3391_v45 = vld [vmem:[#allocation3 + $0x98] sm:$0xff] }
 0x589   :  { %6906 = vmatpush1.bf16.msra.mxu1 %v9309_v55  ;;  %v3397_v55 = vld [vmem:[#allocation3 + $0xc8] sm:$0xff] }
 0x58a   :  { %6908 = vmatprep.subr.bf16.mxu1 %v9312_v5  ;;  %v3390_v5 = vld [vmem:[#allocation3 + $0x90] sm:$0xff] }
 0x58d   :  { %6910 = vmatpush1.bf16.msra.mxu1 %v9317_v18  ;;  %v10500_v18 = vld [vmem:[#allocation51_spill] sm:$0xff] }
 0x58e   :  { %6912 = vmatprep.subr.bf16.mxu1 %v9320_v15  ;;  %v6919_v15 = vpack.c.bf16 %v3397_v55, %v3391_v45  ;;  %v3487_v45 = vld [vmem:[#allocation3 + $0x398] sm:$0xff]  ;;  %v3493_v55 = vld [vmem:[#allocation3 + $0x3c8] sm:$0xff] }
 0x590   :  { %6920 = vmatprep.subr.bf16.mxu0 %v6919_v15 }
 0x591   :  { %6914 = vmatpush1.bf16.msra.mxu1 %v9325_v48  ;;  %v3396_v48 = vld [vmem:[#allocation3 + $0xc0] sm:$0xff] }
 0x592   :  { %6916 = vmatprep.subr.bf16.mxu1 %v9328_v53  ;;  %v3403_v53 = vld [vmem:[#allocation3 + $0xf8] sm:$0xff] }
 0x595   :  { %6918 = vmatpush1.bf16.msra.mxu1 %v9333_v6  ;;  %v3409_v6 = vld [vmem:[#allocation3 + $0x128] sm:$0xff] }
 0x596   :  { %6984 = vmatprep.subr.bf16.mxu1 %v9342_v0  ;;  %v9546_v0 = vpack.c.bf16 %v3396_v48, %v3390_v5  ;;  %v9548_v17 = vpack.c.bf16 %v3409_v6, %v3403_v53  ;;  %v3492_v48 = vld [vmem:[#allocation3 + $0x3c0] sm:$0xff]  ;;  %v3499_v6 = vld [vmem:[#allocation3 + $0x3f8] sm:$0xff] }
 0x597   :  { %v9604_v44 = vpack.c.bf16 %v3505_v28, %v3499_v6  ;;  %v3570_v28 = vld [vmem:[#allocation3 + $0x630] sm:$0xff] }
 0x598   :  { %3246 = vmatmul.mubr.f32.vlgmr.msra.gmra.mrb[18].mxu1 %v3033_v23  ;;  %6922 = vmatpush1.bf16.msra.mxu0 %v9546_v0  ;;  %v3445_v23 = vld [vmem:[#allocation3 + $0x248] sm:$0xff] }
 0x599   :  { %6986 = vmatpush1.bf16.msra.mxu1 %v10477_v41  ;;  %6924 = vmatprep.subr.bf16.mxu0 %v9548_v17  ;;  %v10506_v41 = vld [vmem:[#allocation57_spill] sm:$0xff] }
 0x59a   :  { %6988 = vmatprep.subr.bf16.mxu1 %v10478_v43  ;;  %v9572_v43 = vpack.c.bf16 %v3445_v23, %v3439_v34  ;;  %v3522_v34 = vld [vmem:[#allocation3 + $0x4b0] sm:$0xff]  ;;  %v3528_v23 = vld [vmem:[#allocation3 + $0x4e0] sm:$0xff] }
 0x59c   :  { %6926 = vmatpush1.bf16.msra.mxu0 %v9552_v40 }
 0x59d   :  { %6990 = vmatpush1.bf16.msra.mxu1 %v10479_v57  ;;  %6928 = vmatprep.subr.bf16.mxu0 %v9556_v10  ;;  %v3438_v57 = vld [vmem:[#allocation3 + $0x210] sm:$0xff] }
 0x59e   :  { %6992 = vmatprep.subr.bf16.mxu1 %v10480_v16  ;;  %v3444_v16 = vld [vmem:[#allocation3 + $0x240] sm:$0xff] }
 0x5a0   :  { %6930 = vmatpush1.bf16.msra.mxu0 %v9560_v9 }
 0x5a1   :  { %6994 = vmatpush1.bf16.msra.mxu1 %v10481_v19  ;;  %6932 = vmatprep.subr.bf16.mxu0 %v9564_v42  ;;  %v3451_v19 = vld [vmem:[#allocation3 + $0x278] sm:$0xff] }
 0x5a2   :  { %6996 = vmatprep.subr.bf16.mxu1 %v10482_v1  ;;  %v3457_v1 = vld [vmem:[#allocation3 + $0x2a8] sm:$0xff] }
 0x5a4   :  { %6934 = vmatpush1.bf16.msra.mxu0 %v9568_v37 }
 0x5a5   :  { %6998 = vmatpush1.bf16.msra.mxu1 %v10483_v8  ;;  %v10507_v8 = vld [vmem:[#allocation58_spill] sm:$0xff]  ;;  %6936 = vmatprep.subr.bf16.mxu0 %v9572_v43 }
 0x5a6   :  { %7000 = vmatprep.subr.bf16.mxu1 %v10484_v47  ;;  %v9576_v47 = vpack.c.bf16 %v3444_v16, %v3438_v57  ;;  %v3541_v57 = vld [vmem:[#allocation3 + $0x548] sm:$0xff]  ;;  %v3534_v16 = vld [vmem:[#allocation3 + $0x510] sm:$0xff] }
 0x5a8   :  { %6938 = vmatpush1.bf16.msra.mxu0 %v9576_v47 }
 0x5a9   :  { %7002 = vmatpush1.bf16.msra.mxu1 %v10485_v29  ;;  %v9579_v29 = vpack.c.bf16 %v3457_v1, %v3451_v19  ;;  %v3540_v1 = vld [vmem:[#allocation3 + $0x540] sm:$0xff] }
 0x5aa   :  { %7004 = vmatprep.subr.bf16.mxu1 %v10486_v31  ;;  %v3450_v31 = vld [vmem:[#allocation3 + $0x270] sm:$0xff] }
 0x5ab   :  { %6940 = vmatprep.subr.bf16.mxu0 %v9579_v29 }
 0x5ad   :  { %7006 = vmatpush1.bf16.msra.mxu1 %v10487_v36  ;;  %v3456_v36 = vld [vmem:[#allocation3 + $0x2a0] sm:$0xff] }
 0x5ae   :  { %7008 = vmatprep.subr.bf16.mxu1 %v10488_v38  ;;  %v3463_v38 = vld [vmem:[#allocation3 + $0x2d8] sm:$0xff] }
 0x5b1   :  { %7010 = vmatpush1.bf16.msra.mxu1 %v10489_v25  ;;  %v3469_v25 = vld [vmem:[#allocation3 + $0x308] sm:$0xff] }
 0x5b2   :  { %7012 = vmatprep.subr.bf16.mxu1 %v10490_v2  ;;  %v9582_v2 = vpack.c.bf16 %v3456_v36, %v3450_v31  ;;  %v3553_v31 = vld [vmem:[#allocation3 + $0x5a8] sm:$0xff]  ;;  %v9624_v36 = vpack.c.bf16 %v3540_v1, %v3534_v16  ;;  %v10508_v1 = vld [vmem:[#allocation22_spill] sm:$0xff] }
 0x5b4   :  { %6942 = vmatpush1.bf16.msra.mxu0 %v9582_v2 }
 0x5b5   :  { %7014 = vmatpush1.bf16.msra.mxu1 %v10491_v3  ;;  %v9585_v3 = vpack.c.bf16 %v3469_v25, %v3463_v38  ;;  %v3546_v25 = vld [vmem:[#allocation3 + $0x570] sm:$0xff] }
 0x5b6   :  { %7016 = vmatprep.subr.bf16.mxu1 %v10492_v21  ;;  %v3462_v21 = vld [vmem:[#allocation3 + $0x2d0] sm:$0xff] }
 0x5b7   :  { %6944 = vmatprep.subr.bf16.mxu0 %v9585_v3 }
 0x5b9   :  { %7018 = vmatpush1.bf16.msra.mxu1 %v10493_v56  ;;  %v3468_v56 = vld [vmem:[#allocation3 + $0x300] sm:$0xff] }
 0x5ba   :  { %7020 = vmatprep.subr.bf16.mxu1 %v10494_v60  ;;  %v3475_v60 = vld [vmem:[#allocation3 + $0x338] sm:$0xff] }
 0x5bd   :  { %7022 = vmatpush1.bf16.msra.mxu1 %v10495_v27  ;;  %v3481_v27 = vld [vmem:[#allocation3 + $0x368] sm:$0xff] }
 0x5be   :  { %7024 = vmatprep.subr.bf16.mxu1 %v10496_v32  ;;  %v9588_v32 = vpack.c.bf16 %v3468_v56, %v3462_v21  ;;  %v3552_v21 = vld [vmem:[#allocation3 + $0x5a0] sm:$0xff]  ;;  %v3559_v56 = vld [vmem:[#allocation3 + $0x5d8] sm:$0xff] }
 0x5c0   :  { %6946 = vmatpush1.bf16.msra.mxu0 %v9588_v32 }
 0x5c1   :  { %7026 = vmatpush1.bf16.msra.mxu1 %v10497_v39  ;;  %v9591_v39 = vpack.c.bf16 %v3481_v27, %v3475_v60  ;;  %v3565_v60 = vld [vmem:[#allocation3 + $0x608] sm:$0xff]  ;;  %v9630_v27 = vpack.c.bf16 %v3552_v21, %v3546_v25 }
 0x5c2   :  { %7028 = vmatprep.subr.bf16.mxu1 %v10498_v51  ;;  %v3474_v51 = vld [vmem:[#allocation3 + $0x330] sm:$0xff] }
 0x5c3   :  { %6948 = vmatprep.subr.bf16.mxu0 %v9591_v39 }
 0x5c5   :  { %7030 = vmatpush1.bf16.msra.mxu1 %v10499_v11  ;;  %v3480_v11 = vld [vmem:[#allocation3 + $0x360] sm:$0xff] }
 0x5c6   :  { %7032 = vmatprep.subr.bf16.mxu1 %v10500_v18  ;;  %v9594_v5 = vpack.c.bf16 %v3480_v11, %v3474_v51  ;;  %v9597_v18 = vpack.c.bf16 %v3493_v55, %v3487_v45  ;;  %v9633_v51 = vpack.c.bf16 %v3565_v60, %v3559_v56  ;;  %v3558_v11 = vld [vmem:[#allocation3 + $0x5d0] sm:$0xff]  ;;  %v3564_v45 = vld [vmem:[#allocation3 + $0x600] sm:$0xff]  ;;  %v3571_v55 = vld [vmem:[#allocation3 + $0x638] sm:$0xff] }
 0x5c7   :  { %v10510_v56 = vld [vmem:[#allocation23_spill] sm:$0xff] }
 0x5c8   :  { %6950 = vmatpush1.bf16.msra.mxu0 %v9594_v5 }
 0x5c9   :  { %7034 = vmatpush1.bf16.msra.mxu1 %v10501_v62  ;;  %6952 = vmatprep.subr.bf16.mxu0 %v9597_v18  ;;  %v9606_v62 = vpack.c.bf16 %v3504_v30, %v3498_v24  ;;  %v3576_v24 = vld [vmem:[#allocation3 + $0x660] sm:$0xff] }
 0x5ca   :  { %7036 = vmatprep.subr.bf16.mxu1 %v10502_v4  ;;  %v3511_v4 = vld [vmem:[#allocation3 + $0x458] sm:$0xff]  ;;  %v9642_v30 = vpack.c.bf16 %v3576_v24, %v3570_v28 }
 0x5cb   :  { %v9610_v33 = vpack.c.bf16 %v3517_v20, %v3511_v4  ;;  %v3395_v4 = vld [vmem:[#allocation3 + $0xb8] sm:$0xff]  ;;  %v3401_v20 = vld [vmem:[#allocation3 + $0xe8] sm:$0xff] }
 0x5cd   :  { %7038 = vmatpush1.bf16.msra.mxu1 %v10503_v12  ;;  %v9612_v12 = vpack.c.bf16 %v3516_v63, %v3510_v26  ;;  %v9646_v26 = vpack.c.bf16 %v3401_v20, %v3395_v4 }
 0x5ce   :  { %7040 = vmatprep.subr.bf16.mxu1 %v10504_v52  ;;  %v3523_v52 = vld [vmem:[#allocation3 + $0x4b8] sm:$0xff] }
 0x5cf   :  { %v9616_v61 = vpack.c.bf16 %v3529_v59, %v3523_v52 }
 0x5d1   :  { %7042 = vmatpush1.bf16.msra.mxu1 %v10505_v22  ;;  %v9618_v22 = vpack.c.bf16 %v3528_v23, %v3522_v34 }
 0x5d2   :  { %7044 = vmatprep.subr.bf16.mxu1 %v10506_v41  ;;  %v3535_v41 = vld [vmem:[#allocation3 + $0x518] sm:$0xff] }
 0x5d3   :  { %v9621_v19 = vpack.c.bf16 %v3541_v57, %v3535_v41 }
 0x5d5   :  { %7046 = vmatpush1.bf16.msra.mxu1 %v10507_v8  ;;  %v3547_v8 = vld [vmem:[#allocation3 + $0x578] sm:$0xff] }
 0x5d6   :  { %7112 = vmatprep.subr.bf16.mxu1 %v6919_v15  ;;  %v3486_v15 = vld [vmem:[#allocation3 + $0x390] sm:$0xff]  ;;  %v9627_v38 = vpack.c.bf16 %v3553_v31, %v3547_v8  ;;  %v10509_v31 = vld [vmem:[#allocation24_spill] sm:$0xff] }
 0x5d7   :  { %v9600_v53 = vpack.c.bf16 %v3492_v48, %v3486_v15  ;;  %v3577_v15 = vld [vmem:[#allocation3 + $0x668] sm:$0xff]  ;;  %v9636_v48 = vpack.c.bf16 %v3564_v45, %v3558_v11  ;;  %v10511_v45 = vld [vmem:[#allocation25_spill] sm:$0xff] }
 0x5d8   :  { %v9639_v6 = vpack.c.bf16 %v3577_v15, %v3571_v55 }
 0x5d9   :  { %6954 = vmatpush1.bf16.msra.mxu0 %v9600_v53 }
 0x5da   :  { %6956 = vmatprep.subr.bf16.mxu0 %v9604_v44 }
 0x5dd   :  { %6958 = vmatpush1.bf16.msra.mxu0 %v9606_v62 }
 0x5de   :  { %6960 = vmatprep.subr.bf16.mxu0 %v9610_v33 }
 0x5e1   :  { %6962 = vmatpush1.bf16.msra.mxu0 %v9612_v12 }
 0x5e2   :  { %6964 = vmatprep.subr.bf16.mxu0 %v9616_v61 }
 0x5e5   :  { %6966 = vmatpush1.bf16.msra.mxu0 %v9618_v22 }
 0x5e6   :  { %6968 = vmatprep.subr.bf16.mxu0 %v9621_v19 }
 0x5e9   :  { %6970 = vmatpush1.bf16.msra.mxu0 %v9624_v36 }
 0x5ea   :  { %6972 = vmatprep.subr.bf16.mxu0 %v9627_v38 }
 0x5ed   :  { %6974 = vmatpush1.bf16.msra.mxu0 %v9630_v27 }
 0x5ee   :  { %6976 = vmatprep.subr.bf16.mxu0 %v9633_v51 }
 0x5f1   :  { %6978 = vmatpush1.bf16.msra.mxu0 %v9636_v48 }
 0x5f2   :  { %6980 = vmatprep.subr.bf16.mxu0 %v9639_v6 }
 0x5f5   :  { %6982 = vmatpush1.bf16.msra.mxu0 %v9642_v30 }
 0x5f6   :  { %7048 = vmatprep.subr.bf16.mxu0 %v9646_v26 }
 0x62b   :  { %v3105_v63 = vpop.f32.mrb[16].mxu1  ;;  %v3176_v52 = vpop.f32.mrb[24].mxu0 }
 0x62c   :  { %v3258_v59 = vrot.slane %v3176_v52, 4  ;;  %v3262_v34 = vrot.slane %v3176_v52, 5  ;;  %v3107_v23 = vpop.f32.mrb[17].mxu1  ;;  %v3178_v41 = vpop.f32.mrb[25].mxu0 }
 0x62d   :  { %v3259_v57 = vrot.slane %v3178_v41, 4  ;;  %v3263_v16 = vrot.slane %v3178_v41, 5 }
 0x62e   :  { %v3274_v8 = vadd.f32 %v3258_v59, %v10508_v1  ;;  %v3278_v25 = vadd.f32 %v3262_v34, %v10509_v31 }
 0x62f   :  { %v3275_v60 = vadd.f32 %v3259_v57, %v10510_v56  ;;  %v3279_v55 = vadd.f32 %v3263_v16, %v10511_v45  ;;  %v3256_v57 = vrot.slane %v3105_v63, 4  ;;  %v3260_v16 = vrot.slane %v3105_v63, 5  ;;  %v10515_v63 = vld [vmem:[#allocation21_spill] sm:$0xff] }
 0x630   :  { %v5818_v21 = vmul.f32 -1.442695, %v3274_v8  ;;  %v5822_v11 = vmul.f32 -1.442695, %v3278_v25  ;;  %v3257_v25 = vrot.slane %v3107_v23, 4 }
 0x631   :  { %v5819_v15 = vmul.f32 -1.442695, %v3275_v60  ;;  %v5823_v28 = vmul.f32 -1.442695, %v3279_v55  ;;  %v10512_v60 = vld [vmem:[#allocation18_spill] sm:$0xff]  ;;  %v3360_v55 = vrot.slane %v9469_v13, 7 }
 0x632   :  { %7917 = vpow2.f32 %v5818_v21  ;;  %v3261_v21 = vrot.slane %v3107_v23, 5  ;;  %v3361_v13 = vrot.slane %v9474_v58, 7 }
 0x633   :  { %7919 = vpow2.f32 %v5822_v11  ;;  %v3272_v11 = vadd.f32 %v3256_v57, %v10512_v60 }
 0x634   :  { %7921 = vpow2.f32 %v5819_v15 }
 0x635   :  { %7923 = vpow2.f32 %v5823_v28  ;;  %v10513_v28 = vld [vmem:[#allocation20_spill] sm:$0xff] }
 0x63c   :  { %v7918_v24 = vpop.eup %7917 }
 0x63d   :  { %v7920_v4 = vpop.eup %7919  ;;  %v3306_v20 = vadd.f32 1.0, %v7918_v24  ;;  %v3276_v24 = vadd.f32 %v3260_v16, %v10513_v28  ;;  %v3363_v16 = vrot.slane %v9478_v50, 7 }
 0x63e   :  { %v3310_v52 = vadd.f32 1.0, %v7920_v4  ;;  %v7922_v59 = vpop.eup %7921  ;;  %v3362_v4 = vrot.slane %v9472_v46, 7 }
 0x63f   :  { %7925 = vrcp.f32 %v3306_v20  ;;  %v7924_v34 = vpop.eup %7923  ;;  %v3307_v41 = vadd.f32 1.0, %v7922_v59  ;;  %v5820_v60 = vmul.f32 -1.442695, %v3276_v24  ;;  %v10516_v24 = vld [vmem:[#allocation26_spill] sm:$0xff] }
 0x640   :  { %7927 = vrcp.f32 %v3310_v52  ;;  %v3311_v8 = vadd.f32 1.0, %v7924_v34  ;;  %v10514_v52 = vld [vmem:[#allocation19_spill] sm:$0xff] }
 0x641   :  { %7929 = vrcp.f32 %v3307_v41  ;;  %v3273_v59 = vadd.f32 %v3257_v25, %v10514_v52  ;;  %v3277_v41 = vadd.f32 %v3261_v21, %v10515_v63 }
 0x642   :  { %7931 = vrcp.f32 %v3311_v8  ;;  %v5816_v8 = vmul.f32 -1.442695, %v3272_v11 }
 0x643   :  { %v5817_v28 = vmul.f32 -1.442695, %v3273_v59  ;;  %v5821_v56 = vmul.f32 -1.442695, %v3277_v41 }
 0x644   :  { %7933 = vpow2.f32 %v5816_v8 }
 0x645   :  { %7935 = vpow2.f32 %v5820_v60 }
 0x646   :  { %7937 = vpow2.f32 %v5817_v28 }
 0x647   :  { %7939 = vpow2.f32 %v5821_v56 }
 0x649   :  { %v9655_v15 = vpop.eup %7925 }
 0x64a   :  { %v9659_v20 = vpop.eup %7927  ;;  %v9663_v34 = vmul.f32 %v9655_v15, %v3360_v55 }
 0x64b   :  { %v9667_v23 = vmul.f32 %v9659_v20, %v3362_v4  ;;  %v7930_v57 = vpop.eup %7929 }
 0x64c   :  { %v7932_v46 = vpop.eup %7931  ;;  %v3369_v45 = vmul.f32 %v7930_v57, %v3361_v13 }
 0x64d   :  { %v3371_v25 = vmul.f32 %v7932_v46, %v3363_v16 }
 0x64e   :  { %v7934_v21 = vpop.eup %7933 }
 0x64f   :  { %v7936_v55 = vpop.eup %7935  ;;  %v3304_v11 = vadd.f32 1.0, %v7934_v21 }
 0x650   :  { %v7938_v4 = vpop.eup %7937  ;;  %v3308_v52 = vadd.f32 1.0, %v7936_v55 }
 0x651   :  { %v7940_v63 = vpop.eup %7939  ;;  %v3305_v58 = vadd.f32 1.0, %v7938_v4  ;;  %7941 = vrcp.f32 %v3304_v11 }
 0x652   :  { %v3309_v31 = vadd.f32 1.0, %v7940_v63  ;;  %7943 = vrcp.f32 %v3308_v52 }
 0x653   :  { %7945 = vrcp.f32 %v3305_v58 }
 0x654   :  { %7947 = vrcp.f32 %v3309_v31 }
 0x65b   :  { %v7942_v8 = vpop.eup %7941 }
 0x65c   :  { %v7944_v56 = vpop.eup %7943 }
 0x65d   :  { %v7946_v16 = vpop.eup %7945 }
 0x65e   :  { %v7948_v55 = vpop.eup %7947 }
 0x66b   :  { %v3247_v50 = vpop.f32.mrb[18].mxu1 }
 0x66c   :  { %v3328_v59 = vadd.f32 %v3247_v50, %v10516_v24  ;;  %v3249_v41 = vpop.f32.mrb[19].mxu1 }
 0x66d   :  { %v3329_v60 = vadd.f32 %v3249_v41, %v10476_v14 }
 0x66e   :  { %v3332_v28 = vrot.slane %v3328_v59, 4  ;;  %v3334_v13 = vrot.slane %v3328_v59, 5  ;;  %v3352_v59 = vsub.f32 1.0, %v9655_v15 }
 0x66f   :  { %v3333_v1 = vrot.slane %v3329_v60, 4  ;;  %v3335_v21 = vrot.slane %v3329_v60, 5 }
 0x670   :  { %v3340_v4 = vmul.f32 %v7942_v8, %v3332_v28  ;;  %v3342_v63 = vmul.f32 %v7944_v56, %v3334_v13  ;;  %v3354_v8 = vsub.f32 1.0, %v9659_v20  ;;  %v3355_v13 = vsub.f32 1.0, %v7932_v46  ;;  %v3400_v46 = vld [vmem:[#allocation3 + $0xe0] sm:$0xff] }
 0x671   :  { %v3341_v11 = vmul.f32 %v7946_v16, %v3333_v1  ;;  %v3343_v52 = vmul.f32 %v7948_v55, %v3335_v21  ;;  %v3353_v1 = vsub.f32 1.0, %v7930_v57 }
 0x672   :  { %v3344_v31 = vadd.f32 %v3340_v4, %v10393_v49  ;;  %v3346_v58 = vadd.f32 %v3342_v63, %v8687_v7 }
 0x673   :  { %v3345_v50 = vadd.f32 %v3341_v11, %v10434_v35  ;;  %v3347_v24 = vadd.f32 %v3343_v52, %v10435_v54  ;;  %v3394_v52 = vld [vmem:[#allocation3 + $0xb0] sm:$0xff] }
 0x674   :  { %7949 = vtanh.f32 %v3344_v31 }
 0x675   :  { %7951 = vtanh.f32 %v3346_v58  ;;  %v3407_v58 = vld [vmem:[#allocation3 + $0x118] sm:$0xff] }
 0x676   :  { %7953 = vtanh.f32 %v3345_v50  ;;  %v3413_v50 = vld [vmem:[#allocation3 + $0x148] sm:$0xff] }
 0x677   :  { %7955 = vtanh.f32 %v3347_v24 }
 0x67e   :  { %v7950_v41 = vpop.eup %7949 }
 0x67f   :  { %v7952_v60 = vpop.eup %7951  ;;  %v3356_v56 = vmul.f32 %v7950_v41, %v3352_v59  ;;  %v3406_v41 = vld [vmem:[#allocation3 + $0x110] sm:$0xff] }
 0x680   :  { %v7954_v28 = vpop.eup %7953  ;;  %v3358_v16 = vmul.f32 %v7952_v60, %v3354_v8  ;;  %v3412_v8 = vld [vmem:[#allocation3 + $0x140] sm:$0xff]  ;;  %v3419_v60 = vld [vmem:[#allocation3 + $0x178] sm:$0xff] }
 0x681   :  { %v7956_v21 = vpop.eup %7955  ;;  %v3357_v55 = vmul.f32 %v7954_v28, %v3353_v1  ;;  %v9680_v4 = vadd.f32 %v9663_v34, %v3356_v56  ;;  %v3425_v1 = vld [vmem:[#allocation3 + $0x1a8] sm:$0xff]  ;;  %v9705_v56 = vpack.c.bf16 %v3412_v8, %v3406_v41  ;;  %v3454_v41 = vld [vmem:[#allocation3 + $0x290] sm:$0xff]  ;;  %v3460_v8 = vld [vmem:[#allocation3 + $0x2c0] sm:$0xff] }
 0x682   :  { %v3359_v63 = vmul.f32 %v7956_v21, %v3355_v13  ;;  %v9683_v11 = vadd.f32 %v9667_v23, %v3358_v16  ;;  %v9708_v28 = vpack.c.bf16 %v3425_v1, %v3419_v60  ;;  %v3418_v13 = vld [vmem:[#allocation3 + $0x170] sm:$0xff]  ;;  %v3424_v16 = vld [vmem:[#allocation3 + $0x1a0] sm:$0xff]  ;;  %v3431_v21 = vld [vmem:[#allocation3 + $0x1d8] sm:$0xff] }
 0x683   :  { %v9685_v24 = vadd.f32 %v3369_v45, %v3357_v55  ;;  %v3380_v15 = vrot.slane %v9680_v4, 4  ;;  %v9697_v45 = vpack.c.bf16 %v3400_v46, %v3394_v52  ;;  %v3437_v55 = vld [vmem:[#allocation3 + $0x208] sm:$0xff]  ;;  %v3436_v52 = vld [vmem:[#allocation3 + $0x200] sm:$0xff]  ;;  %v3443_v46 = vld [vmem:[#allocation3 + $0x238] sm:$0xff] }
 0x684   :  { %v9688_v20 = vadd.f32 %v3371_v25, %v3359_v63  ;;  %v3381_v57 = vrot.slane %v9683_v11, 3  ;;  %v9700_v25 = vpack.c.bf16 %v3413_v50, %v3407_v58  ;;  %v9713_v63 = vpack.c.bf16 %v3424_v16, %v3418_v13  ;;  %v3442_v58 = vld [vmem:[#allocation3 + $0x230] sm:$0xff]  ;;  %v3448_v50 = vld [vmem:[#allocation3 + $0x260] sm:$0xff]  ;;  %v3467_v60 = vld [vmem:[#allocation3 + $0x2f8] sm:$0xff] }
 0x685   :  { %v3383_v31 = vrot.slane %v9685_v24, 4  ;;  %v3473_v1 = vld [vmem:[#allocation3 + $0x328] sm:$0xff]  ;;  %v3466_v13 = vld [vmem:[#allocation3 + $0x2f0] sm:$0xff]  ;;  %v3472_v16 = vld [vmem:[#allocation3 + $0x320] sm:$0xff] }
 0x686   :  { %v3384_v34 = vrot.slane %v9688_v20, 3  ;;  %v9694_v59 = vsel %vm1195_vm6, %v3381_v57, %v3380_v15  ;;  %v9716_v15 = vpack.c.bf16 %v3437_v55, %v3431_v21  ;;  %v3430_v57 = vld [vmem:[#allocation3 + $0x1d0] sm:$0xff]  ;;  %v3479_v21 = vld [vmem:[#allocation3 + $0x358] sm:$0xff]  ;;  %v3485_v55 = vld [vmem:[#allocation3 + $0x388] sm:$0xff] }
 0x687   :  { %3388 = vst [vmem:[#allocation2 + $0x10] sm:$0x3] %v9694_v59 }
 0x688   :  { %v3385_v23 = vsel %vm1195_vm6, %v3384_v34, %v3383_v31  ;;  %v3449_v31 = vld [vmem:[#allocation3 + $0x268] sm:$0xff]  ;;  %v3455_v34 = vld [vmem:[#allocation3 + $0x298] sm:$0xff] }
 0x689   :  { %3389 = vst [vmem:[#allocation2 + $0x18] sm:$0x3] %v3385_v23  ;;  %3646 = vmatprep.mubr.f32.mxu0 %v3385_v23  ;;  %3717 = vmatprep.mubr.f32.mxu1 %v3385_v23 }
 0x68a   :  { %3647 = vmatmul.mubr.f32.vlgmr.msra.gmra.mrb[26].mxu0 %v9694_v59  ;;  %3718 = vmatmul.mubr.f32.vlgmr.msra.gmra.mrb[20].mxu1 %v9694_v59 }
 0x68b   :  { %7050 = vmatpush1.bf16.msra.mxu0 %v9697_v45  ;;  %3788 = vmatprep.mubr.f32.mxu0 %v3385_v23  ;;  %v3461_v23 = vld [vmem:[#allocation3 + $0x2c8] sm:$0xff] }
 0x68c   :  { %7052 = vmatprep.subr.bf16.mxu0 %v9700_v25  ;;  %7114 = vmatpush1.bf16.msra.mxu1 %v9546_v0  ;;  %v9721_v0 = vpack.c.bf16 %v3436_v52, %v3430_v57  ;;  %v3478_v57 = vld [vmem:[#allocation3 + $0x350] sm:$0xff]  ;;  %v3484_v52 = vld [vmem:[#allocation3 + $0x380] sm:$0xff] }
 0x68d   :  { %7116 = vmatprep.subr.bf16.mxu1 %v9548_v17  ;;  %v9724_v17 = vpack.c.bf16 %v3449_v31, %v3443_v46  ;;  %v3491_v46 = vld [vmem:[#allocation3 + $0x3b8] sm:$0xff]  ;;  %v3497_v31 = vld [vmem:[#allocation3 + $0x3e8] sm:$0xff] }
 0x68f   :  { %7054 = vmatpush1.bf16.msra.mxu0 %v9705_v56 }
 0x690   :  { %7056 = vmatprep.subr.bf16.mxu0 %v9708_v28  ;;  %7118 = vmatpush1.bf16.msra.mxu1 %v9552_v40  ;;  %v9729_v40 = vpack.c.bf16 %v3448_v50, %v3442_v58  ;;  %v3490_v58 = vld [vmem:[#allocation3 + $0x3b0] sm:$0xff]  ;;  %v3496_v50 = vld [vmem:[#allocation3 + $0x3e0] sm:$0xff] }
 0x691   :  { %7120 = vmatprep.subr.bf16.mxu1 %v9556_v10  ;;  %v9732_v10 = vpack.c.bf16 %v3461_v23, %v3455_v34  ;;  %v3503_v34 = vld [vmem:[#allocation3 + $0x418] sm:$0xff]  ;;  %v3509_v23 = vld [vmem:[#allocation3 + $0x448] sm:$0xff] }
 0x693   :  { %7058 = vmatpush1.bf16.msra.mxu0 %v9713_v63 }
 0x694   :  { %7060 = vmatprep.subr.bf16.mxu0 %v9716_v15  ;;  %7122 = vmatpush1.bf16.msra.mxu1 %v9560_v9  ;;  %v9737_v9 = vpack.c.bf16 %v3460_v8, %v3454_v41  ;;  %v3502_v41 = vld [vmem:[#allocation3 + $0x410] sm:$0xff]  ;;  %v3508_v8 = vld [vmem:[#allocation3 + $0x440] sm:$0xff] }
 0x695   :  { %7124 = vmatprep.subr.bf16.mxu1 %v9564_v42  ;;  %v9740_v42 = vpack.c.bf16 %v3473_v1, %v3467_v60  ;;  %v3515_v60 = vld [vmem:[#allocation3 + $0x478] sm:$0xff]  ;;  %v3521_v1 = vld [vmem:[#allocation3 + $0x4a8] sm:$0xff] }
 0x697   :  { %7062 = vmatpush1.bf16.msra.mxu0 %v9721_v0 }
 0x698   :  { %7064 = vmatprep.subr.bf16.mxu0 %v9724_v17  ;;  %7126 = vmatpush1.bf16.msra.mxu1 %v9568_v37  ;;  %v9745_v37 = vpack.c.bf16 %v3472_v16, %v3466_v13  ;;  %v3514_v13 = vld [vmem:[#allocation3 + $0x470] sm:$0xff]  ;;  %v3520_v16 = vld [vmem:[#allocation3 + $0x4a0] sm:$0xff] }
 0x699   :  { %7128 = vmatprep.subr.bf16.mxu1 %v9572_v43  ;;  %v9748_v43 = vpack.c.bf16 %v3485_v55, %v3479_v21  ;;  %v3527_v21 = vld [vmem:[#allocation3 + $0x4d8] sm:$0xff]  ;;  %v3533_v55 = vld [vmem:[#allocation3 + $0x508] sm:$0xff] }
 0x69b   :  { %7066 = vmatpush1.bf16.msra.mxu0 %v9729_v40 }
 0x69c   :  { %7068 = vmatprep.subr.bf16.mxu0 %v9732_v10  ;;  %7130 = vmatpush1.bf16.msra.mxu1 %v9576_v47  ;;  %v9753_v47 = vpack.c.bf16 %v3484_v52, %v3478_v57  ;;  %v3526_v57 = vld [vmem:[#allocation3 + $0x4d0] sm:$0xff]  ;;  %v3532_v52 = vld [vmem:[#allocation3 + $0x500] sm:$0xff] }
 0x69d   :  { %7132 = vmatprep.subr.bf16.mxu1 %v9579_v29  ;;  %v9756_v29 = vpack.c.bf16 %v3497_v31, %v3491_v46  ;;  %v3539_v46 = vld [vmem:[#allocation3 + $0x538] sm:$0xff]  ;;  %v3545_v31 = vld [vmem:[#allocation3 + $0x568] sm:$0xff] }
 0x69f   :  { %7070 = vmatpush1.bf16.msra.mxu0 %v9737_v9 }
 0x6a0   :  { %7072 = vmatprep.subr.bf16.mxu0 %v9740_v42  ;;  %7134 = vmatpush1.bf16.msra.mxu1 %v9582_v2  ;;  %v9761_v2 = vpack.c.bf16 %v3496_v50, %v3490_v58  ;;  %v3538_v58 = vld [vmem:[#allocation3 + $0x530] sm:$0xff]  ;;  %v3544_v50 = vld [vmem:[#allocation3 + $0x560] sm:$0xff] }
 0x6a1   :  { %7136 = vmatprep.subr.bf16.mxu1 %v9585_v3  ;;  %v9764_v3 = vpack.c.bf16 %v3509_v23, %v3503_v34  ;;  %v3551_v34 = vld [vmem:[#allocation3 + $0x598] sm:$0xff]  ;;  %v3557_v23 = vld [vmem:[#allocation3 + $0x5c8] sm:$0xff] }
 0x6a3   :  { %7074 = vmatpush1.bf16.msra.mxu0 %v9745_v37 }
 0x6a4   :  { %7076 = vmatprep.subr.bf16.mxu0 %v9748_v43  ;;  %7138 = vmatpush1.bf16.msra.mxu1 %v9588_v32  ;;  %v9769_v32 = vpack.c.bf16 %v3508_v8, %v3502_v41  ;;  %v3550_v41 = vld [vmem:[#allocation3 + $0x590] sm:$0xff]  ;;  %v3556_v8 = vld [vmem:[#allocation3 + $0x5c0] sm:$0xff] }
 0x6a5   :  { %7140 = vmatprep.subr.bf16.mxu1 %v9591_v39  ;;  %v9772_v39 = vpack.c.bf16 %v3521_v1, %v3515_v60  ;;  %v3563_v60 = vld [vmem:[#allocation3 + $0x5f8] sm:$0xff]  ;;  %v3569_v1 = vld [vmem:[#allocation3 + $0x628] sm:$0xff] }
 0x6a7   :  { %7078 = vmatpush1.bf16.msra.mxu0 %v9753_v47 }
 0x6a8   :  { %7080 = vmatprep.subr.bf16.mxu0 %v9756_v29  ;;  %7142 = vmatpush1.bf16.msra.mxu1 %v9594_v5  ;;  %v9777_v5 = vpack.c.bf16 %v3520_v16, %v3514_v13  ;;  %v3562_v13 = vld [vmem:[#allocation3 + $0x5f0] sm:$0xff]  ;;  %v3568_v16 = vld [vmem:[#allocation3 + $0x620] sm:$0xff] }
 0x6a9   :  { %7144 = vmatprep.subr.bf16.mxu1 %v9597_v18  ;;  %v9780_v18 = vpack.c.bf16 %v3533_v55, %v3527_v21  ;;  %v3575_v21 = vld [vmem:[#allocation3 + $0x658] sm:$0xff]  ;;  %v3581_v55 = vld [vmem:[#allocation3 + $0x688] sm:$0xff] }
 0x6ab   :  { %7082 = vmatpush1.bf16.msra.mxu0 %v9761_v2 }
 0x6ac   :  { %7084 = vmatprep.subr.bf16.mxu0 %v9764_v3  ;;  %7146 = vmatpush1.bf16.msra.mxu1 %v9600_v53  ;;  %v9785_v53 = vpack.c.bf16 %v3532_v52, %v3526_v57  ;;  %v3574_v57 = vld [vmem:[#allocation3 + $0x650] sm:$0xff]  ;;  %v3580_v52 = vld [vmem:[#allocation3 + $0x680] sm:$0xff] }
 0x6ad   :  { %7148 = vmatprep.subr.bf16.mxu1 %v9604_v44  ;;  %v9788_v44 = vpack.c.bf16 %v3545_v31, %v3539_v46  ;;  %v3941_v31 = vld [vmem:[#allocation3 + $0xd0] sm:$0xff] }
 0x6af   :  { %7086 = vmatpush1.bf16.msra.mxu0 %v9769_v32 }
 0x6b0   :  { %7088 = vmatprep.subr.bf16.mxu0 %v9772_v39  ;;  %7150 = vmatpush1.bf16.msra.mxu1 %v9606_v62  ;;  %v9793_v62 = vpack.c.bf16 %v3544_v50, %v3538_v58  ;;  %v3948_v58 = vld [vmem:[#allocation3 + $0x108] sm:$0xff]  ;;  %v3954_v50 = vld [vmem:[#allocation3 + $0x138] sm:$0xff] }
 0x6b1   :  { %7152 = vmatprep.subr.bf16.mxu1 %v9610_v33  ;;  %v9796_v33 = vpack.c.bf16 %v3557_v23, %v3551_v34  ;;  %v3953_v23 = vld [vmem:[#allocation3 + $0x130] sm:$0xff] }
 0x6b3   :  { %7090 = vmatpush1.bf16.msra.mxu0 %v9777_v5 }
 0x6b4   :  { %7092 = vmatprep.subr.bf16.mxu0 %v9780_v18  ;;  %7154 = vmatpush1.bf16.msra.mxu1 %v9612_v12  ;;  %v9801_v12 = vpack.c.bf16 %v3556_v8, %v3550_v41  ;;  %v3960_v41 = vld [vmem:[#allocation3 + $0x168] sm:$0xff]  ;;  %v3959_v8 = vld [vmem:[#allocation3 + $0x160] sm:$0xff] }
 0x6b5   :  { %7156 = vmatprep.subr.bf16.mxu1 %v9616_v61  ;;  %v9804_v61 = vpack.c.bf16 %v3569_v1, %v3563_v60  ;;  %v3965_v60 = vld [vmem:[#allocation3 + $0x190] sm:$0xff]  ;;  %v3972_v1 = vld [vmem:[#allocation3 + $0x1c8] sm:$0xff] }
 0x6b7   :  { %7094 = vmatpush1.bf16.msra.mxu0 %v9785_v53 }
 0x6b8   :  { %7096 = vmatprep.subr.bf16.mxu0 %v9788_v44  ;;  %7158 = vmatpush1.bf16.msra.mxu1 %v9618_v22  ;;  %v9809_v22 = vpack.c.bf16 %v3568_v16, %v3562_v13  ;;  %v3978_v13 = vld [vmem:[#allocation3 + $0x1f8] sm:$0xff]  ;;  %v9840_v16 = vpack.c.bf16 %v3965_v60, %v3959_v8  ;;  %v4001_v8 = vld [vmem:[#allocation3 + $0x2b0] sm:$0xff]  ;;  %v4008_v60 = vld [vmem:[#allocation3 + $0x2e8] sm:$0xff] }
 0x6b9   :  { %7160 = vmatprep.subr.bf16.mxu1 %v9621_v19  ;;  %v9812_v19 = vpack.c.bf16 %v3581_v55, %v3575_v21  ;;  %v9843_v21 = vpack.c.bf16 %v3978_v13, %v3972_v1  ;;  %v3971_v55 = vld [vmem:[#allocation3 + $0x1c0] sm:$0xff]  ;;  %v4014_v1 = vld [vmem:[#allocation3 + $0x318] sm:$0xff] }
 0x6ba   :  { %10521 = vst [vmem:[#allocation28_spill] sm:$0xff] %v9840_v16 }
 0x6bb   :  { %7098 = vmatpush1.bf16.msra.mxu0 %v9793_v62  ;;  %10522 = vst [vmem:[#allocation13_spill] sm:$0xff] %v9843_v21 }
 0x6bc   :  { %7100 = vmatprep.subr.bf16.mxu0 %v9796_v33  ;;  %7162 = vmatpush1.bf16.msra.mxu1 %v9624_v36  ;;  %v9817_v36 = vpack.c.bf16 %v3580_v52, %v3574_v57  ;;  %v3977_v57 = vld [vmem:[#allocation3 + $0x1f0] sm:$0xff]  ;;  %v3984_v52 = vld [vmem:[#allocation3 + $0x228] sm:$0xff] }
 0x6bd   :  { %7164 = vmatprep.subr.bf16.mxu1 %v9627_v38  ;;  %v3936_v38 = vld [vmem:[#allocation3 + $0xa8] sm:$0xff] }
 0x6bf   :  { %7102 = vmatpush1.bf16.msra.mxu0 %v9801_v12 }
 0x6c0   :  { %7104 = vmatprep.subr.bf16.mxu0 %v9804_v61  ;;  %7166 = vmatpush1.bf16.msra.mxu1 %v9630_v27  ;;  %v3942_v27 = vld [vmem:[#allocation3 + $0xd8] sm:$0xff] }
 0x6c1   :  { %7168 = vmatprep.subr.bf16.mxu1 %v9633_v51  ;;  %v3935_v51 = vld [vmem:[#allocation3 + $0xa0] sm:$0xff]  ;;  %v9826_v46 = vpack.c.bf16 %v3942_v27, %v3936_v38  ;;  %v3990_v38 = vld [vmem:[#allocation3 + $0x258] sm:$0xff]  ;;  %v9846_v27 = vpack.c.bf16 %v3977_v57, %v3971_v55  ;;  %v9861_v55 = vpack.c.bf16 %v4014_v1, %v4008_v60 }
 0x6c2   :  { %v9828_v34 = vpack.c.bf16 %v3941_v31, %v3935_v51  ;;  %v9849_v51 = vpack.c.bf16 %v3990_v38, %v3984_v52  ;;  %v3983_v31 = vld [vmem:[#allocation3 + $0x220] sm:$0xff]  ;;  %v4013_v52 = vld [vmem:[#allocation3 + $0x310] sm:$0xff]  ;;  %v4020_v38 = vld [vmem:[#allocation3 + $0x348] sm:$0xff] }
 0x6c3   :  { %7106 = vmatpush1.bf16.msra.mxu0 %v9809_v22  ;;  %10523 = vst [vmem:[#allocation14_spill] sm:$0xff] %v9846_v27  ;;  %10528 = vst [vmem:[#allocation35_spill] sm:$0xff] %v9861_v55  ;;  %v4007_v57 = vld [vmem:[#allocation3 + $0x2e0] sm:$0xff] }
 0x6c4   :  { %7108 = vmatprep.subr.bf16.mxu0 %v9812_v19  ;;  %7170 = vmatpush1.bf16.msra.mxu1 %v9636_v48  ;;  %10517 = vst [vmem:[#allocation59_spill] sm:$0xff] %v9828_v34  ;;  %v9830_v48 = vpack.c.bf16 %v3954_v50, %v3948_v58  ;;  %10524 = vst [vmem:[#allocation31_spill] sm:$0xff] %v9849_v51  ;;  %v3989_v58 = vld [vmem:[#allocation3 + $0x250] sm:$0xff]  ;;  %v3996_v50 = vld [vmem:[#allocation3 + $0x288] sm:$0xff] }
 0x6c5   :  { %7172 = vmatprep.subr.bf16.mxu1 %v9639_v6  ;;  %v3947_v6 = vld [vmem:[#allocation3 + $0x100] sm:$0xff] }
 0x6c6   :  { %10518 = vst [vmem:[#allocation29_spill] sm:$0xff] %v9830_v48 }
 0x6c7   :  { %7110 = vmatpush1.bf16.msra.mxu0 %v9817_v36 }
 0x6c8   :  { %7174 = vmatpush1.bf16.msra.mxu1 %v9642_v30  ;;  %7176 = vmatprep.subr.bf16.mxu0 %v9826_v46  ;;  %v3966_v30 = vld [vmem:[#allocation3 + $0x198] sm:$0xff] }
 0x6c9   :  { %7240 = vmatprep.subr.bf16.mxu1 %v9646_v26  ;;  %v9834_v26 = vpack.c.bf16 %v3953_v23, %v3947_v6  ;;  %v4002_v6 = vld [vmem:[#allocation3 + $0x2b8] sm:$0xff]  ;;  %v9852_v23 = vpack.c.bf16 %v3989_v58, %v3983_v31  ;;  %v9864_v58 = vpack.c.bf16 %v4013_v52, %v4007_v57  ;;  %v4044_v52 = vld [vmem:[#allocation3 + $0x408] sm:$0xff] }
 0x6ca   :  { %3789 = vmatmul.mubr.f32.vlgmr.msra.gmra.mrb[28].mxu0 %v9694_v59  ;;  %v9837_v59 = vpack.c.bf16 %v3966_v30, %v3960_v41  ;;  %v9855_v41 = vpack.c.bf16 %v4002_v6, %v3996_v50  ;;  %v3995_v30 = vld [vmem:[#allocation3 + $0x280] sm:$0xff]  ;;  %v4026_v31 = vld [vmem:[#allocation3 + $0x378] sm:$0xff] }
 0x6cb   :  { %7178 = vmatpush1.bf16.msra.mxu0 %v9828_v34  ;;  %10519 = vst [vmem:[#allocation30_spill] sm:$0xff] %v9834_v26  ;;  %10525 = vst [vmem:[#allocation32_spill] sm:$0xff] %v9852_v23  ;;  %v9858_v13 = vpack.c.bf16 %v4001_v8, %v3995_v30  ;;  %v9867_v50 = vpack.c.bf16 %v4026_v31, %v4020_v38  ;;  %v4019_v6 = vld [vmem:[#allocation3 + $0x340] sm:$0xff]  ;;  %v4032_v30 = vld [vmem:[#allocation3 + $0x3a8] sm:$0xff] }
 0x6cc   :  { %7180 = vmatprep.subr.bf16.mxu0 %v9830_v48  ;;  %10520 = vst [vmem:[#allocation27_spill] sm:$0xff] %v9837_v59  ;;  %10526 = vst [vmem:[#allocation33_spill] sm:$0xff] %v9855_v41  ;;  %v4038_v8 = vld [vmem:[#allocation3 + $0x3d8] sm:$0xff] }
 0x6cd   :  { %10527 = vst [vmem:[#allocation34_spill] sm:$0xff] %v9858_v13  ;;  %10529 = vst [vmem:[#allocation36_spill] sm:$0xff] %v9864_v58  ;;  %v9873_v1 = vpack.c.bf16 %v4038_v8, %v4032_v30  ;;  %v4050_v38 = vld [vmem:[#allocation3 + $0x438] sm:$0xff]  ;;  %v4056_v30 = vld [vmem:[#allocation3 + $0x468] sm:$0xff] }
 0x6ce   :  { %10530 = vst [vmem:[#allocation37_spill] sm:$0xff] %v9867_v50  ;;  %v9880_v31 = vpack.c.bf16 %v4050_v38, %v4044_v52  ;;  %v4062_v8 = vld [vmem:[#allocation3 + $0x498] sm:$0xff]  ;;  %v4068_v52 = vld [vmem:[#allocation3 + $0x4c8] sm:$0xff] }
 0x6cf   :  { %7182 = vmatpush1.bf16.msra.mxu0 %v9834_v26  ;;  %10532 = vst [vmem:[#allocation39_spill] sm:$0xff] %v9873_v1  ;;  %v4074_v38 = vld [vmem:[#allocation3 + $0x4f8] sm:$0xff] }
 0x6d0   :  { %7184 = vmatprep.subr.bf16.mxu0 %v9837_v59  ;;  %10534 = vst [vmem:[#allocation41_spill] sm:$0xff] %v9880_v31 }
 0x6d3   :  { %7186 = vmatpush1.bf16.msra.mxu0 %v9840_v16  ;;  %v10551_v16 = vld [vmem:[#allocation25_spill] sm:$0xff] }
 0x6d4   :  { %7188 = vmatprep.subr.bf16.mxu0 %v9843_v21 }
 0x6d7   :  { %7190 = vmatpush1.bf16.msra.mxu0 %v9846_v27 }
 0x6d8   :  { %7192 = vmatprep.subr.bf16.mxu0 %v9849_v51 }
 0x6db   :  { %7194 = vmatpush1.bf16.msra.mxu0 %v9852_v23  ;;  %v4025_v23 = vld [vmem:[#allocation3 + $0x370] sm:$0xff] }
 0x6dc   :  { %7196 = vmatprep.subr.bf16.mxu0 %v9855_v41  ;;  %v9870_v60 = vpack.c.bf16 %v4025_v23, %v4019_v6  ;;  %v4031_v41 = vld [vmem:[#allocation3 + $0x3a0] sm:$0xff]  ;;  %v4049_v6 = vld [vmem:[#allocation3 + $0x430] sm:$0xff] }
 0x6dd   :  { %v4043_v23 = vld [vmem:[#allocation3 + $0x400] sm:$0xff] }
 0x6de   :  { %10531 = vst [vmem:[#allocation38_spill] sm:$0xff] %v9870_v60 }
 0x6df   :  { %7198 = vmatpush1.bf16.msra.mxu0 %v9858_v13  ;;  %v4037_v13 = vld [vmem:[#allocation3 + $0x3d0] sm:$0xff] }
 0x6e0   :  { %7200 = vmatprep.subr.bf16.mxu0 %v9861_v55  ;;  %v9876_v57 = vpack.c.bf16 %v4037_v13, %v4031_v41  ;;  %v9886_v41 = vpack.c.bf16 %v4062_v8, %v4056_v30  ;;  %v4055_v13 = vld [vmem:[#allocation3 + $0x460] sm:$0xff]  ;;  %v4085_v8 = vld [vmem:[#allocation3 + $0x550] sm:$0xff]  ;;  %v4110_v55 = vld [vmem:[#allocation3 + $0x618] sm:$0xff] }
 0x6e1   :  { %v4079_v30 = vld [vmem:[#allocation3 + $0x520] sm:$0xff] }
 0x6e2   :  { %10533 = vst [vmem:[#allocation40_spill] sm:$0xff] %v9876_v57  ;;  %10536 = vst [vmem:[#allocation43_spill] sm:$0xff] %v9886_v41 }
 0x6e3   :  { %7202 = vmatpush1.bf16.msra.mxu0 %v9864_v58  ;;  %v9882_v58 = vpack.c.bf16 %v4049_v6, %v4043_v23  ;;  %v9892_v23 = vpack.c.bf16 %v4074_v38, %v4068_v52  ;;  %v4067_v6 = vld [vmem:[#allocation3 + $0x4c0] sm:$0xff] }
 0x6e4   :  { %7204 = vmatprep.subr.bf16.mxu0 %v9867_v50  ;;  %v4086_v50 = vld [vmem:[#allocation3 + $0x558] sm:$0xff]  ;;  %v4091_v38 = vld [vmem:[#allocation3 + $0x580] sm:$0xff] }
 0x6e5   :  { %10535 = vst [vmem:[#allocation42_spill] sm:$0xff] %v9882_v58  ;;  %10538 = vst [vmem:[#allocation45_spill] sm:$0xff] %v9892_v23 }
 0x6e7   :  { %7206 = vmatpush1.bf16.msra.mxu0 %v9870_v60 }
 0x6e8   :  { %7208 = vmatprep.subr.bf16.mxu0 %v9873_v1  ;;  %v4061_v1 = vld [vmem:[#allocation3 + $0x490] sm:$0xff] }
 0x6e9   :  { %v9888_v60 = vpack.c.bf16 %v4061_v1, %v4055_v13  ;;  %v4092_v13 = vld [vmem:[#allocation3 + $0x588] sm:$0xff] }
 0x6eb   :  { %7210 = vmatpush1.bf16.msra.mxu0 %v9876_v57  ;;  %10537 = vst [vmem:[#allocation44_spill] sm:$0xff] %v9888_v60  ;;  %v4080_v57 = vld [vmem:[#allocation3 + $0x528] sm:$0xff] }
 0x6ec   :  { %7212 = vmatprep.subr.bf16.mxu0 %v9880_v31  ;;  %v4073_v31 = vld [vmem:[#allocation3 + $0x4f0] sm:$0xff]  ;;  %v9897_v1 = vpack.c.bf16 %v4086_v50, %v4080_v57  ;;  %v4103_v57 = vld [vmem:[#allocation3 + $0x5e0] sm:$0xff] }
 0x6ee   :  { %10540 = vst [vmem:[#allocation47_spill] sm:$0xff] %v9897_v1 }
 0x6ef   :  { %7214 = vmatpush1.bf16.msra.mxu0 %v9882_v58  ;;  %v9894_v58 = vpack.c.bf16 %v4073_v31, %v4067_v6  ;;  %v4097_v31 = vld [vmem:[#allocation3 + $0x5b0] sm:$0xff]  ;;  %v4104_v6 = vld [vmem:[#allocation3 + $0x5e8] sm:$0xff] }
 0x6f0   :  { %7216 = vmatprep.subr.bf16.mxu0 %v9886_v41  ;;  %v4098_v41 = vld [vmem:[#allocation3 + $0x5b8] sm:$0xff]  ;;  %v9906_v51 = vpack.c.bf16 %v4097_v31, %v4091_v38  ;;  %v9909_v50 = vpack.c.bf16 %v4110_v55, %v4104_v6 }
 0x6f1   :  { %10539 = vst [vmem:[#allocation46_spill] sm:$0xff] %v9894_v58  ;;  %v9903_v52 = vpack.c.bf16 %v4098_v41, %v4092_v13 }
 0x6f2   :  { %10543 = vst [vmem:[#allocation50_spill] sm:$0xff] %v9906_v51  ;;  %10544 = vst [vmem:[#allocation51_spill] sm:$0xff] %v9909_v50 }
 0x6f3   :  { %7218 = vmatpush1.bf16.msra.mxu0 %v9888_v60  ;;  %v9900_v60 = vpack.c.bf16 %v4085_v8, %v4079_v30  ;;  %10542 = vst [vmem:[#allocation49_spill] sm:$0xff] %v9903_v52  ;;  %v4116_v30 = vld [vmem:[#allocation3 + $0x648] sm:$0xff]  ;;  %v4122_v8 = vld [vmem:[#allocation3 + $0x678] sm:$0xff] }
 0x6f4   :  { %7220 = vmatprep.subr.bf16.mxu0 %v9892_v23  ;;  %v9915_v13 = vpack.c.bf16 %v4122_v8, %v4116_v30  ;;  %v10548_v30 = vld [vmem:[#allocation22_spill] sm:$0xff]  ;;  %v10549_v23 = vld [vmem:[#allocation24_spill] sm:$0xff] }
 0x6f5   :  { %10541 = vst [vmem:[#allocation48_spill] sm:$0xff] %v9900_v60 }
 0x6f6   :  { %10546 = vst [vmem:[#allocation53_spill] sm:$0xff] %v9915_v13 }
 0x6f7   :  { %7222 = vmatpush1.bf16.msra.mxu0 %v9894_v58  ;;  %v4109_v58 = vld [vmem:[#allocation3 + $0x610] sm:$0xff] }
 0x6f8   :  { %7224 = vmatprep.subr.bf16.mxu0 %v9897_v1  ;;  %v9912_v41 = vpack.c.bf16 %v4109_v58, %v4103_v57  ;;  %v4115_v1 = vld [vmem:[#allocation3 + $0x640] sm:$0xff] }
 0x6fa   :  { %10545 = vst [vmem:[#allocation52_spill] sm:$0xff] %v9912_v41 }
 0x6fb   :  { %7226 = vmatpush1.bf16.msra.mxu0 %v9900_v60  ;;  %v4121_v60 = vld [vmem:[#allocation3 + $0x670] sm:$0xff] }
 0x6fc   :  { %7228 = vmatprep.subr.bf16.mxu0 %v9903_v52  ;;  %v9918_v38 = vpack.c.bf16 %v4121_v60, %v4115_v1 }
 0x6fe   :  { %10547 = vst [vmem:[#allocation54_spill] sm:$0xff] %v9918_v38 }
 0x6ff   :  { %7230 = vmatpush1.bf16.msra.mxu0 %v9906_v51 }
 0x700   :  { %7232 = vmatprep.subr.bf16.mxu0 %v9909_v50 }
 0x703   :  { %7234 = vmatpush1.bf16.msra.mxu0 %v9912_v41  ;;  %v10550_v41 = vld [vmem:[#allocation23_spill] sm:$0xff] }
 0x704   :  { %7236 = vmatprep.subr.bf16.mxu0 %v9915_v13 }
 0x707   :  { %7238 = vmatpush1.bf16.msra.mxu0 %v9918_v38 }
 0x75d   :  { %v3648_v55 = vpop.f32.mrb[26].mxu0  ;;  %v3719_v31 = vpop.f32.mrb[20].mxu1 }
 0x75e   :  { %v3801_v6 = vrot.slane %v3719_v31, 3  ;;  %v3805_v51 = vrot.slane %v3719_v31, 4  ;;  %v3650_v58 = vpop.f32.mrb[27].mxu0  ;;  %v3721_v57 = vpop.f32.mrb[21].mxu1 }
 0x75f   :  { %v3802_v52 = vrot.slane %v3721_v57, 3  ;;  %v3806_v50 = vrot.slane %v3721_v57, 4 }
 0x760   :  { %v3817_v8 = vadd.f32 %v3801_v6, %v10548_v30  ;;  %v3821_v27 = vadd.f32 %v3805_v51, %v10549_v23 }
 0x761   :  { %v3818_v60 = vadd.f32 %v3802_v52, %v10550_v41  ;;  %v3822_v13 = vadd.f32 %v3806_v50, %v10551_v16  ;;  %v3803_v52 = vrot.slane %v3648_v55, 4  ;;  %v3804_v50 = vrot.slane %v3650_v58, 4 }
 0x762   :  { %v5826_v21 = vmul.f32 -1.442695, %v3817_v8  ;;  %v5830_v1 = vmul.f32 -1.442695, %v3821_v27  ;;  %v3799_v27 = vrot.slane %v3648_v55, 3 }
 0x763   :  { %v5827_v38 = vmul.f32 -1.442695, %v3818_v60  ;;  %v5831_v59 = vmul.f32 -1.442695, %v3822_v13  ;;  %v3903_v13 = vrot.slane %v9680_v4, 7  ;;  %v3904_v4 = vrot.slane %v9685_v24, 7 }
 0x764   :  { %7957 = vpow2.f32 %v5826_v21  ;;  %v3800_v21 = vrot.slane %v3650_v58, 3 }
 0x765   :  { %7959 = vpow2.f32 %v5830_v1 }
 0x766   :  { %7961 = vpow2.f32 %v5827_v38  ;;  %v10552_v38 = vld [vmem:[#allocation18_spill] sm:$0xff] }
 0x767   :  { %7963 = vpow2.f32 %v5831_v59  ;;  %v3815_v59 = vadd.f32 %v3799_v27, %v10552_v38 }
 0x76e   :  { %v7958_v31 = vpop.eup %7957 }
 0x76f   :  { %v7960_v26 = vpop.eup %7959  ;;  %v3849_v48 = vadd.f32 1.0, %v7958_v31 }
 0x770   :  { %v3853_v57 = vadd.f32 1.0, %v7960_v26  ;;  %v7962_v6 = vpop.eup %7961  ;;  %v3905_v26 = vrot.slane %v9683_v11, 7  ;;  %v3906_v11 = vrot.slane %v9688_v20, 7 }
 0x771   :  { %7965 = vrcp.f32 %v3849_v48  ;;  %v7964_v51 = vpop.eup %7963  ;;  %v3850_v8 = vadd.f32 1.0, %v7962_v6  ;;  %v10553_v48 = vld [vmem:[#allocation20_spill] sm:$0xff] }
 0x772   :  { %7967 = vrcp.f32 %v3853_v57  ;;  %v3854_v23 = vadd.f32 1.0, %v7964_v51  ;;  %v3819_v1 = vadd.f32 %v3803_v52, %v10553_v48  ;;  %v10554_v57 = vld [vmem:[#allocation19_spill] sm:$0xff] }
 0x773   :  { %7969 = vrcp.f32 %v3850_v8  ;;  %v3816_v6 = vadd.f32 %v3800_v21, %v10554_v57  ;;  %v5824_v8 = vmul.f32 -1.442695, %v3815_v59 }
 0x774   :  { %7971 = vrcp.f32 %v3854_v23  ;;  %v10555_v23 = vld [vmem:[#allocation21_spill] sm:$0xff]  ;;  %v5828_v38 = vmul.f32 -1.442695, %v3819_v1  ;;  %v10556_v1 = vld [vmem:[#allocation26_spill] sm:$0xff] }
 0x775   :  { %v3820_v55 = vadd.f32 %v3804_v50, %v10555_v23  ;;  %v5825_v48 = vmul.f32 -1.442695, %v3816_v6  ;;  %7973 = vpow2.f32 %v5824_v8 }
 0x776   :  { %7975 = vpow2.f32 %v5828_v38 }
 0x777   :  { %v5829_v41 = vmul.f32 -1.442695, %v3820_v55  ;;  %7977 = vpow2.f32 %v5825_v48 }
 0x779   :  { %7979 = vpow2.f32 %v5829_v41 }
 0x77b   :  { %v9928_v60 = vpop.eup %7965 }
 0x77c   :  { %v9932_v31 = vpop.eup %7967  ;;  %v9936_v51 = vmul.f32 %v9928_v60, %v3903_v13 }
 0x77d   :  { %v9940_v58 = vmul.f32 %v9932_v31, %v3905_v26  ;;  %v7970_v27 = vpop.eup %7969 }
 0x77e   :  { %v7972_v52 = vpop.eup %7971  ;;  %v3912_v16 = vmul.f32 %v7970_v27, %v3904_v4 }
 0x77f   :  { %v3914_v21 = vmul.f32 %v7972_v52, %v3906_v11  ;;  %v7974_v50 = vpop.eup %7973 }
 0x780   :  { %v7976_v13 = vpop.eup %7975  ;;  %v3847_v57 = vadd.f32 1.0, %v7974_v50 }
 0x781   :  { %v7978_v26 = vpop.eup %7977  ;;  %v3851_v24 = vadd.f32 1.0, %v7976_v13 }
 0x782   :  { %v3848_v59 = vadd.f32 1.0, %v7978_v26  ;;  %7981 = vrcp.f32 %v3847_v57 }
 0x783   :  { %v7980_v23 = vpop.eup %7979  ;;  %7983 = vrcp.f32 %v3851_v24 }
 0x784   :  { %v3852_v30 = vadd.f32 1.0, %v7980_v23  ;;  %7985 = vrcp.f32 %v3848_v59 }
 0x786   :  { %7987 = vrcp.f32 %v3852_v30 }
 0x78c   :  { %v7982_v4 = vpop.eup %7981 }
 0x78d   :  { %v7984_v41 = vpop.eup %7983 }
 0x78e   :  { %v7986_v11 = vpop.eup %7985 }
 0x790   :  { %v7988_v13 = vpop.eup %7987 }
 0x79d   :  { %v3790_v20 = vpop.f32.mrb[28].mxu0 }
 0x79e   :  { %v3871_v6 = vadd.f32 %v3790_v20, %v10556_v1  ;;  %v3792_v55 = vpop.f32.mrb[29].mxu0 }
 0x79f   :  { %v3872_v38 = vadd.f32 %v3792_v55, %v10476_v14 }
 0x7a0   :  { %v3875_v48 = vrot.slane %v3871_v6, 3  ;;  %v3877_v8 = vrot.slane %v3871_v6, 4  ;;  %v3895_v6 = vsub.f32 1.0, %v9928_v60 }
 0x7a1   :  { %v3876_v34 = vrot.slane %v3872_v38, 3  ;;  %v3878_v50 = vrot.slane %v3872_v38, 4 }
 0x7a2   :  { %v3883_v26 = vmul.f32 %v7982_v4, %v3875_v48  ;;  %v3885_v23 = vmul.f32 %v7984_v41, %v3877_v8  ;;  %v3897_v4 = vsub.f32 1.0, %v9932_v31  ;;  %v3898_v8 = vsub.f32 1.0, %v7972_v52 }
 0x7a3   :  { %v3884_v57 = vmul.f32 %v7986_v11, %v3876_v34  ;;  %v3886_v24 = vmul.f32 %v7988_v13, %v3878_v50  ;;  %v3896_v34 = vsub.f32 1.0, %v7970_v27 }
 0x7a4   :  { %v3887_v30 = vadd.f32 %v3883_v26, %v10393_v49  ;;  %v3889_v59 = vadd.f32 %v3885_v23, %v8687_v7 }
 0x7a5   :  { %v3888_v20 = vadd.f32 %v3884_v57, %v10434_v35  ;;  %v3890_v1 = vadd.f32 %v3886_v24, %v10435_v54 }
 0x7a6   :  { %7989 = vtanh.f32 %v3887_v30 }
 0x7a7   :  { %7991 = vtanh.f32 %v3889_v59 }
 0x7a8   :  { %7993 = vtanh.f32 %v3888_v20 }
 0x7a9   :  { %7995 = vtanh.f32 %v3890_v1 }
 0x7b0   :  { %v7990_v55 = vpop.eup %7989 }
 0x7b1   :  { %v7992_v38 = vpop.eup %7991  ;;  %v3899_v41 = vmul.f32 %v7990_v55, %v3895_v6 }
 0x7b2   :  { %v7994_v48 = vpop.eup %7993  ;;  %v3901_v11 = vmul.f32 %v7992_v38, %v3897_v4  ;;  %v4496_v4 = vld [vmem:[#allocation3 + $0xf0] sm:$0xff]  ;;  %v4502_v38 = vld [vmem:[#allocation3 + $0x120] sm:$0xff] }
 0x7b3   :  { %v7996_v50 = vpop.eup %7995  ;;  %v3900_v13 = vmul.f32 %v7994_v48, %v3896_v34  ;;  %v9953_v26 = vadd.f32 %v9936_v51, %v3899_v41  ;;  %v4509_v34 = vld [vmem:[#allocation3 + $0x158] sm:$0xff]  ;;  %v4515_v41 = vld [vmem:[#allocation3 + $0x188] sm:$0xff] }
 0x7b4   :  { %v3902_v23 = vmul.f32 %v7996_v50, %v3898_v8  ;;  %v9956_v57 = vadd.f32 %v9940_v58, %v3901_v11  ;;  %v10581_v48 = vld [vmem:[#allocation48_spill] sm:$0xff]  ;;  %v7309_v8 = vpack.c.bf16 %v4502_v38, %v4496_v4  ;;  %v10582_v11 = vld [vmem:[#allocation49_spill] sm:$0xff]  ;;  %v7311_v50 = vpack.c.bf16 %v4515_v41, %v4509_v34  ;;  %v4598_v38 = vld [vmem:[#allocation3 + $0x420] sm:$0xff] }
 0x7b5   :  { %v9958_v1 = vadd.f32 %v3912_v16, %v3900_v13  ;;  %v3923_v60 = vrot.slane %v9953_v26, 3  ;;  %v4125_v31 = vrot.slane %v9953_v26, 5  ;;  %v4508_v13 = vld [vmem:[#allocation3 + $0x150] sm:$0xff]  ;;  %v4605_v41 = vld [vmem:[#allocation3 + $0x458] sm:$0xff] }
 0x7b6   :  { %v9962_v27 = vadd.f32 %v3914_v21, %v3902_v23  ;;  %v3924_v52 = vrot.slane %v9956_v57, 2  ;;  %v4126_v24 = vrot.slane %v9956_v57, 4  ;;  %v4514_v23 = vld [vmem:[#allocation3 + $0x180] sm:$0xff]  ;;  %v4592_v4 = vld [vmem:[#allocation3 + $0x3f0] sm:$0xff] }
 0x7b7   :  { %v3926_v30 = vrot.slane %v9958_v1, 3  ;;  %v4128_v51 = vrot.slane %v9958_v1, 5  ;;  %v7341_v34 = vpack.c.bf16 %v4598_v38, %v4592_v4  ;;  %v10589_v4 = vld [vmem:[#allocation24_spill] sm:$0xff] }
 0x7b8   :  { %v3927_v59 = vrot.slane %v9962_v27, 2  ;;  %v4129_v58 = vrot.slane %v9962_v27, 4  ;;  %v3925_v16 = vsel %vm1730_vm7, %v3924_v52, %v3923_v60  ;;  %v4127_v20 = vsel %vm1195_vm6, %v4126_v24, %v4125_v31  ;;  %v4521_v60 = vld [vmem:[#allocation3 + $0x1b8] sm:$0xff]  ;;  %v4527_v31 = vld [vmem:[#allocation3 + $0x1e8] sm:$0xff] }
 0x7b9   :  { %3931 = vst [vmem:[#allocation2 + $0x10] sm:$0xc] %v3925_v16  ;;  %v10583_v52 = vld [vmem:[#allocation50_spill] sm:$0xff]  ;;  %v7313_v24 = vpack.c.bf16 %v4514_v23, %v4508_v13 }
 0x7ba   :  { %v3928_v21 = vsel %vm1730_vm7, %v3927_v59, %v3926_v30  ;;  %v4130_v6 = vsel %vm1195_vm6, %v4129_v58, %v4128_v51  ;;  %v10584_v30 = vld [vmem:[#allocation51_spill] sm:$0xff]  ;;  %v7315_v51 = vpack.c.bf16 %v4527_v31, %v4521_v60  ;;  %v4520_v59 = vld [vmem:[#allocation3 + $0x1b0] sm:$0xff]  ;;  %v4533_v16 = vld [vmem:[#allocation3 + $0x218] sm:$0xff] }
 0x7bb   :  { %3932 = vst [vmem:[#allocation2 + $0x18] sm:$0xc] %v3928_v21  ;;  %4197 = vmatprep.mubr.f32.mxu1 %v4130_v6  ;;  %4268 = vmatprep.mubr.f32.mxu0 %v4130_v6  ;;  %v4526_v58 = vld [vmem:[#allocation3 + $0x1e0] sm:$0xff]  ;;  %v10585_v21 = vld [vmem:[#allocation52_spill] sm:$0xff]  ;;  %v4617_v23 = vld [vmem:[#allocation3 + $0x4b8] sm:$0xff] }
 0x7bc   :  { %4198 = vmatmul.mubr.f32.vlgmr.msra.gmra.mrb[22].mxu1 %v4127_v20  ;;  %4269 = vmatmul.mubr.f32.vlgmr.msra.gmra.mrb[30].mxu0 %v4127_v20  ;;  %v4623_v60 = vld [vmem:[#allocation3 + $0x4e8] sm:$0xff] }
 0x7bd   :  { %7242 = vmatpush1.bf16.msra.mxu1 %v9697_v45  ;;  %4339 = vmatprep.mubr.f32.mxu1 %v4130_v6  ;;  %v10557_v45 = vld [vmem:[#allocation59_spill] sm:$0xff]  ;;  %v7317_v6 = vpack.c.bf16 %v4526_v58, %v4520_v59  ;;  %v7347_v31 = vpack.c.bf16 %v4623_v60, %v4617_v23  ;;  %v4635_v59 = vld [vmem:[#allocation3 + $0x548] sm:$0xff]  ;;  %v4628_v58 = vld [vmem:[#allocation3 + $0x510] sm:$0xff] }
 0x7be   :  { %7244 = vmatprep.subr.bf16.mxu1 %v9700_v25  ;;  %v10558_v25 = vld [vmem:[#allocation29_spill] sm:$0xff] }
 0x7c1   :  { %7246 = vmatpush1.bf16.msra.mxu1 %v9705_v56  ;;  %v10559_v56 = vld [vmem:[#allocation30_spill] sm:$0xff] }
 0x7c2   :  { %7248 = vmatprep.subr.bf16.mxu1 %v9708_v28  ;;  %v10560_v28 = vld [vmem:[#allocation27_spill] sm:$0xff] }
 0x7c5   :  { %7250 = vmatpush1.bf16.msra.mxu1 %v9713_v63  ;;  %v10561_v63 = vld [vmem:[#allocation28_spill] sm:$0xff] }
 0x7c6   :  { %7252 = vmatprep.subr.bf16.mxu1 %v9716_v15  ;;  %v10562_v15 = vld [vmem:[#allocation13_spill] sm:$0xff] }
 0x7c9   :  { %7254 = vmatpush1.bf16.msra.mxu1 %v9721_v0  ;;  %v10563_v0 = vld [vmem:[#allocation14_spill] sm:$0xff] }
 0x7ca   :  { %7256 = vmatprep.subr.bf16.mxu1 %v9724_v17  ;;  %v10564_v17 = vld [vmem:[#allocation31_spill] sm:$0xff] }
 0x7cd   :  { %7258 = vmatpush1.bf16.msra.mxu1 %v9729_v40  ;;  %v10565_v40 = vld [vmem:[#allocation32_spill] sm:$0xff] }
 0x7ce   :  { %7260 = vmatprep.subr.bf16.mxu1 %v9732_v10  ;;  %v10566_v10 = vld [vmem:[#allocation33_spill] sm:$0xff] }
 0x7d1   :  { %7262 = vmatpush1.bf16.msra.mxu1 %v9737_v9  ;;  %v10567_v9 = vld [vmem:[#allocation34_spill] sm:$0xff] }
 0x7d2   :  { %7264 = vmatprep.subr.bf16.mxu1 %v9740_v42  ;;  %v10568_v42 = vld [vmem:[#allocation35_spill] sm:$0xff] }
 0x7d5   :  { %7266 = vmatpush1.bf16.msra.mxu1 %v9745_v37  ;;  %v10569_v37 = vld [vmem:[#allocation36_spill] sm:$0xff] }
 0x7d6   :  { %7268 = vmatprep.subr.bf16.mxu1 %v9748_v43  ;;  %v10570_v43 = vld [vmem:[#allocation37_spill] sm:$0xff] }
 0x7d9   :  { %7270 = vmatpush1.bf16.msra.mxu1 %v9753_v47  ;;  %v10571_v47 = vld [vmem:[#allocation38_spill] sm:$0xff] }
 0x7da   :  { %7272 = vmatprep.subr.bf16.mxu1 %v9756_v29  ;;  %v10572_v29 = vld [vmem:[#allocation39_spill] sm:$0xff] }
 0x7dd   :  { %7274 = vmatpush1.bf16.msra.mxu1 %v9761_v2  ;;  %v10573_v2 = vld [vmem:[#allocation40_spill] sm:$0xff] }
 0x7de   :  { %7276 = vmatprep.subr.bf16.mxu1 %v9764_v3  ;;  %v10574_v3 = vld [vmem:[#allocation41_spill] sm:$0xff] }
 0x7e1   :  { %7278 = vmatpush1.bf16.msra.mxu1 %v9769_v32  ;;  %v10575_v32 = vld [vmem:[#allocation42_spill] sm:$0xff] }
 0x7e2   :  { %7280 = vmatprep.subr.bf16.mxu1 %v9772_v39  ;;  %v10576_v39 = vld [vmem:[#allocation43_spill] sm:$0xff] }
 0x7e5   :  { %7282 = vmatpush1.bf16.msra.mxu1 %v9777_v5  ;;  %v10577_v5 = vld [vmem:[#allocation44_spill] sm:$0xff] }
 0x7e6   :  { %7284 = vmatprep.subr.bf16.mxu1 %v9780_v18  ;;  %v10578_v18 = vld [vmem:[#allocation45_spill] sm:$0xff] }
 0x7e9   :  { %7286 = vmatpush1.bf16.msra.mxu1 %v9785_v53  ;;  %v10579_v53 = vld [vmem:[#allocation46_spill] sm:$0xff] }
 0x7ea   :  { %7288 = vmatprep.subr.bf16.mxu1 %v9788_v44  ;;  %v4485_v44 = vld [vmem:[#allocation3 + $0x98] sm:$0xff] }
 0x7ed   :  { %7290 = vmatpush1.bf16.msra.mxu1 %v9793_v62  ;;  %v4491_v62 = vld [vmem:[#allocation3 + $0xc8] sm:$0xff] }
 0x7ee   :  { %7292 = vmatprep.subr.bf16.mxu1 %v9796_v33  ;;  %v4484_v33 = vld [vmem:[#allocation3 + $0x90] sm:$0xff] }
 0x7f1   :  { %7294 = vmatpush1.bf16.msra.mxu1 %v9801_v12  ;;  %v10580_v12 = vld [vmem:[#allocation47_spill] sm:$0xff] }
 0x7f2   :  { %7296 = vmatprep.subr.bf16.mxu1 %v9804_v61  ;;  %v7303_v61 = vpack.c.bf16 %v4491_v62, %v4485_v44  ;;  %v4581_v44 = vld [vmem:[#allocation3 + $0x398] sm:$0xff]  ;;  %v4587_v62 = vld [vmem:[#allocation3 + $0x3c8] sm:$0xff] }
 0x7f4   :  { %7304 = vmatprep.subr.bf16.mxu0 %v7303_v61  ;;  %v4580_v61 = vld [vmem:[#allocation3 + $0x390] sm:$0xff] }
 0x7f5   :  { %7298 = vmatpush1.bf16.msra.mxu1 %v9809_v22  ;;  %v4490_v22 = vld [vmem:[#allocation3 + $0xc0] sm:$0xff] }
 0x7f6   :  { %7300 = vmatprep.subr.bf16.mxu1 %v9812_v19  ;;  %v4497_v19 = vld [vmem:[#allocation3 + $0xf8] sm:$0xff] }
 0x7f9   :  { %7302 = vmatpush1.bf16.msra.mxu1 %v9817_v36  ;;  %v4503_v36 = vld [vmem:[#allocation3 + $0x128] sm:$0xff] }
 0x7fa   :  { %7368 = vmatprep.subr.bf16.mxu1 %v9826_v46  ;;  %v7305_v46 = vpack.c.bf16 %v4490_v22, %v4484_v33  ;;  %v7307_v55 = vpack.c.bf16 %v4503_v36, %v4497_v19  ;;  %v4586_v22 = vld [vmem:[#allocation3 + $0x3c0] sm:$0xff]  ;;  %v4593_v36 = vld [vmem:[#allocation3 + $0x3f8] sm:$0xff] }
 0x7fb   :  { %v7337_v19 = vpack.c.bf16 %v4586_v22, %v4580_v61 }
 0x7fc   :  { %4340 = vmatmul.mubr.f32.vlgmr.msra.gmra.mrb[24].mxu1 %v4127_v20  ;;  %7306 = vmatpush1.bf16.msra.mxu0 %v7305_v46  ;;  %v4539_v20 = vld [vmem:[#allocation3 + $0x248] sm:$0xff] }
 0x7fd   :  { %7370 = vmatpush1.bf16.msra.mxu1 %v10557_v45  ;;  %7308 = vmatprep.subr.bf16.mxu0 %v7307_v55  ;;  %v10586_v45 = vld [vmem:[#allocation53_spill] sm:$0xff]  ;;  %v4599_v46 = vld [vmem:[#allocation3 + $0x428] sm:$0xff] }
 0x7fe   :  { %7372 = vmatprep.subr.bf16.mxu1 %v10558_v25  ;;  %v7319_v25 = vpack.c.bf16 %v4539_v20, %v4533_v16  ;;  %v7339_v55 = vpack.c.bf16 %v4599_v46, %v4593_v36  ;;  %v4634_v20 = vld [vmem:[#allocation3 + $0x540] sm:$0xff]  ;;  %v10588_v46 = vld [vmem:[#allocation22_spill] sm:$0xff] }
 0x800   :  { %7310 = vmatpush1.bf16.msra.mxu0 %v7309_v8 }
 0x801   :  { %7374 = vmatpush1.bf16.msra.mxu1 %v10559_v56  ;;  %7312 = vmatprep.subr.bf16.mxu0 %v7311_v50  ;;  %v4532_v56 = vld [vmem:[#allocation3 + $0x210] sm:$0xff]  ;;  %v4610_v50 = vld [vmem:[#allocation3 + $0x480] sm:$0xff] }
 0x802   :  { %7376 = vmatprep.subr.bf16.mxu1 %v10560_v28  ;;  %v4538_v28 = vld [vmem:[#allocation3 + $0x240] sm:$0xff] }
 0x804   :  { %7314 = vmatpush1.bf16.msra.mxu0 %v7313_v24  ;;  %v4622_v24 = vld [vmem:[#allocation3 + $0x4e0] sm:$0xff] }
 0x805   :  { %7378 = vmatpush1.bf16.msra.mxu1 %v10561_v63  ;;  %7316 = vmatprep.subr.bf16.mxu0 %v7315_v51  ;;  %v4545_v63 = vld [vmem:[#allocation3 + $0x278] sm:$0xff] }
 0x806   :  { %7380 = vmatprep.subr.bf16.mxu1 %v10562_v15  ;;  %v4551_v15 = vld [vmem:[#allocation3 + $0x2a8] sm:$0xff]  ;;  %v4629_v51 = vld [vmem:[#allocation3 + $0x518] sm:$0xff] }
 0x807   :  { %v7351_v16 = vpack.c.bf16 %v4635_v59, %v4629_v51 }
 0x808   :  { %7318 = vmatpush1.bf16.msra.mxu0 %v7317_v6  ;;  %v4647_v6 = vld [vmem:[#allocation3 + $0x5a8] sm:$0xff] }
 0x809   :  { %7382 = vmatpush1.bf16.msra.mxu1 %v10563_v0  ;;  %v10587_v0 = vld [vmem:[#allocation54_spill] sm:$0xff]  ;;  %7320 = vmatprep.subr.bf16.mxu0 %v7319_v25 }
 0x80a   :  { %7384 = vmatprep.subr.bf16.mxu1 %v10564_v17  ;;  %v7321_v17 = vpack.c.bf16 %v4538_v28, %v4532_v56  ;;  %v4640_v56 = vld [vmem:[#allocation3 + $0x570] sm:$0xff]  ;;  %v4646_v28 = vld [vmem:[#allocation3 + $0x5a0] sm:$0xff] }
 0x80c   :  { %7322 = vmatpush1.bf16.msra.mxu0 %v7321_v17 }
 0x80d   :  { %7386 = vmatpush1.bf16.msra.mxu1 %v10565_v40  ;;  %v7323_v40 = vpack.c.bf16 %v4551_v15, %v4545_v63  ;;  %v4653_v63 = vld [vmem:[#allocation3 + $0x5d8] sm:$0xff]  ;;  %v4659_v15 = vld [vmem:[#allocation3 + $0x608] sm:$0xff] }
 0x80e   :  { %7388 = vmatprep.subr.bf16.mxu1 %v10566_v10  ;;  %v4544_v10 = vld [vmem:[#allocation3 + $0x270] sm:$0xff]  ;;  %v7359_v17 = vpack.c.bf16 %v4659_v15, %v4653_v63  ;;  %v10593_v63 = vld [vmem:[#allocation20_spill] sm:$0xff] }
 0x80f   :  { %7324 = vmatprep.subr.bf16.mxu0 %v7323_v40  ;;  %v4652_v40 = vld [vmem:[#allocation3 + $0x5d0] sm:$0xff] }
 0x811   :  { %7390 = vmatpush1.bf16.msra.mxu1 %v10567_v9  ;;  %v4550_v9 = vld [vmem:[#allocation3 + $0x2a0] sm:$0xff] }
 0x812   :  { %7392 = vmatprep.subr.bf16.mxu1 %v10568_v42  ;;  %v4557_v42 = vld [vmem:[#allocation3 + $0x2d8] sm:$0xff] }
 0x815   :  { %7394 = vmatpush1.bf16.msra.mxu1 %v10569_v37  ;;  %v4563_v37 = vld [vmem:[#allocation3 + $0x308] sm:$0xff] }
 0x816   :  { %7396 = vmatprep.subr.bf16.mxu1 %v10570_v43  ;;  %v7325_v43 = vpack.c.bf16 %v4550_v9, %v4544_v10  ;;  %v4658_v10 = vld [vmem:[#allocation3 + $0x600] sm:$0xff]  ;;  %v4665_v9 = vld [vmem:[#allocation3 + $0x638] sm:$0xff] }
 0x818   :  { %7326 = vmatpush1.bf16.msra.mxu0 %v7325_v43 }
 0x819   :  { %7398 = vmatpush1.bf16.msra.mxu1 %v10571_v47  ;;  %v7327_v47 = vpack.c.bf16 %v4563_v37, %v4557_v42  ;;  %v4671_v42 = vld [vmem:[#allocation3 + $0x668] sm:$0xff]  ;;  %v7361_v37 = vpack.c.bf16 %v4658_v10, %v4652_v40  ;;  %v10594_v40 = vld [vmem:[#allocation19_spill] sm:$0xff] }
 0x81a   :  { %7400 = vmatprep.subr.bf16.mxu1 %v10572_v29  ;;  %v4556_v29 = vld [vmem:[#allocation3 + $0x2d0] sm:$0xff]  ;;  %v7363_v43 = vpack.c.bf16 %v4671_v42, %v4665_v9 }
 0x81b   :  { %7328 = vmatprep.subr.bf16.mxu0 %v7327_v47  ;;  %v4664_v47 = vld [vmem:[#allocation3 + $0x630] sm:$0xff] }
 0x81c   :  { %v10595_v42 = vld [vmem:[#allocation21_spill] sm:$0xff] }
 0x81d   :  { %7402 = vmatpush1.bf16.msra.mxu1 %v10573_v2  ;;  %v4562_v2 = vld [vmem:[#allocation3 + $0x300] sm:$0xff] }
 0x81e   :  { %7404 = vmatprep.subr.bf16.mxu1 %v10574_v3  ;;  %v4569_v3 = vld [vmem:[#allocation3 + $0x338] sm:$0xff] }
 0x821   :  { %7406 = vmatpush1.bf16.msra.mxu1 %v10575_v32  ;;  %v4575_v32 = vld [vmem:[#allocation3 + $0x368] sm:$0xff] }
 0x822   :  { %7408 = vmatprep.subr.bf16.mxu1 %v10576_v39  ;;  %v7329_v39 = vpack.c.bf16 %v4562_v2, %v4556_v29  ;;  %v4670_v29 = vld [vmem:[#allocation3 + $0x660] sm:$0xff] }
 0x823   :  { %v7365_v2 = vpack.c.bf16 %v4670_v29, %v4664_v47 }
 0x824   :  { %7330 = vmatpush1.bf16.msra.mxu0 %v7329_v39  ;;  %v5067_v39 = vld [vmem:[#allocation5 + $0x8] sm:$0xff] }
 0x825   :  { %7410 = vmatpush1.bf16.msra.mxu1 %v10577_v5  ;;  %v7331_v5 = vpack.c.bf16 %v4575_v32, %v4569_v3  ;;  %v4489_v3 = vld [vmem:[#allocation3 + $0xb8] sm:$0xff]  ;;  %v4495_v32 = vld [vmem:[#allocation3 + $0xe8] sm:$0xff] }
 0x826   :  { %7412 = vmatprep.subr.bf16.mxu1 %v10578_v18  ;;  %v4568_v18 = vld [vmem:[#allocation3 + $0x330] sm:$0xff] }
 0x827   :  { %7332 = vmatprep.subr.bf16.mxu0 %v7331_v5  ;;  %v7431_v5 = vpack.c.bf16 %v4495_v32, %v4489_v3  ;;  %v4457_v3 = vrot.slane %v9962_v27, 7 }
 0x829   :  { %7414 = vmatpush1.bf16.msra.mxu1 %v10579_v53  ;;  %v4574_v53 = vld [vmem:[#allocation3 + $0x360] sm:$0xff] }
 0x82a   :  { %7416 = vmatprep.subr.bf16.mxu1 %v10580_v12  ;;  %v7333_v33 = vpack.c.bf16 %v4574_v53, %v4568_v18  ;;  %v7335_v12 = vpack.c.bf16 %v4587_v62, %v4581_v44  ;;  %v5070_v18 = vld [vmem:[#allocation5 + $0x20] sm:$0xff] }
 0x82b   :  { %v7495_v53 = vpack.c.bf16 %v5070_v18, %v5067_v39 }
 0x82c   :  { %7334 = vmatpush1.bf16.msra.mxu0 %v7333_v33 }
 0x82d   :  { %7418 = vmatpush1.bf16.msra.mxu1 %v10581_v48  ;;  %7336 = vmatprep.subr.bf16.mxu0 %v7335_v12  ;;  %v4611_v48 = vld [vmem:[#allocation3 + $0x488] sm:$0xff] }
 0x82e   :  { %7420 = vmatprep.subr.bf16.mxu1 %v10582_v11  ;;  %v7343_v8 = vpack.c.bf16 %v4611_v48, %v4605_v41  ;;  %v4604_v11 = vld [vmem:[#allocation3 + $0x450] sm:$0xff]  ;;  %v10590_v41 = vld [vmem:[#allocation23_spill] sm:$0xff] }
 0x82f   :  { %v7345_v13 = vpack.c.bf16 %v4610_v50, %v4604_v11  ;;  %v10591_v11 = vld [vmem:[#allocation25_spill] sm:$0xff] }
 0x830   :  { %7338 = vmatpush1.bf16.msra.mxu0 %v7337_v19 }
 0x831   :  { %7422 = vmatpush1.bf16.msra.mxu1 %v10583_v52  ;;  %7340 = vmatprep.subr.bf16.mxu0 %v7339_v55  ;;  %v4616_v52 = vld [vmem:[#allocation3 + $0x4b0] sm:$0xff] }
 0x832   :  { %7424 = vmatprep.subr.bf16.mxu1 %v10584_v30  ;;  %v7349_v30 = vpack.c.bf16 %v4622_v24, %v4616_v52 }
 0x834   :  { %7342 = vmatpush1.bf16.msra.mxu0 %v7341_v34 }
 0x835   :  { %7426 = vmatpush1.bf16.msra.mxu1 %v10585_v21  ;;  %7344 = vmatprep.subr.bf16.mxu0 %v7343_v8  ;;  %v4641_v21 = vld [vmem:[#allocation3 + $0x578] sm:$0xff] }
 0x836   :  { %7428 = vmatprep.subr.bf16.mxu1 %v10586_v45  ;;  %v7353_v45 = vpack.c.bf16 %v4634_v20, %v4628_v58  ;;  %v7355_v25 = vpack.c.bf16 %v4647_v6, %v4641_v21 }
 0x838   :  { %7346 = vmatpush1.bf16.msra.mxu0 %v7345_v13 }
 0x839   :  { %7430 = vmatpush1.bf16.msra.mxu1 %v10587_v0  ;;  %7348 = vmatprep.subr.bf16.mxu0 %v7347_v31  ;;  %v7357_v0 = vpack.c.bf16 %v4646_v28, %v4640_v56  ;;  %v4454_v56 = vrot.slane %v9953_v26, 7  ;;  %v4455_v26 = vrot.slane %v9958_v1, 7 }
 0x83a   :  { %7496 = vmatprep.subr.bf16.mxu1 %v7495_v53 }
 0x83c   :  { %7350 = vmatpush1.bf16.msra.mxu0 %v7349_v30 }
 0x83d   :  { %7352 = vmatprep.subr.bf16.mxu0 %v7351_v16 }
 0x840   :  { %7354 = vmatpush1.bf16.msra.mxu0 %v7353_v45  ;;  %v10592_v45 = vld [vmem:[#allocation18_spill] sm:$0xff] }
 0x841   :  { %7356 = vmatprep.subr.bf16.mxu0 %v7355_v25 }
 0x844   :  { %7358 = vmatpush1.bf16.msra.mxu0 %v7357_v0  ;;  %v4456_v0 = vrot.slane %v9956_v57, 7 }
 0x845   :  { %7360 = vmatprep.subr.bf16.mxu0 %v7359_v17 }
 0x848   :  { %7362 = vmatpush1.bf16.msra.mxu0 %v7361_v37 }
 0x849   :  { %7364 = vmatprep.subr.bf16.mxu0 %v7363_v43 }
 0x84c   :  { %7366 = vmatpush1.bf16.msra.mxu0 %v7365_v2 }
 0x84d   :  { %7432 = vmatprep.subr.bf16.mxu0 %v7431_v5 }
 0x88f   :  { %v4199_v44 = vpop.f32.mrb[22].mxu1  ;;  %v4270_v62 = vpop.f32.mrb[30].mxu0 }
 0x890   :  { %v4352_v33 = vrot.slane %v4270_v62, 2  ;;  %v4356_v12 = vrot.slane %v4270_v62, 3  ;;  %v4201_v61 = vpop.f32.mrb[23].mxu1  ;;  %v4272_v22 = vpop.f32.mrb[31].mxu0  ;;  %v4350_v16 = vrot.slane %v4199_v44, 2  ;;  %v4354_v20 = vrot.slane %v4199_v44, 3 }
 0x891   :  { %v4353_v19 = vrot.slane %v4272_v22, 2  ;;  %v4357_v36 = vrot.slane %v4272_v22, 3  ;;  %v4351_v21 = vrot.slane %v4201_v61, 2  ;;  %v4355_v6 = vrot.slane %v4201_v61, 3 }
 0x892   :  { %v4368_v55 = vadd.f32 %v4352_v33, %v10588_v46  ;;  %v4372_v38 = vadd.f32 %v4356_v12, %v10589_v4  ;;  %v4366_v25 = vadd.f32 %v4350_v16, %v10592_v45  ;;  %v4370_v15 = vadd.f32 %v4354_v20, %v10593_v63 }
 0x893   :  { %v4369_v48 = vadd.f32 %v4353_v19, %v10590_v41  ;;  %v4373_v50 = vadd.f32 %v4357_v36, %v10591_v11  ;;  %v4367_v10 = vadd.f32 %v4351_v21, %v10594_v40  ;;  %v4371_v37 = vadd.f32 %v4355_v6, %v10595_v42  ;;  %v10596_v19 = vld [vmem:[#allocation26_spill] sm:$0xff] }
 0x894   :  { %v5834_v34 = vmul.f32 -1.442695, %v4368_v55  ;;  %v5838_v8 = vmul.f32 -1.442695, %v4372_v38  ;;  %v5832_v47 = vmul.f32 -1.442695, %v4366_v25 }
 0x895   :  { %v5835_v13 = vmul.f32 -1.442695, %v4369_v48  ;;  %v5839_v23 = vmul.f32 -1.442695, %v4373_v50  ;;  %v5836_v2 = vmul.f32 -1.442695, %v4370_v15 }
 0x896   :  { %7997 = vpow2.f32 %v5834_v34  ;;  %v5833_v32 = vmul.f32 -1.442695, %v4367_v10  ;;  %v5837_v5 = vmul.f32 -1.442695, %v4371_v37 }
 0x897   :  { %7999 = vpow2.f32 %v5838_v8 }
 0x898   :  { %8001 = vpow2.f32 %v5835_v13 }
 0x899   :  { %8003 = vpow2.f32 %v5839_v23 }
 0x8a0   :  { %v7998_v60 = vpop.eup %7997 }
 0x8a1   :  { %v8000_v31 = vpop.eup %7999  ;;  %v4400_v52 = vadd.f32 1.0, %v7998_v60 }
 0x8a2   :  { %v4404_v24 = vadd.f32 1.0, %v8000_v31  ;;  %v8002_v30 = vpop.eup %8001 }
 0x8a3   :  { %8005 = vrcp.f32 %v4400_v52  ;;  %v8004_v51 = vpop.eup %8003  ;;  %v4401_v59 = vadd.f32 1.0, %v8002_v30 }
 0x8a4   :  { %8007 = vrcp.f32 %v4404_v24  ;;  %v4405_v58 = vadd.f32 1.0, %v8004_v51 }
 0x8a5   :  { %8009 = vrcp.f32 %v4401_v59 }
 0x8a6   :  { %8011 = vrcp.f32 %v4405_v58 }
 0x8a7   :  { %8013 = vpow2.f32 %v5832_v47 }
 0x8a8   :  { %8015 = vpow2.f32 %v5836_v2 }
 0x8a9   :  { %8017 = vpow2.f32 %v5833_v32 }
 0x8aa   :  { %8019 = vpow2.f32 %v5837_v5 }
 0x8ad   :  { %v10043_v28 = vpop.eup %8005 }
 0x8ae   :  { %v10047_v17 = vpop.eup %8007  ;;  %v10051_v9 = vmul.f32 %v10043_v28, %v4454_v56  ;;  %v4446_v21 = vsub.f32 1.0, %v10043_v28 }
 0x8af   :  { %v10055_v43 = vmul.f32 %v10047_v17, %v4456_v0  ;;  %v8010_v29 = vpop.eup %8009  ;;  %v4448_v25 = vsub.f32 1.0, %v10047_v17 }
 0x8b0   :  { %v8012_v57 = vpop.eup %8011  ;;  %v4463_v39 = vmul.f32 %v8010_v29, %v4455_v26  ;;  %v4447_v15 = vsub.f32 1.0, %v8010_v29  ;;  %v4488_v29 = vld [vmem:[#allocation3 + $0xb0] sm:$0xff] }
 0x8b1   :  { %v4465_v18 = vmul.f32 %v8012_v57, %v4457_v3  ;;  %v8014_v53 = vpop.eup %8013  ;;  %v4449_v37 = vsub.f32 1.0, %v8012_v57 }
 0x8b2   :  { %v8016_v44 = vpop.eup %8015  ;;  %v4398_v12 = vadd.f32 1.0, %v8014_v53 }
 0x8b3   :  { %v8018_v62 = vpop.eup %8017  ;;  %v4402_v61 = vadd.f32 1.0, %v8016_v44 }
 0x8b4   :  { %v8020_v33 = vpop.eup %8019  ;;  %v4399_v1 = vadd.f32 1.0, %v8018_v62  ;;  %8021 = vrcp.f32 %v4398_v12  ;;  %v5069_v12 = vld [vmem:[#allocation5 + $0x18] sm:$0xff] }
 0x8b5   :  { %v4403_v22 = vadd.f32 1.0, %v8020_v33  ;;  %8023 = vrcp.f32 %v4402_v61  ;;  %v4494_v33 = vld [vmem:[#allocation3 + $0xe0] sm:$0xff] }
 0x8b6   :  { %8025 = vrcp.f32 %v4399_v1 }
 0x8b7   :  { %8027 = vrcp.f32 %v4403_v22 }
 0x8be   :  { %v8022_v38 = vpop.eup %8021 }
 0x8bf   :  { %v8024_v48 = vpop.eup %8023 }
 0x8c0   :  { %v8026_v13 = vpop.eup %8025 }
 0x8c1   :  { %v8028_v31 = vpop.eup %8027 }
 0x8cf   :  { %v4341_v27 = vpop.f32.mrb[24].mxu1 }
 0x8d0   :  { %v4422_v36 = vadd.f32 %v4341_v27, %v10596_v19  ;;  %v4343_v55 = vpop.f32.mrb[25].mxu1 }
 0x8d1   :  { %v4423_v34 = vadd.f32 %v4343_v55, %v10476_v14  ;;  %v5076_v55 = vld [vmem:[#allocation5 + $0x50] sm:$0xff] }
 0x8d2   :  { %v4426_v8 = vrot.slane %v4422_v36, 2  ;;  %v4428_v50 = vrot.slane %v4422_v36, 3  ;;  %v5073_v36 = vld [vmem:[#allocation5 + $0x38] sm:$0xff] }
 0x8d3   :  { %v4427_v23 = vrot.slane %v4423_v34, 2  ;;  %v4429_v60 = vrot.slane %v4423_v34, 3  ;;  %v7433_v34 = vpack.c.bf16 %v4494_v33, %v4488_v29  ;;  %v4530_v29 = vld [vmem:[#allocation3 + $0x200] sm:$0xff] }
 0x8d4   :  { %v4434_v52 = vmul.f32 %v8022_v38, %v4426_v8  ;;  %v4436_v24 = vmul.f32 %v8024_v48, %v4428_v50  ;;  %v4500_v8 = vld [vmem:[#allocation3 + $0x110] sm:$0xff]  ;;  %v4506_v50 = vld [vmem:[#allocation3 + $0x140] sm:$0xff] }
 0x8d5   :  { %v4435_v30 = vmul.f32 %v8026_v13, %v4427_v23  ;;  %v4437_v51 = vmul.f32 %v8028_v31, %v4429_v60  ;;  %v5072_v60 = vld [vmem:[#allocation5 + $0x30] sm:$0xff]  ;;  %v5075_v31 = vld [vmem:[#allocation5 + $0x48] sm:$0xff] }
 0x8d6   :  { %v4438_v59 = vadd.f32 %v4434_v52, %v10393_v49  ;;  %v4440_v58 = vadd.f32 %v4436_v24, %v8687_v7  ;;  %v4513_v52 = vld [vmem:[#allocation3 + $0x178] sm:$0xff]  ;;  %v5084_v33 = vld [vmem:[#allocation5 + $0x90] sm:$0xff] }
 0x8d7   :  { %v4439_v16 = vadd.f32 %v4435_v30, %v10434_v35  ;;  %v4441_v20 = vadd.f32 %v4437_v51, %v10435_v54  ;;  %v7499_v30 = vpack.c.bf16 %v5076_v55, %v5073_v36  ;;  %v4519_v51 = vld [vmem:[#allocation3 + $0x1a8] sm:$0xff] }
 0x8d8   :  { %8029 = vtanh.f32 %v4438_v59  ;;  %v5079_v59 = vld [vmem:[#allocation5 + $0x68] sm:$0xff] }
 0x8d9   :  { %8031 = vtanh.f32 %v4440_v58  ;;  %v5082_v58 = vld [vmem:[#allocation5 + $0x80] sm:$0xff] }
 0x8da   :  { %8033 = vtanh.f32 %v4439_v16  ;;  %v5063_v16 = vld [vmem:[#allocation2 + $0x8] sm:$0xff] }
 0x8db   :  { %8035 = vtanh.f32 %v4441_v20  ;;  %v7437_v20 = vpack.c.bf16 %v4506_v50, %v4500_v8  ;;  %v4549_v8 = vld [vmem:[#allocation3 + $0x298] sm:$0xff]  ;;  %v4555_v50 = vld [vmem:[#allocation3 + $0x2c8] sm:$0xff] }
 0x8e2   :  { %v8030_v6 = vpop.eup %8029 }
 0x8e3   :  { %v8032_v56 = vpop.eup %8031  ;;  %v4450_v0 = vmul.f32 %v8030_v6, %v4446_v21  ;;  %v7501_v21 = vpack.c.bf16 %v5075_v31, %v5072_v60  ;;  %v4512_v6 = vld [vmem:[#allocation3 + $0x170] sm:$0xff] }
 0x8e4   :  { %v8034_v10 = vpop.eup %8033  ;;  %v4452_v47 = vmul.f32 %v8032_v56, %v4448_v25  ;;  %v4518_v25 = vld [vmem:[#allocation3 + $0x1a0] sm:$0xff]  ;;  %v7439_v56 = vpack.c.bf16 %v4519_v51, %v4513_v52  ;;  %v4548_v52 = vld [vmem:[#allocation3 + $0x290] sm:$0xff] }
 0x8e5   :  { %v8036_v26 = vpop.eup %8035  ;;  %v4451_v2 = vmul.f32 %v8034_v10, %v4447_v15  ;;  %v10068_v3 = vadd.f32 %v10051_v9, %v4450_v0  ;;  %v5066_v9 = vld [vmem:[#allocation5] sm:$0xff]  ;;  %v7503_v15 = vpack.c.bf16 %v5082_v58, %v5079_v59  ;;  %v5081_v10 = vld [vmem:[#allocation5 + $0x78] sm:$0xff]  ;;  %v5096_v59 = vld [vmem:[#allocation5 + $0xf0] sm:$0xff] }
 0x8e6   :  { %v4453_v32 = vmul.f32 %v8036_v26, %v4449_v37  ;;  %v10071_v5 = vadd.f32 %v10055_v43, %v4452_v47  ;;  %v7497_v48 = vpack.c.bf16 %v5069_v12, %v5066_v9  ;;  %v5078_v0 = vld [vmem:[#allocation5 + $0x60] sm:$0xff]  ;;  %v4525_v37 = vld [vmem:[#allocation3 + $0x1d8] sm:$0xff]  ;;  %v4531_v47 = vld [vmem:[#allocation3 + $0x208] sm:$0xff] }
 0x8e7   :  { %v10073_v53 = vadd.f32 %v4463_v39, %v4451_v2  ;;  %v4474_v28 = vrot.slane %v10068_v3, 2  ;;  %v4676_v17 = vrot.slane %v10068_v3, 6  ;;  %v4501_v39 = vld [vmem:[#allocation3 + $0x118] sm:$0xff]  ;;  %v5085_v26 = vld [vmem:[#allocation5 + $0x98] sm:$0xff]  ;;  %v5088_v2 = vld [vmem:[#allocation5 + $0xb0] sm:$0xff] }
 0x8e8   :  { %v10077_v44 = vadd.f32 %v4465_v18, %v4453_v32  ;;  %v4475_v57 = vrot.slane %v10071_v5, 1  ;;  %v4677_v62 = vrot.slane %v10071_v5, 5  ;;  %v4507_v18 = vld [vmem:[#allocation3 + $0x148] sm:$0xff]  ;;  %v7441_v32 = vpack.c.bf16 %v4518_v25, %v4512_v6  ;;  %v5087_v9 = vld [vmem:[#allocation5 + $0xa8] sm:$0xff]  ;;  %v5106_v6 = vld [vmem:[#allocation5 + $0x140] sm:$0xff] }
 0x8e9   :  { %v4477_v61 = vrot.slane %v10073_v53, 2  ;;  %v4679_v43 = vrot.slane %v10073_v53, 6  ;;  %v7435_v24 = vpack.c.bf16 %v4507_v18, %v4501_v39  ;;  %v4537_v12 = vld [vmem:[#allocation3 + $0x238] sm:$0xff]  ;;  %v5094_v39 = vld [vmem:[#allocation5 + $0xe0] sm:$0xff]  ;;  %v4542_v18 = vld [vmem:[#allocation3 + $0x260] sm:$0xff] }
 0x8ea   :  { %v4478_v1 = vrot.slane %v10077_v44, 1  ;;  %v4680_v22 = vrot.slane %v10077_v44, 5  ;;  %v4476_v27 = vsel %vm2278_vm8, %v4475_v57, %v4474_v28  ;;  %v10087_v38 = vsel %vm1195_vm6, %v4677_v62, %v4676_v17  ;;  %v4524_v17 = vld [vmem:[#allocation3 + $0x1d0] sm:$0xff]  ;;  %v5099_v58 = vld [vmem:[#allocation5 + $0x108] sm:$0xff] }
 0x8eb   :  { %4482 = vst [vmem:[#allocation2 + $0x10] sm:$0x30] %v4476_v27  ;;  %v7505_v28 = vpack.c.bf16 %v5081_v10, %v5078_v0  ;;  %v7443_v57 = vpack.c.bf16 %v4531_v47, %v4525_v37  ;;  %v7507_v62 = vpack.c.bf16 %v5088_v2, %v5085_v26  ;;  %v4536_v27 = vld [vmem:[#allocation3 + $0x230] sm:$0xff]  ;;  %v4566_v0 = vld [vmem:[#allocation3 + $0x320] sm:$0xff]  ;;  %v5105_v26 = vld [vmem:[#allocation5 + $0x138] sm:$0xff] }
 0x8ec   :  { %v4479_v13 = vsel %vm2278_vm8, %v4478_v1, %v4477_v61  ;;  %v4681_v23 = vsel %vm1195_vm6, %v4680_v22, %v4679_v43  ;;  %v4543_v61 = vld [vmem:[#allocation3 + $0x268] sm:$0xff]  ;;  %v5091_v43 = vld [vmem:[#allocation5 + $0xc8] sm:$0xff]  ;;  %v7445_v1 = vpack.c.bf16 %v4530_v29, %v4524_v17  ;;  %v7509_v22 = vpack.c.bf16 %v5087_v9, %v5084_v33  ;;  %v5102_v47 = vld [vmem:[#allocation5 + $0x120] sm:$0xff] }
 0x8ed   :  { %4483 = vst [vmem:[#allocation2 + $0x18] sm:$0x30] %v4479_v13  ;;  %4748 = vmatprep.mubr.f32.mxu0 %v4681_v23  ;;  %4819 = vmatprep.mubr.f32.mxu1 %v4681_v23  ;;  %v7447_v36 = vpack.c.bf16 %v4543_v61, %v4537_v12  ;;  %v7511_v55 = vpack.c.bf16 %v5094_v39, %v5091_v43  ;;  %v5097_v13 = vld [vmem:[#allocation5 + $0xf8] sm:$0xff]  ;;  %v4573_v2 = vld [vmem:[#allocation3 + $0x358] sm:$0xff]  ;;  %v5112_v17 = vld [vmem:[#allocation5 + $0x170] sm:$0xff] }
 0x8ee   :  { %4749 = vmatmul.mubr.f32.vlgmr.msra.gmra.mrb[32].mxu0 %v10087_v38  ;;  %4820 = vmatmul.mubr.f32.vlgmr.msra.gmra.mrb[26].mxu1 %v10087_v38  ;;  %v7449_v60 = vpack.c.bf16 %v4542_v18, %v4536_v27  ;;  %v4578_v33 = vld [vmem:[#allocation3 + $0x380] sm:$0xff]  ;;  %v5111_v43 = vld [vmem:[#allocation5 + $0x168] sm:$0xff]  ;;  %v5118_v27 = vld [vmem:[#allocation5 + $0x1a0] sm:$0xff] }
 0x8ef   :  { %7434 = vmatpush1.bf16.msra.mxu0 %v7433_v34  ;;  %7498 = vmatpush1.bf16.msra.mxu1 %v7497_v48  ;;  %v5090_v34 = vld [vmem:[#allocation5 + $0xc0] sm:$0xff]  ;;  %v5093_v48 = vld [vmem:[#allocation5 + $0xd8] sm:$0xff]  ;;  %v5108_v61 = vld [vmem:[#allocation5 + $0x150] sm:$0xff] }
 0x8f0   :  { %4890 = vmatprep.mubr.f32.mxu0 %v4681_v23  ;;  %5243 = vmatprep.mubr.f32.mxu1 %v5063_v16  ;;  %v5100_v23 = vld [vmem:[#allocation5 + $0x110] sm:$0xff]  ;;  %v7513_v31 = vpack.c.bf16 %v5093_v48, %v5090_v34  ;;  %v4561_v16 = vld [vmem:[#allocation3 + $0x2f8] sm:$0xff] }
 0x8f1   :  { %7436 = vmatprep.subr.bf16.mxu0 %v7435_v24  ;;  %7500 = vmatprep.subr.bf16.mxu1 %v7499_v30  ;;  %v4554_v24 = vld [vmem:[#allocation3 + $0x2c0] sm:$0xff]  ;;  %v7451_v30 = vpack.c.bf16 %v4555_v50, %v4549_v8  ;;  %v7515_v51 = vpack.c.bf16 %v5100_v23, %v5097_v13  ;;  %v4585_v39 = vld [vmem:[#allocation3 + $0x3b8] sm:$0xff]  ;;  %v5114_v50 = vld [vmem:[#allocation5 + $0x180] sm:$0xff] }
 0x8f2   :  { %v7453_v25 = vpack.c.bf16 %v4554_v24, %v4548_v52  ;;  %v4590_v34 = vld [vmem:[#allocation3 + $0x3e0] sm:$0xff]  ;;  %v5117_v13 = vld [vmem:[#allocation5 + $0x198] sm:$0xff]  ;;  %v4597_v23 = vld [vmem:[#allocation3 + $0x418] sm:$0xff] }
 0x8f3   :  { %7438 = vmatpush1.bf16.msra.mxu0 %v7437_v20  ;;  %7502 = vmatpush1.bf16.msra.mxu1 %v7501_v21  ;;  %v4567_v20 = vld [vmem:[#allocation3 + $0x328] sm:$0xff]  ;;  %v5103_v21 = vld [vmem:[#allocation5 + $0x128] sm:$0xff]  ;;  %v5124_v52 = vld [vmem:[#allocation5 + $0x1d0] sm:$0xff] }
 0x8f4   :  { %7440 = vmatprep.subr.bf16.mxu0 %v7439_v56  ;;  %7504 = vmatprep.subr.bf16.mxu1 %v7503_v15  ;;  %v7517_v56 = vpack.c.bf16 %v5099_v58, %v5096_v59  ;;  %v4560_v15 = vld [vmem:[#allocation3 + $0x2f0] sm:$0xff]  ;;  %v7455_v10 = vpack.c.bf16 %v4567_v20, %v4561_v16  ;;  %v7519_v37 = vpack.c.bf16 %v5106_v6, %v5103_v21  ;;  %v4602_v59 = vld [vmem:[#allocation3 + $0x440] sm:$0xff]  ;;  %v5123_v21 = vld [vmem:[#allocation5 + $0x1c8] sm:$0xff] }
 0x8f5   :  { %v7457_v29 = vpack.c.bf16 %v4566_v0, %v4560_v15  ;;  %v5120_v20 = vld [vmem:[#allocation5 + $0x1b0] sm:$0xff]  ;;  %v4609_v6 = vld [vmem:[#allocation3 + $0x478] sm:$0xff]  ;;  %v5130_v15 = vld [vmem:[#allocation5 + $0x200] sm:$0xff] }
 0x8f7   :  { %7442 = vmatpush1.bf16.msra.mxu0 %v7441_v32  ;;  %7506 = vmatpush1.bf16.msra.mxu1 %v7505_v28  ;;  %v4579_v32 = vld [vmem:[#allocation3 + $0x388] sm:$0xff] }
 0x8f8   :  { %7444 = vmatprep.subr.bf16.mxu0 %v7443_v57  ;;  %7508 = vmatprep.subr.bf16.mxu1 %v7507_v62  ;;  %v5109_v28 = vld [vmem:[#allocation5 + $0x158] sm:$0xff]  ;;  %v7521_v57 = vpack.c.bf16 %v5105_v26, %v5102_v47  ;;  %v4572_v62 = vld [vmem:[#allocation3 + $0x350] sm:$0xff]  ;;  %v7459_v9 = vpack.c.bf16 %v4579_v32, %v4573_v2  ;;  %v4614_v47 = vld [vmem:[#allocation3 + $0x4a0] sm:$0xff] }
 0x8f9   :  { %v7523_v12 = vpack.c.bf16 %v5112_v17, %v5109_v28  ;;  %v7461_v18 = vpack.c.bf16 %v4578_v33, %v4572_v62  ;;  %v5126_v32 = vld [vmem:[#allocation5 + $0x1e0] sm:$0xff]  ;;  %v5129_v28 = vld [vmem:[#allocation5 + $0x1f8] sm:$0xff]  ;;  %v4621_v17 = vld [vmem:[#allocation3 + $0x4d8] sm:$0xff] }
 0x8fa   :  { %v5136_v62 = vld [vmem:[#allocation5 + $0x230] sm:$0xff] }
 0x8fb   :  { %7446 = vmatpush1.bf16.msra.mxu0 %v7445_v1  ;;  %7510 = vmatpush1.bf16.msra.mxu1 %v7509_v22  ;;  %v4591_v1 = vld [vmem:[#allocation3 + $0x3e8] sm:$0xff]  ;;  %v5115_v22 = vld [vmem:[#allocation5 + $0x188] sm:$0xff] }
 0x8fc   :  { %7448 = vmatprep.subr.bf16.mxu0 %v7447_v36  ;;  %7512 = vmatprep.subr.bf16.mxu1 %v7511_v55  ;;  %v7525_v36 = vpack.c.bf16 %v5111_v43, %v5108_v61  ;;  %v4584_v55 = vld [vmem:[#allocation3 + $0x3b0] sm:$0xff]  ;;  %v7463_v48 = vpack.c.bf16 %v4591_v1, %v4585_v39  ;;  %v7527_v8 = vpack.c.bf16 %v5118_v27, %v5115_v22  ;;  %v4626_v61 = vld [vmem:[#allocation3 + $0x500] sm:$0xff]  ;;  %v5135_v22 = vld [vmem:[#allocation5 + $0x228] sm:$0xff] }
 0x8fd   :  { %v7465_v24 = vpack.c.bf16 %v4590_v34, %v4584_v55  ;;  %v5132_v1 = vld [vmem:[#allocation5 + $0x210] sm:$0xff]  ;;  %v4633_v27 = vld [vmem:[#allocation3 + $0x538] sm:$0xff]  ;;  %v5142_v55 = vld [vmem:[#allocation5 + $0x260] sm:$0xff] }
 0x8ff   :  { %7450 = vmatpush1.bf16.msra.mxu0 %v7449_v60  ;;  %7514 = vmatpush1.bf16.msra.mxu1 %v7513_v31  ;;  %v4603_v60 = vld [vmem:[#allocation3 + $0x448] sm:$0xff] }
 0x900   :  { %7452 = vmatprep.subr.bf16.mxu0 %v7451_v30  ;;  %7516 = vmatprep.subr.bf16.mxu1 %v7515_v51  ;;  %v5121_v31 = vld [vmem:[#allocation5 + $0x1b8] sm:$0xff]  ;;  %v7529_v30 = vpack.c.bf16 %v5117_v13, %v5114_v50  ;;  %v4596_v51 = vld [vmem:[#allocation3 + $0x410] sm:$0xff]  ;;  %v7467_v58 = vpack.c.bf16 %v4603_v60, %v4597_v23  ;;  %v4638_v50 = vld [vmem:[#allocation3 + $0x560] sm:$0xff] }
 0x901   :  { %v7531_v16 = vpack.c.bf16 %v5124_v52, %v5121_v31  ;;  %v7469_v0 = vpack.c.bf16 %v4602_v59, %v4596_v51  ;;  %v5138_v60 = vld [vmem:[#allocation5 + $0x240] sm:$0xff]  ;;  %v5141_v31 = vld [vmem:[#allocation5 + $0x258] sm:$0xff]  ;;  %v4645_v52 = vld [vmem:[#allocation3 + $0x598] sm:$0xff] }
 0x902   :  { %v5148_v51 = vld [vmem:[#allocation5 + $0x290] sm:$0xff] }
 0x903   :  { %7454 = vmatpush1.bf16.msra.mxu0 %v7453_v25  ;;  %7518 = vmatpush1.bf16.msra.mxu1 %v7517_v56  ;;  %v4615_v25 = vld [vmem:[#allocation3 + $0x4a8] sm:$0xff]  ;;  %v5127_v56 = vld [vmem:[#allocation5 + $0x1e8] sm:$0xff] }
 0x904   :  { %7456 = vmatprep.subr.bf16.mxu0 %v7455_v10  ;;  %7520 = vmatprep.subr.bf16.mxu1 %v7519_v37  ;;  %v7533_v10 = vpack.c.bf16 %v5123_v21, %v5120_v20  ;;  %v4608_v37 = vld [vmem:[#allocation3 + $0x470] sm:$0xff]  ;;  %v7471_v26 = vpack.c.bf16 %v4615_v25, %v4609_v6  ;;  %v7535_v2 = vpack.c.bf16 %v5130_v15, %v5127_v56  ;;  %v4650_v20 = vld [vmem:[#allocation3 + $0x5c0] sm:$0xff]  ;;  %v5147_v56 = vld [vmem:[#allocation5 + $0x288] sm:$0xff] }
 0x905   :  { %v7473_v33 = vpack.c.bf16 %v4614_v47, %v4608_v37  ;;  %v5144_v25 = vld [vmem:[#allocation5 + $0x270] sm:$0xff]  ;;  %v4657_v15 = vld [vmem:[#allocation3 + $0x5f8] sm:$0xff]  ;;  %v5154_v37 = vld [vmem:[#allocation5 + $0x2c0] sm:$0xff] }
 0x907   :  { %7458 = vmatpush1.bf16.msra.mxu0 %v7457_v29  ;;  %7522 = vmatpush1.bf16.msra.mxu1 %v7521_v57  ;;  %v4627_v29 = vld [vmem:[#allocation3 + $0x508] sm:$0xff] }
 0x908   :  { %7460 = vmatprep.subr.bf16.mxu0 %v7459_v9  ;;  %7524 = vmatprep.subr.bf16.mxu1 %v7523_v12  ;;  %v5133_v57 = vld [vmem:[#allocation5 + $0x218] sm:$0xff]  ;;  %v7537_v9 = vpack.c.bf16 %v5129_v28, %v5126_v32  ;;  %v4620_v12 = vld [vmem:[#allocation3 + $0x4d0] sm:$0xff]  ;;  %v7475_v43 = vpack.c.bf16 %v4627_v29, %v4621_v17  ;;  %v4662_v32 = vld [vmem:[#allocation3 + $0x620] sm:$0xff] }
 0x909   :  { %v7539_v39 = vpack.c.bf16 %v5136_v62, %v5133_v57  ;;  %v7477_v34 = vpack.c.bf16 %v4626_v61, %v4620_v12  ;;  %v5150_v29 = vld [vmem:[#allocation5 + $0x2a0] sm:$0xff]  ;;  %v5153_v57 = vld [vmem:[#allocation5 + $0x2b8] sm:$0xff]  ;;  %v4669_v62 = vld [vmem:[#allocation3 + $0x658] sm:$0xff] }
 0x90a   :  { %v5160_v12 = vld [vmem:[#allocation5 + $0x2f0] sm:$0xff] }
 0x90b   :  { %7462 = vmatpush1.bf16.msra.mxu0 %v7461_v18  ;;  %7526 = vmatpush1.bf16.msra.mxu1 %v7525_v36  ;;  %v4639_v18 = vld [vmem:[#allocation3 + $0x568] sm:$0xff]  ;;  %v5139_v36 = vld [vmem:[#allocation5 + $0x248] sm:$0xff] }
 0x90c   :  { %7464 = vmatprep.subr.bf16.mxu0 %v7463_v48  ;;  %7528 = vmatprep.subr.bf16.mxu1 %v7527_v8  ;;  %v7541_v48 = vpack.c.bf16 %v5135_v22, %v5132_v1  ;;  %v4632_v8 = vld [vmem:[#allocation3 + $0x530] sm:$0xff]  ;;  %v7479_v13 = vpack.c.bf16 %v4639_v18, %v4633_v27  ;;  %v7543_v23 = vpack.c.bf16 %v5142_v55, %v5139_v36  ;;  %v4674_v27 = vld [vmem:[#allocation3 + $0x680] sm:$0xff]  ;;  %v5159_v36 = vld [vmem:[#allocation5 + $0x2e8] sm:$0xff] }
 0x90d   :  { %v7481_v59 = vpack.c.bf16 %v4638_v50, %v4632_v8  ;;  %v5156_v18 = vld [vmem:[#allocation5 + $0x2d0] sm:$0xff]  ;;  %v5338_v8 = vld [vmem:[#allocation7 + $0x8] sm:$0xff]  ;;  %v5340_v50 = vld [vmem:[#allocation7 + $0x18] sm:$0xff] }
 0x90f   :  { %7466 = vmatpush1.bf16.msra.mxu0 %v7465_v24  ;;  %7530 = vmatpush1.bf16.msra.mxu1 %v7529_v30  ;;  %v4651_v24 = vld [vmem:[#allocation3 + $0x5c8] sm:$0xff] }
 0x910   :  { %7468 = vmatprep.subr.bf16.mxu0 %v7467_v58  ;;  %7532 = vmatprep.subr.bf16.mxu1 %v7531_v16  ;;  %v5145_v30 = vld [vmem:[#allocation5 + $0x278] sm:$0xff]  ;;  %v7545_v58 = vpack.c.bf16 %v5141_v31, %v5138_v60  ;;  %v4644_v16 = vld [vmem:[#allocation3 + $0x590] sm:$0xff]  ;;  %v7483_v21 = vpack.c.bf16 %v4651_v24, %v4645_v52  ;;  %v5339_v60 = vld [vmem:[#allocation7 + $0x10] sm:$0xff] }
 0x911   :  { %v7547_v6 = vpack.c.bf16 %v5148_v51, %v5145_v30  ;;  %v7485_v47 = vpack.c.bf16 %v4650_v20, %v4644_v16  ;;  %v5342_v52 = vld [vmem:[#allocation7 + $0x28] sm:$0xff]  ;;  %v5344_v24 = vld [vmem:[#allocation7 + $0x38] sm:$0xff]  ;;  %v5341_v51 = vld [vmem:[#allocation7 + $0x20] sm:$0xff] }
 0x912   :  { %v7595_v30 = vpack.c.bf16 %v5344_v24, %v5342_v52  ;;  %v5346_v16 = vld [vmem:[#allocation7 + $0x48] sm:$0xff]  ;;  %v5371_v52 = vld [vmem:[#allocation7 + $0x110] sm:$0xff] }
 0x913   :  { %7470 = vmatpush1.bf16.msra.mxu0 %v7469_v0  ;;  %7534 = vmatpush1.bf16.msra.mxu1 %v7533_v10  ;;  %v4663_v0 = vld [vmem:[#allocation3 + $0x628] sm:$0xff]  ;;  %v5151_v10 = vld [vmem:[#allocation5 + $0x2a8] sm:$0xff] }
 0x914   :  { %7472 = vmatprep.subr.bf16.mxu0 %v7471_v26  ;;  %7536 = vmatprep.subr.bf16.mxu1 %v7535_v2  ;;  %v7549_v26 = vpack.c.bf16 %v5147_v56, %v5144_v25  ;;  %v4656_v2 = vld [vmem:[#allocation3 + $0x5f0] sm:$0xff]  ;;  %v7487_v28 = vpack.c.bf16 %v4663_v0, %v4657_v15  ;;  %v7551_v17 = vpack.c.bf16 %v5154_v37, %v5151_v10  ;;  %v5350_v56 = vld [vmem:[#allocation7 + $0x68] sm:$0xff]  ;;  %v5352_v15 = vld [vmem:[#allocation7 + $0x78] sm:$0xff] }
 0x915   :  { %v7489_v61 = vpack.c.bf16 %v4662_v32, %v4656_v2  ;;  %v7603_v0 = vpack.c.bf16 %v5352_v15, %v5350_v56  ;;  %v5349_v10 = vld [vmem:[#allocation7 + $0x60] sm:$0xff]  ;;  %v5351_v37 = vld [vmem:[#allocation7 + $0x70] sm:$0xff]  ;;  %v5356_v2 = vld [vmem:[#allocation7 + $0x98] sm:$0xff] }
 0x916   :  { %v5377_v56 = vld [vmem:[#allocation7 + $0x140] sm:$0xff]  ;;  %v5379_v15 = vld [vmem:[#allocation7 + $0x150] sm:$0xff] }
 0x917   :  { %7474 = vmatpush1.bf16.msra.mxu0 %v7473_v33  ;;  %7538 = vmatpush1.bf16.msra.mxu1 %v7537_v9  ;;  %v4675_v33 = vld [vmem:[#allocation3 + $0x688] sm:$0xff] }
 0x918   :  { %7476 = vmatprep.subr.bf16.mxu0 %v7475_v43  ;;  %7540 = vmatprep.subr.bf16.mxu1 %v7539_v39  ;;  %v5157_v9 = vld [vmem:[#allocation5 + $0x2d8] sm:$0xff]  ;;  %v7553_v43 = vpack.c.bf16 %v5153_v57, %v5150_v29  ;;  %v4668_v39 = vld [vmem:[#allocation3 + $0x650] sm:$0xff]  ;;  %v7491_v1 = vpack.c.bf16 %v4675_v33, %v4669_v62  ;;  %v5358_v57 = vld [vmem:[#allocation7 + $0xa8] sm:$0xff] }
 0x919   :  { %v7555_v22 = vpack.c.bf16 %v5160_v12, %v5157_v9  ;;  %v7493_v55 = vpack.c.bf16 %v4674_v27, %v4668_v39  ;;  %v5360_v62 = vld [vmem:[#allocation7 + $0xb8] sm:$0xff]  ;;  %v5357_v9 = vld [vmem:[#allocation7 + $0xa0] sm:$0xff]  ;;  %v5359_v12 = vld [vmem:[#allocation7 + $0xb0] sm:$0xff] }
 0x91a   :  { %v7611_v33 = vpack.c.bf16 %v5360_v62, %v5358_v57  ;;  %v5364_v39 = vld [vmem:[#allocation7 + $0xd8] sm:$0xff]  ;;  %v5363_v27 = vld [vmem:[#allocation7 + $0xd0] sm:$0xff]  ;;  %v5385_v57 = vld [vmem:[#allocation7 + $0x180] sm:$0xff] }
 0x91b   :  { %7478 = vmatpush1.bf16.msra.mxu0 %v7477_v34  ;;  %7542 = vmatpush1.bf16.msra.mxu1 %v7541_v48  ;;  %v7557_v34 = vpack.c.bf16 %v5159_v36, %v5156_v18  ;;  %v10093_v48 = vld [vmem:[#allocation2] sm:$0xff]  ;;  %v5366_v36 = vld [vmem:[#allocation7 + $0xe8] sm:$0xff] }
 0x91c   :  { %7480 = vmatprep.subr.bf16.mxu0 %v7479_v13  ;;  %7544 = vmatprep.subr.bf16.mxu1 %v7543_v23  ;;  %v7591_v13 = vpack.c.bf16 %v5340_v50, %v5338_v8  ;;  %v5337_v23 = vld [vmem:[#allocation7] sm:$0xff]  ;;  %v5367_v50 = vld [vmem:[#allocation7 + $0xf0] sm:$0xff] }
 0x91d   :  { %v7593_v31 = vpack.c.bf16 %v5339_v60, %v5337_v23  ;;  %v5365_v8 = vld [vmem:[#allocation7 + $0xe0] sm:$0xff]  ;;  %v5372_v60 = vld [vmem:[#allocation7 + $0x118] sm:$0xff]  ;;  %v5387_v62 = vld [vmem:[#allocation7 + $0x190] sm:$0xff] }
 0x91e   :  { %v7621_v23 = vpack.c.bf16 %v5367_v50, %v5365_v8  ;;  %v5398_v8 = vld [vmem:[#allocation7 + $0x1e8] sm:$0xff]  ;;  %v5400_v50 = vld [vmem:[#allocation7 + $0x1f8] sm:$0xff] }
 0x91f   :  { %7482 = vmatpush1.bf16.msra.mxu0 %v7481_v59  ;;  %7546 = vmatpush1.bf16.msra.mxu1 %v7545_v58  ;;  %v5343_v59 = vld [vmem:[#allocation7 + $0x30] sm:$0xff] }
 0x920   :  { %7484 = vmatprep.subr.bf16.mxu0 %v7483_v21  ;;  %7548 = vmatprep.subr.bf16.mxu1 %v7547_v6  ;;  %v7597_v58 = vpack.c.bf16 %v5343_v59, %v5341_v51  ;;  %v5345_v21 = vld [vmem:[#allocation7 + $0x40] sm:$0xff]  ;;  %v5347_v6 = vld [vmem:[#allocation7 + $0x50] sm:$0xff]  ;;  %v5376_v51 = vld [vmem:[#allocation7 + $0x138] sm:$0xff] }
 0x921   :  { %v7601_v25 = vpack.c.bf16 %v5347_v6, %v5345_v21  ;;  %v5380_v21 = vld [vmem:[#allocation7 + $0x158] sm:$0xff] }
 0x923   :  { %7486 = vmatpush1.bf16.msra.mxu0 %v7485_v47  ;;  %7550 = vmatpush1.bf16.msra.mxu1 %v7549_v26  ;;  %v7605_v47 = vpack.c.bf16 %v5351_v37, %v5349_v10  ;;  %v5354_v26 = vld [vmem:[#allocation7 + $0x88] sm:$0xff]  ;;  %v5384_v10 = vld [vmem:[#allocation7 + $0x178] sm:$0xff]  ;;  %v7633_v37 = vpack.c.bf16 %v5379_v15, %v5377_v56  ;;  %v5128_v56 = vld [vmem:[#allocation5 + $0x1f0] sm:$0xff] }
 0x924   :  { %7488 = vmatprep.subr.bf16.mxu0 %v7487_v28  ;;  %7552 = vmatprep.subr.bf16.mxu1 %v7551_v17  ;;  %v7607_v32 = vpack.c.bf16 %v5356_v2, %v5354_v26  ;;  %v5353_v28 = vld [vmem:[#allocation7 + $0x80] sm:$0xff]  ;;  %v5355_v17 = vld [vmem:[#allocation7 + $0x90] sm:$0xff]  ;;  %v5131_v15 = vld [vmem:[#allocation5 + $0x208] sm:$0xff] }
 0x925   :  { %v7609_v29 = vpack.c.bf16 %v5355_v17, %v5353_v28  ;;  %v5381_v26 = vld [vmem:[#allocation7 + $0x160] sm:$0xff]  ;;  %v5383_v2 = vld [vmem:[#allocation7 + $0x170] sm:$0xff]  ;;  %v5388_v28 = vld [vmem:[#allocation7 + $0x198] sm:$0xff] }
 0x926   :  { %v7637_v17 = vpack.c.bf16 %v5383_v2, %v5381_v26  ;;  %v5134_v26 = vld [vmem:[#allocation5 + $0x220] sm:$0xff]  ;;  %v5137_v2 = vld [vmem:[#allocation5 + $0x238] sm:$0xff] }
 0x927   :  { %7490 = vmatpush1.bf16.msra.mxu0 %v7489_v61  ;;  %7554 = vmatpush1.bf16.msra.mxu1 %v7553_v43  ;;  %v7613_v61 = vpack.c.bf16 %v5359_v12, %v5357_v9  ;;  %v5362_v43 = vld [vmem:[#allocation7 + $0xc8] sm:$0xff]  ;;  %v5392_v9 = vld [vmem:[#allocation7 + $0x1b8] sm:$0xff]  ;;  %v7641_v12 = vpack.c.bf16 %v5387_v62, %v5385_v57  ;;  %v5140_v57 = vld [vmem:[#allocation5 + $0x250] sm:$0xff] }
 0x928   :  { %7492 = vmatprep.subr.bf16.mxu0 %v7491_v1  ;;  %7556 = vmatprep.subr.bf16.mxu1 %v7555_v22  ;;  %v7615_v1 = vpack.c.bf16 %v5364_v39, %v5362_v43  ;;  %v5361_v22 = vld [vmem:[#allocation7 + $0xc0] sm:$0xff]  ;;  %v5391_v39 = vld [vmem:[#allocation7 + $0x1b0] sm:$0xff]  ;;  %v5143_v62 = vld [vmem:[#allocation5 + $0x268] sm:$0xff] }
 0x929   :  { %v7617_v18 = vpack.c.bf16 %v5363_v27, %v5361_v22  ;;  %v5389_v43 = vld [vmem:[#allocation7 + $0x1a0] sm:$0xff]  ;;  %v5396_v22 = vld [vmem:[#allocation7 + $0x1d8] sm:$0xff] }
 0x92a   :  { %v7645_v27 = vpack.c.bf16 %v5391_v39, %v5389_v43  ;;  %v5146_v43 = vld [vmem:[#allocation5 + $0x280] sm:$0xff]  ;;  %v5149_v39 = vld [vmem:[#allocation5 + $0x298] sm:$0xff] }
 0x92b   :  { %7494 = vmatpush1.bf16.msra.mxu0 %v7493_v55  ;;  %7558 = vmatpush1.bf16.msra.mxu1 %v7557_v34  ;;  %v5368_v55 = vld [vmem:[#allocation7 + $0xf8] sm:$0xff] }
 0x92c   :  { %7592 = vmatprep.subr.bf16.mxu0 %v7591_v13  ;;  %v7619_v34 = vpack.c.bf16 %v5368_v55, %v5366_v36  ;;  %v5370_v13 = vld [vmem:[#allocation7 + $0x108] sm:$0xff]  ;;  %v5393_v36 = vld [vmem:[#allocation7 + $0x1c0] sm:$0xff]  ;;  %v5395_v55 = vld [vmem:[#allocation7 + $0x1d0] sm:$0xff] }
 0x92d   :  { %v7623_v24 = vpack.c.bf16 %v5372_v60, %v5370_v13  ;;  %v7651_v13 = vpack.c.bf16 %v5400_v50, %v5398_v8  ;;  %v5399_v60 = vld [vmem:[#allocation7 + $0x1f0] sm:$0xff]  ;;  %v5107_v50 = vld [vmem:[#allocation5 + $0x148] sm:$0xff] }
 0x92e   :  { %4891 = vmatmul.mubr.f32.vlgmr.msra.gmra.mrb[34].mxu0 %v10087_v38  ;;  %5244 = vmatmul.mubr.f32.vlgmr.msra.gmra.mrb[28].mxu1 %v10093_v48  ;;  %v5348_v38 = vld [vmem:[#allocation7 + $0x58] sm:$0xff]  ;;  %v5104_v8 = vld [vmem:[#allocation5 + $0x130] sm:$0xff] }
 0x92f   :  { %7594 = vmatpush1.bf16.msra.mxu0 %v7593_v31  ;;  %v7599_v20 = vpack.c.bf16 %v5348_v38, %v5346_v16  ;;  %v5369_v31 = vld [vmem:[#allocation7 + $0x100] sm:$0xff]  ;;  %v5375_v38 = vld [vmem:[#allocation7 + $0x130] sm:$0xff] }
 0x930   :  { %7596 = vmatprep.subr.bf16.mxu0 %v7595_v30  ;;  %v5374_v30 = vld [vmem:[#allocation7 + $0x128] sm:$0xff]  ;;  %v7625_v59 = vpack.c.bf16 %v5371_v52, %v5369_v31  ;;  %v5373_v16 = vld [vmem:[#allocation7 + $0x120] sm:$0xff]  ;;  %v5116_v52 = vld [vmem:[#allocation5 + $0x190] sm:$0xff] }
 0x931   :  { %v7629_v6 = vpack.c.bf16 %v5375_v38, %v5373_v16  ;;  %v5122_v16 = vld [vmem:[#allocation5 + $0x1c0] sm:$0xff]  ;;  %v5125_v38 = vld [vmem:[#allocation5 + $0x1d8] sm:$0xff] }
 0x933   :  { %7598 = vmatpush1.bf16.msra.mxu0 %v7597_v58  ;;  %v7627_v58 = vpack.c.bf16 %v5376_v51, %v5374_v30  ;;  %v5068_v51 = vld [vmem:[#allocation5 + $0x10] sm:$0xff] }
 0x934   :  { %7600 = vmatprep.subr.bf16.mxu0 %v7599_v20  ;;  %v5378_v20 = vld [vmem:[#allocation7 + $0x148] sm:$0xff] }
 0x937   :  { %7602 = vmatpush1.bf16.msra.mxu0 %v7601_v25  ;;  %v7631_v25 = vpack.c.bf16 %v5380_v21, %v5378_v20  ;;  %v7563_v20 = vpack.c.bf16 %v5125_v38, %v5122_v16  ;;  %v5074_v21 = vld [vmem:[#allocation5 + $0x40] sm:$0xff] }
 0x938   :  { %7604 = vmatprep.subr.bf16.mxu0 %v7603_v0  ;;  %v5382_v0 = vld [vmem:[#allocation7 + $0x168] sm:$0xff] }
 0x93b   :  { %7606 = vmatpush1.bf16.msra.mxu0 %v7605_v47  ;;  %v7635_v47 = vpack.c.bf16 %v5384_v10, %v5382_v0  ;;  %v7567_v0 = vpack.c.bf16 %v5131_v15, %v5128_v56  ;;  %v5080_v10 = vld [vmem:[#allocation5 + $0x70] sm:$0xff] }
 0x93c   :  { %7608 = vmatprep.subr.bf16.mxu0 %v7607_v32  ;;  %v5386_v32 = vld [vmem:[#allocation7 + $0x188] sm:$0xff] }
 0x93f   :  { %7610 = vmatpush1.bf16.msra.mxu0 %v7609_v29  ;;  %v7639_v29 = vpack.c.bf16 %v5388_v28, %v5386_v32  ;;  %v7571_v32 = vpack.c.bf16 %v5137_v2, %v5134_v26  ;;  %v5086_v28 = vld [vmem:[#allocation5 + $0xa0] sm:$0xff] }
 0x940   :  { %7612 = vmatprep.subr.bf16.mxu0 %v7611_v33  ;;  %v5390_v33 = vld [vmem:[#allocation7 + $0x1a8] sm:$0xff] }
 0x943   :  { %7614 = vmatpush1.bf16.msra.mxu0 %v7613_v61  ;;  %v7643_v61 = vpack.c.bf16 %v5392_v9, %v5390_v33  ;;  %v7575_v33 = vpack.c.bf16 %v5143_v62, %v5140_v57  ;;  %v5092_v9 = vld [vmem:[#allocation5 + $0xd0] sm:$0xff] }
 0x944   :  { %7616 = vmatprep.subr.bf16.mxu0 %v7615_v1  ;;  %v5394_v1 = vld [vmem:[#allocation7 + $0x1c8] sm:$0xff] }
 0x947   :  { %7618 = vmatpush1.bf16.msra.mxu0 %v7617_v18  ;;  %v7647_v18 = vpack.c.bf16 %v5396_v22, %v5394_v1  ;;  %v7579_v1 = vpack.c.bf16 %v5149_v39, %v5146_v43  ;;  %v5098_v22 = vld [vmem:[#allocation5 + $0x100] sm:$0xff]  ;;  %v5005_v43 = vrot.slane %v10068_v3, 7 }
 0x948   :  { %7620 = vmatprep.subr.bf16.mxu0 %v7619_v34  ;;  %v7649_v34 = vpack.c.bf16 %v5395_v55, %v5393_v36  ;;  %v5152_v36 = vld [vmem:[#allocation5 + $0x2b0] sm:$0xff]  ;;  %v5155_v55 = vld [vmem:[#allocation5 + $0x2c8] sm:$0xff] }
 0x94b   :  { %7622 = vmatpush1.bf16.msra.mxu0 %v7621_v23  ;;  %v5397_v23 = vld [vmem:[#allocation7 + $0x1e0] sm:$0xff] }
 0x94c   :  { %7624 = vmatprep.subr.bf16.mxu0 %v7623_v24  ;;  %v7653_v31 = vpack.c.bf16 %v5399_v60, %v5397_v23  ;;  %v5119_v24 = vld [vmem:[#allocation5 + $0x1a8] sm:$0xff]  ;;  %v5158_v23 = vld [vmem:[#allocation5 + $0x2e0] sm:$0xff]  ;;  %v5161_v60 = vld [vmem:[#allocation5 + $0x2f8] sm:$0xff] }
 0x94d   :  { %v7559_v30 = vpack.c.bf16 %v5119_v24, %v5116_v52  ;;  %v7587_v52 = vpack.c.bf16 %v5161_v60, %v5158_v23  ;;  %v5113_v24 = vld [vmem:[#allocation5 + $0x178] sm:$0xff] }
 0x94f   :  { %7626 = vmatpush1.bf16.msra.mxu0 %v7625_v59  ;;  %v5071_v59 = vld [vmem:[#allocation5 + $0x28] sm:$0xff]  ;;  %7560 = vmatprep.subr.bf16.mxu1 %v7559_v30 }
 0x950   :  { %7628 = vmatprep.subr.bf16.mxu0 %v7627_v58  ;;  %v7561_v58 = vpack.c.bf16 %v5071_v59, %v5068_v51  ;;  %v5402_v51 = vld [vmem:[#allocation7 + $0x208] sm:$0xff]  ;;  %v5404_v59 = vld [vmem:[#allocation7 + $0x218] sm:$0xff] }
 0x952   :  { %7562 = vmatpush3.bf16.msra.mxu1 %v7561_v58  ;;  %v7655_v58 = vpack.c.bf16 %v5404_v59, %v5402_v51 }
 0x953   :  { %7630 = vmatpush1.bf16.msra.mxu0 %v7629_v6  ;;  %v5077_v6 = vld [vmem:[#allocation5 + $0x58] sm:$0xff]  ;;  %7564 = vmatprep.subr.bf16.mxu1 %v7563_v20 }
 0x954   :  { %7632 = vmatprep.subr.bf16.mxu0 %v7631_v25  ;;  %v7565_v25 = vpack.c.bf16 %v5077_v6, %v5074_v21 }
 0x956   :  { %7566 = vmatpush3.bf16.msra.mxu1 %v7565_v25 }
 0x957   :  { %7634 = vmatpush1.bf16.msra.mxu0 %v7633_v37  ;;  %v5083_v37 = vld [vmem:[#allocation5 + $0x88] sm:$0xff]  ;;  %7568 = vmatprep.subr.bf16.mxu1 %v7567_v0 }
 0x958   :  { %7636 = vmatprep.subr.bf16.mxu0 %v7635_v47  ;;  %v7569_v47 = vpack.c.bf16 %v5083_v37, %v5080_v10 }
 0x95a   :  { %7570 = vmatpush3.bf16.msra.mxu1 %v7569_v47 }
 0x95b   :  { %7638 = vmatpush1.bf16.msra.mxu0 %v7637_v17  ;;  %v5089_v17 = vld [vmem:[#allocation5 + $0xb8] sm:$0xff]  ;;  %7572 = vmatprep.subr.bf16.mxu1 %v7571_v32 }
 0x95c   :  { %7640 = vmatprep.subr.bf16.mxu0 %v7639_v29  ;;  %v7573_v29 = vpack.c.bf16 %v5089_v17, %v5086_v28 }
 0x95e   :  { %7574 = vmatpush3.bf16.msra.mxu1 %v7573_v29 }
 0x95f   :  { %7642 = vmatpush1.bf16.msra.mxu0 %v7641_v12  ;;  %v5095_v12 = vld [vmem:[#allocation5 + $0xe8] sm:$0xff]  ;;  %7576 = vmatprep.subr.bf16.mxu1 %v7575_v33 }
 0x960   :  { %7644 = vmatprep.subr.bf16.mxu0 %v7643_v61  ;;  %v7577_v61 = vpack.c.bf16 %v5095_v12, %v5092_v9 }
 0x962   :  { %7578 = vmatpush3.bf16.msra.mxu1 %v7577_v61 }
 0x963   :  { %7646 = vmatpush1.bf16.msra.mxu0 %v7645_v27  ;;  %v5101_v27 = vld [vmem:[#allocation5 + $0x118] sm:$0xff]  ;;  %7580 = vmatprep.subr.bf16.mxu1 %v7579_v1 }
 0x964   :  { %7648 = vmatprep.subr.bf16.mxu0 %v7647_v18  ;;  %v7581_v18 = vpack.c.bf16 %v5101_v27, %v5098_v22  ;;  %v5007_v22 = vrot.slane %v10071_v5, 7  ;;  %v5008_v5 = vrot.slane %v10077_v44, 7 }
 0x966   :  { %7582 = vmatpush3.bf16.msra.mxu1 %v7581_v18 }
 0x967   :  { %7650 = vmatpush1.bf16.msra.mxu0 %v7649_v34  ;;  %v7583_v34 = vpack.c.bf16 %v5155_v55, %v5152_v36 }
 0x968   :  { %7652 = vmatprep.subr.bf16.mxu0 %v7651_v13  ;;  %v7585_v13 = vpack.c.bf16 %v5107_v50, %v5104_v8 }
 0x969   :  { %7584 = vmatprep.subr.bf16.mxu1 %v7583_v34 }
 0x96a   :  { %7586 = vmatpush3.bf16.msra.mxu1 %v7585_v13 }
 0x96b   :  { %7654 = vmatpush1.bf16.msra.mxu0 %v7653_v31  ;;  %v5110_v31 = vld [vmem:[#allocation5 + $0x160] sm:$0xff]  ;;  %7588 = vmatprep.subr.bf16.mxu1 %v7587_v52 }
 0x96c   :  { %v7589_v30 = vpack.c.bf16 %v5113_v24, %v5110_v31  ;;  %7656 = vmatprep.subr.bf16.mxu0 %v7655_v58  ;;  %v10132_v58 = vld [vmem:[%s10195_s3 + $0x8] sm:$0x7] }
 0x96e   :  { %7590 = vmatpush3.bf16.msra.mxu1 %v7589_v30 }
 0x9c1   :  { %v4750_v16 = vpop.f32.mrb[32].mxu0  ;;  %v4821_v38 = vpop.f32.mrb[26].mxu1 }
 0x9c2   :  { %v4903_v20 = vrot.slane %v4821_v38, 1  ;;  %v4907_v21 = vrot.slane %v4821_v38, 2  ;;  %v4752_v6 = vpop.f32.mrb[33].mxu0  ;;  %v4823_v25 = vpop.f32.mrb[27].mxu1 }
 0x9c3   :  { %v4904_v56 = vrot.slane %v4823_v25, 1  ;;  %v4908_v15 = vrot.slane %v4823_v25, 2  ;;  %v4902_v12 = vrot.slane %v4752_v6, 1  ;;  %v4906_v61 = vrot.slane %v4752_v6, 2 }
 0x9c4   :  { %v4919_v0 = vadd.f32 %v4903_v20, %v10588_v46  ;;  %v4923_v10 = vadd.f32 %v4907_v21, %v10589_v4  ;;  %v10598_v20 = vld [vmem:[#allocation17_spill] sm:$0xff] }
 0x9c5   :  { %v4920_v47 = vadd.f32 %v4904_v56, %v10590_v41  ;;  %v4924_v2 = vadd.f32 %v4908_v15, %v10591_v11  ;;  %v4901_v41 = vrot.slane %v4750_v16, 1  ;;  %v4905_v11 = vrot.slane %v4750_v16, 2  ;;  %v10597_v16 = vld [vmem:[#allocation16_spill] sm:$0xff] }
 0x9c6   :  { %v5842_v37 = vmul.f32 -1.442695, %v4919_v0  ;;  %v5846_v26 = vmul.f32 -1.442695, %v4923_v10  ;;  %v4918_v55 = vadd.f32 %v4902_v12, %v10594_v40  ;;  %v4922_v3 = vadd.f32 %v4906_v61, %v10595_v42 }
 0x9c7   :  { %v5843_v32 = vmul.f32 -1.442695, %v4920_v47  ;;  %v5847_v28 = vmul.f32 -1.442695, %v4924_v2  ;;  %v4917_v39 = vadd.f32 %v4901_v41, %v10592_v45  ;;  %v4921_v27 = vadd.f32 %v4905_v11, %v10593_v63  ;;  %v5403_v47 = vld [vmem:[#allocation7 + $0x210] sm:$0xff] }
 0x9c8   :  { %8037 = vpow2.f32 %v5842_v37  ;;  %v5006_v45 = vrot.slane %v10073_v53, 7  ;;  %v5841_v23 = vmul.f32 -1.442695, %v4918_v55  ;;  %v5845_v40 = vmul.f32 -1.442695, %v4922_v3  ;;  %v5401_v37 = vld [vmem:[#allocation7 + $0x200] sm:$0xff] }
 0x9c9   :  { %8039 = vpow2.f32 %v5846_v26  ;;  %v5840_v8 = vmul.f32 -1.442695, %v4917_v39  ;;  %v5844_v63 = vmul.f32 -1.442695, %v4921_v27  ;;  %v10136_v38 = vrot.slane %v10132_v58, %v10597_v16  ;;  %v5405_v39 = vld [vmem:[#allocation7 + $0x220] sm:$0xff]  ;;  %v5410_v55 = vld [vmem:[#allocation7 + $0x248] sm:$0xff] }
 0x9ca   :  { %8041 = vpow2.f32 %v5843_v32  ;;  %v10140_v21 = vrot.slane %v10132_v58, %v10598_v20  ;;  %v5412_v3 = vld [vmem:[#allocation7 + $0x258] sm:$0xff] }
 0x9cb   :  { %8043 = vpow2.f32 %v5847_v28  ;;  %v5406_v28 = vld [vmem:[#allocation7 + $0x228] sm:$0xff] }
 0x9d2   :  { %v8038_v17 = vpop.eup %8037 }
 0x9d3   :  { %v8040_v29 = vpop.eup %8039  ;;  %v4951_v57 = vadd.f32 1.0, %v8038_v17  ;;  %v5408_v17 = vld [vmem:[#allocation7 + $0x238] sm:$0xff] }
 0x9d4   :  { %v4955_v62 = vadd.f32 1.0, %v8040_v29  ;;  %v8042_v46 = vpop.eup %8041 }
 0x9d5   :  { %8045 = vrcp.f32 %v4951_v57  ;;  %v8044_v4 = vpop.eup %8043  ;;  %v4952_v33 = vadd.f32 1.0, %v8042_v46 }
 0x9d6   :  { %8047 = vrcp.f32 %v4955_v62  ;;  %v4956_v9 = vadd.f32 1.0, %v8044_v4 }
 0x9d7   :  { %8049 = vrcp.f32 %v4952_v33 }
 0x9d8   :  { %8051 = vrcp.f32 %v4956_v9  ;;  %v7657_v9 = vpack.c.bf16 %v5403_v47, %v5401_v37 }
 0x9d9   :  { %8053 = vpow2.f32 %v5840_v8 }
 0x9da   :  { %8055 = vpow2.f32 %v5844_v63 }
 0x9db   :  { %8057 = vpow2.f32 %v5841_v23 }
 0x9dc   :  { %8059 = vpow2.f32 %v5845_v40  ;;  %v7663_v40 = vpack.c.bf16 %v5412_v3, %v5410_v55 }
 0x9df   :  { %v10103_v1 = vpop.eup %8045 }
 0x9e0   :  { %v10107_v18 = vpop.eup %8047  ;;  %v10110_v36 = vmul.f32 %v10103_v1, %v5005_v43  ;;  %v7659_v43 = vpack.c.bf16 %v5408_v17, %v5406_v28 }
 0x9e1   :  { %v10114_v34 = vmul.f32 %v10107_v18, %v5007_v22  ;;  %v10118_v50 = vpop.eup %8049  ;;  %v5407_v22 = vld [vmem:[#allocation7 + $0x230] sm:$0xff]  ;;  %v4999_v37 = vsub.f32 1.0, %v10107_v18 }
 0x9e2   :  { %v10121_v13 = vpop.eup %8051  ;;  %v10124_v60 = vmul.f32 %v10118_v50, %v5006_v45  ;;  %v7661_v23 = vpack.c.bf16 %v5407_v22, %v5405_v39 }
 0x9e3   :  { %v10127_v31 = vmul.f32 %v10121_v13, %v5008_v5  ;;  %v8054_v42 = vpop.eup %8053 }
 0x9e4   :  { %v8056_v53 = vpop.eup %8055  ;;  %v4949_v44 = vadd.f32 1.0, %v8054_v42  ;;  %v5409_v42 = vld [vmem:[#allocation7 + $0x240] sm:$0xff] }
 0x9e5   :  { %v8058_v52 = vpop.eup %8057  ;;  %v4953_v30 = vadd.f32 1.0, %v8056_v53  ;;  %v5411_v53 = vld [vmem:[#allocation7 + $0x250] sm:$0xff] }
 0x9e6   :  { %v8060_v24 = vpop.eup %8059  ;;  %v4950_v51 = vadd.f32 1.0, %v8058_v52  ;;  %8061 = vrcp.f32 %v4949_v44  ;;  %v5414_v52 = vld [vmem:[#allocation7 + $0x268] sm:$0xff]  ;;  %v5413_v44 = vld [vmem:[#allocation7 + $0x260] sm:$0xff] }
 0x9e7   :  { %v4954_v59 = vadd.f32 1.0, %v8060_v24  ;;  %8063 = vrcp.f32 %v4953_v30  ;;  %v5416_v24 = vld [vmem:[#allocation7 + $0x278] sm:$0xff]  ;;  %v5418_v30 = vld [vmem:[#allocation7 + $0x288] sm:$0xff] }
 0x9e8   :  { %8065 = vrcp.f32 %v4950_v51  ;;  %v8194_v51 = vmov 1983009808  }
 0x9e9   :  { %8067 = vrcp.f32 %v4954_v59  ;;  %v5035_v59 = vunpack.c.l.s4 %v8194_v51  ;;  %v5429_v51 = vld [vmem:[#allocation7 + $0x2e0] sm:$0xff] }
 0x9f0   :  { %v8062_v26 = vpop.eup %8061 }
 0x9f1   :  { %v8064_v29 = vpop.eup %8063 }
 0x9f2   :  { %v8066_v46 = vpop.eup %8065 }
 0x9f3   :  { %v8068_v41 = vpop.eup %8067 }
 0xa01   :  { %v4892_v6 = vpop.f32.mrb[34].mxu0  ;;  %v5245_v25 = vpop.f32.mrb[28].mxu1 }
 0xa02   :  { %v4973_v56 = vadd.f32 %v4892_v6, %v10596_v19  ;;  %v5246_v15 = vadd.f32 %v5245_v25, %v10136_v38  ;;  %v4894_v0 = vpop.f32.mrb[35].mxu0  ;;  %v5247_v10 = vpop.f32.mrb[29].mxu1 }
 0xa03   :  { %v4974_v2 = vadd.f32 %v4894_v0, %v10476_v14  ;;  %v5248_v32 = vadd.f32 %v5247_v10, %v10140_v21  ;;  %v4997_v0 = vsub.f32 1.0, %v10103_v1 }
 0xa04   :  { %v4977_v57 = vrot.slane %v4973_v56, 1  ;;  %v4979_v62 = vrot.slane %v4973_v56, 2  ;;  %v5331_v61 = vmax.f32 %v5246_v15, 0.0  ;;  %v5417_v56 = vld [vmem:[#allocation7 + $0x280] sm:$0xff]  ;;  %v5419_v15 = vld [vmem:[#allocation7 + $0x290] sm:$0xff] }
 0xa05   :  { %v4978_v4 = vrot.slane %v4974_v2, 1  ;;  %v4980_v33 = vrot.slane %v4974_v2, 2  ;;  %v5332_v19 = vmax.f32 %v5248_v32, 0.0  ;;  %v5036_v32 = vunpack.c.0.s8 %v5035_v59  ;;  %v5431_v59 = vld [vmem:[#allocation7 + $0x2f0] sm:$0xff] }
 0xa06   :  { %v4985_v11 = vmul.f32 %v8062_v26, %v4977_v57  ;;  %v4987_v12 = vmul.f32 %v8064_v29, %v4979_v62  ;;  %v4998_v26 = vsub.f32 1.0, %v10118_v50  ;;  %v7673_v28 = vpack.c.bf16 %v5419_v15, %v5417_v56  ;;  %v10599_v50 = vld [vmem:[#allocation15_spill] sm:$0xff]  ;;  %v5602_v56 = vld [vmem:[#allocation8 + $0x8] sm:$0xff] }
 0xa07   :  { %v4986_v14 = vmul.f32 %v8066_v46, %v4978_v4  ;;  %v4988_v27 = vmul.f32 %v8068_v41, %v4980_v33  ;;  %5509 = vmatprep.mubr.f32.mxu0 %v5332_v19  ;;  %v5000_v29 = vsub.f32 1.0, %v10121_v13  ;;  %v5603_v15 = vld [vmem:[#allocation8 + $0x10] sm:$0xff] }
 0xa08   :  { %v4989_v45 = vadd.f32 %v4985_v11, %v10393_v49  ;;  %v4991_v8 = vadd.f32 %v4987_v12, %v8687_v7  ;;  %5510 = vmatmul.mubr.f32.vlgmr.msra.gmra.mrb[36].mxu0 %v5331_v61  ;;  %v7665_v49 = vpack.c.bf16 %v5411_v53, %v5409_v42  ;;  %v7667_v7 = vpack.c.bf16 %v5416_v24, %v5414_v52  ;;  %v5423_v42 = vld [vmem:[#allocation7 + $0x2b0] sm:$0xff]  ;;  %v5426_v52 = vld [vmem:[#allocation7 + $0x2c8] sm:$0xff]  ;;  %v5428_v24 = vld [vmem:[#allocation7 + $0x2d8] sm:$0xff] }
 0xa09   :  { %v4990_v5 = vadd.f32 %v4986_v14, %v10434_v35  ;;  %v4992_v63 = vadd.f32 %v4988_v27, %v10435_v54  ;;  %7658 = vmatpush1.bf16.msra.mxu0 %v7657_v9  ;;  %v5415_v35 = vld [vmem:[#allocation7 + $0x270] sm:$0xff]  ;;  %v5420_v54 = vld [vmem:[#allocation7 + $0x298] sm:$0xff]  ;;  %v5039_v9 = vsub.s32 %v5036_v32, %v10599_v50 }
 0xa0a   :  { %8069 = vtanh.f32 %v4989_v45  ;;  %7660 = vmatprep.subr.bf16.mxu0 %v7659_v43  ;;  %v7669_v6 = vpack.c.bf16 %v5415_v35, %v5413_v44  ;;  %v7671_v25 = vpack.c.bf16 %v5420_v54, %v5418_v30  ;;  %v5427_v44 = vld [vmem:[#allocation7 + $0x2d0] sm:$0xff]  ;;  %v5430_v30 = vld [vmem:[#allocation7 + $0x2e8] sm:$0xff] }
 0xa0b   :  { %8071 = vtanh.f32 %v4991_v8  ;;  %v8085_v8 = vld [vmem:[#allocation2 + $0x8] sm:$0xff]  ;;  %v5607_v32 = vld [vmem:[#allocation8 + $0x30] sm:$0xff] }
 0xa0c   :  { %8073 = vtanh.f32 %v4990_v5  ;;  %v5422_v5 = vld [vmem:[#allocation7 + $0x2a8] sm:$0xff] }
 0xa0d   :  { %8075 = vtanh.f32 %v4992_v63  ;;  %7662 = vmatpush1.bf16.msra.mxu0 %v7661_v23  ;;  %v5424_v63 = vld [vmem:[#allocation7 + $0x2b8] sm:$0xff] }
 0xa0e   :  { %7664 = vmatprep.subr.bf16.mxu0 %v7663_v40  ;;  %v7675_v23 = vpack.c.bf16 %v5424_v63, %v5422_v5  ;;  %v5421_v40 = vld [vmem:[#allocation7 + $0x2a0] sm:$0xff] }
 0xa0f   :  { %v7677_v53 = vpack.c.bf16 %v5423_v42, %v5421_v40 }
 0xa11   :  { %7666 = vmatpush1.bf16.msra.mxu0 %v7665_v49  ;;  %v7679_v49 = vpack.c.bf16 %v5428_v24, %v5426_v52 }
 0xa12   :  { %7668 = vmatprep.subr.bf16.mxu0 %v7667_v7  ;;  %v5425_v7 = vld [vmem:[#allocation7 + $0x2c0] sm:$0xff] }
 0xa13   :  { %v7681_v35 = vpack.c.bf16 %v5427_v44, %v5425_v7  ;;  %v10602_v7 = vlaneseq }
 0xa14   :  { %v8070_v10 = vpop.eup %8069 }
 0xa15   :  { %v8072_v47 = vpop.eup %8071  ;;  %v5001_v2 = vmul.f32 %v8070_v10, %v4997_v0  ;;  %7670 = vmatpush1.bf16.msra.mxu0 %v7669_v6  ;;  %v7685_v6 = vpack.c.bf16 %v5431_v59, %v5429_v51  ;;  %v5604_v10 = vld [vmem:[#allocation8 + $0x18] sm:$0xff]  ;;  %v5700_v44 = vand.u32 127, %v10602_v7 }
 0xa16   :  { %v8074_v17 = vpop.eup %8073  ;;  %v5003_v57 = vmul.f32 %v8072_v47, %v4999_v37  ;;  %7672 = vmatprep.subr.bf16.mxu0 %v7671_v25  ;;  %v5601_v25 = vld [vmem:[#allocation8] sm:$0xff]  ;;  %v7691_v37 = vpack.c.bf16 %v5604_v10, %v5603_v15  ;;  %v8195_v15 = vmov 0  }
 0xa17   :  { %v8076_v62 = vpop.eup %8075  ;;  %v5017_v46 = vadd.f32 %v10110_v36, %v5001_v2  ;;  %v5002_v4 = vmul.f32 %v8074_v17, %v4998_v26  ;;  %v7687_v0 = vpack.c.bf16 %v5602_v56, %v5601_v25  ;;  %v5605_v47 = vld [vmem:[#allocation8 + $0x20] sm:$0xff]  ;;  %v5606_v26 = vld [vmem:[#allocation8 + $0x28] sm:$0xff]  ;;  %vm5722_vm10 = vcmp.eq.s32.totalorder %v5700_v44, 3  ;;  %7756 = vset.pattern.permute.xlu1 %v8195_v15  ;;  %7755 = vset.pattern.permute.xlu0 %v8195_v15 }
 0xa18   :  { %v5019_v1 = vadd.f32 %v10114_v34, %v5003_v57  ;;  %v5004_v33 = vmul.f32 %v8076_v62, %v5000_v29  ;;  %v7695_v2 = vpack.c.bf16 %v5606_v26, %v5605_v47  ;;  %v5609_v29 = vld [vmem:[#allocation8 + $0x40] sm:$0xff]  ;;  %v5610_v57 = vld [vmem:[#allocation8 + $0x48] sm:$0xff]  ;;  %vm5701_vm11 = vcmp.lt.s32.totalorder %v5700_v44, 3 }
 0xa19   :  { %v5025_v18 = vrot.slane %v5017_v46, 1  ;;  %v5018_v19 = vadd.f32 %v10124_v60, %v5002_v4  ;;  %7674 = vmatpush1.bf16.msra.mxu0 %v7673_v28  ;;  %7688 = vmatprep.subr.bf16.mxu1 %v7687_v0  ;;  %v5608_v28 = vld [vmem:[#allocation8 + $0x38] sm:$0xff]  ;;  %v7703_v62 = vpack.c.bf16 %v5610_v57, %v5609_v29 }
 0xa1a   :  { %v5020_v41 = vadd.f32 %v10127_v31, %v5004_v33  ;;  %7676 = vmatprep.subr.bf16.mxu0 %v7675_v23  ;;  %v7699_v17 = vpack.c.bf16 %v5608_v28, %v5607_v32  ;;  %v5612_v4 = vld [vmem:[#allocation8 + $0x58] sm:$0xff] }
 0xa1b   :  { %v5026_v11 = vsel %vm2830_vm9, %v5019_v1, %v5025_v18  ;;  %v5027_v13 = vrot.slane %v5018_v19, 1  ;;  %v5033_v12 = vcombine.high %v5017_v46, %v5018_v19  ;;  %v5611_v46 = vld [vmem:[#allocation8 + $0x50] sm:$0xff] }
 0xa1c   :  { %5031 = vst [vmem:[#allocation2 + $0x10] sm:$0xc0] %v5026_v11  ;;  %v5042_v61 = vcombine.high %v5019_v1, %v5020_v41  ;;  %v7707_v1 = vpack.c.bf16 %v5612_v4, %v5611_v46 }
 0xa1d   :  { %v5028_v36 = vsel %vm2830_vm9, %v5020_v41, %v5027_v13  ;;  %v5040_v43 = vrot.slane %v5033_v12, %v5039_v9  ;;  %7678 = vmatpush1.bf16.msra.mxu0 %v7677_v53  ;;  %v10600_v13 = vsub.s32 2, %v10599_v50  ;;  %v5613_v50 = vld [vmem:[#allocation8 + $0x60] sm:$0xff] }
 0xa1e   :  { %5032 = vst [vmem:[#allocation2 + $0x18] sm:$0xc0] %v5028_v36  ;;  %v5049_v34 = vrot.slane %v5042_v61, %v5039_v9  ;;  %7680 = vmatprep.subr.bf16.mxu0 %v7679_v49 }
 0xa1f   :  { %v5041_v39 = vcombine.high %v5040_v43, %v5040_v43  ;;  %v5175_v12 = vrot.slane %v10132_v58, %v10600_v13  ;;  %v5614_v58 = vld [vmem:[#allocation8 + $0x68] sm:$0xff] }
 0xa20   :  { %v5050_v22 = vcombine.high %v5049_v34, %v5049_v34 }
 0xa21   :  { %v5051_v14 = vrot.slane %v5041_v39, 1  ;;  %7682 = vmatpush1.bf16.msra.mxu0 %v7681_v35  ;;  %v5848_v35 = vld [vmem:[%s10195_s3 + $0xd] ss:$0 sm:$0xff] }
 0xa23   :  { %v5056_v60 = vsel %vm1195_vm6, %v5050_v22, %v5051_v14  ;;  %v5064_v45 = vld [vmem:[#allocation2 + $0x10] sm:$0xff] }
 0xa24   :  { %v5057_v27 = vsel %vm1730_vm7, %v5050_v22, %v5056_v60 }
 0xa25   :  { %v5058_v31 = vsel %vm2278_vm8, %v5050_v22, %v5057_v27  ;;  %v5065_v55 = vld [vmem:[#allocation2 + $0x18] sm:$0xff] }
 0xa26   :  { %v5059_v3 = vsel %vm2830_vm9, %v5050_v22, %v5058_v31  ;;  %5249 = vmatprep.mubr.f32.mxu1 %v5065_v55  ;;  %v10601_v22 = vmov 0.0   ;;  %v7711_v31 = vpack.c.bf16 %v5614_v58, %v5613_v50 }
 0xa27   :  { %5061 = vst [vmem:[%s10200_s8] sm:$0xf] %v5059_v3  ;;  %5250 = vmatmul.mubr.f32.gmra.mrb[30].mxu1 %v5064_v45  ;;  %v5616_v3 = vld [vmem:[#allocation8 + $0x78] sm:$0xff] }
 0xa28   :  { %5320 = vmatprep.mubr.f32.mxu1 %v8085_v8  ;;  %v5433_v8 = vld [vmem:[%s10195_s3 + $0xb] sm:$0x3] }
 0xa29   :  { %v5438_v5 = vrot.slane %v5433_v8, %v10597_v16  ;;  %v5849_v16 = vsel %vm5722_vm10, 1.0, %v10601_v22  ;;  %v5442_v29 = vrot.slane %v5433_v8, %v10598_v20 }
 0xa2b   :  { %5321 = vmatmul.mubr.f32.vlgmr.msra.gmra.mrb[32].mxu1 %v10093_v48  ;;  %v5432_v48 = vld [vmem:[#allocation7 + $0x2f8] sm:$0xff] }
 0xa2c   :  { %5325 = vmatprep.mubr.f32.mxu1 %v5065_v55  ;;  %v7683_v54 = vpack.c.bf16 %v5432_v48, %v5430_v30  ;;  %7690 = vmatpush3.bf16.msra.mxu1 %v7687_v0  ;;  %v5615_v55 = vld [vmem:[#allocation8 + $0x70] sm:$0xff] }
 0xa2d   :  { %7692 = vmatprep.subr.bf16.mxu1 %v7691_v37 }
 0xa2e   :  { %7684 = vmatprep.subr.bf16.mxu0 %v7683_v54 }
 0xa2f   :  { %5326 = vmatmul.mubr.f32.gmra.mrb[34].mxu1 %v5064_v45  ;;  %7686 = vmatpush1.bf16.msra.mxu0 %v7685_v6  ;;  %v7715_v45 = vpack.c.bf16 %v5616_v3, %v5615_v55 }
 0xa30   :  { %7694 = vmatpush3.bf16.msra.mxu1 %v7691_v37 }
 0xa31   :  { %7696 = vmatprep.subr.bf16.mxu1 %v7695_v2 }
 0xa34   :  { %7698 = vmatpush3.bf16.msra.mxu1 %v7695_v2 }
 0xa35   :  { %7700 = vmatprep.subr.bf16.mxu1 %v7699_v17 }
 0xa38   :  { %7702 = vmatpush3.bf16.msra.mxu1 %v7699_v17 }
 0xa39   :  { %7704 = vmatprep.subr.bf16.mxu1 %v7703_v62 }
 0xa3c   :  { %7706 = vmatpush3.bf16.msra.mxu1 %v7703_v62 }
 0xa3d   :  { %7708 = vmatprep.subr.bf16.mxu1 %v7707_v1 }
 0xa40   :  { %7710 = vmatpush3.bf16.msra.mxu1 %v7707_v1 }
 0xa41   :  { %7712 = vmatprep.subr.bf16.mxu1 %v7711_v31 }
 0xa44   :  { %7714 = vmatpush3.bf16.msra.mxu1 %v7711_v31 }
 0xa45   :  { %7716 = vmatprep.subr.bf16.mxu1 %v7715_v45 }
 0xa48   :  { %7718 = vmatpush3.bf16.msra.mxu1 %v7715_v45 }
 0xafa   :  { %v5251_v33 = vpop.f32.mrb[30].mxu1 }
 0xafb   :  { %v5252_v18 = vadd.f32 %v5251_v33, %v10136_v38  ;;  %v5253_v19 = vpop.f32.mrb[31].mxu1 }
 0xafc   :  { %v5254_v9 = vadd.f32 %v5253_v19, %v10140_v21 }
 0xafd   :  { %v5334_v61 = vmax.f32 %v5252_v18, 0.0 }
 0xafe   :  { %v5335_v41 = vmax.f32 %v5254_v9, 0.0  ;;  %v5882_v11 = vpop.f32.mrb[32].mxu1 }
 0xaff   :  { %v5883_v36 = vpop.f32.mrb[33].mxu1 }
 0xb00   :  { %v5884_v43 = vadd.f32 %v5883_v36, %v5882_v11  ;;  %5515 = vmatprep.mubr.f32.mxu0 %v5335_v41 }
 0xb01   :  { %5516 = vmatmul.mubr.f32.gmra.mrb[38].mxu0 %v5334_v61 }
 0xb02   :  { %v5323_v34 = vadd.f32 %v5884_v43, %v5175_v12  ;;  %v5885_v39 = vpop.f32.mrb[34].mxu1  ;;  %5586 = vmatprep.mubr.f32.mxu0 %v10601_v22 }
 0xb03   :  { %v5886_v14 = vpop.f32.mrb[35].mxu1 }
 0xb04   :  { %v5333_v38 = vmax.f32 %v5323_v34, 0.0  ;;  %v5887_v60 = vadd.f32 %v5886_v14, %v5885_v39 }
 0xb06   :  { %v5328_v27 = vadd.f32 %v5887_v60, %v5175_v12  ;;  %5587 = vmatmul.mubr.f32.vlgmr.msra.gmra.mrb[36].mxu0 %v5333_v38 }
 0xb07   :  { %5592 = vmatprep.mubr.f32.mxu0 %v10601_v22 }
 0xb08   :  { %v5336_v21 = vmax.f32 %v5328_v27, 0.0 }
 0xb0a   :  { %5593 = vmatmul.mubr.f32.gmra.mrb[38].mxu0 %v5336_v21 }
 0xbd9   :  { %v5588_v63 = vpop.f32.mrb[36].mxu0 }
 0xbda   :  { %v7723_v23 = vadd.f32 %v5588_v63, %v5438_v5  ;;  %v5590_v40 = vpop.f32.mrb[37].mxu0 }
 0xbdb   :  { %v7724_v46 = vadd.f32 %v5590_v40, %v5442_v29 }
 0xbdc   :  { %v5599_v42 = vmax.f32 %v7723_v23, 0.0 }
 0xbdd   :  { %v5594_v53 = vpop.f32.mrb[38].mxu0 }
 0xbde   :  { %v7725_v52 = vadd.f32 %v5594_v53, %v5438_v5  ;;  %v5596_v24 = vpop.f32.mrb[39].mxu0  ;;  %5938 = vmatprep.mubr.f32.mxu1 %v5599_v42 }
 0xbdf   :  { %v7726_v62 = vadd.f32 %v5596_v24, %v5442_v29 }
 0xbe0   :  { %v5600_v49 = vmax.f32 %v7725_v52, 0.0 }
 0xbe2   :  { %5939 = vmatmul.mubr.f32.vlgmr.msra.gmra.mrb[36].mxu1 %v5600_v49 }
 0xcb5   :  { %v5940_v30 = vpop.f32.mrb[36].mxu1 }
 0xcb6   :  { %v5690_v48 = vpop.f32.mrb[37].mxu1  ;;  %v5696_v51 = vadd.f32 %v5940_v30, %v5848_v35 }
 0xcb7   :  { %v5691_v54 = vadd.f32 %v5848_v35, %v5690_v48 }
 0xcb8   :  { %v5703_v25 = vsel %vm5701_vm11, %v5696_v51, -1e+30  ;;  %v5726_v56 = vmul.f32 %v5849_v16, %v5696_v51 }
 0xcb9   :  { %v5702_v59 = vsel %vm5701_vm11, %v5691_v54, -1e+30  ;;  %v5725_v6 = vmul.f32 %v5849_v16, %v5691_v54 }
 0xcba   :  { %5704 = vmax.xlane.f32.xlu0 %v5702_v59 }
 0xcbb   :  { %5727 = vadd.xlane.f32.xlu1 %v5725_v6 }
 0xcbe   :  { %5706 = vmax.xlane.f32.xlu0 %v5703_v25 }
 0xcbf   :  { %5729 = vadd.xlane.f32.xlu1 %v5726_v56 }
 0xd47   :  { %v5705_v0 = vpop.xlane.xlu0 %5704 }
 0xd48   :  { %v5708_v10 = vsub.f32 %v5702_v59, %v5705_v0  ;;  %v5728_v17 = vpop.xlane.xlu1 %5727 }
 0xd49   :  { %v5731_v1 = vmul.f32 %v7724_v46, %v5728_v17 }
 0xd4a   :  { %v5710_v37 = vmul.f32 1.442695, %v5708_v10 }
 0xd4b   :  { %v5707_v47 = vpop.xlane.xlu0 %5706 }
 0xd4c   :  { %8077 = vpow2.f32 %v5710_v37  ;;  %v5709_v26 = vsub.f32 %v5703_v25, %v5707_v47  ;;  %v5730_v57 = vpop.xlane.xlu1 %5729 }
 0xd4d   :  { %v5732_v4 = vmul.f32 %v7726_v62, %v5730_v57 }
 0xd4e   :  { %v5712_v2 = vmul.f32 1.442695, %v5709_v26 }
 0xd50   :  { %8079 = vpow2.f32 %v5712_v2 }
 0xd56   :  { %v8078_v32 = vpop.eup %8077 }
 0xd57   :  { %5714 = vadd.xlane.f32.xlu0 %v8078_v32 }
 0xd5a   :  { %v8080_v28 = vpop.eup %8079 }
 0xd5b   :  { %5716 = vadd.xlane.f32.xlu1 %v8080_v28 }
 0xd6c   :  { %5740 = vperm.xlu1 %7756, %v5732_v4  }
 0xd6d   :  { %5735 = vperm.xlu0 %7755, %v5731_v1  }
 0xde4   :  { %v5715_v33 = vpop.xlane.xlu0 %5714 }
 0xde5   :  { %8081 = vrcp.f32 %v5715_v33 }
 0xde8   :  { %v5717_v18 = vpop.xlane.xlu1 %5716 }
 0xde9   :  { %8083 = vrcp.f32 %v5717_v18 }
 0xdec   :  { %v5736_v19 = vpop.permute.xlu0 %5735  ;;  %v5741_v13 = vpop.permute.xlu1 %5740 }
 0xded   :  { %v5743_v11 = vmul.f32 %v5849_v16, %v5736_v19  ;;  %v5744_v20 = vmul.f32 %v5849_v16, %v5741_v13 }
 0xdef   :  { %v8082_v9 = vpop.eup %8081 }
 0xdf0   :  { %v5720_v41 = vmul.f32 %v8082_v9, %v8078_v32 }
 0xdf2   :  { %v5745_v12 = vadd.f32 %v5743_v11, %v5720_v41 }
 0xdf3   :  { %v8084_v61 = vpop.eup %8083 }
 0xdf4   :  { %v5721_v36 = vmul.f32 %v8084_v61, %v8080_v28  ;;  %5747 = vst [vmem:[%s10199_s7] sm:$0xff] %v5745_v12 }
 0xdf6   :  { %v5746_v43 = vadd.f32 %v5744_v20, %v5721_v36 }
 0xdf8   :  { %5748 = vst [vmem:[%s10199_s7 + $0x8] sm:$0xff] %v5746_v43 }
 0xdf9   :  { %5757 = vsyncpa [#allocation4], 1 }
 0xdfa   :  { %5758 = vsyncpa [#allocation6], 1 }
 0xdfb   :  { %5759 = vsyncpa [#allocation9], 1 }

</bundles_post_ra>
